<compile_context>
chip_gen: v7x
topology: tpu7x:2x2x1
jax: 0.10.0
libtpu: 0.0.40
codegen_flags: <defaults>
</compile_context>

<pallas_src>
import jax
import jax.numpy as jnp
from jax.experimental import pallas as pl
from jax.experimental.pallas import tpu as pltpu


def _feat_lstm_kernel(xg_ref, whh1_ref, w2_ref, b2_ref, out_ref,
                      h1_ref, c1_ref, h2_ref, c2_ref):
    # Re-initialize state at the first time chunk of every batch chunk.
    @pl.when(pl.program_id(1) == 0)
    def _():
        h1_ref[...] = jnp.zeros_like(h1_ref)
        c1_ref[...] = jnp.zeros_like(c1_ref)
        h2_ref[...] = jnp.zeros_like(h2_ref)
        c2_ref[...] = jnp.zeros_like(c2_ref)

    H = h1_ref.shape[-1]
    O = h2_ref.shape[-1]
    Tc = xg_ref.shape[1]

    # Weights stay VMEM-resident for the whole grid (constant index maps).
    whh1 = whh1_ref[...]          # (H, 4H)    bf16
    w2 = w2_ref[...]              # (H+O, 4O)  bf16, fused [W_ih2; W_hh2]
    b2 = b2_ref[...]              # (Bc, 4O)   f32, pre-broadcast

    h1 = h1_ref[...]
    c1 = c1_ref[...]
    h2 = h2_ref[...]
    c2 = c2_ref[...]

    # Static, fully unrolled inner time loop (Tc is a small compile-time int).
    for tt in range(Tc):
        # ----- layer 1 (recurrent part only; xW1 + b1 precomputed in wrapper)
        g1 = xg_ref[:, tt, :] + jnp.dot(
            h1.astype(jnp.bfloat16), whh1, preferred_element_type=jnp.float32)
        i1 = jax.nn.sigmoid(g1[:, 0 * H:1 * H])
        f1 = jax.nn.sigmoid(g1[:, 1 * H:2 * H])
        gg1 = jnp.tanh(g1[:, 2 * H:3 * H])
        o1 = jax.nn.sigmoid(g1[:, 3 * H:4 * H])
        c1 = f1 * c1 + i1 * gg1
        h1 = o1 * jnp.tanh(c1)

        # ----- layer 2: fused single K = H+O matmul
        hcat = jnp.concatenate([h1, h2], axis=-1).astype(jnp.bfloat16)
        g2 = jnp.dot(hcat, w2, preferred_element_type=jnp.float32) + b2
        i2 = jax.nn.sigmoid(g2[:, 0 * O:1 * O])
        f2 = jax.nn.sigmoid(g2[:, 1 * O:2 * O])
        gg2 = jnp.tanh(g2[:, 2 * O:3 * O])
        o2 = jax.nn.sigmoid(g2[:, 3 * O:4 * O])
        c2 = f2 * c2 + i2 * gg2
        h2 = o2 * jnp.tanh(c2)

        out_ref[:, tt, :] = h2.astype(out_ref.dtype)

    h1_ref[...] = h1
    c1_ref[...] = c1
    h2_ref[...] = h2
    c2_ref[...] = c2


def feat_lstm(feats: jax.Array, params: dict,
              time_chunk: int | None = None,
              batch_chunk: int | None = None) -> jax.Array:
    """feats: [B, T, D_in]. params in PyTorch LSTMCell layout.
    Returns stream [B, T, out_size] float32."""
    B, T, D_in = feats.shape
    H = params["w_hh1"].shape[1]
    O = params["w_hh2"].shape[1]

    # --- chunk sizes (Tc must be a multiple of 8 or equal T; both must divide)
    if time_chunk is None:
        time_chunk = T
        for cand in (32, 24, 16, 8):
            if T % cand == 0:
                time_chunk = cand
                break
    if batch_chunk is None:
        batch_chunk = 8 if (B > 8 and B % 8 == 0) else B
    assert T % time_chunk == 0 and (time_chunk % 8 == 0 or time_chunk == T)
    assert B % batch_chunk == 0
    Tc, Bc = time_chunk, batch_chunk

    # --- layer-1 input projection hoisted out of the recurrence (one matmul).
    wih1 = params["w_ih1"].T.astype(jnp.float32)                       # [D_in, 4H]
    b1 = (params["b_ih1"] + params["b_hh1"]).astype(jnp.float32)       # [4H]
    xg = jnp.einsum("btd,dg->btg", feats.astype(jnp.float32), wih1) + b1   # [B,T,4H]

    # --- recurrent weights: bf16 MXU operands, f32 accumulate in-kernel.
    whh1 = params["w_hh1"].T.astype(jnp.bfloat16)                      # [H, 4H]
    w2 = jnp.concatenate([params["w_ih2"].T, params["w_hh2"].T],
                         axis=0).astype(jnp.bfloat16)                  # [H+O, 4O]
    b2 = jnp.broadcast_to(
        (params["b_ih2"] + params["b_hh2"]).astype(jnp.float32)[None, :],
        (B, 4 * O))                                                    # [B, 4O]

    grid = (B // Bc, T // Tc)

    stream = pl.pallas_call(
        _feat_lstm_kernel,
        out_shape=jax.ShapeDtypeStruct((B, T, O), jnp.float32),
        grid=grid,
        in_specs=[
            pl.BlockSpec((Bc, Tc, 4 * H), lambda b, c: (b, c, 0)),     # precomputed xW1+b1
            pl.BlockSpec((H, 4 * H), lambda b, c: (0, 0)),             # whh1 (resident)
            pl.BlockSpec((H + O, 4 * O), lambda b, c: (0, 0)),         # fused layer-2 weight
            pl.BlockSpec((Bc, 4 * O), lambda b, c: (b, 0)),            # pre-broadcast b2
        ],
        out_specs=pl.BlockSpec((Bc, Tc, O), lambda b, c: (b, c, 0)),
        scratch_shapes=[
            pltpu.VMEM((Bc, H), jnp.float32),   # h1
            pltpu.VMEM((Bc, H), jnp.float32),   # c1
            pltpu.VMEM((Bc, O), jnp.float32),   # h2
            pltpu.VMEM((Bc, O), jnp.float32),   # c2
        ],
        compiler_params=pltpu.CompilerParams(
            dimension_semantics=("parallel", "arbitrary")),
    )(xg, whh1, w2, b2)

    return stream


# ----------------------------- reference + test -----------------------------

def _lstm_cell_ref(x, h, c, w_ih, w_hh, b_ih, b_hh):
    g = x @ w_ih.T + b_ih + h @ w_hh.T + b_hh
    n = h.shape[-1]
    i = jax.nn.sigmoid(g[:, 0 * n:1 * n])
    f = jax.nn.sigmoid(g[:, 1 * n:2 * n])
    gg = jnp.tanh(g[:, 2 * n:3 * n])
    o = jax.nn.sigmoid(g[:, 3 * n:4 * n])
    c_new = f * c + i * gg
    h_new = o * jnp.tanh(c_new)
    return h_new, c_new


def _reference(feats, p):
    B, T, _ = feats.shape
    H = p["w_hh1"].shape[1]
    O = p["w_hh2"].shape[1]
    h1 = jnp.zeros((B, H), jnp.float32)
    c1 = jnp.zeros((B, H), jnp.float32)
    h2 = jnp.zeros((B, O), jnp.float32)
    c2 = jnp.zeros((B, O), jnp.float32)
    outs = []
    for t in range(T):
        h1, c1 = _lstm_cell_ref(feats[:, t, :], h1, c1,
                                p["w_ih1"], p["w_hh1"], p["b_ih1"], p["b_hh1"])
        h2, c2 = _lstm_cell_ref(h1, h2, c2,
                                p["w_ih2"], p["w_hh2"], p["b_ih2"], p["b_hh2"])
        outs.append(h2[:, None, :])
    return jnp.concatenate(outs, axis=1)


if __name__ == "__main__":
    key = jax.random.PRNGKey(0)
    # Small, TPU-tile-friendly shapes consistent with the module
    # (module default: input 1024 -> hidden 128 -> out 128).
    B, T = 16, 16
    D_IN, HID, OUT = 256, 128, 128

    ks = jax.random.split(key, 9)
    k1 = 1.0 / jnp.sqrt(HID)
    k2 = 1.0 / jnp.sqrt(OUT)
    params = {
        "w_ih1": jax.random.uniform(ks[0], (4 * HID, D_IN), jnp.float32, -k1, k1),
        "w_hh1": jax.random.uniform(ks[1], (4 * HID, HID), jnp.float32, -k1, k1),
        "b_ih1": jax.random.uniform(ks[2], (4 * HID,), jnp.float32, -k1, k1),
        "b_hh1": jax.random.uniform(ks[3], (4 * HID,), jnp.float32, -k1, k1),
        "w_ih2": jax.random.uniform(ks[4], (4 * OUT, HID), jnp.float32, -k2, k2),
        "w_hh2": jax.random.uniform(ks[5], (4 * OUT, OUT), jnp.float32, -k2, k2),
        "b_ih2": jax.random.uniform(ks[6], (4 * OUT,), jnp.float32, -k2, k2),
        "b_hh2": jax.random.uniform(ks[7], (4 * OUT,), jnp.float32, -k2, k2),
    }
    feats = jax.random.normal(ks[8], (B, T, D_IN), jnp.float32)

    # Use Tc=8 / Bc=8 so the test exercises both the unrolled inner time loop,
    # state carry across grid time-chunks, and the batch-parallel axis.
    stream = feat_lstm(feats, params, time_chunk=8, batch_chunk=8)
    jax.block_until_ready(stream)

    ref = _reference(feats, params)
    assert stream.shape == (B, T, OUT), stream.shape
    # Tolerance accounts for bf16 MXU operands (f32 accumulate) in the kernel.
    assert jnp.allclose(stream, ref, atol=2e-2, rtol=2e-2), (
        float(jnp.max(jnp.abs(stream - ref))))

    print("KERNEL_OK")
</pallas_src>

<mosaic_0001>
module attributes {stable_mosaic.version = 11 : i64} {
  func.func @_feat_lstm_kernel(%arg0: i32, %arg1: i32, %arg2: memref<8x8x512xf32, #tpu.memory_space<vmem>>, %arg3: memref<128x512xbf16, #tpu.memory_space<vmem>>, %arg4: memref<256x512xbf16, #tpu.memory_space<vmem>>, %arg5: memref<8x512xf32, #tpu.memory_space<vmem>>, %arg6: memref<8x8x128xf32, #tpu.memory_space<vmem>>, %arg7: memref<8x128xf32, #tpu.memory_space<vmem>>, %arg8: memref<8x128xf32, #tpu.memory_space<vmem>>, %arg9: memref<8x128xf32, #tpu.memory_space<vmem>>, %arg10: memref<8x128xf32, #tpu.memory_space<vmem>>) attributes {dimension_semantics = [#tpu.dimension_semantics<parallel>, #tpu.dimension_semantics<arbitrary>], iteration_bounds = array<i64: 2, 2>, scalar_prefetch = 0 : i64, scratch_operands = 4 : i64, tpu.core_type = #tpu.core_type<tc>, window_params = [{transform_indices = @transform_0, window_bounds = array<i64: 8, 8, 512>}, {pipeline_mode = #tpu.pipeline_mode<synchronous>, transform_indices = @transform_1, window_bounds = array<i64: 128, 512>}, {pipeline_mode = #tpu.pipeline_mode<synchronous>, transform_indices = @transform_2, window_bounds = array<i64: 256, 512>}, {transform_indices = @transform_3, window_bounds = array<i64: 8, 512>}, {transform_indices = @transform_4, window_bounds = array<i64: 8, 8, 128>}]} {
    %c0_i32 = arith.constant 0 : i32
    %0 = arith.cmpi eq, %arg1, %c0_i32 : i32
    %1 = arith.extui %0 : i1 to i32
    %c0_i32_0 = arith.constant 0 : i32
    %2 = arith.cmpi ne, %1, %c0_i32_0 : i32
    scf.if %2 {
      %cst_126 = arith.constant 0.000000e+00 : f32
      %510 = vector.broadcast %cst_126 : f32 to vector<8x128xf32>
      %c0_127 = arith.constant 0 : index
      %c0_128 = arith.constant 0 : index
      %511 = vector.load %arg7[%c0_127, %c0_128] : memref<8x128xf32, #tpu.memory_space<vmem>>, vector<8x128xf32>
      tpu.vector_store %arg7[%c0_127, %c0_128], %510 {strides = array<i32>} : memref<8x128xf32, #tpu.memory_space<vmem>>, vector<8x128xf32>,
      %cst_129 = arith.constant 0.000000e+00 : f32
      %512 = vector.broadcast %cst_129 : f32 to vector<8x128xf32>
      %c0_130 = arith.constant 0 : index
      %c0_131 = arith.constant 0 : index
      %513 = vector.load %arg8[%c0_130, %c0_131] : memref<8x128xf32, #tpu.memory_space<vmem>>, vector<8x128xf32>
      tpu.vector_store %arg8[%c0_130, %c0_131], %512 {strides = array<i32>} : memref<8x128xf32, #tpu.memory_space<vmem>>, vector<8x128xf32>,
      %cst_132 = arith.constant 0.000000e+00 : f32
      %514 = vector.broadcast %cst_132 : f32 to vector<8x128xf32>
      %c0_133 = arith.constant 0 : index
      %c0_134 = arith.constant 0 : index
      %515 = vector.load %arg9[%c0_133, %c0_134] : memref<8x128xf32, #tpu.memory_space<vmem>>, vector<8x128xf32>
      tpu.vector_store %arg9[%c0_133, %c0_134], %514 {strides = array<i32>} : memref<8x128xf32, #tpu.memory_space<vmem>>, vector<8x128xf32>,
      %cst_135 = arith.constant 0.000000e+00 : f32
      %516 = vector.broadcast %cst_135 : f32 to vector<8x128xf32>
      %c0_136 = arith.constant 0 : index
      %c0_137 = arith.constant 0 : index
      %517 = vector.load %arg10[%c0_136, %c0_137] : memref<8x128xf32, #tpu.memory_space<vmem>>, vector<8x128xf32>
      tpu.vector_store %arg10[%c0_136, %c0_137], %516 {strides = array<i32>} : memref<8x128xf32, #tpu.memory_space<vmem>>, vector<8x128xf32>,
    } else {
    }
    %c0 = arith.constant 0 : index
    %c0_1 = arith.constant 0 : index
    %3 = vector.load %arg3[%c0, %c0_1] : memref<128x512xbf16, #tpu.memory_space<vmem>>, vector<128x512xbf16>
    %c0_2 = arith.constant 0 : index
    %c0_3 = arith.constant 0 : index
    %4 = vector.load %arg4[%c0_2, %c0_3] : memref<256x512xbf16, #tpu.memory_space<vmem>>, vector<256x512xbf16>
    %c0_4 = arith.constant 0 : index
    %c0_5 = arith.constant 0 : index
    %5 = vector.load %arg5[%c0_4, %c0_5] : memref<8x512xf32, #tpu.memory_space<vmem>>, vector<8x512xf32>
    %c0_6 = arith.constant 0 : index
    %c0_7 = arith.constant 0 : index
    %6 = vector.load %arg7[%c0_6, %c0_7] : memref<8x128xf32, #tpu.memory_space<vmem>>, vector<8x128xf32>
    %c0_8 = arith.constant 0 : index
    %c0_9 = arith.constant 0 : index
    %7 = vector.load %arg8[%c0_8, %c0_9] : memref<8x128xf32, #tpu.memory_space<vmem>>, vector<8x128xf32>
    %c0_10 = arith.constant 0 : index
    %c0_11 = arith.constant 0 : index
    %8 = vector.load %arg9[%c0_10, %c0_11] : memref<8x128xf32, #tpu.memory_space<vmem>>, vector<8x128xf32>
    %c0_12 = arith.constant 0 : index
    %c0_13 = arith.constant 0 : index
    %9 = vector.load %arg10[%c0_12, %c0_13] : memref<8x128xf32, #tpu.memory_space<vmem>>, vector<8x128xf32>
    %c0_14 = arith.constant 0 : index
    %c0_15 = arith.constant 0 : index
    %c0_16 = arith.constant 0 : index
    %10 = vector.load %arg2[%c0_14, %c0_15, %c0_16] : memref<8x8x512xf32, #tpu.memory_space<vmem>>, vector<8x1x512xf32>
    %11 = vector.shape_cast %10 : vector<8x1x512xf32> to vector<8x512xf32>
    %12 = arith.truncf %6 : vector<8x128xf32> to vector<8x128xbf16>
    %cst = arith.constant dense<0.000000e+00> : vector<8x512xf32>
    %13 = tpu.matmul %12, %3, %cst {dimension_numbers = #tpu.dot_dimension_numbers<[1], [0], [0], [1], [0, 0, 1, 1], [], []>} : vector<8x128xbf16>, vector<128x512xbf16>, vector<8x512xf32> -> vector<8x512xf32>
    %14 = arith.addf %11, %13 : vector<8x512xf32>
    %15 = vector.extract_strided_slice %14 {offsets = [0, 0], sizes = [8, 128], strides = [1, 1]} : vector<8x512xf32> to vector<8x128xf32>
    %16 = arith.negf %15 : vector<8x128xf32>
    %17 = math.exp %16 : vector<8x128xf32>
    %cst_17 = arith.constant 1.000000e+00 : f32
    %18 = vector.broadcast %cst_17 : f32 to vector<8x128xf32>
    %19 = arith.addf %18, %17 : vector<8x128xf32>
    %20 = arith.divf %18, %19 : vector<8x128xf32>
    %21 = vector.extract_strided_slice %14 {offsets = [0, 128], sizes = [8, 128], strides = [1, 1]} : vector<8x512xf32> to vector<8x128xf32>
    %22 = arith.negf %21 : vector<8x128xf32>
    %23 = math.exp %22 : vector<8x128xf32>
    %cst_18 = arith.constant 1.000000e+00 : f32
    %24 = vector.broadcast %cst_18 : f32 to vector<8x128xf32>
    %25 = arith.addf %24, %23 : vector<8x128xf32>
    %26 = arith.divf %24, %25 : vector<8x128xf32>
    %27 = vector.extract_strided_slice %14 {offsets = [0, 256], sizes = [8, 128], strides = [1, 1]} : vector<8x512xf32> to vector<8x128xf32>
    %28 = math.tanh %27 : vector<8x128xf32>
    %29 = vector.extract_strided_slice %14 {offsets = [0, 384], sizes = [8, 128], strides = [1, 1]} : vector<8x512xf32> to vector<8x128xf32>
    %30 = arith.negf %29 : vector<8x128xf32>
    %31 = math.exp %30 : vector<8x128xf32>
    %cst_19 = arith.constant 1.000000e+00 : f32
    %32 = vector.broadcast %cst_19 : f32 to vector<8x128xf32>
    %33 = arith.addf %32, %31 : vector<8x128xf32>
    %34 = arith.divf %32, %33 : vector<8x128xf32>
    %35 = arith.mulf %26, %7 : vector<8x128xf32>
    %36 = arith.mulf %20, %28 : vector<8x128xf32>
    %37 = arith.addf %35, %36 : vector<8x128xf32>
    %38 = math.tanh %37 : vector<8x128xf32>
    %39 = arith.mulf %34, %38 : vector<8x128xf32>
    %40 = tpu.concatenate %39, %8 in 1 : vector<8x128xf32>, vector<8x128xf32> -> vector<8x256xf32>
    %41 = arith.truncf %40 : vector<8x256xf32> to vector<8x256xbf16>
    %cst_20 = arith.constant dense<0.000000e+00> : vector<8x512xf32>
    %42 = tpu.matmul %41, %4, %cst_20 {dimension_numbers = #tpu.dot_dimension_numbers<[1], [0], [0], [1], [0, 0, 1, 1], [], []>} : vector<8x256xbf16>, vector<256x512xbf16>, vector<8x512xf32> -> vector<8x512xf32>
    %43 = arith.addf %42, %5 : vector<8x512xf32>
    %44 = vector.extract_strided_slice %43 {offsets = [0, 0], sizes = [8, 128], strides = [1, 1]} : vector<8x512xf32> to vector<8x128xf32>
    %45 = arith.negf %44 : vector<8x128xf32>
    %46 = math.exp %45 : vector<8x128xf32>
    %cst_21 = arith.constant 1.000000e+00 : f32
    %47 = vector.broadcast %cst_21 : f32 to vector<8x128xf32>
    %48 = arith.addf %47, %46 : vector<8x128xf32>
    %49 = arith.divf %47, %48 : vector<8x128xf32>
    %50 = vector.extract_strided_slice %43 {offsets = [0, 128], sizes = [8, 128], strides = [1, 1]} : vector<8x512xf32> to vector<8x128xf32>
    %51 = arith.negf %50 : vector<8x128xf32>
    %52 = math.exp %51 : vector<8x128xf32>
    %cst_22 = arith.constant 1.000000e+00 : f32
    %53 = vector.broadcast %cst_22 : f32 to vector<8x128xf32>
    %54 = arith.addf %53, %52 : vector<8x128xf32>
    %55 = arith.divf %53, %54 : vector<8x128xf32>
    %56 = vector.extract_strided_slice %43 {offsets = [0, 256], sizes = [8, 128], strides = [1, 1]} : vector<8x512xf32> to vector<8x128xf32>
    %57 = math.tanh %56 : vector<8x128xf32>
    %58 = vector.extract_strided_slice %43 {offsets = [0, 384], sizes = [8, 128], strides = [1, 1]} : vector<8x512xf32> to vector<8x128xf32>
    %59 = arith.negf %58 : vector<8x128xf32>
    %60 = math.exp %59 : vector<8x128xf32>
    %cst_23 = arith.constant 1.000000e+00 : f32
    %61 = vector.broadcast %cst_23 : f32 to vector<8x128xf32>
    %62 = arith.addf %61, %60 : vector<8x128xf32>
    %63 = arith.divf %61, %62 : vector<8x128xf32>
    %64 = arith.mulf %55, %9 : vector<8x128xf32>
    %65 = arith.mulf %49, %57 : vector<8x128xf32>
    %66 = arith.addf %64, %65 : vector<8x128xf32>
    %67 = math.tanh %66 : vector<8x128xf32>
    %68 = arith.mulf %63, %67 : vector<8x128xf32>
    %c0_24 = arith.constant 0 : index
    %c0_25 = arith.constant 0 : index
    %c0_26 = arith.constant 0 : index
    %69 = vector.load %arg6[%c0_24, %c0_25, %c0_26] : memref<8x8x128xf32, #tpu.memory_space<vmem>>, vector<8x1x128xf32>
    %70 = vector.shape_cast %69 : vector<8x1x128xf32> to vector<8x128xf32>
    %71 = vector.shape_cast %68 : vector<8x128xf32> to vector<8x1x128xf32>
    tpu.vector_store %arg6[%c0_24, %c0_25, %c0_26], %71 {strides = array<i32>} : memref<8x8x128xf32, #tpu.memory_space<vmem>>, vector<8x1x128xf32>,
    %c0_27 = arith.constant 0 : index
    %c1 = arith.constant 1 : index
    %c0_28 = arith.constant 0 : index
    %72 = vector.load %arg2[%c0_27, %c1, %c0_28] : memref<8x8x512xf32, #tpu.memory_space<vmem>>, vector<8x1x512xf32>
    %73 = vector.shape_cast %72 : vector<8x1x512xf32> to vector<8x512xf32>
    %74 = arith.truncf %39 : vector<8x128xf32> to vector<8x128xbf16>
    %cst_29 = arith.constant dense<0.000000e+00> : vector<8x512xf32>
    %75 = tpu.matmul %74, %3, %cst_29 {dimension_numbers = #tpu.dot_dimension_numbers<[1], [0], [0], [1], [0, 0, 1, 1], [], []>} : vector<8x128xbf16>, vector<128x512xbf16>, vector<8x512xf32> -> vector<8x512xf32>
    %76 = arith.addf %73, %75 : vector<8x512xf32>
    %77 = vector.extract_strided_slice %76 {offsets = [0, 0], sizes = [8, 128], strides = [1, 1]} : vector<8x512xf32> to vector<8x128xf32>
    %78 = arith.negf %77 : vector<8x128xf32>
    %79 = math.exp %78 : vector<8x128xf32>
    %cst_30 = arith.constant 1.000000e+00 : f32
    %80 = vector.broadcast %cst_30 : f32 to vector<8x128xf32>
    %81 = arith.addf %80, %79 : vector<8x128xf32>
    %82 = arith.divf %80, %81 : vector<8x128xf32>
    %83 = vector.extract_strided_slice %76 {offsets = [0, 128], sizes = [8, 128], strides = [1, 1]} : vector<8x512xf32> to vector<8x128xf32>
    %84 = arith.negf %83 : vector<8x128xf32>
    %85 = math.exp %84 : vector<8x128xf32>
    %cst_31 = arith.constant 1.000000e+00 : f32
    %86 = vector.broadcast %cst_31 : f32 to vector<8x128xf32>
    %87 = arith.addf %86, %85 : vector<8x128xf32>
    %88 = arith.divf %86, %87 : vector<8x128xf32>
    %89 = vector.extract_strided_slice %76 {offsets = [0, 256], sizes = [8, 128], strides = [1, 1]} : vector<8x512xf32> to vector<8x128xf32>
    %90 = math.tanh %89 : vector<8x128xf32>
    %91 = vector.extract_strided_slice %76 {offsets = [0, 384], sizes = [8, 128], strides = [1, 1]} : vector<8x512xf32> to vector<8x128xf32>
    %92 = arith.negf %91 : vector<8x128xf32>
    %93 = math.exp %92 : vector<8x128xf32>
    %cst_32 = arith.constant 1.000000e+00 : f32
    %94 = vector.broadcast %cst_32 : f32 to vector<8x128xf32>
    %95 = arith.addf %94, %93 : vector<8x128xf32>
    %96 = arith.divf %94, %95 : vector<8x128xf32>
    %97 = arith.mulf %88, %37 : vector<8x128xf32>
    %98 = arith.mulf %82, %90 : vector<8x128xf32>
    %99 = arith.addf %97, %98 : vector<8x128xf32>
    %100 = math.tanh %99 : vector<8x128xf32>
    %101 = arith.mulf %96, %100 : vector<8x128xf32>
    %102 = tpu.concatenate %101, %68 in 1 : vector<8x128xf32>, vector<8x128xf32> -> vector<8x256xf32>
    %103 = arith.truncf %102 : vector<8x256xf32> to vector<8x256xbf16>
    %cst_33 = arith.constant dense<0.000000e+00> : vector<8x512xf32>
    %104 = tpu.matmul %103, %4, %cst_33 {dimension_numbers = #tpu.dot_dimension_numbers<[1], [0], [0], [1], [0, 0, 1, 1], [], []>} : vector<8x256xbf16>, vector<256x512xbf16>, vector<8x512xf32> -> vector<8x512xf32>
    %105 = arith.addf %104, %5 : vector<8x512xf32>
    %106 = vector.extract_strided_slice %105 {offsets = [0, 0], sizes = [8, 128], strides = [1, 1]} : vector<8x512xf32> to vector<8x128xf32>
    %107 = arith.negf %106 : vector<8x128xf32>
    %108 = math.exp %107 : vector<8x128xf32>
    %cst_34 = arith.constant 1.000000e+00 : f32
    %109 = vector.broadcast %cst_34 : f32 to vector<8x128xf32>
    %110 = arith.addf %109, %108 : vector<8x128xf32>
    %111 = arith.divf %109, %110 : vector<8x128xf32>
    %112 = vector.extract_strided_slice %105 {offsets = [0, 128], sizes = [8, 128], strides = [1, 1]} : vector<8x512xf32> to vector<8x128xf32>
    %113 = arith.negf %112 : vector<8x128xf32>
    %114 = math.exp %113 : vector<8x128xf32>
    %cst_35 = arith.constant 1.000000e+00 : f32
    %115 = vector.broadcast %cst_35 : f32 to vector<8x128xf32>
    %116 = arith.addf %115, %114 : vector<8x128xf32>
    %117 = arith.divf %115, %116 : vector<8x128xf32>
    %118 = vector.extract_strided_slice %105 {offsets = [0, 256], sizes = [8, 128], strides = [1, 1]} : vector<8x512xf32> to vector<8x128xf32>
    %119 = math.tanh %118 : vector<8x128xf32>
    %120 = vector.extract_strided_slice %105 {offsets = [0, 384], sizes = [8, 128], strides = [1, 1]} : vector<8x512xf32> to vector<8x128xf32>
    %121 = arith.negf %120 : vector<8x128xf32>
    %122 = math.exp %121 : vector<8x128xf32>
    %cst_36 = arith.constant 1.000000e+00 : f32
    %123 = vector.broadcast %cst_36 : f32 to vector<8x128xf32>
    %124 = arith.addf %123, %122 : vector<8x128xf32>
    %125 = arith.divf %123, %124 : vector<8x128xf32>
    %126 = arith.mulf %117, %66 : vector<8x128xf32>
    %127 = arith.mulf %111, %119 : vector<8x128xf32>
    %128 = arith.addf %126, %127 : vector<8x128xf32>
    %129 = math.tanh %128 : vector<8x128xf32>
    %130 = arith.mulf %125, %129 : vector<8x128xf32>
    %c0_37 = arith.constant 0 : index
    %c1_38 = arith.constant 1 : index
    %c0_39 = arith.constant 0 : index
    %131 = vector.load %arg6[%c0_37, %c1_38, %c0_39] : memref<8x8x128xf32, #tpu.memory_space<vmem>>, vector<8x1x128xf32>
    %132 = vector.shape_cast %131 : vector<8x1x128xf32> to vector<8x128xf32>
    %133 = vector.shape_cast %130 : vector<8x128xf32> to vector<8x1x128xf32>
    tpu.vector_store %arg6[%c0_37, %c1_38, %c0_39], %133 {strides = array<i32>} : memref<8x8x128xf32, #tpu.memory_space<vmem>>, vector<8x1x128xf32>,
    %c0_40 = arith.constant 0 : index
    %c2 = arith.constant 2 : index
    %c0_41 = arith.constant 0 : index
    %134 = vector.load %arg2[%c0_40, %c2, %c0_41] : memref<8x8x512xf32, #tpu.memory_space<vmem>>, vector<8x1x512xf32>
    %135 = vector.shape_cast %134 : vector<8x1x512xf32> to vector<8x512xf32>
    %136 = arith.truncf %101 : vector<8x128xf32> to vector<8x128xbf16>
    %cst_42 = arith.constant dense<0.000000e+00> : vector<8x512xf32>
    %137 = tpu.matmul %136, %3, %cst_42 {dimension_numbers = #tpu.dot_dimension_numbers<[1], [0], [0], [1], [0, 0, 1, 1], [], []>} : vector<8x128xbf16>, vector<128x512xbf16>, vector<8x512xf32> -> vector<8x512xf32>
    %138 = arith.addf %135, %137 : vector<8x512xf32>
    %139 = vector.extract_strided_slice %138 {offsets = [0, 0], sizes = [8, 128], strides = [1, 1]} : vector<8x512xf32> to vector<8x128xf32>
    %140 = arith.negf %139 : vector<8x128xf32>
    %141 = math.exp %140 : vector<8x128xf32>
    %cst_43 = arith.constant 1.000000e+00 : f32
    %142 = vector.broadcast %cst_43 : f32 to vector<8x128xf32>
    %143 = arith.addf %142, %141 : vector<8x128xf32>
    %144 = arith.divf %142, %143 : vector<8x128xf32>
    %145 = vector.extract_strided_slice %138 {offsets = [0, 128], sizes = [8, 128], strides = [1, 1]} : vector<8x512xf32> to vector<8x128xf32>
    %146 = arith.negf %145 : vector<8x128xf32>
    %147 = math.exp %146 : vector<8x128xf32>
    %cst_44 = arith.constant 1.000000e+00 : f32
    %148 = vector.broadcast %cst_44 : f32 to vector<8x128xf32>
    %149 = arith.addf %148, %147 : vector<8x128xf32>
    %150 = arith.divf %148, %149 : vector<8x128xf32>
    %151 = vector.extract_strided_slice %138 {offsets = [0, 256], sizes = [8, 128], strides = [1, 1]} : vector<8x512xf32> to vector<8x128xf32>
    %152 = math.tanh %151 : vector<8x128xf32>
    %153 = vector.extract_strided_slice %138 {offsets = [0, 384], sizes = [8, 128], strides = [1, 1]} : vector<8x512xf32> to vector<8x128xf32>
    %154 = arith.negf %153 : vector<8x128xf32>
    %155 = math.exp %154 : vector<8x128xf32>
    %cst_45 = arith.constant 1.000000e+00 : f32
    %156 = vector.broadcast %cst_45 : f32 to vector<8x128xf32>
    %157 = arith.addf %156, %155 : vector<8x128xf32>
    %158 = arith.divf %156, %157 : vector<8x128xf32>
    %159 = arith.mulf %150, %99 : vector<8x128xf32>
    %160 = arith.mulf %144, %152 : vector<8x128xf32>
    %161 = arith.addf %159, %160 : vector<8x128xf32>
    %162 = math.tanh %161 : vector<8x128xf32>
    %163 = arith.mulf %158, %162 : vector<8x128xf32>
    %164 = tpu.concatenate %163, %130 in 1 : vector<8x128xf32>, vector<8x128xf32> -> vector<8x256xf32>
    %165 = arith.truncf %164 : vector<8x256xf32> to vector<8x256xbf16>
    %cst_46 = arith.constant dense<0.000000e+00> : vector<8x512xf32>
    %166 = tpu.matmul %165, %4, %cst_46 {dimension_numbers = #tpu.dot_dimension_numbers<[1], [0], [0], [1], [0, 0, 1, 1], [], []>} : vector<8x256xbf16>, vector<256x512xbf16>, vector<8x512xf32> -> vector<8x512xf32>
    %167 = arith.addf %166, %5 : vector<8x512xf32>
    %168 = vector.extract_strided_slice %167 {offsets = [0, 0], sizes = [8, 128], strides = [1, 1]} : vector<8x512xf32> to vector<8x128xf32>
    %169 = arith.negf %168 : vector<8x128xf32>
    %170 = math.exp %169 : vector<8x128xf32>
    %cst_47 = arith.constant 1.000000e+00 : f32
    %171 = vector.broadcast %cst_47 : f32 to vector<8x128xf32>
    %172 = arith.addf %171, %170 : vector<8x128xf32>
    %173 = arith.divf %171, %172 : vector<8x128xf32>
    %174 = vector.extract_strided_slice %167 {offsets = [0, 128], sizes = [8, 128], strides = [1, 1]} : vector<8x512xf32> to vector<8x128xf32>
    %175 = arith.negf %174 : vector<8x128xf32>
    %176 = math.exp %175 : vector<8x128xf32>
    %cst_48 = arith.constant 1.000000e+00 : f32
    %177 = vector.broadcast %cst_48 : f32 to vector<8x128xf32>
    %178 = arith.addf %177, %176 : vector<8x128xf32>
    %179 = arith.divf %177, %178 : vector<8x128xf32>
    %180 = vector.extract_strided_slice %167 {offsets = [0, 256], sizes = [8, 128], strides = [1, 1]} : vector<8x512xf32> to vector<8x128xf32>
    %181 = math.tanh %180 : vector<8x128xf32>
    %182 = vector.extract_strided_slice %167 {offsets = [0, 384], sizes = [8, 128], strides = [1, 1]} : vector<8x512xf32> to vector<8x128xf32>
    %183 = arith.negf %182 : vector<8x128xf32>
    %184 = math.exp %183 : vector<8x128xf32>
    %cst_49 = arith.constant 1.000000e+00 : f32
    %185 = vector.broadcast %cst_49 : f32 to vector<8x128xf32>
    %186 = arith.addf %185, %184 : vector<8x128xf32>
    %187 = arith.divf %185, %186 : vector<8x128xf32>
    %188 = arith.mulf %179, %128 : vector<8x128xf32>
    %189 = arith.mulf %173, %181 : vector<8x128xf32>
    %190 = arith.addf %188, %189 : vector<8x128xf32>
    %191 = math.tanh %190 : vector<8x128xf32>
    %192 = arith.mulf %187, %191 : vector<8x128xf32>
    %c0_50 = arith.constant 0 : index
    %c2_51 = arith.constant 2 : index
    %c0_52 = arith.constant 0 : index
    %193 = vector.load %arg6[%c0_50, %c2_51, %c0_52] : memref<8x8x128xf32, #tpu.memory_space<vmem>>, vector<8x1x128xf32>
    %194 = vector.shape_cast %193 : vector<8x1x128xf32> to vector<8x128xf32>
    %195 = vector.shape_cast %192 : vector<8x128xf32> to vector<8x1x128xf32>
    tpu.vector_store %arg6[%c0_50, %c2_51, %c0_52], %195 {strides = array<i32>} : memref<8x8x128xf32, #tpu.memory_space<vmem>>, vector<8x1x128xf32>,
    %c0_53 = arith.constant 0 : index
    %c3 = arith.constant 3 : index
    %c0_54 = arith.constant 0 : index
    %196 = vector.load %arg2[%c0_53, %c3, %c0_54] : memref<8x8x512xf32, #tpu.memory_space<vmem>>, vector<8x1x512xf32>
    %197 = vector.shape_cast %196 : vector<8x1x512xf32> to vector<8x512xf32>
    %198 = arith.truncf %163 : vector<8x128xf32> to vector<8x128xbf16>
    %cst_55 = arith.constant dense<0.000000e+00> : vector<8x512xf32>
    %199 = tpu.matmul %198, %3, %cst_55 {dimension_numbers = #tpu.dot_dimension_numbers<[1], [0], [0], [1], [0, 0, 1, 1], [], []>} : vector<8x128xbf16>, vector<128x512xbf16>, vector<8x512xf32> -> vector<8x512xf32>
    %200 = arith.addf %197, %199 : vector<8x512xf32>
    %201 = vector.extract_strided_slice %200 {offsets = [0, 0], sizes = [8, 128], strides = [1, 1]} : vector<8x512xf32> to vector<8x128xf32>
    %202 = arith.negf %201 : vector<8x128xf32>
    %203 = math.exp %202 : vector<8x128xf32>
    %cst_56 = arith.constant 1.000000e+00 : f32
    %204 = vector.broadcast %cst_56 : f32 to vector<8x128xf32>
    %205 = arith.addf %204, %203 : vector<8x128xf32>
    %206 = arith.divf %204, %205 : vector<8x128xf32>
    %207 = vector.extract_strided_slice %200 {offsets = [0, 128], sizes = [8, 128], strides = [1, 1]} : vector<8x512xf32> to vector<8x128xf32>
    %208 = arith.negf %207 : vector<8x128xf32>
    %209 = math.exp %208 : vector<8x128xf32>
    %cst_57 = arith.constant 1.000000e+00 : f32
    %210 = vector.broadcast %cst_57 : f32 to vector<8x128xf32>
    %211 = arith.addf %210, %209 : vector<8x128xf32>
    %212 = arith.divf %210, %211 : vector<8x128xf32>
    %213 = vector.extract_strided_slice %200 {offsets = [0, 256], sizes = [8, 128], strides = [1, 1]} : vector<8x512xf32> to vector<8x128xf32>
    %214 = math.tanh %213 : vector<8x128xf32>
    %215 = vector.extract_strided_slice %200 {offsets = [0, 384], sizes = [8, 128], strides = [1, 1]} : vector<8x512xf32> to vector<8x128xf32>
    %216 = arith.negf %215 : vector<8x128xf32>
    %217 = math.exp %216 : vector<8x128xf32>
    %cst_58 = arith.constant 1.000000e+00 : f32
    %218 = vector.broadcast %cst_58 : f32 to vector<8x128xf32>
    %219 = arith.addf %218, %217 : vector<8x128xf32>
    %220 = arith.divf %218, %219 : vector<8x128xf32>
    %221 = arith.mulf %212, %161 : vector<8x128xf32>
    %222 = arith.mulf %206, %214 : vector<8x128xf32>
    %223 = arith.addf %221, %222 : vector<8x128xf32>
    %224 = math.tanh %223 : vector<8x128xf32>
    %225 = arith.mulf %220, %224 : vector<8x128xf32>
    %226 = tpu.concatenate %225, %192 in 1 : vector<8x128xf32>, vector<8x128xf32> -> vector<8x256xf32>
    %227 = arith.truncf %226 : vector<8x256xf32> to vector<8x256xbf16>
    %cst_59 = arith.constant dense<0.000000e+00> : vector<8x512xf32>
    %228 = tpu.matmul %227, %4, %cst_59 {dimension_numbers = #tpu.dot_dimension_numbers<[1], [0], [0], [1], [0, 0, 1, 1], [], []>} : vector<8x256xbf16>, vector<256x512xbf16>, vector<8x512xf32> -> vector<8x512xf32>
    %229 = arith.addf %228, %5 : vector<8x512xf32>
    %230 = vector.extract_strided_slice %229 {offsets = [0, 0], sizes = [8, 128], strides = [1, 1]} : vector<8x512xf32> to vector<8x128xf32>
    %231 = arith.negf %230 : vector<8x128xf32>
    %232 = math.exp %231 : vector<8x128xf32>
    %cst_60 = arith.constant 1.000000e+00 : f32
    %233 = vector.broadcast %cst_60 : f32 to vector<8x128xf32>
    %234 = arith.addf %233, %232 : vector<8x128xf32>
    %235 = arith.divf %233, %234 : vector<8x128xf32>
    %236 = vector.extract_strided_slice %229 {offsets = [0, 128], sizes = [8, 128], strides = [1, 1]} : vector<8x512xf32> to vector<8x128xf32>
    %237 = arith.negf %236 : vector<8x128xf32>
    %238 = math.exp %237 : vector<8x128xf32>
    %cst_61 = arith.constant 1.000000e+00 : f32
    %239 = vector.broadcast %cst_61 : f32 to vector<8x128xf32>
    %240 = arith.addf %239, %238 : vector<8x128xf32>
    %241 = arith.divf %239, %240 : vector<8x128xf32>
    %242 = vector.extract_strided_slice %229 {offsets = [0, 256], sizes = [8, 128], strides = [1, 1]} : vector<8x512xf32> to vector<8x128xf32>
    %243 = math.tanh %242 : vector<8x128xf32>
    %244 = vector.extract_strided_slice %229 {offsets = [0, 384], sizes = [8, 128], strides = [1, 1]} : vector<8x512xf32> to vector<8x128xf32>
    %245 = arith.negf %244 : vector<8x128xf32>
    %246 = math.exp %245 : vector<8x128xf32>
    %cst_62 = arith.constant 1.000000e+00 : f32
    %247 = vector.broadcast %cst_62 : f32 to vector<8x128xf32>
    %248 = arith.addf %247, %246 : vector<8x128xf32>
    %249 = arith.divf %247, %248 : vector<8x128xf32>
    %250 = arith.mulf %241, %190 : vector<8x128xf32>
    %251 = arith.mulf %235, %243 : vector<8x128xf32>
    %252 = arith.addf %250, %251 : vector<8x128xf32>
    %253 = math.tanh %252 : vector<8x128xf32>
    %254 = arith.mulf %249, %253 : vector<8x128xf32>
    %c0_63 = arith.constant 0 : index
    %c3_64 = arith.constant 3 : index
    %c0_65 = arith.constant 0 : index
    %255 = vector.load %arg6[%c0_63, %c3_64, %c0_65] : memref<8x8x128xf32, #tpu.memory_space<vmem>>, vector<8x1x128xf32>
    %256 = vector.shape_cast %255 : vector<8x1x128xf32> to vector<8x128xf32>
    %257 = vector.shape_cast %254 : vector<8x128xf32> to vector<8x1x128xf32>
    tpu.vector_store %arg6[%c0_63, %c3_64, %c0_65], %257 {strides = array<i32>} : memref<8x8x128xf32, #tpu.memory_space<vmem>>, vector<8x1x128xf32>,
    %c0_66 = arith.constant 0 : index
    %c4 = arith.constant 4 : index
    %c0_67 = arith.constant 0 : index
    %258 = vector.load %arg2[%c0_66, %c4, %c0_67] : memref<8x8x512xf32, #tpu.memory_space<vmem>>, vector<8x1x512xf32>
    %259 = vector.shape_cast %258 : vector<8x1x512xf32> to vector<8x512xf32>
    %260 = arith.truncf %225 : vector<8x128xf32> to vector<8x128xbf16>
    %cst_68 = arith.constant dense<0.000000e+00> : vector<8x512xf32>
    %261 = tpu.matmul %260, %3, %cst_68 {dimension_numbers = #tpu.dot_dimension_numbers<[1], [0], [0], [1], [0, 0, 1, 1], [], []>} : vector<8x128xbf16>, vector<128x512xbf16>, vector<8x512xf32> -> vector<8x512xf32>
    %262 = arith.addf %259, %261 : vector<8x512xf32>
    %263 = vector.extract_strided_slice %262 {offsets = [0, 0], sizes = [8, 128], strides = [1, 1]} : vector<8x512xf32> to vector<8x128xf32>
    %264 = arith.negf %263 : vector<8x128xf32>
    %265 = math.exp %264 : vector<8x128xf32>
    %cst_69 = arith.constant 1.000000e+00 : f32
    %266 = vector.broadcast %cst_69 : f32 to vector<8x128xf32>
    %267 = arith.addf %266, %265 : vector<8x128xf32>
    %268 = arith.divf %266, %267 : vector<8x128xf32>
    %269 = vector.extract_strided_slice %262 {offsets = [0, 128], sizes = [8, 128], strides = [1, 1]} : vector<8x512xf32> to vector<8x128xf32>
    %270 = arith.negf %269 : vector<8x128xf32>
    %271 = math.exp %270 : vector<8x128xf32>
    %cst_70 = arith.constant 1.000000e+00 : f32
    %272 = vector.broadcast %cst_70 : f32 to vector<8x128xf32>
    %273 = arith.addf %272, %271 : vector<8x128xf32>
    %274 = arith.divf %272, %273 : vector<8x128xf32>
    %275 = vector.extract_strided_slice %262 {offsets = [0, 256], sizes = [8, 128], strides = [1, 1]} : vector<8x512xf32> to vector<8x128xf32>
    %276 = math.tanh %275 : vector<8x128xf32>
    %277 = vector.extract_strided_slice %262 {offsets = [0, 384], sizes = [8, 128], strides = [1, 1]} : vector<8x512xf32> to vector<8x128xf32>
    %278 = arith.negf %277 : vector<8x128xf32>
    %279 = math.exp %278 : vector<8x128xf32>
    %cst_71 = arith.constant 1.000000e+00 : f32
    %280 = vector.broadcast %cst_71 : f32 to vector<8x128xf32>
    %281 = arith.addf %280, %279 : vector<8x128xf32>
    %282 = arith.divf %280, %281 : vector<8x128xf32>
    %283 = arith.mulf %274, %223 : vector<8x128xf32>
    %284 = arith.mulf %268, %276 : vector<8x128xf32>
    %285 = arith.addf %283, %284 : vector<8x128xf32>
    %286 = math.tanh %285 : vector<8x128xf32>
    %287 = arith.mulf %282, %286 : vector<8x128xf32>
    %288 = tpu.concatenate %287, %254 in 1 : vector<8x128xf32>, vector<8x128xf32> -> vector<8x256xf32>
    %289 = arith.truncf %288 : vector<8x256xf32> to vector<8x256xbf16>
    %cst_72 = arith.constant dense<0.000000e+00> : vector<8x512xf32>
    %290 = tpu.matmul %289, %4, %cst_72 {dimension_numbers = #tpu.dot_dimension_numbers<[1], [0], [0], [1], [0, 0, 1, 1], [], []>} : vector<8x256xbf16>, vector<256x512xbf16>, vector<8x512xf32> -> vector<8x512xf32>
    %291 = arith.addf %290, %5 : vector<8x512xf32>
    %292 = vector.extract_strided_slice %291 {offsets = [0, 0], sizes = [8, 128], strides = [1, 1]} : vector<8x512xf32> to vector<8x128xf32>
    %293 = arith.negf %292 : vector<8x128xf32>
    %294 = math.exp %293 : vector<8x128xf32>
    %cst_73 = arith.constant 1.000000e+00 : f32
    %295 = vector.broadcast %cst_73 : f32 to vector<8x128xf32>
    %296 = arith.addf %295, %294 : vector<8x128xf32>
    %297 = arith.divf %295, %296 : vector<8x128xf32>
    %298 = vector.extract_strided_slice %291 {offsets = [0, 128], sizes = [8, 128], strides = [1, 1]} : vector<8x512xf32> to vector<8x128xf32>
    %299 = arith.negf %298 : vector<8x128xf32>
    %300 = math.exp %299 : vector<8x128xf32>
    %cst_74 = arith.constant 1.000000e+00 : f32
    %301 = vector.broadcast %cst_74 : f32 to vector<8x128xf32>
    %302 = arith.addf %301, %300 : vector<8x128xf32>
    %303 = arith.divf %301, %302 : vector<8x128xf32>
    %304 = vector.extract_strided_slice %291 {offsets = [0, 256], sizes = [8, 128], strides = [1, 1]} : vector<8x512xf32> to vector<8x128xf32>
    %305 = math.tanh %304 : vector<8x128xf32>
    %306 = vector.extract_strided_slice %291 {offsets = [0, 384], sizes = [8, 128], strides = [1, 1]} : vector<8x512xf32> to vector<8x128xf32>
    %307 = arith.negf %306 : vector<8x128xf32>
    %308 = math.exp %307 : vector<8x128xf32>
    %cst_75 = arith.constant 1.000000e+00 : f32
    %309 = vector.broadcast %cst_75 : f32 to vector<8x128xf32>
    %310 = arith.addf %309, %308 : vector<8x128xf32>
    %311 = arith.divf %309, %310 : vector<8x128xf32>
    %312 = arith.mulf %303, %252 : vector<8x128xf32>
    %313 = arith.mulf %297, %305 : vector<8x128xf32>
    %314 = arith.addf %312, %313 : vector<8x128xf32>
    %315 = math.tanh %314 : vector<8x128xf32>
    %316 = arith.mulf %311, %315 : vector<8x128xf32>
    %c0_76 = arith.constant 0 : index
    %c4_77 = arith.constant 4 : index
    %c0_78 = arith.constant 0 : index
    %317 = vector.load %arg6[%c0_76, %c4_77, %c0_78] : memref<8x8x128xf32, #tpu.memory_space<vmem>>, vector<8x1x128xf32>
    %318 = vector.shape_cast %317 : vector<8x1x128xf32> to vector<8x128xf32>
    %319 = vector.shape_cast %316 : vector<8x128xf32> to vector<8x1x128xf32>
    tpu.vector_store %arg6[%c0_76, %c4_77, %c0_78], %319 {strides = array<i32>} : memref<8x8x128xf32, #tpu.memory_space<vmem>>, vector<8x1x128xf32>,
    %c0_79 = arith.constant 0 : index
    %c5 = arith.constant 5 : index
    %c0_80 = arith.constant 0 : index
    %320 = vector.load %arg2[%c0_79, %c5, %c0_80] : memref<8x8x512xf32, #tpu.memory_space<vmem>>, vector<8x1x512xf32>
    %321 = vector.shape_cast %320 : vector<8x1x512xf32> to vector<8x512xf32>
    %322 = arith.truncf %287 : vector<8x128xf32> to vector<8x128xbf16>
    %cst_81 = arith.constant dense<0.000000e+00> : vector<8x512xf32>
    %323 = tpu.matmul %322, %3, %cst_81 {dimension_numbers = #tpu.dot_dimension_numbers<[1], [0], [0], [1], [0, 0, 1, 1], [], []>} : vector<8x128xbf16>, vector<128x512xbf16>, vector<8x512xf32> -> vector<8x512xf32>
    %324 = arith.addf %321, %323 : vector<8x512xf32>
    %325 = vector.extract_strided_slice %324 {offsets = [0, 0], sizes = [8, 128], strides = [1, 1]} : vector<8x512xf32> to vector<8x128xf32>
    %326 = arith.negf %325 : vector<8x128xf32>
    %327 = math.exp %326 : vector<8x128xf32>
    %cst_82 = arith.constant 1.000000e+00 : f32
    %328 = vector.broadcast %cst_82 : f32 to vector<8x128xf32>
    %329 = arith.addf %328, %327 : vector<8x128xf32>
    %330 = arith.divf %328, %329 : vector<8x128xf32>
    %331 = vector.extract_strided_slice %324 {offsets = [0, 128], sizes = [8, 128], strides = [1, 1]} : vector<8x512xf32> to vector<8x128xf32>
    %332 = arith.negf %331 : vector<8x128xf32>
    %333 = math.exp %332 : vector<8x128xf32>
    %cst_83 = arith.constant 1.000000e+00 : f32
    %334 = vector.broadcast %cst_83 : f32 to vector<8x128xf32>
    %335 = arith.addf %334, %333 : vector<8x128xf32>
    %336 = arith.divf %334, %335 : vector<8x128xf32>
    %337 = vector.extract_strided_slice %324 {offsets = [0, 256], sizes = [8, 128], strides = [1, 1]} : vector<8x512xf32> to vector<8x128xf32>
    %338 = math.tanh %337 : vector<8x128xf32>
    %339 = vector.extract_strided_slice %324 {offsets = [0, 384], sizes = [8, 128], strides = [1, 1]} : vector<8x512xf32> to vector<8x128xf32>
    %340 = arith.negf %339 : vector<8x128xf32>
    %341 = math.exp %340 : vector<8x128xf32>
    %cst_84 = arith.constant 1.000000e+00 : f32
    %342 = vector.broadcast %cst_84 : f32 to vector<8x128xf32>
    %343 = arith.addf %342, %341 : vector<8x128xf32>
    %344 = arith.divf %342, %343 : vector<8x128xf32>
    %345 = arith.mulf %336, %285 : vector<8x128xf32>
    %346 = arith.mulf %330, %338 : vector<8x128xf32>
    %347 = arith.addf %345, %346 : vector<8x128xf32>
    %348 = math.tanh %347 : vector<8x128xf32>
    %349 = arith.mulf %344, %348 : vector<8x128xf32>
    %350 = tpu.concatenate %349, %316 in 1 : vector<8x128xf32>, vector<8x128xf32> -> vector<8x256xf32>
    %351 = arith.truncf %350 : vector<8x256xf32> to vector<8x256xbf16>
    %cst_85 = arith.constant dense<0.000000e+00> : vector<8x512xf32>
    %352 = tpu.matmul %351, %4, %cst_85 {dimension_numbers = #tpu.dot_dimension_numbers<[1], [0], [0], [1], [0, 0, 1, 1], [], []>} : vector<8x256xbf16>, vector<256x512xbf16>, vector<8x512xf32> -> vector<8x512xf32>
    %353 = arith.addf %352, %5 : vector<8x512xf32>
    %354 = vector.extract_strided_slice %353 {offsets = [0, 0], sizes = [8, 128], strides = [1, 1]} : vector<8x512xf32> to vector<8x128xf32>
    %355 = arith.negf %354 : vector<8x128xf32>
    %356 = math.exp %355 : vector<8x128xf32>
    %cst_86 = arith.constant 1.000000e+00 : f32
    %357 = vector.broadcast %cst_86 : f32 to vector<8x128xf32>
    %358 = arith.addf %357, %356 : vector<8x128xf32>
    %359 = arith.divf %357, %358 : vector<8x128xf32>
    %360 = vector.extract_strided_slice %353 {offsets = [0, 128], sizes = [8, 128], strides = [1, 1]} : vector<8x512xf32> to vector<8x128xf32>
    %361 = arith.negf %360 : vector<8x128xf32>
    %362 = math.exp %361 : vector<8x128xf32>
    %cst_87 = arith.constant 1.000000e+00 : f32
    %363 = vector.broadcast %cst_87 : f32 to vector<8x128xf32>
    %364 = arith.addf %363, %362 : vector<8x128xf32>
    %365 = arith.divf %363, %364 : vector<8x128xf32>
    %366 = vector.extract_strided_slice %353 {offsets = [0, 256], sizes = [8, 128], strides = [1, 1]} : vector<8x512xf32> to vector<8x128xf32>
    %367 = math.tanh %366 : vector<8x128xf32>
    %368 = vector.extract_strided_slice %353 {offsets = [0, 384], sizes = [8, 128], strides = [1, 1]} : vector<8x512xf32> to vector<8x128xf32>
    %369 = arith.negf %368 : vector<8x128xf32>
    %370 = math.exp %369 : vector<8x128xf32>
    %cst_88 = arith.constant 1.000000e+00 : f32
    %371 = vector.broadcast %cst_88 : f32 to vector<8x128xf32>
    %372 = arith.addf %371, %370 : vector<8x128xf32>
    %373 = arith.divf %371, %372 : vector<8x128xf32>
    %374 = arith.mulf %365, %314 : vector<8x128xf32>
    %375 = arith.mulf %359, %367 : vector<8x128xf32>
    %376 = arith.addf %374, %375 : vector<8x128xf32>
    %377 = math.tanh %376 : vector<8x128xf32>
    %378 = arith.mulf %373, %377 : vector<8x128xf32>
    %c0_89 = arith.constant 0 : index
    %c5_90 = arith.constant 5 : index
    %c0_91 = arith.constant 0 : index
    %379 = vector.load %arg6[%c0_89, %c5_90, %c0_91] : memref<8x8x128xf32, #tpu.memory_space<vmem>>, vector<8x1x128xf32>
    %380 = vector.shape_cast %379 : vector<8x1x128xf32> to vector<8x128xf32>
    %381 = vector.shape_cast %378 : vector<8x128xf32> to vector<8x1x128xf32>
    tpu.vector_store %arg6[%c0_89, %c5_90, %c0_91], %381 {strides = array<i32>} : memref<8x8x128xf32, #tpu.memory_space<vmem>>, vector<8x1x128xf32>,
    %c0_92 = arith.constant 0 : index
    %c6 = arith.constant 6 : index
    %c0_93 = arith.constant 0 : index
    %382 = vector.load %arg2[%c0_92, %c6, %c0_93] : memref<8x8x512xf32, #tpu.memory_space<vmem>>, vector<8x1x512xf32>
    %383 = vector.shape_cast %382 : vector<8x1x512xf32> to vector<8x512xf32>
    %384 = arith.truncf %349 : vector<8x128xf32> to vector<8x128xbf16>
    %cst_94 = arith.constant dense<0.000000e+00> : vector<8x512xf32>
    %385 = tpu.matmul %384, %3, %cst_94 {dimension_numbers = #tpu.dot_dimension_numbers<[1], [0], [0], [1], [0, 0, 1, 1], [], []>} : vector<8x128xbf16>, vector<128x512xbf16>, vector<8x512xf32> -> vector<8x512xf32>
    %386 = arith.addf %383, %385 : vector<8x512xf32>
    %387 = vector.extract_strided_slice %386 {offsets = [0, 0], sizes = [8, 128], strides = [1, 1]} : vector<8x512xf32> to vector<8x128xf32>
    %388 = arith.negf %387 : vector<8x128xf32>
    %389 = math.exp %388 : vector<8x128xf32>
    %cst_95 = arith.constant 1.000000e+00 : f32
    %390 = vector.broadcast %cst_95 : f32 to vector<8x128xf32>
    %391 = arith.addf %390, %389 : vector<8x128xf32>
    %392 = arith.divf %390, %391 : vector<8x128xf32>
    %393 = vector.extract_strided_slice %386 {offsets = [0, 128], sizes = [8, 128], strides = [1, 1]} : vector<8x512xf32> to vector<8x128xf32>
    %394 = arith.negf %393 : vector<8x128xf32>
    %395 = math.exp %394 : vector<8x128xf32>
    %cst_96 = arith.constant 1.000000e+00 : f32
    %396 = vector.broadcast %cst_96 : f32 to vector<8x128xf32>
    %397 = arith.addf %396, %395 : vector<8x128xf32>
    %398 = arith.divf %396, %397 : vector<8x128xf32>
    %399 = vector.extract_strided_slice %386 {offsets = [0, 256], sizes = [8, 128], strides = [1, 1]} : vector<8x512xf32> to vector<8x128xf32>
    %400 = math.tanh %399 : vector<8x128xf32>
    %401 = vector.extract_strided_slice %386 {offsets = [0, 384], sizes = [8, 128], strides = [1, 1]} : vector<8x512xf32> to vector<8x128xf32>
    %402 = arith.negf %401 : vector<8x128xf32>
    %403 = math.exp %402 : vector<8x128xf32>
    %cst_97 = arith.constant 1.000000e+00 : f32
    %404 = vector.broadcast %cst_97 : f32 to vector<8x128xf32>
    %405 = arith.addf %404, %403 : vector<8x128xf32>
    %406 = arith.divf %404, %405 : vector<8x128xf32>
    %407 = arith.mulf %398, %347 : vector<8x128xf32>
    %408 = arith.mulf %392, %400 : vector<8x128xf32>
    %409 = arith.addf %407, %408 : vector<8x128xf32>
    %410 = math.tanh %409 : vector<8x128xf32>
    %411 = arith.mulf %406, %410 : vector<8x128xf32>
    %412 = tpu.concatenate %411, %378 in 1 : vector<8x128xf32>, vector<8x128xf32> -> vector<8x256xf32>
    %413 = arith.truncf %412 : vector<8x256xf32> to vector<8x256xbf16>
    %cst_98 = arith.constant dense<0.000000e+00> : vector<8x512xf32>
    %414 = tpu.matmul %413, %4, %cst_98 {dimension_numbers = #tpu.dot_dimension_numbers<[1], [0], [0], [1], [0, 0, 1, 1], [], []>} : vector<8x256xbf16>, vector<256x512xbf16>, vector<8x512xf32> -> vector<8x512xf32>
    %415 = arith.addf %414, %5 : vector<8x512xf32>
    %416 = vector.extract_strided_slice %415 {offsets = [0, 0], sizes = [8, 128], strides = [1, 1]} : vector<8x512xf32> to vector<8x128xf32>
    %417 = arith.negf %416 : vector<8x128xf32>
    %418 = math.exp %417 : vector<8x128xf32>
    %cst_99 = arith.constant 1.000000e+00 : f32
    %419 = vector.broadcast %cst_99 : f32 to vector<8x128xf32>
    %420 = arith.addf %419, %418 : vector<8x128xf32>
    %421 = arith.divf %419, %420 : vector<8x128xf32>
    %422 = vector.extract_strided_slice %415 {offsets = [0, 128], sizes = [8, 128], strides = [1, 1]} : vector<8x512xf32> to vector<8x128xf32>
    %423 = arith.negf %422 : vector<8x128xf32>
    %424 = math.exp %423 : vector<8x128xf32>
    %cst_100 = arith.constant 1.000000e+00 : f32
    %425 = vector.broadcast %cst_100 : f32 to vector<8x128xf32>
    %426 = arith.addf %425, %424 : vector<8x128xf32>
    %427 = arith.divf %425, %426 : vector<8x128xf32>
    %428 = vector.extract_strided_slice %415 {offsets = [0, 256], sizes = [8, 128], strides = [1, 1]} : vector<8x512xf32> to vector<8x128xf32>
    %429 = math.tanh %428 : vector<8x128xf32>
    %430 = vector.extract_strided_slice %415 {offsets = [0, 384], sizes = [8, 128], strides = [1, 1]} : vector<8x512xf32> to vector<8x128xf32>
    %431 = arith.negf %430 : vector<8x128xf32>
    %432 = math.exp %431 : vector<8x128xf32>
    %cst_101 = arith.constant 1.000000e+00 : f32
    %433 = vector.broadcast %cst_101 : f32 to vector<8x128xf32>
    %434 = arith.addf %433, %432 : vector<8x128xf32>
    %435 = arith.divf %433, %434 : vector<8x128xf32>
    %436 = arith.mulf %427, %376 : vector<8x128xf32>
    %437 = arith.mulf %421, %429 : vector<8x128xf32>
    %438 = arith.addf %436, %437 : vector<8x128xf32>
    %439 = math.tanh %438 : vector<8x128xf32>
    %440 = arith.mulf %435, %439 : vector<8x128xf32>
    %c0_102 = arith.constant 0 : index
    %c6_103 = arith.constant 6 : index
    %c0_104 = arith.constant 0 : index
    %441 = vector.load %arg6[%c0_102, %c6_103, %c0_104] : memref<8x8x128xf32, #tpu.memory_space<vmem>>, vector<8x1x128xf32>
    %442 = vector.shape_cast %441 : vector<8x1x128xf32> to vector<8x128xf32>
    %443 = vector.shape_cast %440 : vector<8x128xf32> to vector<8x1x128xf32>
    tpu.vector_store %arg6[%c0_102, %c6_103, %c0_104], %443 {strides = array<i32>} : memref<8x8x128xf32, #tpu.memory_space<vmem>>, vector<8x1x128xf32>,
    %c0_105 = arith.constant 0 : index
    %c7 = arith.constant 7 : index
    %c0_106 = arith.constant 0 : index
    %444 = vector.load %arg2[%c0_105, %c7, %c0_106] : memref<8x8x512xf32, #tpu.memory_space<vmem>>, vector<8x1x512xf32>
    %445 = vector.shape_cast %444 : vector<8x1x512xf32> to vector<8x512xf32>
    %446 = arith.truncf %411 : vector<8x128xf32> to vector<8x128xbf16>
    %cst_107 = arith.constant dense<0.000000e+00> : vector<8x512xf32>
    %447 = tpu.matmul %446, %3, %cst_107 {dimension_numbers = #tpu.dot_dimension_numbers<[1], [0], [0], [1], [0, 0, 1, 1], [], []>} : vector<8x128xbf16>, vector<128x512xbf16>, vector<8x512xf32> -> vector<8x512xf32>
    %448 = arith.addf %445, %447 : vector<8x512xf32>
    %449 = vector.extract_strided_slice %448 {offsets = [0, 0], sizes = [8, 128], strides = [1, 1]} : vector<8x512xf32> to vector<8x128xf32>
    %450 = arith.negf %449 : vector<8x128xf32>
    %451 = math.exp %450 : vector<8x128xf32>
    %cst_108 = arith.constant 1.000000e+00 : f32
    %452 = vector.broadcast %cst_108 : f32 to vector<8x128xf32>
    %453 = arith.addf %452, %451 : vector<8x128xf32>
    %454 = arith.divf %452, %453 : vector<8x128xf32>
    %455 = vector.extract_strided_slice %448 {offsets = [0, 128], sizes = [8, 128], strides = [1, 1]} : vector<8x512xf32> to vector<8x128xf32>
    %456 = arith.negf %455 : vector<8x128xf32>
    %457 = math.exp %456 : vector<8x128xf32>
    %cst_109 = arith.constant 1.000000e+00 : f32
    %458 = vector.broadcast %cst_109 : f32 to vector<8x128xf32>
    %459 = arith.addf %458, %457 : vector<8x128xf32>
    %460 = arith.divf %458, %459 : vector<8x128xf32>
    %461 = vector.extract_strided_slice %448 {offsets = [0, 256], sizes = [8, 128], strides = [1, 1]} : vector<8x512xf32> to vector<8x128xf32>
    %462 = math.tanh %461 : vector<8x128xf32>
    %463 = vector.extract_strided_slice %448 {offsets = [0, 384], sizes = [8, 128], strides = [1, 1]} : vector<8x512xf32> to vector<8x128xf32>
    %464 = arith.negf %463 : vector<8x128xf32>
    %465 = math.exp %464 : vector<8x128xf32>
    %cst_110 = arith.constant 1.000000e+00 : f32
    %466 = vector.broadcast %cst_110 : f32 to vector<8x128xf32>
    %467 = arith.addf %466, %465 : vector<8x128xf32>
    %468 = arith.divf %466, %467 : vector<8x128xf32>
    %469 = arith.mulf %460, %409 : vector<8x128xf32>
    %470 = arith.mulf %454, %462 : vector<8x128xf32>
    %471 = arith.addf %469, %470 : vector<8x128xf32>
    %472 = math.tanh %471 : vector<8x128xf32>
    %473 = arith.mulf %468, %472 : vector<8x128xf32>
    %474 = tpu.concatenate %473, %440 in 1 : vector<8x128xf32>, vector<8x128xf32> -> vector<8x256xf32>
    %475 = arith.truncf %474 : vector<8x256xf32> to vector<8x256xbf16>
    %cst_111 = arith.constant dense<0.000000e+00> : vector<8x512xf32>
    %476 = tpu.matmul %475, %4, %cst_111 {dimension_numbers = #tpu.dot_dimension_numbers<[1], [0], [0], [1], [0, 0, 1, 1], [], []>} : vector<8x256xbf16>, vector<256x512xbf16>, vector<8x512xf32> -> vector<8x512xf32>
    %477 = arith.addf %476, %5 : vector<8x512xf32>
    %478 = vector.extract_strided_slice %477 {offsets = [0, 0], sizes = [8, 128], strides = [1, 1]} : vector<8x512xf32> to vector<8x128xf32>
    %479 = arith.negf %478 : vector<8x128xf32>
    %480 = math.exp %479 : vector<8x128xf32>
    %cst_112 = arith.constant 1.000000e+00 : f32
    %481 = vector.broadcast %cst_112 : f32 to vector<8x128xf32>
    %482 = arith.addf %481, %480 : vector<8x128xf32>
    %483 = arith.divf %481, %482 : vector<8x128xf32>
    %484 = vector.extract_strided_slice %477 {offsets = [0, 128], sizes = [8, 128], strides = [1, 1]} : vector<8x512xf32> to vector<8x128xf32>
    %485 = arith.negf %484 : vector<8x128xf32>
    %486 = math.exp %485 : vector<8x128xf32>
    %cst_113 = arith.constant 1.000000e+00 : f32
    %487 = vector.broadcast %cst_113 : f32 to vector<8x128xf32>
    %488 = arith.addf %487, %486 : vector<8x128xf32>
    %489 = arith.divf %487, %488 : vector<8x128xf32>
    %490 = vector.extract_strided_slice %477 {offsets = [0, 256], sizes = [8, 128], strides = [1, 1]} : vector<8x512xf32> to vector<8x128xf32>
    %491 = math.tanh %490 : vector<8x128xf32>
    %492 = vector.extract_strided_slice %477 {offsets = [0, 384], sizes = [8, 128], strides = [1, 1]} : vector<8x512xf32> to vector<8x128xf32>
    %493 = arith.negf %492 : vector<8x128xf32>
    %494 = math.exp %493 : vector<8x128xf32>
    %cst_114 = arith.constant 1.000000e+00 : f32
    %495 = vector.broadcast %cst_114 : f32 to vector<8x128xf32>
    %496 = arith.addf %495, %494 : vector<8x128xf32>
    %497 = arith.divf %495, %496 : vector<8x128xf32>
    %498 = arith.mulf %489, %438 : vector<8x128xf32>
    %499 = arith.mulf %483, %491 : vector<8x128xf32>
    %500 = arith.addf %498, %499 : vector<8x128xf32>
    %501 = math.tanh %500 : vector<8x128xf32>
    %502 = arith.mulf %497, %501 : vector<8x128xf32>
    %c0_115 = arith.constant 0 : index
    %c7_116 = arith.constant 7 : index
    %c0_117 = arith.constant 0 : index
    %503 = vector.load %arg6[%c0_115, %c7_116, %c0_117] : memref<8x8x128xf32, #tpu.memory_space<vmem>>, vector<8x1x128xf32>
    %504 = vector.shape_cast %503 : vector<8x1x128xf32> to vector<8x128xf32>
    %505 = vector.shape_cast %502 : vector<8x128xf32> to vector<8x1x128xf32>
    tpu.vector_store %arg6[%c0_115, %c7_116, %c0_117], %505 {strides = array<i32>} : memref<8x8x128xf32, #tpu.memory_space<vmem>>, vector<8x1x128xf32>,
    %c0_118 = arith.constant 0 : index
    %c0_119 = arith.constant 0 : index
    %506 = vector.load %arg7[%c0_118, %c0_119] : memref<8x128xf32, #tpu.memory_space<vmem>>, vector<8x128xf32>
    tpu.vector_store %arg7[%c0_118, %c0_119], %473 {strides = array<i32>} : memref<8x128xf32, #tpu.memory_space<vmem>>, vector<8x128xf32>,
    %c0_120 = arith.constant 0 : index
    %c0_121 = arith.constant 0 : index
    %507 = vector.load %arg8[%c0_120, %c0_121] : memref<8x128xf32, #tpu.memory_space<vmem>>, vector<8x128xf32>
    tpu.vector_store %arg8[%c0_120, %c0_121], %471 {strides = array<i32>} : memref<8x128xf32, #tpu.memory_space<vmem>>, vector<8x128xf32>,
    %c0_122 = arith.constant 0 : index
    %c0_123 = arith.constant 0 : index
    %508 = vector.load %arg9[%c0_122, %c0_123] : memref<8x128xf32, #tpu.memory_space<vmem>>, vector<8x128xf32>
    tpu.vector_store %arg9[%c0_122, %c0_123], %502 {strides = array<i32>} : memref<8x128xf32, #tpu.memory_space<vmem>>, vector<8x128xf32>,
    %c0_124 = arith.constant 0 : index
    %c0_125 = arith.constant 0 : index
    %509 = vector.load %arg10[%c0_124, %c0_125] : memref<8x128xf32, #tpu.memory_space<vmem>>, vector<8x128xf32>
    tpu.vector_store %arg10[%c0_124, %c0_125], %500 {strides = array<i32>} : memref<8x128xf32, #tpu.memory_space<vmem>>, vector<8x128xf32>,
    return
  }
  func.func @transform_0(%arg0: i32, %arg1: i32) -> (i32, i32, i32) {
    %c0_i32 = arith.constant 0 : i32
    %c0_i32_0 = arith.constant 0 : i32
    return %arg0, %arg1, %c0_i32 : i32, i32, i32
  }
  func.func @transform_1(%arg0: i32, %arg1: i32) -> (i32, i32) {
    %c0_i32 = arith.constant 0 : i32
    %c0_i32_0 = arith.constant 0 : i32
    %c0_i32_1 = arith.constant 0 : i32
    return %c0_i32, %c0_i32_0 : i32, i32
  }
  func.func @transform_2(%arg0: i32, %arg1: i32) -> (i32, i32) {
    %c0_i32 = arith.constant 0 : i32
    %c0_i32_0 = arith.constant 0 : i32
    %c0_i32_1 = arith.constant 0 : i32
    return %c0_i32, %c0_i32_0 : i32, i32
  }
  func.func @transform_3(%arg0: i32, %arg1: i32) -> (i32, i32) {
    %c0_i32 = arith.constant 0 : i32
    %c0_i32_0 = arith.constant 0 : i32
    return %arg0, %c0_i32 : i32, i32
  }
  func.func @transform_4(%arg0: i32, %arg1: i32) -> (i32, i32, i32) {
    %c0_i32 = arith.constant 0 : i32
    %c0_i32_0 = arith.constant 0 : i32
    return %arg0, %arg1, %c0_i32 : i32, i32, i32
  }
}

</mosaic_0001>

<bundles_post_ra>
// kernel: tpu_custom_call.1
= control target key start
LH: loop header
LB: loop body
LE: loop exit
PB: predicated region body
PF: predicated region fallthrough
CT: control target
= control target key end

     0   :  { %s12334_s0 = inlined_call_operand.hbm [shape: f32[16,16,512], index: 0, kind: input, shape index: {}]   ;;  %s12335_s1 = inlined_call_operand.hbm [shape: bf16[128,512], index: 1, kind: input, shape index: {}]   ;;  %s12336_s2 = inlined_call_operand.hbm [shape: bf16[256,512], index: 2, kind: input, shape index: {}]   ;;  %s12337_s3 = inlined_call_operand.hbm [shape: f32[16,512], index: 3, kind: input, shape index: {}]   ;;  %s12338_s4 = inlined_call_operand.hbm [shape: f32[16,16,128], index: 4, kind: output, shape index: {}]  }
   0x1   :  { %12581 = sst [smem:[#allocation80_spill]] %s12334_s0 }
   0x2   :  { %12582 = sst [smem:[#allocation81_spill]] %s12335_s1 }
   0x3   :  { %12583 = sst [smem:[#allocation82_spill]] %s12336_s2 }
   0x4   :  { %12584 = sst [smem:[#allocation83_spill]] %s12338_s4 }
   0x5   :  { %9 = vsyncpa [#allocation7], 0 }
   0x6   :  { %11 = vsyncpa [#allocation7 + $0x1], 0 }
   0x7   :  { %12 = vsyncpa [#allocation10], 0 }
   0x8   :  { %13 = vsyncpa [#allocation13], 0 }
   0x9   :  { %15 = vsyncpa [#allocation13 + $0x1], 0 }
   0xa   :  { %16 = vsyncpa [#allocation8], 0 }
   0xb   :  { %18 = vsyncpa [#allocation8 + $0x1], 0  ;;  %s9279_s15 = smov 0   ;;  %s9281_s16 = smov 0  }
   0xc   :  { %s9283_s17 = smov 0   ;;  %s9285_s18 = smov 0  }
   0xd   :  { %s9287_s19 = smov 0   ;;  %s9289_s20 = smov 0  }
   0xe   :  { %s9291_s21 = smov 0   ;;  %s9293_s22 = smov 0  }
   0xf   :  { %s9295_s23 = smov 0   ;;  %s9297_s24 = smov 0  }
  0x10   :  { %s9299_s25 = smov 0  }
  0x11 LB: > { %12585 = sst [smem:[#allocation19_spill]] %s9208_s18  ;;  %s12339_s26 = sadd.s32 4294967295, %s9236_s25   ;;  %s9236_s25 = sphi %s9299_s25, %s24_s25   ;;  %s9232_s24 = sphi %s9297_s24, %s13080_s24   ;;  %s9228_s23 = sphi %s9295_s23, %s13072_s23   ;;  %s9224_s22 = sphi %s9293_s22, %s13079_s22   ;;  %s9220_s21 = sphi %s9291_s21, %s13071_s21   ;;  %s9216_s20 = sphi %s9289_s20, %s13078_s20   ;;  %s9212_s19 = sphi %s9287_s19, %s13077_s19   ;;  %s9208_s18 = sphi %s9285_s18, %s13076_s18   ;;  %s9204_s17 = sphi %s9283_s17, %s13075_s17   ;;  %s9200_s16 = sphi %s9281_s16, %s13074_s16   ;;  %s9196_s15 = sphi %s9279_s15, %s13073_s15  }
  0x12   : > { %12586 = sst [smem:[#allocation20_spill]] %s9228_s23  ;;  %s6780_s27 = sadd.s32 4294967294, %s9236_s25  }
  0x13   : > { %p58_p0 = scmp.ne.s32.totalorder %s9212_s19, %s9208_s18  ;;  %p9340_p1 = scmp.eq.s32.totalorder %s12339_s26, 0 }
  0x14   : > { %p158_p2 = scmp.eq.s32.totalorder %s6780_s27, 3  ;;  %p6781_p4 = scmp.ge.s32.totalorder %s9236_s25, 1 }
  0x15   : > { %s12587_s28 = scalar_select %p9340_p1, 1, 0 }
  0x16   : > { %p9346_p3 = por %p9340_p1, %p58_p0  ;;  %p9351_p5 = por %p158_p2, %p58_p0 }
  0x17   : > { %p165_p6 = scmp.lt.s32.totalorder %s9236_s25, 5  ;;  %s9238_s6 = smov [#allocation9]  }
  0x18   : > { %s12588_s29 = scalar_select %p9346_p3, 1, 0 }
  0x19   : > { %s12589_s30 = scalar_select %p9351_p5, 1, 0 }
  0x1a   : > { %p9356_p7 = pnand %p6781_p4, %p165_p6  ;;  %s177_s7 = sshll.u32 %s9238_s6, 4  ;;  %s178_s7 = int_to_ptr.vmem [resolvable:$true] %s177_s7 }
  0x1b   : > { %12590 = sst [smem:[#allocation21_spill]] %s12589_s30  ;;  %s9239_s9 = smov [#allocation11]  }
  0x1c   : > { %s12591_s5 = scalar_select %p9356_p7, 1, 0 }
  0x1d   : > { %p7230_p8 = pneg %p9356_p7  ;;  %s190_s10 = sshll.u32 %s9239_s9, 4  ;;  %s9368_s10 = int_to_ptr.vmem [resolvable:$true] %s190_s10 }
  0x1e   : > { %s12593_s1 = sld [smem:[#allocation81_spill]] }
  0x1f   : > { %p9364_p9 = pnand %p7230_p8, %p9340_p1 }
  0x21   : > { %p8992_p11 = pneg %p9364_p9 }
  0x24   : > { %s8990_s13 = scalar_lea.hbm %s12593_s1, 4096 }
  0x25   : > { %p8991_p10 = scmp.ne.s32.totalorder %s12593_s1, %s8990_s13  ;;  %p8997_p0 = scmp.lt.u32.totalorder %s8990_s13, %s12593_s1 }
  0x27   : > { %p8993_p12 = pnand %p8992_p11, %p8991_p10 }
  0x29   : > { %p8994_p13 = pneg %p8993_p12 }
  0x2b   : > { %p8999_p2 = pnand %p8997_p0, %p8994_p13 }
  0x2d   : > { %9002 = shalt.err (!%p8999_p2)
}
  0x2e   : > { %s9003_s9 = scalar_lea.vmem %s178_s7, 4096  ;;  %p9011_p5 = scmp.lt.s32.totalorder %s178_s7, %s178_s7 }
  0x2f   : > { %p9004_p4 = scmp.ne.s32.totalorder %s178_s7, %s9003_s9  ;;  %p9012_p3 = scmp.lt.s32.totalorder %s9003_s9, %s9003_s9 }
  0x31   : > { %p9006_p6 = pnand %p9004_p4, %p8992_p11  ;;  %p9013_p7 = por %p9012_p3, %p9011_p5 }
  0x33   : > { %p9007_p8 = pneg %p9006_p6 }
  0x35   : > { %p9014_p1 = pnand %p9013_p7, %p9007_p8 }
  0x37   : > { %9017 = shalt.err (!%p9014_p1)
}
  0x38   : > { %s9240_s11 = smov 256   ;;  %s9241_s12 = smov 16  }
  0x39   : > { %7233 = dma.hbm_to_vmem [thread:$0]  (!%p9364_p9), %s12593_s1, 4096, %s178_s7, [#allocation10], %s9240_s11, %s9240_s11, %s9241_s12  }
  0x3a   : > { %s12594_s2 = sld [smem:[#allocation82_spill]] }
  0x40   : > { %s9018_s6 = scalar_lea.hbm %s12594_s2, 8192 }
  0x41   : > { %p9019_p10 = scmp.ne.s32.totalorder %s12594_s2, %s9018_s6  ;;  %p9025_p5 = scmp.lt.u32.totalorder %s9018_s6, %s12594_s2 }
  0x43   : > { %p9021_p1 = pnand %p9019_p10, %p8992_p11 }
  0x45   : > { %p9022_p3 = pneg %p9021_p1 }
  0x47   : > { %p9027_p7 = pnand %p9025_p5, %p9022_p3 }
  0x49   : > { %9030 = shalt.err (!%p9027_p7)
}
  0x4a   : > { %s9031_s7 = scalar_lea.vmem %s9368_s10, 8192  ;;  %p9039_p2 = scmp.lt.s32.totalorder %s9368_s10, %s9368_s10 }
  0x4b   : > { %p9032_p12 = scmp.ne.s32.totalorder %s9368_s10, %s9031_s7  ;;  %p9040_p4 = scmp.lt.s32.totalorder %s9031_s7, %s9031_s7 }
  0x4d   : > { %p9034_p13 = pnand %p9032_p12, %p8992_p11  ;;  %p9041_p6 = por %p9040_p4, %p9039_p2 }
  0x4f   : > { %p9035_p0 = pneg %p9034_p13 }
  0x51   : > { %p9042_p8 = pnand %p9041_p6, %p9035_p0 }
  0x53   : > { %9045 = shalt.err (!%p9042_p8)
}
  0x54   : > { %7236 = dma.hbm_to_vmem [thread:$0]  (!%p9364_p9), %s12594_s2, 8192, %s9368_s10, [#allocation10], %s9240_s11, %s9240_s11, %s9241_s12  }
  0x55   : > { %s12595_s30 = sadd.s32 4294967295, %s9236_s25   ;;  %s33_s26 = sadd.s32 1, %s9228_s23 }
  0x56   : > { %p152_p11 = scmp.eq.s32.totalorder %s12595_s30, 3  ;;  %p9420_p10 = scmp.ge.s32.totalorder %s33_s26, 2 }
  0x57   : > { %p52_p1 = scmp.ne.s32.totalorder %s9216_s20, %s9212_s19  ;;  %p12348_p3 = scmp.eq.s32.totalorder %s9236_s25, 0 }
  0x58   : > { %s13082_s26 = smov (%p9420_p10, %s33_s26), 0  ;;  %p12347_p9 = scmp.lt.s32.totalorder %s9236_s25, 4 }
  0x59   : > { %12597 = sst [smem:[#allocation22_spill]] %s13082_s26  ;;  %p9432_p5 = por %p152_p11, %p52_p1 }
  0x5a   : > { %p54_p7 = por %p12348_p3, %p52_p1  ;;  %s204_s10 = sand.u32 1, %s9216_s20  }
  0x5b   : > { %s12598_s14 = scalar_select %p9432_p5, 1, 0 }
  0x5c   : > { %s6785_s11 = sshll.u32 %s204_s10, 8  ;;  %s6787_s12 = sshll.u32 %s9228_s23, 2 }
  0x5d   : > { %s7213_s27 = sshll.u32 %s9232_s24, 6  ;;  %s208_s6 = scalar_lea.vmem [#allocation6], %s6785_s11 }
  0x5e   : > { %s218_s9 = sshll.u32 %s208_s6, 4  ;;  %s215_s7 = sadd.s32 %s7213_s27, %s6787_s12  ;;  %s9442_s9 = int_to_ptr.vmem [resolvable:$true] %s218_s9 }
  0x5f   : > { %s6789_s4 = sshll.u32 %s215_s7, 7  ;;  %p9446_p12 = pnand %p12347_p9, %p54_p7 }
  0x60   : > { %s12600_s0 = sld [smem:[#allocation80_spill]]  ;;  %s9455_s11 = scalar_lea.sflag [#allocation7], %s204_s10 }
  0x61   : > { %p9048_p0 = pneg %p9446_p12 }
  0x66   : > { %s9453_s1 = scalar_lea.hbm %s12600_s0, %s6789_s4  ;;  %s9051_s6 = scalar_lea.hbm %s12600_s0, 16384 }
  0x67   : > { %s9046_s12 = scalar_lea.hbm %s9453_s1, 4096  ;;  %p9052_p6 = scmp.lt.u32.totalorder %s9453_s1, %s12600_s0 }
  0x68   : > { %p9047_p13 = scmp.ne.s32.totalorder %s9453_s1, %s9046_s12  ;;  %p9053_p8 = scmp.lt.u32.totalorder %s9051_s6, %s9046_s12 }
  0x69   : > { %p9055_p1 = scmp.lt.u32.totalorder %s9046_s12, %s9453_s1 }
  0x6a   : > { %p9049_p2 = pnand %p9048_p0, %p9047_p13  ;;  %p9054_p11 = por %p9053_p8, %p9052_p6 }
  0x6c   : > { %p9050_p4 = pneg %p9049_p2  ;;  %p9056_p7 = por %p9055_p1, %p9054_p11 }
  0x6e   : > { %p9057_p9 = pnand %p9056_p7, %p9050_p4 }
  0x70   : > { %9060 = shalt.err (!%p9057_p9)
}
  0x71   : > { %s9061_s10 = scalar_lea.vmem %s9442_s9, 4096  ;;  %s9242_s30 = smov [#allocation6]  }
  0x72   : > { %p9062_p13 = scmp.ne.s32.totalorder %s9442_s9, %s9061_s10  ;;  %s9066_s27 = sshll.u32 %s9242_s30, 4  ;;  %s9067_s27 = int_to_ptr.vmem [resolvable:$false] %s9066_s27 }
  0x73   : > { %s9068_s13 = scalar_lea.vmem %s9067_s27, 8192  ;;  %p9069_p5 = scmp.lt.s32.totalorder %s9442_s9, %s9067_s27 }
  0x74   : > { %p9064_p2 = pnand %p9062_p13, %p9048_p0  ;;  %p9070_p6 = scmp.lt.s32.totalorder %s9068_s13, %s9061_s10 }
  0x76   : > { %p9065_p3 = pneg %p9064_p2  ;;  %p9071_p8 = por %p9070_p6, %p9069_p5 }
  0x78   : > { %p9072_p11 = pnand %p9071_p8, %p9065_p3 }
  0x7a   : > { %9075 = shalt.err (!%p9072_p11)
}
  0x7b   : > { %s9243_s12 = smov 1024   ;;  %s9244_s6 = smov 512  }
  0x7c   : > { %s9245_s7 = smov 32   ;;  %s36_s4 = sadd.s32 1, %s9232_s24 }
  0x7d   : > { %7240 = dma.hbm_to_vmem [thread:$0]  (!%p9446_p12), %s9453_s1, 4096, %s9442_s9, %s9455_s11, %s9243_s12, %s9244_s6, %s9245_s7  }
  0x7e   : > { %s13084_s4 = smov (!%p9420_p10, %s36_s4), %s9232_s24  ;;  %s41_s10 = ssub.s32 %s9228_s23, %s13082_s26 }
  0x7f   : > { %p120_p3 = scmp.ne.s32.totalorder %s9204_s17, %s9200_s16  ;;  %p38_p5 = scmp.ge.s32.totalorder %s13084_s4, 2 }
  0x80   : > { %p126_p9 = scmp.ne.s32.totalorder %s9200_s16, %s9196_s15  ;;  %s113_s30 = sadd.s32 1, %s9204_s17 }
  0x81   : > { %s228_s27 = sand.u32 1, %s9204_s17   ;;  %s13086_s4 = smov (%p38_p5, %s13084_s4), 0 }
  0x82   : > { %p12601_p0 = scmp.eq.s32.totalorder %s9236_s25, 0  ;;  %p12603_p12 = scmp.ne.s32.totalorder %s12587_s28, 0 }
  0x83   : > { %s40_s9 = ssub.s32 %s9232_s24, %s13086_s4  ;;  %s6790_s18 = sshll.u32 %s228_s27, 5 }
  0x84   : > { %p9499_p4 = por %p120_p3, %p12601_p0  ;;  %p9505_p10 = por %p126_p9, %p12603_p12 }
  0x85   : > { %s42_s15 = sor.u32 %s41_s10, %s40_s9  ;;  %p111_p1 = scmp.eq.s32.totalorder %s40_s9, 0 }
  0x86   : > { %p43_p7 = scmp.eq.s32.totalorder %s42_s15, 0  ;;  %s12605_s13 = sadd.s32 1, %s9216_s20 }
  0x87   : > { %s9512_s11 = scalar_select %p111_p1, %s9204_s17, %s113_s30  }
  0x88   : > { %s9517_s12 = scalar_select %p43_p7, %s9216_s20, %s12605_s13  }
  0x89   : > { %s7214_s6 = sshll.u32 %s9232_s24, 9  ;;  %s232_s7 = scalar_lea.vmem [#allocation12], %s6790_s18 }
  0x8a   : > { %s240_s0 = sshll.u32 %s232_s7, 4  ;;  %s9523_s23 = scalar_lea.hbm %s12337_s3, %s7214_s6  ;;  %s9525_s0 = int_to_ptr.vmem [resolvable:$true] %s240_s0 }
  0x8b   : > { %p12606_p13 = scmp.lt.s32.totalorder %s9236_s25, 4  ;;  %s229_s30 = scalar_lea.sflag [#allocation13], %s228_s27 }
  0x8c   : > { %s9076_s9 = scalar_lea.hbm %s9523_s23, 512  ;;  %s9081_s1 = scalar_lea.hbm %s12337_s3, 1024 }
  0x8d   : > { %p9531_p2 = pnand %p12606_p13, %p9499_p4  ;;  %p9077_p6 = scmp.ne.s32.totalorder %s9523_s23, %s9076_s9 }
  0x8e   : > { %p9082_p5 = scmp.lt.u32.totalorder %s9523_s23, %s12337_s3  ;;  %p9083_p9 = scmp.lt.u32.totalorder %s9081_s1, %s9076_s9 }
  0x8f   : > { %p9078_p8 = pneg %p9531_p2  ;;  %p9085_p4 = scmp.lt.u32.totalorder %s9076_s9, %s9523_s23 }
  0x90   : > { %p9084_p0 = por %p9083_p9, %p9082_p5 }
  0x91   : > { %p9079_p11 = pnand %p9078_p8, %p9077_p6 }
  0x92   : > { %p9086_p12 = por %p9085_p4, %p9084_p0 }
  0x93   : > { %p9080_p3 = pneg %p9079_p11 }
  0x95   : > { %p9087_p1 = pnand %p9086_p12, %p9080_p3 }
  0x97   : > { %9090 = shalt.err (!%p9087_p1)
}
  0x98   : > { %s9091_s27 = scalar_lea.vmem %s9525_s0, 512  ;;  %s9246_s13 = smov [#allocation12]  }
  0x99   : > { %p9092_p7 = scmp.ne.s32.totalorder %s9525_s0, %s9091_s27  ;;  %s9096_s6 = sshll.u32 %s9246_s13, 4  ;;  %s9097_s6 = int_to_ptr.vmem [resolvable:$false] %s9096_s6 }
  0x9a   : > { %s9098_s7 = scalar_lea.vmem %s9097_s6, 1024  ;;  %p9099_p11 = scmp.lt.s32.totalorder %s9525_s0, %s9097_s6 }
  0x9b   : > { %p9094_p13 = pnand %p9092_p7, %p9078_p8  ;;  %p9100_p5 = scmp.lt.s32.totalorder %s9098_s7, %s9091_s27 }
  0x9d   : > { %p9095_p6 = pneg %p9094_p13  ;;  %p9101_p9 = por %p9100_p5, %p9099_p11 }
  0x9f   : > { %p9102_p0 = pnand %p9101_p9, %p9095_p6 }
  0xa1   : > { %9105 = shalt.err (!%p9102_p0)
}
  0xa2   : > { %7243 = dma.hbm_to_vmem [thread:$0]  (!%p9531_p2), %s9523_s23, 512, %s9525_s0, %s229_s30  }
  0xa3   : > { %p12608_p3 = scmp.ne.s32.totalorder %s12591_s5, 0 }
  0xa5   : > { %249 = sbr.rel (%p12608_p3) target bundleno = 3246 (0xcae), region = 36 }
  0xac   : > { %s9563_s9 = sand.u32 1, %s9212_s19   ;;  %p12609_p8 = scmp.ne.s32.totalorder %s12588_s29, 0 }
  0xad   : > { %s6794_s2 = sshll.u32 %s9563_s9, 8  ;;  %s252_s26 = scalar_lea.sflag [#allocation7], %s9563_s9 }
  0xae   : > { %s9567_s1 = scalar_lea.vmem [#allocation6], %s6794_s2 }
  0xaf   : > { %9179 = dma.done.wait (%p12609_p8), %s252_s26, 4096  }
  0xb0   : > { %9181 = vsyncadd (%p12609_p8), %s252_s26, 4294963200  ;;  %p12610_p2 = scmp.ne.s32.totalorder %s12587_s28, 0 }
  0xb2   : > { %9183 = dma.done.wait (%p12610_p2), [#allocation10], 12288  }
  0xb3   : > { %9185 = vsyncadd (%p12610_p2), [#allocation10], 4294955008  ;;  %s268_s0 = sand.u32 1, %s9200_s16  }
  0xb4   : > { %s6797_s23 = sshll.u32 %s268_s0, 5  ;;  %s269_s5 = scalar_lea.sflag [#allocation13], %s268_s0 }
  0xb5   : > { %s9578_s10 = scalar_lea.vmem [#allocation12], %s6797_s23 }
  0xb6   : > { %9187 = dma.done.wait (%p9505_p10), %s269_s5, 512  }
  0xb7   : > { %9189 = vsyncadd (%p9505_p10), %s269_s5, 4294966784  ;;  %s6798_s29 = sshll.u32 %s9563_s9, 6  ;;  %p6799_p4 = scmp.ne.s32.totalorder %s9220_s21, 0 }
  0xb8   : > { %s9585_s30 = scalar_lea.vmem [#allocation14], %s6798_s29  ;;  %v9247_v0 = vmov (!%p6799_p4), 0.0  }
  0xb9   : > { %308 = sbr.rel (%p6799_p4) target bundleno = 192 (0xc0), region = 56  ;;  %309 = vst [vmem:[#allocation2] sm:$0xff] (!%p6799_p4), %v9247_v0  ;;  %310 = vst [vmem:[#allocation3] sm:$0xff] (!%p6799_p4), %v9247_v0 }
  0xba   : > { %311 = vst [vmem:[#allocation4] sm:$0xff] (!%p6799_p4), %v9247_v0  ;;  %312 = vst [vmem:[#allocation5] sm:$0xff] (!%p6799_p4), %v9247_v0 }
  0xc0 PF: > { %v9588_v1 = vld [vmem:[#allocation9 + $0x4] ss:$16 sps:$4 sm:$0xff]   ;;  %v9590_v2 = vld [vmem:[#allocation9 + $0xc] ss:$16 sps:$4 sm:$0xff]   ;;  %v12352_v3 = vmov 0   ;;  %vm1662_vm0 = vcmask 1041409  }
  0xc1   : > { %625 = vmatprep.mubr.bf16.mxu0 %v12352_v3  ;;  %666 = vmatprep.mubr.bf16.mxu1 %v12352_v3  ;;  %v7359_v4 = vld [vmem:[#allocation9] ss:$16 sps:$4 sm:$0xff]   ;;  %v7360_v5 = vld [vmem:[#allocation9 + $0x8] ss:$16 sps:$4 sm:$0xff]   ;;  %v7361_v6 = vld [vmem:[#allocation9 + $0x24] ss:$16 sps:$4 sm:$0xff]  }
  0xc2   : > { %593 = vmatprep.subr.bf16.mxu0 %v9588_v1  ;;  %634 = vmatprep.subr.bf16.mxu1 %v9590_v2  ;;  %v7363_v7 = vld [vmem:[#allocation9 + $0x2c] ss:$16 sps:$4 sm:$0xff]   ;;  %v7365_v8 = vld [vmem:[#allocation9 + $0x20] ss:$16 sps:$4 sm:$0xff]   ;;  %v7366_v9 = vld [vmem:[#allocation9 + $0x28] ss:$16 sps:$4 sm:$0xff]  }
  0xc3   : > { %594 = vmatpush1.bf16.msra.mxu0 %v7359_v4  ;;  %635 = vmatpush1.bf16.msra.mxu1 %v7360_v5  ;;  %v7367_v10 = vld [vmem:[#allocation9 + $0x44] ss:$16 sps:$4 sm:$0xff]   ;;  %v7369_v11 = vld [vmem:[#allocation9 + $0x4c] ss:$16 sps:$4 sm:$0xff]   ;;  %v7371_v12 = vld [vmem:[#allocation9 + $0x40] ss:$16 sps:$4 sm:$0xff]  }
  0xc4   : > { %595 = vmatprep.subr.bf16.mxu0 %v7361_v6  ;;  %636 = vmatprep.subr.bf16.mxu1 %v7363_v7  ;;  %v7372_v13 = vld [vmem:[#allocation9 + $0x48] ss:$16 sps:$4 sm:$0xff]   ;;  %v7373_v14 = vld [vmem:[#allocation9 + $0x64] ss:$16 sps:$4 sm:$0xff]   ;;  %v7375_v15 = vld [vmem:[#allocation9 + $0x6c] ss:$16 sps:$4 sm:$0xff]  }
  0xc5   : > { %v7377_v16 = vld [vmem:[#allocation9 + $0x60] ss:$16 sps:$4 sm:$0xff]   ;;  %v7378_v17 = vld [vmem:[#allocation9 + $0x68] ss:$16 sps:$4 sm:$0xff]   ;;  %v7379_v18 = vld [vmem:[#allocation9 + $0x84] ss:$16 sps:$4 sm:$0xff]  }
  0xc6   : > { %v7381_v19 = vld [vmem:[#allocation9 + $0x8c] ss:$16 sps:$4 sm:$0xff]   ;;  %v7383_v20 = vld [vmem:[#allocation9 + $0x80] ss:$16 sps:$4 sm:$0xff]   ;;  %v7384_v21 = vld [vmem:[#allocation9 + $0x88] ss:$16 sps:$4 sm:$0xff]  }
  0xc7   : > { %596 = vmatpush1.bf16.msra.mxu0 %v7365_v8  ;;  %637 = vmatpush1.bf16.msra.mxu1 %v7366_v9  ;;  %v7385_v22 = vld [vmem:[#allocation9 + $0xa4] ss:$16 sps:$4 sm:$0xff]   ;;  %v7387_v23 = vld [vmem:[#allocation9 + $0xac] ss:$16 sps:$4 sm:$0xff]   ;;  %v7389_v24 = vld [vmem:[#allocation9 + $0xa0] ss:$16 sps:$4 sm:$0xff]  }
  0xc8   : > { %597 = vmatprep.subr.bf16.mxu0 %v7367_v10  ;;  %638 = vmatprep.subr.bf16.mxu1 %v7369_v11  ;;  %v7390_v25 = vld [vmem:[#allocation9 + $0xa8] ss:$16 sps:$4 sm:$0xff]   ;;  %v7391_v26 = vld [vmem:[#allocation9 + $0xc4] ss:$16 sps:$4 sm:$0xff]   ;;  %v7393_v27 = vld [vmem:[#allocation9 + $0xcc] ss:$16 sps:$4 sm:$0xff]  }
  0xc9   : > { %v7395_v28 = vld [vmem:[#allocation9 + $0xc0] ss:$16 sps:$4 sm:$0xff]   ;;  %v7396_v29 = vld [vmem:[#allocation9 + $0xc8] ss:$16 sps:$4 sm:$0xff]   ;;  %v7397_v30 = vld [vmem:[#allocation9 + $0xe4] ss:$16 sps:$4 sm:$0xff]  }
  0xca   : > { %v7399_v31 = vld [vmem:[#allocation9 + $0xec] ss:$16 sps:$4 sm:$0xff]   ;;  %v7401_v32 = vld [vmem:[#allocation9 + $0xe0] ss:$16 sps:$4 sm:$0xff]   ;;  %v7402_v33 = vld [vmem:[#allocation9 + $0xe8] ss:$16 sps:$4 sm:$0xff]  }
  0xcb   : > { %598 = vmatpush1.bf16.msra.mxu0 %v7371_v12  ;;  %639 = vmatpush1.bf16.msra.mxu1 %v7372_v13  ;;  %v413_v34 = vld [vmem:[#allocation2] sm:$0xff]  ;;  %v7405_v37 = vld [vmem:[#allocation11 + $0xc] ss:$16 sps:$4 sm:$0xff]   ;;  %v7408_v39 = vld [vmem:[#allocation11 + $0x8] ss:$16 sps:$4 sm:$0xff]   ;;  %vm1665_vm1 = vcmask 1042434  }
  0xcc   : > { %599 = vmatprep.subr.bf16.mxu0 %v7373_v14  ;;  %640 = vmatprep.subr.bf16.mxu1 %v7375_v15  ;;  %v432_v35 = vpack.c.bf16 %v413_v34, %v413_v34  ;;  %v7403_v36 = vld [vmem:[#allocation11 + $0x4] ss:$16 sps:$4 sm:$0xff]   ;;  %v7407_v38 = vld [vmem:[#allocation11] ss:$16 sps:$4 sm:$0xff]   ;;  %v7411_v41 = vld [vmem:[#allocation11 + $0x2c] ss:$16 sps:$4 sm:$0xff]  }
  0xcd   : > { %v7409_v40 = vld [vmem:[#allocation11 + $0x24] ss:$16 sps:$4 sm:$0xff]   ;;  %v7413_v42 = vld [vmem:[#allocation11 + $0x20] ss:$16 sps:$4 sm:$0xff]   ;;  %v7414_v43 = vld [vmem:[#allocation11 + $0x28] ss:$16 sps:$4 sm:$0xff]  }
  0xce   : > { %v9596_v44 = vld [vmem:[#allocation11 + $0x44] ss:$16 sps:$4 sm:$0xff]   ;;  %v9598_v45 = vld [vmem:[#allocation11 + $0x4c] ss:$16 sps:$4 sm:$0xff]   ;;  %v9600_v46 = vld [vmem:[#allocation11 + $0x40] ss:$16 sps:$4 sm:$0xff]  }
  0xcf   : > { %600 = vmatpush1.bf16.msra.mxu0 %v7377_v16  ;;  %641 = vmatpush1.bf16.msra.mxu1 %v7378_v17  ;;  %v9602_v47 = vld [vmem:[#allocation11 + $0x48] ss:$16 sps:$4 sm:$0xff]   ;;  %v9608_v48 = vld [vmem:[#allocation11 + $0x64] ss:$16 sps:$4 sm:$0xff]   ;;  %v9610_v49 = vld [vmem:[#allocation11 + $0x6c] ss:$16 sps:$4 sm:$0xff]  }
  0xd0   : > { %601 = vmatprep.subr.bf16.mxu0 %v7379_v18  ;;  %642 = vmatprep.subr.bf16.mxu1 %v7381_v19  ;;  %v9612_v50 = vld [vmem:[#allocation11 + $0x60] ss:$16 sps:$4 sm:$0xff]   ;;  %v9614_v51 = vld [vmem:[#allocation11 + $0x68] ss:$16 sps:$4 sm:$0xff]   ;;  %v9620_v52 = vld [vmem:[#allocation11 + $0x84] ss:$16 sps:$4 sm:$0xff]  }
  0xd1   : > { %v9622_v53 = vld [vmem:[#allocation11 + $0x8c] ss:$16 sps:$4 sm:$0xff]   ;;  %v9624_v54 = vld [vmem:[#allocation11 + $0x80] ss:$16 sps:$4 sm:$0xff]   ;;  %v9626_v55 = vld [vmem:[#allocation11 + $0x88] ss:$16 sps:$4 sm:$0xff]  }
  0xd2   : > { %v9632_v56 = vld [vmem:[#allocation11 + $0xa4] ss:$16 sps:$4 sm:$0xff]   ;;  %v9634_v57 = vld [vmem:[#allocation11 + $0xac] ss:$16 sps:$4 sm:$0xff]   ;;  %v9636_v58 = vld [vmem:[#allocation11 + $0xa0] ss:$16 sps:$4 sm:$0xff]  }
  0xd3   : > { %602 = vmatpush1.bf16.msra.mxu0 %v7383_v20  ;;  %643 = vmatpush1.bf16.msra.mxu1 %v7384_v21  ;;  %v9638_v59 = vld [vmem:[#allocation11 + $0xa8] ss:$16 sps:$4 sm:$0xff]   ;;  %v9644_v60 = vld [vmem:[#allocation11 + $0xc4] ss:$16 sps:$4 sm:$0xff]   ;;  %v9646_v61 = vld [vmem:[#allocation11 + $0xcc] ss:$16 sps:$4 sm:$0xff]  }
  0xd4   : > { %603 = vmatprep.subr.bf16.mxu0 %v7385_v22  ;;  %644 = vmatprep.subr.bf16.mxu1 %v7387_v23  ;;  %v9648_v62 = vld [vmem:[#allocation11 + $0xc0] ss:$16 sps:$4 sm:$0xff]   ;;  %v9650_v63 = vld [vmem:[#allocation11 + $0xc8] ss:$16 sps:$4 sm:$0xff]   ;;  %v9656_v0 = vld [vmem:[#allocation11 + $0xe4] ss:$16 sps:$4 sm:$0xff]  }
  0xd5   : > { %v9658_v4 = vld [vmem:[#allocation11 + $0xec] ss:$16 sps:$4 sm:$0xff]   ;;  %v9660_v5 = vld [vmem:[#allocation11 + $0xe0] ss:$16 sps:$4 sm:$0xff]   ;;  %v9662_v6 = vld [vmem:[#allocation11 + $0xe8] ss:$16 sps:$4 sm:$0xff]  }
  0xd6   : > { %12611 = vst [vmem:[#allocation23_spill] sm:$0xff] %v9658_v4  ;;  %12612 = vst [vmem:[#allocation24_spill] sm:$0xff] %v9660_v5  ;;  %v9664_v7 = vld [vmem:[#allocation11 + $0x104] ss:$16 sps:$4 sm:$0xff]   ;;  %v9666_v8 = vld [vmem:[#allocation11 + $0x10c] ss:$16 sps:$4 sm:$0xff]  }
  0xd7   : > { %604 = vmatpush1.bf16.msra.mxu0 %v7389_v24  ;;  %645 = vmatpush1.bf16.msra.mxu1 %v7390_v25  ;;  %12613 = vst [vmem:[#allocation25_spill] sm:$0xff] %v9662_v6  ;;  %12614 = vst [vmem:[#allocation26_spill] sm:$0xff] %v9664_v7  ;;  %v9672_v9 = vld [vmem:[#allocation11 + $0x100] ss:$16 sps:$4 sm:$0xff]   ;;  %v9674_v10 = vld [vmem:[#allocation11 + $0x108] ss:$16 sps:$4 sm:$0xff]  }
  0xd8   : > { %605 = vmatprep.subr.bf16.mxu0 %v7391_v26  ;;  %646 = vmatprep.subr.bf16.mxu1 %v7393_v27  ;;  %12615 = vst [vmem:[#allocation27_spill] sm:$0xff] %v9666_v8  ;;  %12616 = vst [vmem:[#allocation28_spill] sm:$0xff] %v9672_v9  ;;  %v9678_v11 = vld [vmem:[#allocation11 + $0x124] ss:$16 sps:$4 sm:$0xff]   ;;  %v9680_v12 = vld [vmem:[#allocation11 + $0x12c] ss:$16 sps:$4 sm:$0xff]  }
  0xd9   : > { %12617 = vst [vmem:[#allocation29_spill] sm:$0xff] %v9674_v10  ;;  %12618 = vst [vmem:[#allocation30_spill] sm:$0xff] %v9678_v11  ;;  %v9684_v13 = vld [vmem:[#allocation11 + $0x120] ss:$16 sps:$4 sm:$0xff]   ;;  %v9686_v14 = vld [vmem:[#allocation11 + $0x128] ss:$16 sps:$4 sm:$0xff]  }
  0xda   : > { %12619 = vst [vmem:[#allocation31_spill] sm:$0xff] %v9680_v12  ;;  %12620 = vst [vmem:[#allocation32_spill] sm:$0xff] %v9684_v13  ;;  %v9690_v15 = vld [vmem:[#allocation11 + $0x144] ss:$16 sps:$4 sm:$0xff]   ;;  %v9692_v16 = vld [vmem:[#allocation11 + $0x14c] ss:$16 sps:$4 sm:$0xff]  }
  0xdb   : > { %606 = vmatpush1.bf16.msra.mxu0 %v7395_v28  ;;  %647 = vmatpush1.bf16.msra.mxu1 %v7396_v29  ;;  %12621 = vst [vmem:[#allocation33_spill] sm:$0xff] %v9686_v14  ;;  %12622 = vst [vmem:[#allocation34_spill] sm:$0xff] %v9690_v15  ;;  %v9696_v17 = vld [vmem:[#allocation11 + $0x140] ss:$16 sps:$4 sm:$0xff]   ;;  %v9698_v18 = vld [vmem:[#allocation11 + $0x148] ss:$16 sps:$4 sm:$0xff]  }
  0xdc   : > { %607 = vmatprep.subr.bf16.mxu0 %v7397_v30  ;;  %648 = vmatprep.subr.bf16.mxu1 %v7399_v31  ;;  %12623 = vst [vmem:[#allocation35_spill] sm:$0xff] %v9692_v16  ;;  %12624 = vst [vmem:[#allocation36_spill] sm:$0xff] %v9696_v17  ;;  %v415_v19 = vld [vmem:[#allocation4] sm:$0xff]  ;;  %v9704_v21 = vld [vmem:[#allocation11 + $0x16c] ss:$16 sps:$4 sm:$0xff]   ;;  %vm1668_vm2 = vcmask 1043459  }
  0xdd   : > { %12625 = vst [vmem:[#allocation37_spill] sm:$0xff] %v9698_v18  ;;  %v9702_v20 = vld [vmem:[#allocation11 + $0x164] ss:$16 sps:$4 sm:$0xff]   ;;  %12627 = vst [vmem:[#allocation39_spill] sm:$0xff] %v9704_v21  ;;  %v1128_v22 = vpack.c.bf16 %v415_v19, %v415_v19  ;;  %v9708_v23 = vld [vmem:[#allocation11 + $0x160] ss:$16 sps:$4 sm:$0xff]  }
  0xde   : > { %12626 = vst [vmem:[#allocation38_spill] sm:$0xff] %v9702_v20  ;;  %12628 = vst [vmem:[#allocation40_spill] sm:$0xff] %v9708_v23  ;;  %v9710_v24 = vld [vmem:[#allocation11 + $0x168] ss:$16 sps:$4 sm:$0xff]   ;;  %v9714_v25 = vld [vmem:[#allocation11 + $0x184] ss:$16 sps:$4 sm:$0xff]  }
  0xdf   : > { %608 = vmatpush1.bf16.msra.mxu0 %v7401_v32  ;;  %649 = vmatpush1.bf16.msra.mxu1 %v7402_v33  ;;  %12629 = vst [vmem:[#allocation41_spill] sm:$0xff] %v9710_v24  ;;  %12630 = vst [vmem:[#allocation42_spill] sm:$0xff] %v9714_v25  ;;  %v9716_v26 = vld [vmem:[#allocation11 + $0x18c] ss:$16 sps:$4 sm:$0xff]   ;;  %v9720_v27 = vld [vmem:[#allocation11 + $0x180] ss:$16 sps:$4 sm:$0xff]  }
  0xe0   : > { %1449 = vmatprep.subr.bf16.mxu0 %v7403_v36  ;;  %1490 = vmatprep.subr.bf16.mxu1 %v7405_v37  ;;  %12631 = vst [vmem:[#allocation43_spill] sm:$0xff] %v9716_v26  ;;  %12632 = vst [vmem:[#allocation44_spill] sm:$0xff] %v9720_v27  ;;  %v9722_v28 = vld [vmem:[#allocation11 + $0x188] ss:$16 sps:$4 sm:$0xff]   ;;  %v9726_v29 = vld [vmem:[#allocation11 + $0x1a4] ss:$16 sps:$4 sm:$0xff]  }
  0xe1   : > { %12633 = vst [vmem:[#allocation45_spill] sm:$0xff] %v9722_v28  ;;  %12634 = vst [vmem:[#allocation46_spill] sm:$0xff] %v9726_v29  ;;  %v9728_v30 = vld [vmem:[#allocation11 + $0x1ac] ss:$16 sps:$4 sm:$0xff]   ;;  %v9732_v31 = vld [vmem:[#allocation11 + $0x1a0] ss:$16 sps:$4 sm:$0xff]  }
  0xe2   : > { %626 = vmatmul.mubr.bf16.vlgmr.msra.gmra.mrb[0].mxu0 %v432_v35  ;;  %667 = vmatmul.mubr.bf16.vlgmr.msra.gmra.mrb[0].mxu1 %v432_v35  ;;  %12635 = vst [vmem:[#allocation47_spill] sm:$0xff] %v9728_v30  ;;  %12636 = vst [vmem:[#allocation48_spill] sm:$0xff] %v9732_v31  ;;  %v9734_v32 = vld [vmem:[#allocation11 + $0x1a8] ss:$16 sps:$4 sm:$0xff]   ;;  %v9738_v33 = vld [vmem:[#allocation11 + $0x1c4] ss:$16 sps:$4 sm:$0xff]  }
  0xe3   : > { %1450 = vmatpush1.bf16.msra.mxu0 %v7407_v38  ;;  %1491 = vmatpush1.bf16.msra.mxu1 %v7408_v39  ;;  %12637 = vst [vmem:[#allocation49_spill] sm:$0xff] %v9734_v32  ;;  %12638 = vst [vmem:[#allocation50_spill] sm:$0xff] %v9738_v33  ;;  %v9740_v34 = vld [vmem:[#allocation11 + $0x1cc] ss:$16 sps:$4 sm:$0xff]   ;;  %v9744_v35 = vld [vmem:[#allocation11 + $0x1c0] ss:$16 sps:$4 sm:$0xff]  }
  0xe4   : > { %1451 = vmatprep.subr.bf16.mxu0 %v7409_v40  ;;  %1492 = vmatprep.subr.bf16.mxu1 %v7411_v41  ;;  %12639 = vst [vmem:[#allocation51_spill] sm:$0xff] %v9740_v34  ;;  %12640 = vst [vmem:[#allocation52_spill] sm:$0xff] %v9744_v35  ;;  %v9746_v36 = vld [vmem:[#allocation11 + $0x1c8] ss:$16 sps:$4 sm:$0xff]   ;;  %v9750_v37 = vld [vmem:[#allocation11 + $0x1e4] ss:$16 sps:$4 sm:$0xff]  }
  0xe5   : > { %1481 = vmatprep.mubr.bf16.mxu0 %v1128_v22  ;;  %1522 = vmatprep.mubr.bf16.mxu1 %v1128_v22  ;;  %12641 = vst [vmem:[#allocation53_spill] sm:$0xff] %v9746_v36  ;;  %12642 = vst [vmem:[#allocation54_spill] sm:$0xff] %v9750_v37  ;;  %v9752_v38 = vld [vmem:[#allocation11 + $0x1ec] ss:$16 sps:$4 sm:$0xff]   ;;  %v9756_v39 = vld [vmem:[#allocation11 + $0x1e0] ss:$16 sps:$4 sm:$0xff]  }
  0xe6   : > { %12643 = vst [vmem:[#allocation55_spill] sm:$0xff] %v9752_v38  ;;  %12644 = vst [vmem:[#allocation56_spill] sm:$0xff] %v9756_v39  ;;  %v9758_v40 = vld [vmem:[#allocation11 + $0x1e8] ss:$16 sps:$4 sm:$0xff]   ;;  %v9249_v41 = vmov 1966171168  }
  0xe7   : > { %1452 = vmatpush1.bf16.msra.mxu0 %v7413_v42  ;;  %1493 = vmatpush1.bf16.msra.mxu1 %v7414_v43  ;;  %12645 = vst [vmem:[#allocation57_spill] sm:$0xff] %v9758_v40  ;;  %v684_v42 = vunpack.c.l.s4 %v9249_v41  ;;  %v686_v43 = vlaneseq  ;;  %vm1671_vm3 = vcmask 1044484   ;;  %vm1674_vm4 = vcmask 1045509   ;;  %s7215_s28 = sshll.u32 %s9224_s22, 4  ;;  %s6648_s18 = sshll.u32 %s9585_s30, 4  ;;  %s12263_s18 = int_to_ptr.vmem [resolvable:$true] %s6648_s18 }
  0xe8   : > { %1453 = vmatprep.subr.bf16.mxu0 %v9596_v44  ;;  %1494 = vmatprep.subr.bf16.mxu1 %v9598_v45  ;;  %vm1677_vm5 = vcmask 1046534   ;;  %vm1680_vm6 = vcmask 1047559   ;;  %s6645_s8 = sadd.s32 %s9220_s21, %s7215_s28  ;;  %s13066_s27 = sld [smem:[#allocation83_spill]] }
  0xe9   : > { %v685_v19 = vunpack.c.0.s8 %v684_v42  ;;  %v687_v22 = vshrl.u32 %v686_v43, 7  ;;  %s7210_s21 = sshll.u32 %s6645_s8, 7  ;;  %s6633_s6 = scalar_lea.sflag [#allocation8], %s9563_s9 }
  0xea   : > { %s9106_s7 = scalar_lea.vmem %s12263_s18, 1024  ;;  %p13067_p12 = scmp.ne.s32.totalorder %s12598_s14, 0 }
  0xeb   : > { %1454 = vmatpush1.bf16.msra.mxu0 %v9600_v46  ;;  %1495 = vmatpush1.bf16.msra.mxu1 %v9602_v47  ;;  %p9107_p10 = scmp.ne.s32.totalorder %s12263_s18, %s9106_s7  ;;  %s9250_s2 = smov [#allocation14]  }
  0xec   : > { %1455 = vmatprep.subr.bf16.mxu0 %v9608_v48  ;;  %1496 = vmatprep.subr.bf16.mxu1 %v9610_v49  ;;  %s9110_s26 = sshll.u32 %s9250_s2, 4  ;;  %s9111_s26 = int_to_ptr.vmem [resolvable:$false] %s9110_s26 }
  0xed   : > { %p9108_p1 = pnand %p9107_p10, %p13067_p12  ;;  %p9113_p13 = scmp.lt.s32.totalorder %s12263_s18, %s9111_s26 }
  0xee   : > { %s12268_s13 = scalar_lea.hbm %s13066_s27, %s7210_s21 }
  0xef   : > { %1456 = vmatpush1.bf16.msra.mxu0 %v9612_v50  ;;  %1497 = vmatpush1.bf16.msra.mxu1 %v9614_v51  ;;  %p9109_p7 = pneg %p9108_p1 }
  0xf0   : > { %1457 = vmatprep.subr.bf16.mxu0 %v9620_v52  ;;  %1498 = vmatprep.subr.bf16.mxu1 %v9622_v53 }
  0xf3   : > { %1458 = vmatpush1.bf16.msra.mxu0 %v9624_v54  ;;  %1499 = vmatpush1.bf16.msra.mxu1 %v9626_v55 }
  0xf4   : > { %1459 = vmatprep.subr.bf16.mxu0 %v9632_v56  ;;  %1500 = vmatprep.subr.bf16.mxu1 %v9634_v57 }
  0xf7   : > { %1460 = vmatpush1.bf16.msra.mxu0 %v9636_v58  ;;  %1501 = vmatpush1.bf16.msra.mxu1 %v9638_v59 }
  0xf8   : > { %1461 = vmatprep.subr.bf16.mxu0 %v9644_v60  ;;  %1502 = vmatprep.subr.bf16.mxu1 %v9646_v61 }
  0xfb   : > { %1462 = vmatpush1.bf16.msra.mxu0 %v9648_v62  ;;  %1503 = vmatpush1.bf16.msra.mxu1 %v9650_v63 }
  0xfc   : > { %1463 = vmatprep.subr.bf16.mxu0 %v9656_v0  ;;  %1504 = vmatprep.subr.bf16.mxu1 %v9658_v4 }
  0xff   : > { %1464 = vmatpush1.bf16.msra.mxu0 %v9660_v5  ;;  %1505 = vmatpush1.bf16.msra.mxu1 %v9662_v6 }
 0x100   : > { %1465 = vmatprep.subr.bf16.mxu0 %v9664_v7  ;;  %1506 = vmatprep.subr.bf16.mxu1 %v9666_v8 }
 0x103   : > { %1466 = vmatpush1.bf16.msra.mxu0 %v9672_v9  ;;  %1507 = vmatpush1.bf16.msra.mxu1 %v9674_v10 }
 0x104   : > { %1467 = vmatprep.subr.bf16.mxu0 %v9678_v11  ;;  %1508 = vmatprep.subr.bf16.mxu1 %v9680_v12 }
 0x107   : > { %1468 = vmatpush1.bf16.msra.mxu0 %v9684_v13  ;;  %1509 = vmatpush1.bf16.msra.mxu1 %v9686_v14 }
 0x108   : > { %1469 = vmatprep.subr.bf16.mxu0 %v9690_v15  ;;  %1510 = vmatprep.subr.bf16.mxu1 %v9692_v16 }
 0x10b   : > { %1470 = vmatpush1.bf16.msra.mxu0 %v9696_v17  ;;  %1511 = vmatpush1.bf16.msra.mxu1 %v9698_v18 }
 0x10c   : > { %1471 = vmatprep.subr.bf16.mxu0 %v9702_v20  ;;  %1512 = vmatprep.subr.bf16.mxu1 %v9704_v21 }
 0x10f   : > { %1472 = vmatpush1.bf16.msra.mxu0 %v9708_v23  ;;  %1513 = vmatpush1.bf16.msra.mxu1 %v9710_v24 }
 0x110   : > { %1473 = vmatprep.subr.bf16.mxu0 %v9714_v25  ;;  %1514 = vmatprep.subr.bf16.mxu1 %v9716_v26 }
 0x113   : > { %1474 = vmatpush1.bf16.msra.mxu0 %v9720_v27  ;;  %1515 = vmatpush1.bf16.msra.mxu1 %v9722_v28 }
 0x114   : > { %1475 = vmatprep.subr.bf16.mxu0 %v9726_v29  ;;  %1516 = vmatprep.subr.bf16.mxu1 %v9728_v30  ;;  %v6802_v30 = vld [vmem:[%s9567_s1 + $0x60] ss:$8 sm:$0xf] }
 0x115   : > { %v6804_v29 = vld [vmem:[%s9567_s1 + $0xa0] ss:$8 sm:$0xf] }
 0x117   : > { %1476 = vmatpush1.bf16.msra.mxu0 %v9732_v31  ;;  %1517 = vmatpush1.bf16.msra.mxu1 %v9734_v32 }
 0x118   : > { %1477 = vmatprep.subr.bf16.mxu0 %v9738_v33  ;;  %1518 = vmatprep.subr.bf16.mxu1 %v9740_v34 }
 0x11b   : > { %1478 = vmatpush1.bf16.msra.mxu0 %v9744_v35  ;;  %1519 = vmatpush1.bf16.msra.mxu1 %v9746_v36  ;;  %v9766_v35 = vsub.s32 %v685_v19, %v687_v22 }
 0x11c   : > { %1479 = vmatprep.subr.bf16.mxu0 %v9750_v37  ;;  %1520 = vmatprep.subr.bf16.mxu1 %v9752_v38 }
 0x11f   : > { %1480 = vmatpush1.bf16.msra.mxu0 %v9756_v39  ;;  %1521 = vmatpush1.bf16.msra.mxu1 %v9758_v40 }
 0x120   : > { %1684 = vmatprep.subr.bf16.mxu0 %v9588_v1  ;;  %1725 = vmatprep.subr.bf16.mxu1 %v9590_v2 }
 0x1b5   : > { %v627_v3 = vpop.f32.mrb[0].mxu0  ;;  %v668_v36 = vpop.f32.mrb[0].mxu1 }
 0x1b6   : > { %v629_v37 = vpop.f32.mrb[1].mxu0  ;;  %v670_v34 = vpop.f32.mrb[1].mxu1 }
 0x1b7   : > { %v679_v38 = vcombine.low %v627_v3, %v629_v37  ;;  %v680_v39 = vcombine.high %v627_v3, %v629_v37  ;;  %v681_v40 = vcombine.low %v668_v36, %v670_v34  ;;  %v682_v1 = vcombine.high %v668_v36, %v670_v34  ;;  %v631_v2 = vpop.f32.mrb[2].mxu0  ;;  %v672_v33 = vpop.f32.mrb[2].mxu1  ;;  %v417_v36 = vld [vmem:[%s9567_s1] ss:$8 sm:$0xf] }
 0x1b8   : > { %v632_v41 = vpop.f32.mrb[3].mxu0  ;;  %v673_v32 = vpop.f32.mrb[3].mxu1  ;;  %v6800_v33 = vld [vmem:[%s9567_s1 + $0x20] ss:$8 sm:$0xf] }
 0x1b9   : > { %v689_v42 = vrot.slane %v679_v38, %v9766_v35  ;;  %v696_v43 = vrot.slane %v680_v39, %v9766_v35  ;;  %v703_v19 = vrot.slane %v681_v40, %v9766_v35  ;;  %v710_v3 = vrot.slane %v682_v1, %v9766_v35  ;;  %v6801_v2 = vld [vmem:[%s9567_s1 + $0x40] ss:$8 sm:$0xf] }
 0x1ba   : > { %v6803_v32 = vld [vmem:[%s9567_s1 + $0x80] ss:$8 sm:$0xf] }
 0x1bb   : > { %v711_v37 = vcombine.low %v689_v42, %v703_v19  ;;  %v712_v22 = vcombine.high %v689_v42, %v703_v19  ;;  %v713_v31 = vcombine.low %v696_v43, %v710_v3  ;;  %v714_v34 = vcombine.high %v696_v43, %v710_v3  ;;  %v6805_v1 = vld [vmem:[%s9567_s1 + $0xc0] ss:$8 sm:$0xf] }
 0x1bc   : > { %v6806_v3 = vld [vmem:[%s9567_s1 + $0xe0] ss:$8 sm:$0xf] }
 0x1bd   : > { %v721_v38 = vrot.slane %v711_v37, %v9766_v35  ;;  %v728_v41 = vrot.slane %v713_v31, %v9766_v35  ;;  %v735_v39 = vrot.slane %v712_v22, %v9766_v35  ;;  %v742_v40 = vrot.slane %v714_v34, %v9766_v35 }
 0x1bf   : > { %v743_v28 = vcombine.high %v721_v38, %v721_v38  ;;  %v744_v42 = vcombine.high %v728_v41, %v728_v41  ;;  %v745_v19 = vcombine.high %v735_v39, %v735_v39  ;;  %v746_v43 = vcombine.high %v742_v40, %v742_v40 }
 0x1c0   : > { %v9784_v27 = vadd.f32 %v721_v38, %v417_v36  ;;  %v9786_v26 = vadd.f32 %v6800_v33, %v735_v39  ;;  %v9788_v25 = vadd.f32 %v6803_v32, %v728_v41  ;;  %v9794_v22 = vadd.f32 %v6804_v29, %v742_v40 }
 0x1c1   : > { %v9790_v37 = vadd.f32 %v6801_v2, %v743_v28  ;;  %v9792_v31 = vadd.f32 %v6802_v30, %v745_v19  ;;  %v9796_v34 = vadd.f32 %v6805_v1, %v744_v42  ;;  %v9800_v21 = vadd.f32 %v6806_v3, %v746_v43 }
 0x1c2   : > { %v6839_v24 = vmul.f32 -1.442695, %v9784_v27  ;;  %v6840_v23 = vmul.f32 -1.442695, %v9786_v26  ;;  %v6843_v28 = vmul.f32 -1.442695, %v9788_v25 }
 0x1c3   : > { %v6841_v36 = vmul.f32 -1.442695, %v9790_v37  ;;  %v6842_v33 = vmul.f32 -1.442695, %v9792_v31  ;;  %v819_v30 = vrot.slane %v9784_v27, 1  ;;  %v820_v2 = vrot.slane %v9786_v26, 1 }
 0x1c4   : > { %7500 = vpow2.f32 %v6839_v24  ;;  %v6844_v29 = vmul.f32 -1.442695, %v9794_v22  ;;  %v6845_v32 = vmul.f32 -1.442695, %v9796_v34  ;;  %v821_v38 = vrot.slane %v9790_v37, 1 }
 0x1c5   : > { %7502 = vpow2.f32 %v6840_v23  ;;  %v6846_v41 = vmul.f32 -1.442695, %v9800_v21  ;;  %v822_v39 = vrot.slane %v9792_v31, 1  ;;  %v823_v24 = vrot.slane %v9788_v25, 1 }
 0x1c6   : > { %7504 = vpow2.f32 %v6841_v36  ;;  %v6847_v40 = vmul.f32 -1.442695, %v819_v30  ;;  %v6848_v23 = vmul.f32 -1.442695, %v820_v2  ;;  %v6849_v1 = vmul.f32 -1.442695, %v821_v38 }
 0x1c7   : > { %7506 = vpow2.f32 %v6842_v33  ;;  %v6850_v42 = vmul.f32 -1.442695, %v822_v39  ;;  %v6851_v19 = vmul.f32 -1.442695, %v823_v24  ;;  %v824_v30 = vrot.slane %v9794_v22, 1 }
 0x1c8   : > { %7508 = vpow2.f32 %v6843_v28  ;;  %v826_v39 = vrot.slane %v9800_v21, 1  ;;  %v907_v16 = vrot.slane %v9784_v27, 3  ;;  %v888_v13 = vrot.slane %v9794_v22, 2 }
 0x1c9   : > { %7510 = vpow2.f32 %v6844_v29 }
 0x1ca   : > { %7512 = vpow2.f32 %v6845_v32  ;;  %v825_v32 = vrot.slane %v9796_v34, 1 }
 0x1cb   : > { %7514 = vpow2.f32 %v6846_v41 }
 0x1cc   : > { %7516 = vpow2.f32 %v6847_v40 }
 0x1cd   : > { %7518 = vpow2.f32 %v6848_v23 }
 0x1ce   : > { %v7501_v43 = vpop.eup %7500  ;;  %7520 = vpow2.f32 %v6849_v1 }
 0x1cf   : > { %v7503_v3 = vpop.eup %7502  ;;  %v787_v36 = vadd.f32 1.0, %v7501_v43  ;;  %7522 = vpow2.f32 %v6850_v42  ;;  %v6852_v42 = vmul.f32 -1.442695, %v824_v30 }
 0x1d0   : > { %v7505_v33 = vpop.eup %7504  ;;  %v788_v20 = vadd.f32 1.0, %v7503_v3  ;;  %7524 = vpow2.f32 %v6851_v19  ;;  %v6853_v3 = vmul.f32 -1.442695, %v825_v32 }
 0x1d1   : > { %v7507_v28 = vpop.eup %7506  ;;  %v789_v18 = vadd.f32 1.0, %v7505_v33  ;;  %7526 = vrcp.f32 %v787_v36 }
 0x1d2   : > { %v7509_v29 = vpop.eup %7508  ;;  %v790_v2 = vadd.f32 1.0, %v7507_v28  ;;  %7528 = vrcp.f32 %v788_v20  ;;  %v6854_v20 = vmul.f32 -1.442695, %v826_v39  ;;  %v883_v39 = vrot.slane %v9784_v27, 2 }
 0x1d3   : > { %v7511_v38 = vpop.eup %7510  ;;  %v791_v41 = vadd.f32 1.0, %v7509_v29  ;;  %7530 = vrcp.f32 %v789_v18  ;;  %v890_v27 = vrot.slane %v9800_v21, 2 }
 0x1d4   : > { %v7513_v24 = vpop.eup %7512  ;;  %v792_v40 = vadd.f32 1.0, %v7511_v38  ;;  %7532 = vrcp.f32 %v790_v2 }
 0x1d5   : > { %v7515_v23 = vpop.eup %7514  ;;  %v793_v1 = vadd.f32 1.0, %v7513_v24  ;;  %7534 = vrcp.f32 %v791_v41 }
 0x1d6   : > { %v7517_v19 = vpop.eup %7516  ;;  %v794_v43 = vadd.f32 1.0, %v7515_v23  ;;  %7536 = vrcp.f32 %v792_v40  ;;  %v884_v23 = vrot.slane %v9786_v26, 2 }
 0x1d7   : > { %v7519_v36 = vpop.eup %7518  ;;  %7538 = vrcp.f32 %v793_v1  ;;  %v859_v28 = vadd.f32 1.0, %v7517_v19  ;;  %v414_v1 = vld [vmem:[#allocation3] sm:$0xff]  ;;  %v885_v19 = vrot.slane %v9790_v37, 2 }
 0x1d8   : > { %v7521_v33 = vpop.eup %7520  ;;  %7540 = vrcp.f32 %v794_v43  ;;  %v860_v29 = vadd.f32 1.0, %v7519_v36  ;;  %v979_v43 = vrot.slane %v414_v1, %v9766_v35 }
 0x1d9   : > { %v7523_v18 = vpop.eup %7522  ;;  %7542 = vpow2.f32 %v6852_v42  ;;  %v861_v2 = vadd.f32 1.0, %v7521_v33 }
 0x1da   : > { %v7525_v17 = vpop.eup %7524  ;;  %7544 = vpow2.f32 %v6853_v3  ;;  %v862_v30 = vadd.f32 1.0, %v7523_v18  ;;  %v886_v3 = vrot.slane %v9792_v31, 2  ;;  %v972_v18 = vcombine.high %v414_v1, %v414_v1 }
 0x1db   : > { %v9816_v38 = vpop.eup %7526  ;;  %7546 = vpow2.f32 %v6854_v20  ;;  %v863_v24 = vadd.f32 1.0, %v7525_v17  ;;  %v887_v20 = vrot.slane %v9788_v25, 2  ;;  %v889_v1 = vrot.slane %v9796_v34, 2 }
 0x1dc   : > { %v9818_v41 = vpop.eup %7528  ;;  %7548 = vrcp.f32 %v859_v28 }
 0x1dd   : > { %v9820_v32 = vpop.eup %7530  ;;  %7550 = vrcp.f32 %v860_v29  ;;  %v987_v29 = vcombine.high %v979_v43, %v979_v43 }
 0x1de   : > { %v9823_v40 = vpop.eup %7532  ;;  %7552 = vrcp.f32 %v861_v2 }
 0x1df   : > { %v9826_v42 = vpop.eup %7534  ;;  %7554 = vrcp.f32 %v862_v30 }
 0x1e0   : > { %v9830_v17 = vpop.eup %7536  ;;  %7556 = vrcp.f32 %v863_v24  ;;  %v995_v24 = vrot.slane %v979_v43, %v9766_v35  ;;  %v910_v43 = vrot.slane %v9792_v31, 3 }
 0x1e1   : > { %v9833_v36 = vpop.eup %7538  ;;  %7558 = vtanh.f32 %v883_v39  ;;  %v908_v39 = vrot.slane %v9786_v26, 3  ;;  %v6855_v26 = vmul.f32 -1.442695, %v907_v16 }
 0x1e2   : > { %v9836_v33 = vpop.eup %7540  ;;  %7560 = vtanh.f32 %v884_v23  ;;  %v1017_v31 = vcombine.high %v995_v24, %v995_v24 }
 0x1e3   : > { %v7543_v28 = vpop.eup %7542  ;;  %7562 = vtanh.f32 %v885_v19  ;;  %v909_v19 = vrot.slane %v9790_v37, 3  ;;  %v986_v37 = vrot.slane %v972_v18, %v9766_v35 }
 0x1e4   : > { %v7545_v2 = vpop.eup %7544  ;;  %v864_v30 = vadd.f32 1.0, %v7543_v28  ;;  %7564 = vtanh.f32 %v886_v3  ;;  %v1009_v3 = vrot.slane %v987_v29, %v9766_v35  ;;  %v914_v29 = vrot.slane %v9800_v21, 3 }
 0x1e5   : > { %v7547_v15 = vpop.eup %7546  ;;  %v865_v14 = vadd.f32 1.0, %v7545_v2  ;;  %7566 = vtanh.f32 %v887_v20  ;;  %v911_v20 = vrot.slane %v9788_v25, 3  ;;  %v6857_v9 = vmul.f32 -1.442695, %v909_v19 }
 0x1e6   : > { %v7549_v12 = vpop.eup %7548  ;;  %v866_v23 = vadd.f32 1.0, %v7547_v15  ;;  %7568 = vrcp.f32 %v864_v30  ;;  %v912_v15 = vrot.slane %v9794_v22, 3  ;;  %v6856_v30 = vmul.f32 -1.442695, %v908_v39 }
 0x1e7   : > { %v7551_v28 = vpop.eup %7550  ;;  %7570 = vrcp.f32 %v865_v14  ;;  %v913_v14 = vrot.slane %v9796_v34, 3  ;;  %v1019_v25 = vcombine.high %v1009_v3, %v1009_v3  ;;  %v1002_v22 = vrot.slane %v986_v37, %v9766_v35 }
 0x1e8   : > { %v7553_v2 = vpop.eup %7552  ;;  %7572 = vrcp.f32 %v866_v23  ;;  %v6858_v23 = vmul.f32 -1.442695, %v910_v43  ;;  %v1029_v39 = vmul.f32 %v7549_v12, %v995_v24  ;;  %v6860_v18 = vmul.f32 -1.442695, %v912_v15 }
 0x1e9   : > { %v7555_v11 = vpop.eup %7554  ;;  %7574 = vtanh.f32 %v888_v13  ;;  %v6859_v13 = vmul.f32 -1.442695, %v911_v20  ;;  %v1030_v6 = vmul.f32 %v7551_v28, %v1009_v3  ;;  %v6861_v19 = vmul.f32 -1.442695, %v913_v14 }
 0x1ea   : > { %v7557_v10 = vpop.eup %7556  ;;  %7576 = vtanh.f32 %v889_v1  ;;  %v988_v1 = vcombine.high %v986_v37, %v986_v37  ;;  %v1031_v5 = vmul.f32 %v7553_v2, %v1017_v31  ;;  %v6862_v43 = vmul.f32 -1.442695, %v914_v29 }
 0x1eb   : > { %v7559_v8 = vpop.eup %7558  ;;  %7578 = vtanh.f32 %v890_v27  ;;  %v1032_v20 = vmul.f32 %v7555_v11, %v1019_v25  ;;  %v1033_v24 = vmul.f32 %v7557_v10, %v1002_v22 }
 0x1ec   : > { %v7561_v16 = vpop.eup %7560  ;;  %7580 = vpow2.f32 %v6855_v26  ;;  %v1037_v27 = vmul.f32 %v7559_v8, %v9816_v38 }
 0x1ed   : > { %v7563_v7 = vpop.eup %7562  ;;  %7582 = vpow2.f32 %v6856_v30  ;;  %v1038_v26 = vmul.f32 %v7561_v16, %v9818_v41  ;;  %v1016_v41 = vrot.slane %v988_v1, %v9766_v35  ;;  %v1018_v30 = vcombine.high %v1002_v22, %v1002_v22 }
 0x1ee   : > { %v7565_v34 = vpop.eup %7564  ;;  %7584 = vpow2.f32 %v6857_v9  ;;  %v1039_v12 = vmul.f32 %v7563_v7, %v9820_v32  ;;  %v9856_v15 = vadd.f32 %v1037_v27, %v1029_v39 }
 0x1ef   : > { %v7567_v21 = vpop.eup %7566  ;;  %7586 = vpow2.f32 %v6858_v23  ;;  %v1040_v9 = vmul.f32 %v7565_v34, %v9823_v40  ;;  %v9859_v3 = vadd.f32 %v1038_v26, %v1030_v6  ;;  %v1020_v37 = vcombine.high %v1016_v41, %v1016_v41 }
 0x1f0   : > { %v7569_v4 = vpop.eup %7568  ;;  %7588 = vpow2.f32 %v6859_v13  ;;  %v1041_v38 = vmul.f32 %v7567_v21, %v9826_v42  ;;  %v9862_v2 = vadd.f32 %v1039_v12, %v1031_v5 }
 0x1f1   : > { %v7571_v28 = vpop.eup %7570  ;;  %7590 = vpow2.f32 %v6860_v18  ;;  %v9865_v7 = vadd.f32 %v1040_v9, %v1032_v20  ;;  %v1034_v25 = vmul.f32 %v7569_v4, %v1016_v41 }
 0x1f2   : > { %v7573_v8 = vpop.eup %7572  ;;  %7592 = vpow2.f32 %v6861_v19  ;;  %v9867_v32 = vadd.f32 %v1041_v38, %v1033_v24  ;;  %v1035_v39 = vmul.f32 %v7571_v28, %v1018_v30 }
 0x1f3   : > { %v7575_v11 = vpop.eup %7574  ;;  %7594 = vpow2.f32 %v6862_v43  ;;  %v1036_v34 = vmul.f32 %v7573_v8, %v1020_v37 }
 0x1f4   : > { %v7577_v10 = vpop.eup %7576  ;;  %7596 = vtanh.f32 %v9856_v15  ;;  %v1042_v1 = vmul.f32 %v7575_v11, %v9830_v17 }
 0x1f5   : > { %v7579_v40 = vpop.eup %7578  ;;  %7598 = vtanh.f32 %v9859_v3  ;;  %v1043_v21 = vmul.f32 %v7577_v10, %v9833_v36 }
 0x1f6   : > { %v7581_v6 = vpop.eup %7580  ;;  %7600 = vtanh.f32 %v9862_v2  ;;  %v1044_v4 = vmul.f32 %v7579_v40, %v9836_v33  ;;  %v9877_v20 = vadd.f32 %v1042_v1, %v1034_v25 }
 0x1f7   : > { %v7583_v5 = vpop.eup %7582  ;;  %v947_v42 = vadd.f32 1.0, %v7581_v6  ;;  %7602 = vtanh.f32 %v9865_v7  ;;  %v9879_v28 = vadd.f32 %v1043_v21, %v1035_v39 }
 0x1f8   : > { %v7585_v14 = vpop.eup %7584  ;;  %v948_v31 = vadd.f32 1.0, %v7583_v5  ;;  %7604 = vtanh.f32 %v9867_v32  ;;  %v9881_v17 = vadd.f32 %v1044_v4, %v1036_v34 }
 0x1f9   : > { %v7587_v29 = vpop.eup %7586  ;;  %v949_v23 = vadd.f32 1.0, %v7585_v14  ;;  %7606 = vrcp.f32 %v947_v42 }
 0x1fa   : > { %v7589_v16 = vpop.eup %7588  ;;  %v950_v13 = vadd.f32 1.0, %v7587_v29  ;;  %7608 = vrcp.f32 %v948_v31 }
 0x1fb   : > { %v7591_v22 = vpop.eup %7590  ;;  %v951_v18 = vadd.f32 1.0, %v7589_v16  ;;  %7610 = vrcp.f32 %v949_v23 }
 0x1fc   : > { %v7593_v19 = vpop.eup %7592  ;;  %v952_v27 = vadd.f32 1.0, %v7591_v22  ;;  %7612 = vrcp.f32 %v950_v13 }
 0x1fd   : > { %v7595_v43 = vpop.eup %7594  ;;  %v953_v26 = vadd.f32 1.0, %v7593_v19  ;;  %7614 = vrcp.f32 %v951_v18 }
 0x1fe   : > { %v7597_v12 = vpop.eup %7596  ;;  %v954_v24 = vadd.f32 1.0, %v7595_v43  ;;  %7616 = vrcp.f32 %v952_v27 }
 0x1ff   : > { %v7599_v9 = vpop.eup %7598  ;;  %7618 = vrcp.f32 %v953_v26 }
 0x200   : > { %v7601_v8 = vpop.eup %7600  ;;  %7620 = vrcp.f32 %v954_v24 }
 0x201   : > { %v7603_v38 = vpop.eup %7602  ;;  %7622 = vtanh.f32 %v9877_v20 }
 0x202   : > { %v7605_v36 = vpop.eup %7604  ;;  %7624 = vtanh.f32 %v9879_v28 }
 0x203   : > { %v7607_v33 = vpop.eup %7606  ;;  %7626 = vtanh.f32 %v9881_v17 }
 0x204   : > { %v7609_v11 = vpop.eup %7608  ;;  %v1061_v41 = vmul.f32 %v7607_v33, %v7597_v12 }
 0x205   : > { %v7611_v10 = vpop.eup %7610  ;;  %v1062_v40 = vmul.f32 %v7609_v11, %v7599_v9 }
 0x206   : > { %v7613_v6 = vpop.eup %7612  ;;  %v1063_v30 = vmul.f32 %v7611_v10, %v7601_v8  ;;  %v1637_v5 = vpack.c.bf16 %v1061_v41, %v1061_v41 }
 0x207   : > { %v7615_v42 = vpop.eup %7614  ;;  %v1064_v37 = vmul.f32 %v7613_v6, %v7603_v38  ;;  %v1077_v14 = vcombine.low %v1061_v41, %v1062_v40  ;;  %v1638_v31 = vpack.c.bf16 %v1062_v40, %v1062_v40 }
 0x208   : > { %v7617_v29 = vpop.eup %7616  ;;  %v1065_v23 = vmul.f32 %v7615_v42, %v7605_v36  ;;  %v1639_v25 = vpack.c.bf16 %v1063_v30, %v1063_v30  ;;  %v1653_v1 = vunpack.c.l.b16 %v1637_v5 }
 0x209   : > { %v7619_v16 = vpop.eup %7618  ;;  %v1078_v13 = vcombine.low %v1063_v30, %v1064_v37  ;;  %v1640_v39 = vpack.c.bf16 %v1064_v37, %v1064_v37  ;;  %v1654_v22 = vunpack.c.l.b16 %v1638_v31  ;;  %v1087_v21 = vrot.slane %v1077_v14, %v9766_v35 }
 0x20a   : > { %v7621_v18 = vpop.eup %7620  ;;  %v1655_v34 = vunpack.c.l.b16 %v1639_v25  ;;  %v1641_v19 = vpack.c.bf16 %v1065_v23, %v1065_v23 }
 0x20b   : > { %v7623_v27 = vpop.eup %7622  ;;  %v1094_v43 = vrot.slane %v1078_v13, %v9766_v35  ;;  %v1656_v26 = vunpack.c.l.b16 %v1640_v39  ;;  %v1661_v4 = vrot.slane %v1654_v22, 7 }
 0x20c   : > { %v7625_v12 = vpop.eup %7624  ;;  %v1066_v24 = vmul.f32 %v7623_v27, %v7617_v29  ;;  %v1664_v9 = vrot.slane %v1655_v34, 6  ;;  %v1657_v8 = vunpack.c.l.b16 %v1641_v19 }
 0x20d   : > { %v7627_v38 = vpop.eup %7626  ;;  %v1067_v36 = vmul.f32 %v7625_v12, %v7619_v16  ;;  %v1109_v33 = vcombine.low %v1087_v21, %v1094_v43  ;;  %v1667_v11 = vrot.slane %v1656_v26, 5  ;;  %v1663_v41 = vsel %vm1662_vm0, %v1661_v4, %v1653_v1 }
 0x20e   : > { %v1068_v10 = vmul.f32 %v7627_v38, %v7621_v18  ;;  %v1079_v40 = vcombine.low %v1065_v23, %v1066_v24  ;;  %v1642_v6 = vpack.c.bf16 %v1066_v24, %v1066_v24  ;;  %v1666_v30 = vsel %vm1665_vm1, %v1664_v9, %v1663_v41  ;;  %v9901_v24 = vld [vmem:[#allocation9] ss:$16 sps:$4 sm:$0xff]   ;;  %v9904_v9 = vld [vmem:[#allocation9 + $0x8] ss:$16 sps:$4 sm:$0xff]   ;;  %v9910_v38 = vld [vmem:[#allocation9 + $0x2c] ss:$16 sps:$4 sm:$0xff]  }
 0x20f   : > { %v1643_v5 = vpack.c.bf16 %v1067_v36, %v1067_v36  ;;  %v1669_v42 = vsel %vm1668_vm2, %v1667_v11, %v1666_v30  ;;  %v1670_v37 = vrot.slane %v1657_v8, 4  ;;  %v1117_v34 = vrot.slane %v1109_v33, %v9766_v35  ;;  %v9907_v8 = vld [vmem:[#allocation9 + $0x24] ss:$16 sps:$4 sm:$0xff]   ;;  %v9915_v33 = vld [vmem:[#allocation9 + $0x20] ss:$16 sps:$4 sm:$0xff]  }
 0x210   : > { %v1080_v14 = vcombine.low %v1067_v36, %v1068_v10  ;;  %v1644_v31 = vpack.c.bf16 %v1068_v10, %v1068_v10  ;;  %v1658_v29 = vunpack.c.l.b16 %v1642_v6  ;;  %v1101_v16 = vrot.slane %v1079_v40, %v9766_v35  ;;  %v9918_v11 = vld [vmem:[#allocation9 + $0x28] ss:$16 sps:$4 sm:$0xff]   ;;  %v9921_v41 = vld [vmem:[#allocation9 + $0x44] ss:$16 sps:$4 sm:$0xff]   ;;  %v9924_v10 = vld [vmem:[#allocation9 + $0x4c] ss:$16 sps:$4 sm:$0xff]  }
 0x211   : > { %v1659_v25 = vunpack.c.l.b16 %v1643_v5  ;;  %v1672_v13 = vsel %vm1671_vm3, %v1670_v37, %v1669_v42  ;;  %v12646_v36 = vmov 0   ;;  %v9927_v40 = vld [vmem:[#allocation9 + $0x40] ss:$16 sps:$4 sm:$0xff]   ;;  %v9930_v6 = vld [vmem:[#allocation9 + $0x48] ss:$16 sps:$4 sm:$0xff]  }
 0x212   : > { %v1108_v39 = vrot.slane %v1080_v14, %v9766_v35  ;;  %v1660_v23 = vunpack.c.l.b16 %v1644_v31  ;;  %v1673_v22 = vrot.slane %v1658_v29, 3  ;;  %v9933_v30 = vld [vmem:[#allocation9 + $0x64] ss:$16 sps:$4 sm:$0xff]   ;;  %v9936_v5 = vld [vmem:[#allocation9 + $0x6c] ss:$16 sps:$4 sm:$0xff]  }
 0x213   : > { %v1676_v18 = vrot.slane %v1659_v25, 2  ;;  %v9939_v42 = vld [vmem:[#allocation9 + $0x60] ss:$16 sps:$4 sm:$0xff]   ;;  %v9942_v37 = vld [vmem:[#allocation9 + $0x68] ss:$16 sps:$4 sm:$0xff]  }
 0x214   : > { %v1110_v1 = vcombine.low %v1101_v16, %v1108_v39  ;;  %v1675_v19 = vsel %vm1674_vm4, %v1673_v22, %v1672_v13  ;;  %v1679_v27 = vrot.slane %v1660_v23, 1  ;;  %v9945_v14 = vld [vmem:[#allocation9 + $0x84] ss:$16 sps:$4 sm:$0xff]   ;;  %v9948_v31 = vld [vmem:[#allocation9 + $0x8c] ss:$16 sps:$4 sm:$0xff]  }
 0x215   : > { %v1678_v21 = vsel %vm1677_vm5, %v1676_v18, %v1675_v19  ;;  %v9951_v29 = vld [vmem:[#allocation9 + $0x80] ss:$16 sps:$4 sm:$0xff]   ;;  %v9954_v25 = vld [vmem:[#allocation9 + $0x88] ss:$16 sps:$4 sm:$0xff]   ;;  %v9957_v13 = vld [vmem:[#allocation9 + $0xa4] ss:$16 sps:$4 sm:$0xff]  }
 0x216   : > { %v1124_v43 = vrot.slane %v1110_v1, %v9766_v35  ;;  %v9899_v26 = vsel %vm1680_vm6, %v1679_v27, %v1678_v21  ;;  %v9960_v16 = vld [vmem:[#allocation9 + $0xac] ss:$16 sps:$4 sm:$0xff]   ;;  %v9963_v39 = vld [vmem:[#allocation9 + $0xa0] ss:$16 sps:$4 sm:$0xff]   ;;  %v9966_v23 = vld [vmem:[#allocation9 + $0xa8] ss:$16 sps:$4 sm:$0xff]  }
 0x217   : > { %12647 = vst [vmem:[#allocation58_spill] sm:$0xff] %v9960_v16  ;;  %12648 = vst [vmem:[#allocation59_spill] sm:$0xff] %v9963_v39  ;;  %v9969_v22 = vld [vmem:[#allocation9 + $0xc4] ss:$16 sps:$4 sm:$0xff]   ;;  %v9972_v18 = vld [vmem:[#allocation9 + $0xcc] ss:$16 sps:$4 sm:$0xff]  }
 0x218   : > { %v1125_v4 = vcombine.low %v1117_v34, %v1124_v43  ;;  %12649 = vst [vmem:[#allocation60_spill] sm:$0xff] %v9966_v23  ;;  %12650 = vst [vmem:[#allocation61_spill] sm:$0xff] %v9969_v22  ;;  %v9975_v1 = vld [vmem:[#allocation9 + $0xc0] ss:$16 sps:$4 sm:$0xff]   ;;  %v9978_v34 = vld [vmem:[#allocation9 + $0xc8] ss:$16 sps:$4 sm:$0xff]  }
 0x219   : > { %12651 = vst [vmem:[#allocation62_spill] sm:$0xff] %v9972_v18  ;;  %12652 = vst [vmem:[#allocation63_spill] sm:$0xff] %v9975_v1  ;;  %v9981_v19 = vld [vmem:[#allocation9 + $0xe4] ss:$16 sps:$4 sm:$0xff]   ;;  %v9984_v27 = vld [vmem:[#allocation9 + $0xec] ss:$16 sps:$4 sm:$0xff]  }
 0x21a   : > { %v1127_v12 = vpack.c.bf16 %v1125_v4, %v1125_v4  ;;  %12653 = vst [vmem:[#allocation64_spill] sm:$0xff] %v9978_v34  ;;  %12654 = vst [vmem:[#allocation65_spill] sm:$0xff] %v9981_v19  ;;  %v9987_v21 = vld [vmem:[#allocation9 + $0xe0] ss:$16 sps:$4 sm:$0xff]   ;;  %v9990_v43 = vld [vmem:[#allocation9 + $0xe8] ss:$16 sps:$4 sm:$0xff]   ;;  %v1682_v4 = vpack.c.b16 %v9899_v26, %v9899_v26 }
 0x21b   : > { %12655 = vst [vmem:[#allocation66_spill] sm:$0xff] %v9984_v27  ;;  %12656 = vst [vmem:[#allocation67_spill] sm:$0xff] %v9987_v21  ;;  %v10010_v26 = vld [vmem:[#allocation11 + $0x2c] ss:$16 sps:$4 sm:$0xff]  }
 0x21c   : > { %1482 = vmatmul.mubr.bf16.vlgmr.msra.gmra.mrb[4].mxu0 %v1127_v12  ;;  %1523 = vmatmul.mubr.bf16.vlgmr.msra.gmra.mrb[4].mxu1 %v1127_v12  ;;  %12657 = vst [vmem:[#allocation68_spill] sm:$0xff] %v9990_v43  ;;  %v9995_v12 = vld [vmem:[#allocation11 + $0x4] ss:$16 sps:$4 sm:$0xff]   ;;  %12663 = vst [vmem:[#allocation74_spill] sm:$0xff] %v10010_v26 }
 0x21d   : > { %1685 = vmatpush1.bf16.msra.mxu0 %v9901_v24  ;;  %1726 = vmatpush1.bf16.msra.mxu1 %v9904_v9  ;;  %12658 = vst [vmem:[#allocation69_spill] sm:$0xff] %v9995_v12 }
 0x21e   : > { %1686 = vmatprep.subr.bf16.mxu0 %v9907_v8  ;;  %1727 = vmatprep.subr.bf16.mxu1 %v9910_v38 }
 0x21f   : > { %1716 = vmatprep.mubr.bf16.mxu0 %v12646_v36  ;;  %1757 = vmatprep.mubr.bf16.mxu1 %v12646_v36 }
 0x221   : > { %1687 = vmatpush1.bf16.msra.mxu0 %v9915_v33  ;;  %1728 = vmatpush1.bf16.msra.mxu1 %v9918_v11 }
 0x222   : > { %1688 = vmatprep.subr.bf16.mxu0 %v9921_v41  ;;  %1729 = vmatprep.subr.bf16.mxu1 %v9924_v10 }
 0x225   : > { %1689 = vmatpush1.bf16.msra.mxu0 %v9927_v40  ;;  %1730 = vmatpush1.bf16.msra.mxu1 %v9930_v6 }
 0x226   : > { %1690 = vmatprep.subr.bf16.mxu0 %v9933_v30  ;;  %1731 = vmatprep.subr.bf16.mxu1 %v9936_v5 }
 0x229   : > { %1691 = vmatpush1.bf16.msra.mxu0 %v9939_v42  ;;  %1732 = vmatpush1.bf16.msra.mxu1 %v9942_v37 }
 0x22a   : > { %1692 = vmatprep.subr.bf16.mxu0 %v9945_v14  ;;  %1733 = vmatprep.subr.bf16.mxu1 %v9948_v31 }
 0x22d   : > { %1693 = vmatpush1.bf16.msra.mxu0 %v9951_v29  ;;  %1734 = vmatpush1.bf16.msra.mxu1 %v9954_v25 }
 0x22e   : > { %1694 = vmatprep.subr.bf16.mxu0 %v9957_v13  ;;  %1735 = vmatprep.subr.bf16.mxu1 %v9960_v16 }
 0x231   : > { %1695 = vmatpush1.bf16.msra.mxu0 %v9963_v39  ;;  %1736 = vmatpush1.bf16.msra.mxu1 %v9966_v23 }
 0x232   : > { %1696 = vmatprep.subr.bf16.mxu0 %v9969_v22  ;;  %1737 = vmatprep.subr.bf16.mxu1 %v9972_v18 }
 0x235   : > { %1697 = vmatpush1.bf16.msra.mxu0 %v9975_v1  ;;  %1738 = vmatpush1.bf16.msra.mxu1 %v9978_v34 }
 0x236   : > { %1698 = vmatprep.subr.bf16.mxu0 %v9981_v19  ;;  %1739 = vmatprep.subr.bf16.mxu1 %v9984_v27  ;;  %v9998_v19 = vld [vmem:[#allocation11 + $0xc] ss:$16 sps:$4 sm:$0xff]   ;;  %v10001_v27 = vld [vmem:[#allocation11] ss:$16 sps:$4 sm:$0xff]  }
 0x237   : > { %12659 = vst [vmem:[#allocation70_spill] sm:$0xff] %v9998_v19  ;;  %12660 = vst [vmem:[#allocation71_spill] sm:$0xff] %v10001_v27 }
 0x239   : > { %1699 = vmatpush1.bf16.msra.mxu0 %v9987_v21  ;;  %1740 = vmatpush1.bf16.msra.mxu1 %v9990_v43  ;;  %v10004_v21 = vld [vmem:[#allocation11 + $0x8] ss:$16 sps:$4 sm:$0xff]   ;;  %v10007_v43 = vld [vmem:[#allocation11 + $0x24] ss:$16 sps:$4 sm:$0xff]  }
 0x23a   : > { %2162 = vmatprep.subr.bf16.mxu0 %v9995_v12  ;;  %2203 = vmatprep.subr.bf16.mxu1 %v9998_v19  ;;  %12661 = vst [vmem:[#allocation72_spill] sm:$0xff] %v10004_v21  ;;  %12662 = vst [vmem:[#allocation73_spill] sm:$0xff] %v10007_v43  ;;  %v10013_v12 = vld [vmem:[#allocation11 + $0x20] ss:$16 sps:$4 sm:$0xff]  }
 0x23b   : > { %12664 = vst [vmem:[#allocation75_spill] sm:$0xff] %v10013_v12 }
 0x23c   : > { %1717 = vmatmul.mubr.bf16.vlgmr.msra.gmra.mrb[8].mxu0 %v1682_v4  ;;  %1758 = vmatmul.mubr.bf16.vlgmr.msra.gmra.mrb[8].mxu1 %v1682_v4  ;;  %v10016_v4 = vld [vmem:[#allocation11 + $0x28] ss:$16 sps:$4 sm:$0xff]  }
 0x23d   : > { %2163 = vmatpush1.bf16.msra.mxu0 %v10001_v27  ;;  %2204 = vmatpush1.bf16.msra.mxu1 %v10004_v21  ;;  %12665 = vst [vmem:[#allocation76_spill] sm:$0xff] %v10016_v4 }
 0x23e   : > { %2164 = vmatprep.subr.bf16.mxu0 %v10007_v43  ;;  %2205 = vmatprep.subr.bf16.mxu1 %v10010_v26 }
 0x241   : > { %2165 = vmatpush1.bf16.msra.mxu0 %v10013_v12  ;;  %2206 = vmatpush1.bf16.msra.mxu1 %v10016_v4  ;;  %v6940_v4 = vld [vmem:[%s9567_s1 + $0xc1] ss:$8 sm:$0xf] }
 0x242   : > { %2166 = vmatprep.subr.bf16.mxu0 %v9596_v44  ;;  %2207 = vmatprep.subr.bf16.mxu1 %v9598_v45  ;;  %v12666_v44 = vld [vmem:[#allocation23_spill] sm:$0xff]  ;;  %v12667_v45 = vld [vmem:[#allocation24_spill] sm:$0xff] }
 0x245   : > { %2167 = vmatpush1.bf16.msra.mxu0 %v9600_v46  ;;  %2208 = vmatpush1.bf16.msra.mxu1 %v9602_v47  ;;  %v12668_v46 = vld [vmem:[#allocation25_spill] sm:$0xff]  ;;  %v12669_v47 = vld [vmem:[#allocation26_spill] sm:$0xff] }
 0x246   : > { %2168 = vmatprep.subr.bf16.mxu0 %v9608_v48  ;;  %2209 = vmatprep.subr.bf16.mxu1 %v9610_v49  ;;  %v12670_v48 = vld [vmem:[#allocation27_spill] sm:$0xff]  ;;  %v12671_v49 = vld [vmem:[#allocation28_spill] sm:$0xff] }
 0x249   : > { %2169 = vmatpush1.bf16.msra.mxu0 %v9612_v50  ;;  %2210 = vmatpush1.bf16.msra.mxu1 %v9614_v51  ;;  %v12672_v50 = vld [vmem:[#allocation29_spill] sm:$0xff]  ;;  %v12673_v51 = vld [vmem:[#allocation30_spill] sm:$0xff] }
 0x24a   : > { %2170 = vmatprep.subr.bf16.mxu0 %v9620_v52  ;;  %2211 = vmatprep.subr.bf16.mxu1 %v9622_v53  ;;  %v12674_v52 = vld [vmem:[#allocation31_spill] sm:$0xff]  ;;  %v12675_v53 = vld [vmem:[#allocation32_spill] sm:$0xff] }
 0x24d   : > { %2171 = vmatpush1.bf16.msra.mxu0 %v9624_v54  ;;  %2212 = vmatpush1.bf16.msra.mxu1 %v9626_v55  ;;  %v12676_v54 = vld [vmem:[#allocation33_spill] sm:$0xff]  ;;  %v12677_v55 = vld [vmem:[#allocation34_spill] sm:$0xff] }
 0x24e   : > { %2172 = vmatprep.subr.bf16.mxu0 %v9632_v56  ;;  %2213 = vmatprep.subr.bf16.mxu1 %v9634_v57  ;;  %v12678_v56 = vld [vmem:[#allocation35_spill] sm:$0xff]  ;;  %v12679_v57 = vld [vmem:[#allocation36_spill] sm:$0xff] }
 0x251   : > { %2173 = vmatpush1.bf16.msra.mxu0 %v9636_v58  ;;  %2214 = vmatpush1.bf16.msra.mxu1 %v9638_v59  ;;  %v12680_v58 = vld [vmem:[#allocation37_spill] sm:$0xff]  ;;  %v12681_v59 = vld [vmem:[#allocation38_spill] sm:$0xff] }
 0x252   : > { %2174 = vmatprep.subr.bf16.mxu0 %v9644_v60  ;;  %2215 = vmatprep.subr.bf16.mxu1 %v9646_v61  ;;  %v12682_v60 = vld [vmem:[#allocation39_spill] sm:$0xff]  ;;  %v12683_v61 = vld [vmem:[#allocation40_spill] sm:$0xff] }
 0x255   : > { %2175 = vmatpush1.bf16.msra.mxu0 %v9648_v62  ;;  %2216 = vmatpush1.bf16.msra.mxu1 %v9650_v63  ;;  %v12684_v62 = vld [vmem:[#allocation41_spill] sm:$0xff]  ;;  %v12685_v63 = vld [vmem:[#allocation42_spill] sm:$0xff] }
 0x256   : > { %2176 = vmatprep.subr.bf16.mxu0 %v9656_v0  ;;  %2217 = vmatprep.subr.bf16.mxu1 %v12666_v44  ;;  %v12686_v0 = vld [vmem:[#allocation43_spill] sm:$0xff]  ;;  %v12687_v44 = vld [vmem:[#allocation44_spill] sm:$0xff] }
 0x259   : > { %2177 = vmatpush1.bf16.msra.mxu0 %v12667_v45  ;;  %2218 = vmatpush1.bf16.msra.mxu1 %v12668_v46  ;;  %v12688_v45 = vld [vmem:[#allocation45_spill] sm:$0xff]  ;;  %v12689_v46 = vld [vmem:[#allocation46_spill] sm:$0xff] }
 0x25a   : > { %2178 = vmatprep.subr.bf16.mxu0 %v12669_v47  ;;  %2219 = vmatprep.subr.bf16.mxu1 %v12670_v48  ;;  %v12690_v47 = vld [vmem:[#allocation47_spill] sm:$0xff]  ;;  %v12691_v48 = vld [vmem:[#allocation48_spill] sm:$0xff] }
 0x25d   : > { %2179 = vmatpush1.bf16.msra.mxu0 %v12671_v49  ;;  %2220 = vmatpush1.bf16.msra.mxu1 %v12672_v50  ;;  %v12692_v49 = vld [vmem:[#allocation49_spill] sm:$0xff]  ;;  %v12693_v50 = vld [vmem:[#allocation50_spill] sm:$0xff] }
 0x25e   : > { %2180 = vmatprep.subr.bf16.mxu0 %v12673_v51  ;;  %2221 = vmatprep.subr.bf16.mxu1 %v12674_v52  ;;  %v12694_v51 = vld [vmem:[#allocation51_spill] sm:$0xff]  ;;  %v12695_v52 = vld [vmem:[#allocation52_spill] sm:$0xff] }
 0x261   : > { %2181 = vmatpush1.bf16.msra.mxu0 %v12675_v53  ;;  %2222 = vmatpush1.bf16.msra.mxu1 %v12676_v54  ;;  %v12696_v53 = vld [vmem:[#allocation53_spill] sm:$0xff]  ;;  %v12697_v54 = vld [vmem:[#allocation54_spill] sm:$0xff] }
 0x262   : > { %2182 = vmatprep.subr.bf16.mxu0 %v12677_v55  ;;  %2223 = vmatprep.subr.bf16.mxu1 %v12678_v56  ;;  %v12698_v55 = vld [vmem:[#allocation55_spill] sm:$0xff]  ;;  %v12699_v56 = vld [vmem:[#allocation56_spill] sm:$0xff] }
 0x265   : > { %2183 = vmatpush1.bf16.msra.mxu0 %v12679_v57  ;;  %2224 = vmatpush1.bf16.msra.mxu1 %v12680_v58  ;;  %v12700_v57 = vld [vmem:[#allocation57_spill] sm:$0xff] }
 0x266   : > { %2184 = vmatprep.subr.bf16.mxu0 %v12681_v59  ;;  %2225 = vmatprep.subr.bf16.mxu1 %v12682_v60  ;;  %v10075_v58 = vld [vmem:[#allocation9 + $0x4] ss:$16 sps:$4 sm:$0xff]   ;;  %v10078_v59 = vld [vmem:[#allocation9 + $0xc] ss:$16 sps:$4 sm:$0xff]  }
 0x267   : > { %12701 = vst [vmem:[#allocation23_spill] sm:$0xff] %v10075_v58  ;;  %12702 = vst [vmem:[#allocation24_spill] sm:$0xff] %v10078_v59  ;;  %v10082_v60 = vld [vmem:[%s9578_s10] sm:$0xff] }
 0x268   : > { %12703 = vst [vmem:[#allocation25_spill] sm:$0xff] %v10082_v60 }
 0x269   : > { %2185 = vmatpush1.bf16.msra.mxu0 %v12683_v61  ;;  %2226 = vmatpush1.bf16.msra.mxu1 %v12684_v62  ;;  %v10085_v61 = vld [vmem:[%s9578_s10 + $0x8] sm:$0xff] }
 0x26a   : > { %2186 = vmatprep.subr.bf16.mxu0 %v12685_v63  ;;  %2227 = vmatprep.subr.bf16.mxu1 %v12686_v0  ;;  %12704 = vst [vmem:[#allocation26_spill] sm:$0xff] %v10085_v61 }
 0x26d   : > { %2187 = vmatpush1.bf16.msra.mxu0 %v12687_v44  ;;  %2228 = vmatpush1.bf16.msra.mxu1 %v12688_v45 }
 0x26e   : > { %2188 = vmatprep.subr.bf16.mxu0 %v12689_v46  ;;  %2229 = vmatprep.subr.bf16.mxu1 %v12690_v47 }
 0x271   : > { %2189 = vmatpush1.bf16.msra.mxu0 %v12691_v48  ;;  %2230 = vmatpush1.bf16.msra.mxu1 %v12692_v49 }
 0x272   : > { %2190 = vmatprep.subr.bf16.mxu0 %v12693_v50  ;;  %2231 = vmatprep.subr.bf16.mxu1 %v12694_v51 }
 0x275   : > { %2191 = vmatpush1.bf16.msra.mxu0 %v12695_v52  ;;  %2232 = vmatpush1.bf16.msra.mxu1 %v12696_v53  ;;  %v10090_v53 = vld [vmem:[%s9578_s10 + $0x10] sm:$0xff] }
 0x276   : > { %2192 = vmatprep.subr.bf16.mxu0 %v12697_v54  ;;  %2233 = vmatprep.subr.bf16.mxu1 %v12698_v55  ;;  %12705 = vst [vmem:[#allocation27_spill] sm:$0xff] %v10090_v53 }
 0x279   : > { %2193 = vmatpush1.bf16.msra.mxu0 %v12699_v56  ;;  %2234 = vmatpush1.bf16.msra.mxu1 %v12700_v57 }
 0x27a   : > { %2390 = vmatprep.subr.bf16.mxu0 %v10075_v58  ;;  %2431 = vmatprep.subr.bf16.mxu1 %v10078_v59  ;;  %v6939_v58 = vld [vmem:[%s9567_s1 + $0xa1] ss:$8 sm:$0xf] }
 0x2ef   : > { %v1483_v62 = vpop.f32.mrb[4].mxu0  ;;  %v1524_v63 = vpop.f32.mrb[4].mxu1 }
 0x2f0   : > { %v1484_v0 = vadd.f32 %v1483_v62, %v10082_v60  ;;  %v1485_v44 = vpop.f32.mrb[5].mxu0  ;;  %v1526_v45 = vpop.f32.mrb[5].mxu1  ;;  %v1525_v54 = vadd.f32 %v1524_v63, %v10090_v53  ;;  %v10094_v60 = vld [vmem:[%s9578_s10 + $0x18] sm:$0xff] }
 0x2f1   : > { %v1486_v46 = vadd.f32 %v1485_v44, %v10085_v61  ;;  %v1487_v47 = vpop.f32.mrb[6].mxu0  ;;  %v1528_v48 = vpop.f32.mrb[6].mxu1  ;;  %12706 = vst [vmem:[#allocation28_spill] sm:$0xff] %v10094_v60  ;;  %v6938_v61 = vld [vmem:[%s9567_s1 + $0x81] ss:$8 sm:$0xf] }
 0x2f2   : > { %v6927_v49 = vmul.f32 -1.442695, %v1484_v0  ;;  %v1488_v50 = vpop.f32.mrb[7].mxu0  ;;  %v1529_v51 = vpop.f32.mrb[7].mxu1  ;;  %v1527_v0 = vadd.f32 %v1526_v45, %v10094_v60 }
 0x2f3   : > { %v6928_v52 = vmul.f32 -1.442695, %v1486_v46  ;;  %v416_v46 = vld [vmem:[#allocation5] sm:$0xff] }
 0x2f4   : > { %7628 = vpow2.f32 %v6927_v49  ;;  %v6929_v44 = vmul.f32 -1.442695, %v1527_v0 }
 0x2f5   : > { %7630 = vpow2.f32 %v6928_v52 }
 0x2f6   : > { %7632 = vtanh.f32 %v1525_v54 }
 0x2fe   : > { %v7629_v55 = vpop.eup %7628 }
 0x2ff   : > { %v7631_v56 = vpop.eup %7630  ;;  %v1534_v57 = vadd.f32 1.0, %v7629_v55 }
 0x300   : > { %v1540_v62 = vadd.f32 1.0, %v7631_v56  ;;  %v7633_v47 = vpop.eup %7632 }
 0x301   : > { %7634 = vrcp.f32 %v1534_v57 }
 0x302   : > { %7636 = vrcp.f32 %v1540_v62 }
 0x303   : > { %7638 = vpow2.f32 %v6929_v44 }
 0x30b   : > { %v7635_v48 = vpop.eup %7634 }
 0x30c   : > { %v7637_v49 = vpop.eup %7636  ;;  %v1551_v50 = vmul.f32 %v7635_v48, %v7633_v47 }
 0x30d   : > { %v1550_v51 = vmul.f32 %v7637_v49, %v416_v46 }
 0x30f   : > { %v10097_v63 = vadd.f32 %v1551_v50, %v1550_v51  ;;  %v1718_v52 = vpop.f32.mrb[8].mxu0  ;;  %v1759_v55 = vpop.f32.mrb[8].mxu1 }
 0x310   : > { %v1720_v54 = vpop.f32.mrb[9].mxu0  ;;  %v1761_v56 = vpop.f32.mrb[9].mxu1 }
 0x311   : > { %12707 = vst [vmem:[#allocation29_spill] sm:$0xff] %v10097_v63  ;;  %v1770_v53 = vcombine.low %v1718_v52, %v1720_v54  ;;  %v1771_v57 = vcombine.high %v1718_v52, %v1720_v54  ;;  %v1772_v62 = vcombine.low %v1759_v55, %v1761_v56  ;;  %v1773_v45 = vcombine.high %v1759_v55, %v1761_v56  ;;  %v1722_v0 = vpop.f32.mrb[10].mxu0  ;;  %v1763_v60 = vpop.f32.mrb[10].mxu1  ;;  %v6934_v52 = vld [vmem:[%s9567_s1 + $0x1] ss:$8 sm:$0xf] }
 0x312   : > { %v1723_v44 = vpop.f32.mrb[11].mxu0  ;;  %v1764_v47 = vpop.f32.mrb[11].mxu1  ;;  %v6935_v60 = vld [vmem:[%s9567_s1 + $0x21] ss:$8 sm:$0xf]  ;;  %7640 = vtanh.f32 %v10097_v63 }
 0x313   : > { %v1780_v46 = vrot.slane %v1770_v53, %v9766_v35  ;;  %v1787_v48 = vrot.slane %v1771_v57, %v9766_v35  ;;  %v1794_v49 = vrot.slane %v1772_v62, %v9766_v35  ;;  %v1801_v50 = vrot.slane %v1773_v45, %v9766_v35  ;;  %v7639_v51 = vpop.eup %7638  ;;  %v6936_v44 = vld [vmem:[%s9567_s1 + $0x41] ss:$8 sm:$0xf] }
 0x314   : > { %v6937_v47 = vld [vmem:[%s9567_s1 + $0x61] ss:$8 sm:$0xf]  ;;  %v1547_v59 = vadd.f32 1.0, %v7639_v51 }
 0x315   : > { %v1802_v55 = vcombine.low %v1780_v46, %v1794_v49  ;;  %v1803_v54 = vcombine.high %v1780_v46, %v1794_v49  ;;  %v1804_v56 = vcombine.low %v1787_v48, %v1801_v50  ;;  %v1805_v0 = vcombine.high %v1787_v48, %v1801_v50  ;;  %v6941_v50 = vld [vmem:[%s9567_s1 + $0xe1] ss:$8 sm:$0xf] }
 0x316   : > { %7642 = vrcp.f32 %v1547_v59 }
 0x317   : > { %v1812_v53 = vrot.slane %v1802_v55, %v9766_v35  ;;  %v1819_v57 = vrot.slane %v1804_v56, %v9766_v35  ;;  %v1826_v62 = vrot.slane %v1803_v54, %v9766_v35  ;;  %v1833_v45 = vrot.slane %v1805_v0, %v9766_v35 }
 0x319   : > { %v1834_v12 = vcombine.high %v1812_v53, %v1812_v53  ;;  %v1835_v46 = vcombine.high %v1819_v57, %v1819_v57  ;;  %v1836_v49 = vcombine.high %v1826_v62, %v1826_v62  ;;  %v1837_v48 = vcombine.high %v1833_v45, %v1833_v45 }
 0x31a   : > { %v10115_v26 = vadd.f32 %v6934_v52, %v1812_v53  ;;  %v10117_v43 = vadd.f32 %v6935_v60, %v1826_v62  ;;  %v10119_v21 = vadd.f32 %v6938_v61, %v1819_v57  ;;  %v10125_v54 = vadd.f32 %v6939_v58, %v1833_v45 }
 0x31b   : > { %v10121_v55 = vadd.f32 %v6936_v44, %v1834_v12  ;;  %v10123_v56 = vadd.f32 %v6937_v47, %v1836_v49  ;;  %v10127_v51 = vadd.f32 %v6940_v4, %v1835_v46  ;;  %v10132_v52 = vadd.f32 %v6941_v50, %v1837_v48 }
 0x31c   : > { %v6942_v0 = vmul.f32 -1.442695, %v10115_v26  ;;  %v6943_v27 = vmul.f32 -1.442695, %v10117_v43  ;;  %v6946_v60 = vmul.f32 -1.442695, %v10119_v21  ;;  %v7641_v48 = vpop.eup %7640 }
 0x31d   : > { %v6944_v61 = vmul.f32 -1.442695, %v10121_v55  ;;  %v6945_v12 = vmul.f32 -1.442695, %v10123_v56  ;;  %v1910_v58 = vrot.slane %v10115_v26, 1  ;;  %v1911_v44 = vrot.slane %v10117_v43, 1 }
 0x31e   : > { %7644 = vpow2.f32 %v6942_v0  ;;  %v6947_v4 = vmul.f32 -1.442695, %v10125_v54  ;;  %v6948_v47 = vmul.f32 -1.442695, %v10127_v51  ;;  %v1912_v59 = vrot.slane %v10121_v55, 1 }
 0x31f   : > { %7646 = vpow2.f32 %v6943_v27  ;;  %v6949_v53 = vmul.f32 -1.442695, %v10132_v52  ;;  %v1913_v57 = vrot.slane %v10123_v56, 1  ;;  %v1914_v62 = vrot.slane %v10119_v21, 1 }
 0x320   : > { %7648 = vpow2.f32 %v6944_v61  ;;  %v6950_v45 = vmul.f32 -1.442695, %v1910_v58  ;;  %v6951_v27 = vmul.f32 -1.442695, %v1911_v44  ;;  %v6952_v46 = vmul.f32 -1.442695, %v1912_v59  ;;  %v7643_v0 = vpop.eup %7642 }
 0x321   : > { %7650 = vpow2.f32 %v6945_v12  ;;  %v6953_v49 = vmul.f32 -1.442695, %v1913_v57  ;;  %v6954_v50 = vmul.f32 -1.442695, %v1914_v62  ;;  %v1554_v19 = vmul.f32 %v7643_v0, %v7641_v48 }
 0x322   : > { %7652 = vpow2.f32 %v6946_v60  ;;  %v1915_v60 = vrot.slane %v10125_v54, 1  ;;  %v1916_v59 = vrot.slane %v10127_v51, 1  ;;  %v1917_v62 = vrot.slane %v10132_v52, 1 }
 0x323   : > { %7654 = vpow2.f32 %v6947_v4  ;;  %v2161_v0 = vpack.c.bf16 %v1554_v19, %v1554_v19  ;;  %v2005_v39 = vrot.slane %v10132_v52, 3 }
 0x324   : > { %7656 = vpow2.f32 %v6948_v47 }
 0x325   : > { %7658 = vpow2.f32 %v6949_v53  ;;  %2194 = vmatprep.mubr.bf16.mxu0 %v2161_v0  ;;  %2235 = vmatprep.mubr.bf16.mxu1 %v2161_v0 }
 0x326   : > { %7660 = vpow2.f32 %v6950_v45 }
 0x327   : > { %7662 = vpow2.f32 %v6951_v27 }
 0x328   : > { %v7645_v61 = vpop.eup %7644  ;;  %7664 = vpow2.f32 %v6952_v46  ;;  %v6955_v46 = vmul.f32 -1.442695, %v1915_v60 }
 0x329   : > { %v7647_v12 = vpop.eup %7646  ;;  %v1878_v63 = vadd.f32 1.0, %v7645_v61  ;;  %7666 = vpow2.f32 %v6953_v49  ;;  %v1556_v61 = vcombine.high %v1554_v19, %v1554_v19 }
 0x32a   : > { %v7649_v58 = vpop.eup %7648  ;;  %v1879_v4 = vadd.f32 1.0, %v7647_v12  ;;  %7668 = vpow2.f32 %v6954_v50  ;;  %v1563_v50 = vrot.slane %v1554_v19, %v9766_v35  ;;  %v6957_v19 = vmul.f32 -1.442695, %v1917_v62 }
 0x32b   : > { %v7651_v44 = vpop.eup %7650  ;;  %v1880_v47 = vadd.f32 1.0, %v7649_v58  ;;  %7670 = vrcp.f32 %v1878_v63  ;;  %v6956_v58 = vmul.f32 -1.442695, %v1916_v59 }
 0x32c   : > { %v7653_v53 = vpop.eup %7652  ;;  %v1881_v57 = vadd.f32 1.0, %v7651_v44  ;;  %7672 = vrcp.f32 %v1879_v4  ;;  %v1570_v4 = vrot.slane %v1556_v61, %v9766_v35  ;;  %v1579_v60 = vrot.slane %v1563_v50, %v9766_v35  ;;  %6930 = vst.sshfl [vmem:[%s9585_s30] sm:$0x1 pattern:$0x73625140] %v1563_v50 }
 0x32d   : > { %v7655_v45 = vpop.eup %7654  ;;  %v1882_v27 = vadd.f32 1.0, %v7653_v53  ;;  %7674 = vrcp.f32 %v1880_v47  ;;  %v1571_v47 = vcombine.high %v1563_v50, %v1563_v50 }
 0x32e   : > { %v7657_v49 = vpop.eup %7656  ;;  %v1883_v48 = vadd.f32 1.0, %v7655_v45  ;;  %7676 = vrcp.f32 %v1881_v57  ;;  %v1572_v57 = vcombine.high %v1570_v4, %v1570_v4  ;;  %v1586_v45 = vrot.slane %v1570_v4, %v9766_v35  ;;  %6932 = vst.sshfl [vmem:[%s9585_s30 + $0x20] sm:$0x1 pattern:$0x73625140] %v1570_v4 }
 0x32f   : > { %v7659_v63 = vpop.eup %7658  ;;  %v1884_v12 = vadd.f32 1.0, %v7657_v49  ;;  %7678 = vrcp.f32 %v1882_v27  ;;  %v1593_v61 = vrot.slane %v1571_v47, %v9766_v35  ;;  %v1601_v49 = vcombine.high %v1579_v60, %v1579_v60  ;;  %6931 = vst.sshfl [vmem:[%s9585_s30 + $0x8] sm:$0x1 pattern:$0x73625140] %v1571_v47 }
 0x330   : > { %v7661_v44 = vpop.eup %7660  ;;  %v1885_v34 = vadd.f32 1.0, %v7659_v63  ;;  %7680 = vrcp.f32 %v1883_v48  ;;  %v1600_v0 = vrot.slane %v1572_v57, %v9766_v35  ;;  %v1602_v62 = vcombine.high %v1586_v45, %v1586_v45  ;;  %6933 = vst.sshfl [vmem:[%s9585_s30 + $0x28] sm:$0x1 pattern:$0x73625140] %v1572_v57 }
 0x331   : > { %v7663_v53 = vpop.eup %7662  ;;  %7682 = vrcp.f32 %v1884_v12  ;;  %v1950_v27 = vadd.f32 1.0, %v7661_v44  ;;  %v1603_v4 = vcombine.high %v1593_v61, %v1593_v61  ;;  %1615 = vst [vmem:[%s9585_s30 + $0x10] sm:$0x1] %v1601_v49  ;;  %v1975_v45 = vrot.slane %v10117_v43, 2 }
 0x332   : > { %v7665_v59 = vpop.eup %7664  ;;  %7684 = vrcp.f32 %v1885_v34  ;;  %v1951_v50 = vadd.f32 1.0, %v7663_v53  ;;  %v1604_v47 = vcombine.high %v1600_v0, %v1600_v0  ;;  %1619 = vst [vmem:[%s9585_s30 + $0x30] sm:$0x1] %v1602_v62 }
 0x333   : > { %v7667_v48 = vpop.eup %7666  ;;  %7686 = vpow2.f32 %v6955_v46  ;;  %v1952_v12 = vadd.f32 1.0, %v7665_v59  ;;  %1616 = vst [vmem:[%s9585_s30 + $0x18] sm:$0x1] %v1603_v4  ;;  %v1976_v59 = vrot.slane %v10121_v55, 2 }
 0x334   : > { %v7669_v63 = vpop.eup %7668  ;;  %7688 = vpow2.f32 %v6956_v58  ;;  %v1953_v44 = vadd.f32 1.0, %v7667_v48  ;;  %v1974_v58 = vrot.slane %v10115_v26, 2  ;;  %1620 = vst [vmem:[%s9585_s30 + $0x38] sm:$0x1] %v1604_v47  ;;  %v1978_v48 = vrot.slane %v10119_v21, 2 }
 0x335   : > { %v10159_v34 = vpop.eup %7670  ;;  %7690 = vpow2.f32 %v6957_v19  ;;  %v1954_v46 = vadd.f32 1.0, %v7669_v63  ;;  %v1979_v47 = vrot.slane %v10125_v54, 2 }
 0x336   : > { %v10162_v60 = vpop.eup %7672  ;;  %7692 = vrcp.f32 %v1950_v27  ;;  %v1977_v27 = vrot.slane %v10123_v56, 2 }
 0x337   : > { %v10165_v53 = vpop.eup %7674  ;;  %7694 = vrcp.f32 %v1951_v50 }
 0x338   : > { %v10169_v57 = vpop.eup %7676  ;;  %7696 = vrcp.f32 %v1952_v12  ;;  %v1998_v12 = vrot.slane %v10115_v26, 3  ;;  %v2001_v26 = vrot.slane %v10123_v56, 3 }
 0x339   : > { %v10172_v19 = vpop.eup %7678  ;;  %7698 = vrcp.f32 %v1953_v44 }
 0x33a   : > { %v10175_v61 = vpop.eup %7680  ;;  %7700 = vrcp.f32 %v1954_v46  ;;  %v1999_v46 = vrot.slane %v10117_v43, 3  ;;  %v2003_v43 = vrot.slane %v10125_v54, 3  ;;  %v6961_v56 = vmul.f32 -1.442695, %v2001_v26 }
 0x33b   : > { %v10178_v49 = vpop.eup %7682  ;;  %7702 = vtanh.f32 %v1974_v58  ;;  %v1980_v58 = vrot.slane %v10127_v51, 2 }
 0x33c   : > { %v10181_v50 = vpop.eup %7684  ;;  %7704 = vtanh.f32 %v1975_v45  ;;  %v2000_v45 = vrot.slane %v10121_v55, 3  ;;  %v2004_v55 = vrot.slane %v10127_v51, 3 }
 0x33d   : > { %v7687_v0 = vpop.eup %7686  ;;  %7706 = vtanh.f32 %v1976_v59 }
 0x33e   : > { %v7689_v62 = vpop.eup %7688  ;;  %v1955_v63 = vadd.f32 1.0, %v7687_v0  ;;  %7708 = vtanh.f32 %v1977_v27  ;;  %v1981_v27 = vrot.slane %v10132_v52, 2  ;;  %v6960_v23 = vmul.f32 -1.442695, %v2000_v45 }
 0x33f   : > { %v7691_v4 = vpop.eup %7690  ;;  %v1956_v44 = vadd.f32 1.0, %v7689_v62  ;;  %7710 = vtanh.f32 %v1978_v48  ;;  %v2002_v62 = vrot.slane %v10119_v21, 3  ;;  %v6958_v48 = vmul.f32 -1.442695, %v1998_v12 }
 0x340   : > { %v7693_v1 = vpop.eup %7692  ;;  %v1957_v18 = vadd.f32 1.0, %v7691_v4  ;;  %7712 = vrcp.f32 %v1955_v63  ;;  %v6959_v63 = vmul.f32 -1.442695, %v1999_v46  ;;  %v6965_v52 = vmul.f32 -1.442695, %v2005_v39 }
 0x341   : > { %v7695_v59 = vpop.eup %7694  ;;  %7714 = vrcp.f32 %v1956_v44  ;;  %v2062_v21 = vmul.f32 %v7693_v1, %v9856_v15 }
 0x342   : > { %v7697_v0 = vpop.eup %7696  ;;  %7716 = vrcp.f32 %v1957_v18  ;;  %v6962_v18 = vmul.f32 -1.442695, %v2002_v62  ;;  %v2063_v54 = vmul.f32 %v7695_v59, %v9859_v3 }
 0x343   : > { %v7699_v22 = vpop.eup %7698  ;;  %7718 = vtanh.f32 %v1979_v47  ;;  %v6963_v47 = vmul.f32 -1.442695, %v2003_v43  ;;  %v2064_v45 = vmul.f32 %v7697_v0, %v9862_v2 }
 0x344   : > { %v7701_v4 = vpop.eup %7700  ;;  %7720 = vtanh.f32 %v1980_v58  ;;  %v6964_v58 = vmul.f32 -1.442695, %v2004_v55  ;;  %v2065_v62 = vmul.f32 %v7699_v22, %v9865_v7 }
 0x345   : > { %v7703_v44 = vpop.eup %7702  ;;  %7722 = vtanh.f32 %v1981_v27  ;;  %v2066_v3 = vmul.f32 %v7701_v4, %v9867_v32 }
 0x346   : > { %v7705_v16 = vpop.eup %7704  ;;  %7724 = vpow2.f32 %v6958_v48  ;;  %v2070_v51 = vmul.f32 %v7703_v44, %v10159_v34 }
 0x347   : > { %v7707_v12 = vpop.eup %7706  ;;  %7726 = vpow2.f32 %v6959_v63  ;;  %v2071_v26 = vmul.f32 %v7705_v16, %v10162_v60 }
 0x348   : > { %v7709_v46 = vpop.eup %7708  ;;  %7728 = vpow2.f32 %v6960_v23  ;;  %v2072_v1 = vmul.f32 %v7707_v12, %v10165_v53  ;;  %v10202_v59 = vadd.f32 %v2070_v51, %v2062_v21 }
 0x349   : > { %v7711_v27 = vpop.eup %7710  ;;  %7730 = vpow2.f32 %v6961_v56  ;;  %v2073_v34 = vmul.f32 %v7709_v46, %v10169_v57  ;;  %v10205_v2 = vadd.f32 %v2071_v26, %v2063_v54 }
 0x34a   : > { %v7713_v15 = vpop.eup %7712  ;;  %7732 = vpow2.f32 %v6962_v18  ;;  %v2074_v16 = vmul.f32 %v7711_v27, %v10172_v19  ;;  %v10208_v39 = vadd.f32 %v2072_v1, %v2064_v45 }
 0x34b   : > { %v7715_v23 = vpop.eup %7714  ;;  %7734 = vpow2.f32 %v6963_v47  ;;  %v10210_v22 = vadd.f32 %v2073_v34, %v2065_v62  ;;  %v2067_v44 = vmul.f32 %v7713_v15, %v9877_v20 }
 0x34c   : > { %v7717_v0 = vpop.eup %7716  ;;  %7736 = vpow2.f32 %v6964_v58  ;;  %v10212_v32 = vadd.f32 %v2074_v16, %v2066_v3  ;;  %v2068_v21 = vmul.f32 %v7715_v23, %v9879_v28 }
 0x34d   : > { %v7719_v7 = vpop.eup %7718  ;;  %7738 = vpow2.f32 %v6965_v52  ;;  %v2069_v46 = vmul.f32 %v7717_v0, %v9881_v17 }
 0x34e   : > { %v7721_v60 = vpop.eup %7720  ;;  %7740 = vtanh.f32 %v10202_v59  ;;  %v2075_v54 = vmul.f32 %v7719_v7, %v10175_v61 }
 0x34f   : > { %v7723_v53 = vpop.eup %7722  ;;  %7742 = vtanh.f32 %v10205_v2  ;;  %v2076_v45 = vmul.f32 %v7721_v60, %v10178_v49 }
 0x350   : > { %v7725_v57 = vpop.eup %7724  ;;  %7744 = vtanh.f32 %v10208_v39  ;;  %v2077_v20 = vmul.f32 %v7723_v53, %v10181_v50  ;;  %v10225_v26 = vadd.f32 %v2075_v54, %v2067_v44 }
 0x351   : > { %v7727_v48 = vpop.eup %7726  ;;  %v2038_v43 = vadd.f32 1.0, %v7725_v57  ;;  %7746 = vtanh.f32 %v10210_v22  ;;  %v10227_v15 = vadd.f32 %v2076_v45, %v2068_v21 }
 0x352   : > { %v7729_v19 = vpop.eup %7728  ;;  %v2039_v63 = vadd.f32 1.0, %v7727_v48  ;;  %7748 = vtanh.f32 %v10212_v32  ;;  %v10229_v17 = vadd.f32 %v2077_v20, %v2069_v46 }
 0x353   : > { %v7731_v4 = vpop.eup %7730  ;;  %v2040_v55 = vadd.f32 1.0, %v7729_v19  ;;  %7750 = vrcp.f32 %v2038_v43 }
 0x354   : > { %v7733_v56 = vpop.eup %7732  ;;  %v2041_v18 = vadd.f32 1.0, %v7731_v4  ;;  %7752 = vrcp.f32 %v2039_v63 }
 0x355   : > { %v7735_v12 = vpop.eup %7734  ;;  %v2042_v47 = vadd.f32 1.0, %v7733_v56  ;;  %7754 = vrcp.f32 %v2040_v55 }
 0x356   : > { %v7737_v58 = vpop.eup %7736  ;;  %v2043_v51 = vadd.f32 1.0, %v7735_v12  ;;  %7756 = vrcp.f32 %v2041_v18 }
 0x357   : > { %v7739_v27 = vpop.eup %7738  ;;  %v2044_v52 = vadd.f32 1.0, %v7737_v58  ;;  %7758 = vrcp.f32 %v2042_v47 }
 0x358   : > { %v7741_v28 = vpop.eup %7740  ;;  %v2045_v62 = vadd.f32 1.0, %v7739_v27  ;;  %7760 = vrcp.f32 %v2043_v51 }
 0x359   : > { %v7743_v61 = vpop.eup %7742  ;;  %7762 = vrcp.f32 %v2044_v52 }
 0x35a   : > { %v7745_v1 = vpop.eup %7744  ;;  %7764 = vrcp.f32 %v2045_v62 }
 0x35b   : > { %v7747_v3 = vpop.eup %7746  ;;  %7766 = vtanh.f32 %v10225_v26 }
 0x35c   : > { %v7749_v49 = vpop.eup %7748  ;;  %7768 = vtanh.f32 %v10227_v15 }
 0x35d   : > { %v7751_v50 = vpop.eup %7750  ;;  %7770 = vtanh.f32 %v10229_v17 }
 0x35e   : > { %v7753_v23 = vpop.eup %7752  ;;  %v2094_v34 = vmul.f32 %v7751_v50, %v7741_v28 }
 0x35f   : > { %v7755_v0 = vpop.eup %7754  ;;  %v2095_v16 = vmul.f32 %v7753_v23, %v7743_v61 }
 0x360   : > { %v7757_v7 = vpop.eup %7756  ;;  %v2096_v60 = vmul.f32 %v7755_v0, %v7745_v1  ;;  %v2350_v53 = vpack.c.bf16 %v2094_v34, %v2094_v34 }
 0x361   : > { %v7759_v57 = vpop.eup %7758  ;;  %v2097_v48 = vmul.f32 %v7757_v7, %v7747_v3  ;;  %v2110_v43 = vcombine.low %v2094_v34, %v2095_v16  ;;  %v2351_v19 = vpack.c.bf16 %v2095_v16, %v2095_v16 }
 0x362   : > { %v7761_v63 = vpop.eup %7760  ;;  %v2098_v4 = vmul.f32 %v7759_v57, %v7749_v49  ;;  %v2352_v55 = vpack.c.bf16 %v2096_v60, %v2096_v60  ;;  %v2366_v47 = vunpack.c.l.b16 %v2350_v53 }
 0x363   : > { %v7763_v44 = vpop.eup %7762  ;;  %v2111_v56 = vcombine.low %v2096_v60, %v2097_v48  ;;  %v2353_v18 = vpack.c.bf16 %v2097_v48, %v2097_v48  ;;  %v2367_v21 = vunpack.c.l.b16 %v2351_v19  ;;  %v2120_v51 = vrot.slane %v2110_v43, %v9766_v35 }
 0x364   : > { %v7765_v12 = vpop.eup %7764  ;;  %v2368_v54 = vunpack.c.l.b16 %v2352_v55  ;;  %v2354_v46 = vpack.c.bf16 %v2098_v4, %v2098_v4 }
 0x365   : > { %v7767_v58 = vpop.eup %7766  ;;  %v2127_v45 = vrot.slane %v2111_v56, %v9766_v35  ;;  %v2369_v27 = vunpack.c.l.b16 %v2353_v18  ;;  %v2374_v52 = vrot.slane %v2367_v21, 7 }
 0x366   : > { %v7769_v20 = vpop.eup %7768  ;;  %v2099_v28 = vmul.f32 %v7767_v58, %v7761_v63  ;;  %v2376_v62 = vrot.slane %v2368_v54, 6  ;;  %v2370_v61 = vunpack.c.l.b16 %v2354_v46 }
 0x367   : > { %v7771_v1 = vpop.eup %7770  ;;  %v2100_v3 = vmul.f32 %v7769_v20, %v7763_v44  ;;  %v2142_v49 = vcombine.low %v2120_v51, %v2127_v45  ;;  %v2378_v50 = vrot.slane %v2369_v27, 5  ;;  %v2375_v23 = vsel %vm1662_vm0, %v2374_v52, %v2366_v47  ;;  %v12726_v20 = vld [vmem:[#allocation76_spill] sm:$0xff] }
 0x368   : > { %v2101_v34 = vmul.f32 %v7771_v1, %v7765_v12  ;;  %v2112_v0 = vcombine.low %v2098_v4, %v2099_v28  ;;  %v2355_v16 = vpack.c.bf16 %v2099_v28, %v2099_v28  ;;  %v2377_v7 = vsel %vm1665_vm1, %v2376_v62, %v2375_v23  ;;  %v10287_v28 = vld [vmem:[#allocation11 + $0x44] ss:$16 sps:$4 sm:$0xff]   ;;  %v10290_v62 = vld [vmem:[#allocation11 + $0x4c] ss:$16 sps:$4 sm:$0xff]   ;;  %v10296_v1 = vld [vmem:[#allocation11 + $0x48] ss:$16 sps:$4 sm:$0xff]  }
 0x369   : > { %v2356_v60 = vpack.c.bf16 %v2100_v3, %v2100_v3  ;;  %v2379_v53 = vsel %vm1668_vm2, %v2378_v50, %v2377_v7  ;;  %v2380_v57 = vrot.slane %v2370_v61, 4  ;;  %v2150_v47 = vrot.slane %v2142_v49, %v9766_v35  ;;  %v10293_v61 = vld [vmem:[#allocation11 + $0x40] ss:$16 sps:$4 sm:$0xff]   ;;  %v10302_v49 = vld [vmem:[#allocation11 + $0x6c] ss:$16 sps:$4 sm:$0xff]  }
 0x36a   : > { %v2113_v48 = vcombine.low %v2100_v3, %v2101_v34  ;;  %v2357_v43 = vpack.c.bf16 %v2101_v34, %v2101_v34  ;;  %v2371_v19 = vunpack.c.l.b16 %v2355_v16  ;;  %v2134_v44 = vrot.slane %v2112_v0, %v9766_v35  ;;  %v10299_v3 = vld [vmem:[#allocation11 + $0x64] ss:$16 sps:$4 sm:$0xff]   ;;  %v10305_v50 = vld [vmem:[#allocation11 + $0x60] ss:$16 sps:$4 sm:$0xff]   ;;  %v10308_v23 = vld [vmem:[#allocation11 + $0x68] ss:$16 sps:$4 sm:$0xff]  }
 0x36b   : > { %v2372_v63 = vunpack.c.l.b16 %v2356_v60  ;;  %v2381_v55 = vsel %vm1671_vm3, %v2380_v57, %v2379_v53  ;;  %v10311_v34 = vld [vmem:[#allocation11 + $0x84] ss:$16 sps:$4 sm:$0xff]   ;;  %v10314_v0 = vld [vmem:[#allocation11 + $0x8c] ss:$16 sps:$4 sm:$0xff]   ;;  %v10317_v16 = vld [vmem:[#allocation11 + $0x80] ss:$16 sps:$4 sm:$0xff]  }
 0x36c   : > { %v2141_v56 = vrot.slane %v2113_v48, %v9766_v35  ;;  %v2373_v18 = vunpack.c.l.b16 %v2357_v43  ;;  %v2382_v21 = vrot.slane %v2371_v19, 3  ;;  %v10320_v7 = vld [vmem:[#allocation11 + $0x88] ss:$16 sps:$4 sm:$0xff]   ;;  %v10323_v60 = vld [vmem:[#allocation11 + $0xa4] ss:$16 sps:$4 sm:$0xff]  }
 0x36d   : > { %v2384_v4 = vrot.slane %v2372_v63, 2  ;;  %v10326_v53 = vld [vmem:[#allocation11 + $0xac] ss:$16 sps:$4 sm:$0xff]   ;;  %v10329_v57 = vld [vmem:[#allocation11 + $0xa0] ss:$16 sps:$4 sm:$0xff]  }
 0x36e   : > { %v2143_v12 = vcombine.low %v2134_v44, %v2141_v56  ;;  %v2383_v54 = vsel %vm1674_vm4, %v2382_v21, %v2381_v55  ;;  %v2386_v46 = vrot.slane %v2373_v18, 1  ;;  %v10332_v48 = vld [vmem:[#allocation11 + $0xa8] ss:$16 sps:$4 sm:$0xff]   ;;  %v10335_v43 = vld [vmem:[#allocation11 + $0xc4] ss:$16 sps:$4 sm:$0xff]  }
 0x36f   : > { %v2385_v58 = vsel %vm1677_vm5, %v2384_v4, %v2383_v54  ;;  %v10338_v19 = vld [vmem:[#allocation11 + $0xcc] ss:$16 sps:$4 sm:$0xff]   ;;  %v10341_v63 = vld [vmem:[#allocation11 + $0xc0] ss:$16 sps:$4 sm:$0xff]   ;;  %v10344_v55 = vld [vmem:[#allocation11 + $0xc8] ss:$16 sps:$4 sm:$0xff]  }
 0x370   : > { %v2157_v51 = vrot.slane %v2143_v12, %v9766_v35  ;;  %v2387_v45 = vsel %vm1680_vm6, %v2386_v46, %v2385_v58  ;;  %12727 = vst [vmem:[#allocation30_spill] sm:$0xff] %v10344_v55  ;;  %v10347_v44 = vld [vmem:[#allocation11 + $0xe4] ss:$16 sps:$4 sm:$0xff]   ;;  %v10350_v56 = vld [vmem:[#allocation11 + $0xec] ss:$16 sps:$4 sm:$0xff]  }
 0x371   : > { %12728 = vst [vmem:[#allocation31_spill] sm:$0xff] %v10347_v44  ;;  %12729 = vst [vmem:[#allocation32_spill] sm:$0xff] %v10350_v56  ;;  %v10353_v18 = vld [vmem:[#allocation11 + $0xe0] ss:$16 sps:$4 sm:$0xff]   ;;  %v10356_v21 = vld [vmem:[#allocation11 + $0xe8] ss:$16 sps:$4 sm:$0xff]  }
 0x372   : > { %v2158_v27 = vcombine.low %v2150_v47, %v2157_v51  ;;  %12730 = vst [vmem:[#allocation33_spill] sm:$0xff] %v10353_v18  ;;  %12731 = vst [vmem:[#allocation34_spill] sm:$0xff] %v10356_v21  ;;  %v10359_v4 = vld [vmem:[#allocation11 + $0x104] ss:$16 sps:$4 sm:$0xff]   ;;  %v10362_v12 = vld [vmem:[#allocation11 + $0x10c] ss:$16 sps:$4 sm:$0xff]  }
 0x373   : > { %12732 = vst [vmem:[#allocation35_spill] sm:$0xff] %v10359_v4  ;;  %12733 = vst [vmem:[#allocation36_spill] sm:$0xff] %v10362_v12  ;;  %v10365_v47 = vld [vmem:[#allocation11 + $0x100] ss:$16 sps:$4 sm:$0xff]   ;;  %v10368_v54 = vld [vmem:[#allocation11 + $0x108] ss:$16 sps:$4 sm:$0xff]  }
 0x374   : > { %v2160_v52 = vpack.c.bf16 %v2158_v27, %v2158_v27  ;;  %12734 = vst [vmem:[#allocation37_spill] sm:$0xff] %v10365_v47  ;;  %12735 = vst [vmem:[#allocation38_spill] sm:$0xff] %v10368_v54  ;;  %v10371_v46 = vld [vmem:[#allocation11 + $0x124] ss:$16 sps:$4 sm:$0xff]   ;;  %v10374_v58 = vld [vmem:[#allocation11 + $0x12c] ss:$16 sps:$4 sm:$0xff]  }
 0x375   : > { %12736 = vst [vmem:[#allocation39_spill] sm:$0xff] %v10371_v46  ;;  %12737 = vst [vmem:[#allocation40_spill] sm:$0xff] %v10374_v58  ;;  %v10377_v51 = vld [vmem:[#allocation11 + $0x120] ss:$16 sps:$4 sm:$0xff]   ;;  %v10383_v27 = vld [vmem:[#allocation11 + $0x144] ss:$16 sps:$4 sm:$0xff]  }
 0x376   : > { %2195 = vmatmul.mubr.bf16.vlgmr.msra.gmra.mrb[12].mxu0 %v2160_v52  ;;  %2236 = vmatmul.mubr.bf16.vlgmr.msra.gmra.mrb[12].mxu1 %v2160_v52  ;;  %12738 = vst [vmem:[#allocation41_spill] sm:$0xff] %v10377_v51  ;;  %12740 = vst [vmem:[#allocation43_spill] sm:$0xff] %v10383_v27  ;;  %v10386_v52 = vld [vmem:[#allocation11 + $0x14c] ss:$16 sps:$4 sm:$0xff]  }
 0x377   : > { %2391 = vmatpush1.bf16.msra.mxu0 %v9901_v24  ;;  %2432 = vmatpush1.bf16.msra.mxu1 %v9904_v9  ;;  %v12708_v24 = vld [vmem:[#allocation58_spill] sm:$0xff]  ;;  %v12709_v9 = vld [vmem:[#allocation59_spill] sm:$0xff]  ;;  %12741 = vst [vmem:[#allocation44_spill] sm:$0xff] %v10386_v52 }
 0x378   : > { %2392 = vmatprep.subr.bf16.mxu0 %v9907_v8  ;;  %2433 = vmatprep.subr.bf16.mxu1 %v9910_v38  ;;  %v12710_v8 = vld [vmem:[#allocation60_spill] sm:$0xff]  ;;  %v12711_v38 = vld [vmem:[#allocation61_spill] sm:$0xff] }
 0x379   : > { %2422 = vmatprep.mubr.bf16.mxu0 %v12646_v36  ;;  %2463 = vmatprep.mubr.bf16.mxu1 %v12646_v36 }
 0x37b   : > { %2393 = vmatpush1.bf16.msra.mxu0 %v9915_v33  ;;  %2434 = vmatpush1.bf16.msra.mxu1 %v9918_v11  ;;  %v12712_v33 = vld [vmem:[#allocation62_spill] sm:$0xff]  ;;  %v12713_v11 = vld [vmem:[#allocation63_spill] sm:$0xff] }
 0x37c   : > { %2394 = vmatprep.subr.bf16.mxu0 %v9921_v41  ;;  %2435 = vmatprep.subr.bf16.mxu1 %v9924_v10  ;;  %v12714_v41 = vld [vmem:[#allocation64_spill] sm:$0xff]  ;;  %v12715_v10 = vld [vmem:[#allocation65_spill] sm:$0xff] }
 0x37f   : > { %2395 = vmatpush1.bf16.msra.mxu0 %v9927_v40  ;;  %2436 = vmatpush1.bf16.msra.mxu1 %v9930_v6  ;;  %v12716_v40 = vld [vmem:[#allocation66_spill] sm:$0xff]  ;;  %v12717_v6 = vld [vmem:[#allocation67_spill] sm:$0xff] }
 0x380   : > { %2396 = vmatprep.subr.bf16.mxu0 %v9933_v30  ;;  %2437 = vmatprep.subr.bf16.mxu1 %v9936_v5  ;;  %v12718_v30 = vld [vmem:[#allocation68_spill] sm:$0xff]  ;;  %v2388_v5 = vpack.c.b16 %v2387_v45, %v2387_v45 }
 0x381   : > { %v10380_v45 = vld [vmem:[#allocation11 + $0x128] ss:$16 sps:$4 sm:$0xff]  }
 0x382   : > { %12739 = vst [vmem:[#allocation42_spill] sm:$0xff] %v10380_v45 }
 0x383   : > { %2397 = vmatpush1.bf16.msra.mxu0 %v9939_v42  ;;  %2438 = vmatpush1.bf16.msra.mxu1 %v9942_v37  ;;  %v12719_v42 = vld [vmem:[#allocation69_spill] sm:$0xff]  ;;  %v12720_v37 = vld [vmem:[#allocation70_spill] sm:$0xff] }
 0x384   : > { %2398 = vmatprep.subr.bf16.mxu0 %v9945_v14  ;;  %2439 = vmatprep.subr.bf16.mxu1 %v9948_v31  ;;  %v12721_v14 = vld [vmem:[#allocation71_spill] sm:$0xff]  ;;  %v12722_v31 = vld [vmem:[#allocation72_spill] sm:$0xff] }
 0x387   : > { %2399 = vmatpush1.bf16.msra.mxu0 %v9951_v29  ;;  %2440 = vmatpush1.bf16.msra.mxu1 %v9954_v25  ;;  %v12723_v29 = vld [vmem:[#allocation73_spill] sm:$0xff]  ;;  %v12724_v25 = vld [vmem:[#allocation74_spill] sm:$0xff] }
 0x388   : > { %2400 = vmatprep.subr.bf16.mxu0 %v9957_v13  ;;  %2441 = vmatprep.subr.bf16.mxu1 %v12708_v24  ;;  %v12725_v13 = vld [vmem:[#allocation75_spill] sm:$0xff] }
 0x389   : > { %v10389_v24 = vld [vmem:[#allocation11 + $0x140] ss:$16 sps:$4 sm:$0xff]  }
 0x38a   : > { %12742 = vst [vmem:[#allocation45_spill] sm:$0xff] %v10389_v24 }
 0x38b   : > { %2401 = vmatpush1.bf16.msra.mxu0 %v12709_v9  ;;  %2442 = vmatpush1.bf16.msra.mxu1 %v12710_v8  ;;  %v10392_v9 = vld [vmem:[#allocation11 + $0x148] ss:$16 sps:$4 sm:$0xff]   ;;  %v10395_v8 = vld [vmem:[#allocation11 + $0x164] ss:$16 sps:$4 sm:$0xff]  }
 0x38c   : > { %2402 = vmatprep.subr.bf16.mxu0 %v12711_v38  ;;  %2443 = vmatprep.subr.bf16.mxu1 %v12712_v33  ;;  %12743 = vst [vmem:[#allocation46_spill] sm:$0xff] %v10392_v9  ;;  %12744 = vst [vmem:[#allocation47_spill] sm:$0xff] %v10395_v8  ;;  %v10398_v38 = vld [vmem:[#allocation11 + $0x16c] ss:$16 sps:$4 sm:$0xff]   ;;  %v10401_v33 = vld [vmem:[#allocation11 + $0x160] ss:$16 sps:$4 sm:$0xff]  }
 0x38d   : > { %12745 = vst [vmem:[#allocation48_spill] sm:$0xff] %v10398_v38  ;;  %12746 = vst [vmem:[#allocation49_spill] sm:$0xff] %v10401_v33 }
 0x38f   : > { %2403 = vmatpush1.bf16.msra.mxu0 %v12713_v11  ;;  %2444 = vmatpush1.bf16.msra.mxu1 %v12714_v41  ;;  %v10404_v11 = vld [vmem:[#allocation11 + $0x168] ss:$16 sps:$4 sm:$0xff]   ;;  %v10407_v41 = vld [vmem:[#allocation11 + $0x184] ss:$16 sps:$4 sm:$0xff]  }
 0x390   : > { %2404 = vmatprep.subr.bf16.mxu0 %v12715_v10  ;;  %2445 = vmatprep.subr.bf16.mxu1 %v12716_v40  ;;  %12747 = vst [vmem:[#allocation50_spill] sm:$0xff] %v10404_v11  ;;  %12748 = vst [vmem:[#allocation51_spill] sm:$0xff] %v10407_v41  ;;  %v10410_v10 = vld [vmem:[#allocation11 + $0x18c] ss:$16 sps:$4 sm:$0xff]   ;;  %v10413_v40 = vld [vmem:[#allocation11 + $0x180] ss:$16 sps:$4 sm:$0xff]  }
 0x391   : > { %12749 = vst [vmem:[#allocation52_spill] sm:$0xff] %v10410_v10  ;;  %12750 = vst [vmem:[#allocation53_spill] sm:$0xff] %v10413_v40 }
 0x393   : > { %2405 = vmatpush1.bf16.msra.mxu0 %v12717_v6  ;;  %2446 = vmatpush1.bf16.msra.mxu1 %v12718_v30  ;;  %v10416_v6 = vld [vmem:[#allocation11 + $0x188] ss:$16 sps:$4 sm:$0xff]   ;;  %v10419_v30 = vld [vmem:[#allocation11 + $0x1a4] ss:$16 sps:$4 sm:$0xff]  }
 0x394   : > { %2868 = vmatprep.subr.bf16.mxu0 %v12719_v42  ;;  %2909 = vmatprep.subr.bf16.mxu1 %v12720_v37  ;;  %12751 = vst [vmem:[#allocation54_spill] sm:$0xff] %v10416_v6  ;;  %12752 = vst [vmem:[#allocation55_spill] sm:$0xff] %v10419_v30  ;;  %v10425_v42 = vld [vmem:[#allocation11 + $0x1a0] ss:$16 sps:$4 sm:$0xff]   ;;  %v10428_v37 = vld [vmem:[#allocation11 + $0x1a8] ss:$16 sps:$4 sm:$0xff]  }
 0x395   : > { %12754 = vst [vmem:[#allocation57_spill] sm:$0xff] %v10425_v42  ;;  %12755 = vst [vmem:[#allocation58_spill] sm:$0xff] %v10428_v37 }
 0x396   : > { %2423 = vmatmul.mubr.bf16.vlgmr.msra.gmra.mrb[16].mxu0 %v2388_v5  ;;  %2464 = vmatmul.mubr.bf16.vlgmr.msra.gmra.mrb[16].mxu1 %v2388_v5  ;;  %v10422_v5 = vld [vmem:[#allocation11 + $0x1ac] ss:$16 sps:$4 sm:$0xff]  }
 0x397   : > { %2869 = vmatpush1.bf16.msra.mxu0 %v12721_v14  ;;  %2910 = vmatpush1.bf16.msra.mxu1 %v12722_v31  ;;  %12753 = vst [vmem:[#allocation56_spill] sm:$0xff] %v10422_v5  ;;  %v10431_v14 = vld [vmem:[#allocation11 + $0x1c4] ss:$16 sps:$4 sm:$0xff]   ;;  %v10434_v31 = vld [vmem:[#allocation11 + $0x1cc] ss:$16 sps:$4 sm:$0xff]  }
 0x398   : > { %2870 = vmatprep.subr.bf16.mxu0 %v12723_v29  ;;  %2911 = vmatprep.subr.bf16.mxu1 %v12724_v25  ;;  %12756 = vst [vmem:[#allocation59_spill] sm:$0xff] %v10431_v14  ;;  %12757 = vst [vmem:[#allocation60_spill] sm:$0xff] %v10434_v31  ;;  %v10437_v29 = vld [vmem:[#allocation11 + $0x1c0] ss:$16 sps:$4 sm:$0xff]   ;;  %v10440_v25 = vld [vmem:[#allocation11 + $0x1c8] ss:$16 sps:$4 sm:$0xff]  }
 0x399   : > { %12758 = vst [vmem:[#allocation61_spill] sm:$0xff] %v10437_v29  ;;  %12759 = vst [vmem:[#allocation62_spill] sm:$0xff] %v10440_v25 }
 0x39b   : > { %2871 = vmatpush1.bf16.msra.mxu0 %v12725_v13  ;;  %2912 = vmatpush1.bf16.msra.mxu1 %v12726_v20  ;;  %v10443_v13 = vld [vmem:[#allocation11 + $0x1e4] ss:$16 sps:$4 sm:$0xff]   ;;  %v10446_v20 = vld [vmem:[#allocation11 + $0x1ec] ss:$16 sps:$4 sm:$0xff]  }
 0x39c   : > { %2872 = vmatprep.subr.bf16.mxu0 %v10287_v28  ;;  %2913 = vmatprep.subr.bf16.mxu1 %v10290_v62  ;;  %12760 = vst [vmem:[#allocation63_spill] sm:$0xff] %v10443_v13  ;;  %12761 = vst [vmem:[#allocation64_spill] sm:$0xff] %v10446_v20 }
 0x39f   : > { %2873 = vmatpush1.bf16.msra.mxu0 %v10293_v61  ;;  %2914 = vmatpush1.bf16.msra.mxu1 %v10296_v1 }
 0x3a0   : > { %2874 = vmatprep.subr.bf16.mxu0 %v10299_v3  ;;  %2915 = vmatprep.subr.bf16.mxu1 %v10302_v49 }
 0x3a3   : > { %2875 = vmatpush1.bf16.msra.mxu0 %v10305_v50  ;;  %2916 = vmatpush1.bf16.msra.mxu1 %v10308_v23 }
 0x3a4   : > { %2876 = vmatprep.subr.bf16.mxu0 %v10311_v34  ;;  %2917 = vmatprep.subr.bf16.mxu1 %v10314_v0 }
 0x3a7   : > { %2877 = vmatpush1.bf16.msra.mxu0 %v10317_v16  ;;  %2918 = vmatpush1.bf16.msra.mxu1 %v10320_v7 }
 0x3a8   : > { %2878 = vmatprep.subr.bf16.mxu0 %v10323_v60  ;;  %2919 = vmatprep.subr.bf16.mxu1 %v10326_v53 }
 0x3ab   : > { %2879 = vmatpush1.bf16.msra.mxu0 %v10329_v57  ;;  %2920 = vmatpush1.bf16.msra.mxu1 %v10332_v48 }
 0x3ac   : > { %2880 = vmatprep.subr.bf16.mxu0 %v10335_v43  ;;  %2921 = vmatprep.subr.bf16.mxu1 %v10338_v19 }
 0x3af   : > { %2881 = vmatpush1.bf16.msra.mxu0 %v10341_v63  ;;  %2922 = vmatpush1.bf16.msra.mxu1 %v10344_v55 }
 0x3b0   : > { %2882 = vmatprep.subr.bf16.mxu0 %v10347_v44  ;;  %2923 = vmatprep.subr.bf16.mxu1 %v10350_v56 }
 0x3b3   : > { %2883 = vmatpush1.bf16.msra.mxu0 %v10353_v18  ;;  %2924 = vmatpush1.bf16.msra.mxu1 %v10356_v21 }
 0x3b4   : > { %2884 = vmatprep.subr.bf16.mxu0 %v10359_v4  ;;  %2925 = vmatprep.subr.bf16.mxu1 %v10362_v12 }
 0x3b7   : > { %2885 = vmatpush1.bf16.msra.mxu0 %v10365_v47  ;;  %2926 = vmatpush1.bf16.msra.mxu1 %v10368_v54 }
 0x3b8   : > { %2886 = vmatprep.subr.bf16.mxu0 %v10371_v46  ;;  %2927 = vmatprep.subr.bf16.mxu1 %v10374_v58 }
 0x3bb   : > { %2887 = vmatpush1.bf16.msra.mxu0 %v10377_v51  ;;  %2928 = vmatpush1.bf16.msra.mxu1 %v10380_v45 }
 0x3bc   : > { %2888 = vmatprep.subr.bf16.mxu0 %v10383_v27  ;;  %2929 = vmatprep.subr.bf16.mxu1 %v10386_v52  ;;  %v6978_v52 = vld [vmem:[%s9567_s1 + $0xa2] ss:$8 sm:$0xf] }
 0x3bd   : > { %v6979_v27 = vld [vmem:[%s9567_s1 + $0xc2] ss:$8 sm:$0xf] }
 0x3bf   : > { %2889 = vmatpush1.bf16.msra.mxu0 %v10389_v24  ;;  %2930 = vmatpush1.bf16.msra.mxu1 %v10392_v9 }
 0x3c0   : > { %2890 = vmatprep.subr.bf16.mxu0 %v10395_v8  ;;  %2931 = vmatprep.subr.bf16.mxu1 %v10398_v38 }
 0x3c3   : > { %2891 = vmatpush1.bf16.msra.mxu0 %v10401_v33  ;;  %2932 = vmatpush1.bf16.msra.mxu1 %v10404_v11 }
 0x3c4   : > { %2892 = vmatprep.subr.bf16.mxu0 %v10407_v41  ;;  %2933 = vmatprep.subr.bf16.mxu1 %v10410_v10 }
 0x3c7   : > { %2893 = vmatpush1.bf16.msra.mxu0 %v10413_v40  ;;  %2934 = vmatpush1.bf16.msra.mxu1 %v10416_v6  ;;  %v12767_v40 = vld [vmem:[#allocation26_spill] sm:$0xff] }
 0x3c8   : > { %2894 = vmatprep.subr.bf16.mxu0 %v10419_v30  ;;  %2935 = vmatprep.subr.bf16.mxu1 %v10422_v5  ;;  %v12766_v5 = vld [vmem:[#allocation25_spill] sm:$0xff] }
 0x3cb   : > { %2895 = vmatpush1.bf16.msra.mxu0 %v10425_v42  ;;  %2936 = vmatpush1.bf16.msra.mxu1 %v10428_v37  ;;  %v12765_v37 = vld [vmem:[#allocation24_spill] sm:$0xff] }
 0x3cc   : > { %2896 = vmatprep.subr.bf16.mxu0 %v10431_v14  ;;  %2937 = vmatprep.subr.bf16.mxu1 %v10434_v31  ;;  %v10449_v14 = vld [vmem:[#allocation11 + $0x1e0] ss:$16 sps:$4 sm:$0xff]   ;;  %v10452_v31 = vld [vmem:[#allocation11 + $0x1e8] ss:$16 sps:$4 sm:$0xff]  }
 0x3cd   : > { %12762 = vst [vmem:[#allocation65_spill] sm:$0xff] %v10449_v14  ;;  %12763 = vst [vmem:[#allocation66_spill] sm:$0xff] %v10452_v31 }
 0x3cf   : > { %2897 = vmatpush1.bf16.msra.mxu0 %v10437_v29  ;;  %2938 = vmatpush1.bf16.msra.mxu1 %v10440_v25  ;;  %v12764_v29 = vld [vmem:[#allocation23_spill] sm:$0xff] }
 0x3d0   : > { %2898 = vmatprep.subr.bf16.mxu0 %v10443_v13  ;;  %2939 = vmatprep.subr.bf16.mxu1 %v10446_v20 }
 0x3d3   : > { %2899 = vmatpush1.bf16.msra.mxu0 %v10449_v14  ;;  %2940 = vmatpush1.bf16.msra.mxu1 %v10452_v31  ;;  %v12768_v31 = vld [vmem:[#allocation27_spill] sm:$0xff] }
 0x3d4   : > { %3096 = vmatprep.subr.bf16.mxu0 %v12764_v29  ;;  %3137 = vmatprep.subr.bf16.mxu1 %v12765_v37 }
 0x449   : > { %v2196_v25 = vpop.f32.mrb[12].mxu0  ;;  %v2237_v42 = vpop.f32.mrb[12].mxu1 }
 0x44a   : > { %v2197_v13 = vadd.f32 %v2196_v25, %v12766_v5  ;;  %v2198_v30 = vpop.f32.mrb[13].mxu0  ;;  %v2239_v6 = vpop.f32.mrb[13].mxu1  ;;  %v2238_v29 = vadd.f32 %v2237_v42, %v12768_v31  ;;  %v12769_v5 = vld [vmem:[#allocation28_spill] sm:$0xff] }
 0x44b   : > { %v2199_v20 = vadd.f32 %v2198_v30, %v12767_v40  ;;  %v2200_v10 = vpop.f32.mrb[14].mxu0  ;;  %v2241_v41 = vpop.f32.mrb[14].mxu1  ;;  %v2240_v25 = vadd.f32 %v2239_v6, %v12769_v5 }
 0x44c   : > { %v6966_v11 = vmul.f32 -1.442695, %v2197_v13  ;;  %v2201_v14 = vpop.f32.mrb[15].mxu0  ;;  %v2242_v33 = vpop.f32.mrb[15].mxu1 }
 0x44d   : > { %v6967_v38 = vmul.f32 -1.442695, %v2199_v20  ;;  %v6968_v40 = vmul.f32 -1.442695, %v2240_v25  ;;  %v12770_v14 = vld [vmem:[#allocation29_spill] sm:$0xff] }
 0x44e   : > { %7772 = vpow2.f32 %v6966_v11 }
 0x44f   : > { %7774 = vpow2.f32 %v6967_v38 }
 0x450   : > { %7776 = vtanh.f32 %v2238_v29 }
 0x458   : > { %v7773_v8 = vpop.eup %7772 }
 0x459   : > { %v7775_v37 = vpop.eup %7774  ;;  %v2247_v9 = vadd.f32 1.0, %v7773_v8 }
 0x45a   : > { %v2253_v24 = vadd.f32 1.0, %v7775_v37  ;;  %v7777_v10 = vpop.eup %7776 }
 0x45b   : > { %7778 = vrcp.f32 %v2247_v9 }
 0x45c   : > { %7780 = vrcp.f32 %v2253_v24 }
 0x45d   : > { %7782 = vpow2.f32 %v6968_v40 }
 0x465   : > { %v7779_v41 = vpop.eup %7778 }
 0x466   : > { %v7781_v30 = vpop.eup %7780  ;;  %v2264_v33 = vmul.f32 %v7779_v41, %v7777_v10 }
 0x467   : > { %v2263_v11 = vmul.f32 %v7781_v30, %v12770_v14  ;;  %v6973_v14 = vld [vmem:[%s9567_s1 + $0x2] ss:$8 sm:$0xf] }
 0x469   : > { %v10462_v38 = vadd.f32 %v2264_v33, %v2263_v11  ;;  %v2424_v42 = vpop.f32.mrb[16].mxu0  ;;  %v2465_v31 = vpop.f32.mrb[16].mxu1 }
 0x46a   : > { %v2426_v8 = vpop.f32.mrb[17].mxu0  ;;  %v2467_v13 = vpop.f32.mrb[17].mxu1 }
 0x46b   : > { %12771 = vst [vmem:[#allocation67_spill] sm:$0xff] %v10462_v38  ;;  %v2476_v20 = vcombine.low %v2424_v42, %v2426_v8  ;;  %v2477_v9 = vcombine.high %v2424_v42, %v2426_v8  ;;  %v2478_v24 = vcombine.low %v2465_v31, %v2467_v13  ;;  %v2479_v6 = vcombine.high %v2465_v31, %v2467_v13  ;;  %v2428_v29 = vpop.f32.mrb[18].mxu0  ;;  %v2469_v37 = vpop.f32.mrb[18].mxu1  ;;  %v6974_v13 = vld [vmem:[%s9567_s1 + $0x22] ss:$8 sm:$0xf] }
 0x46c   : > { %v2429_v5 = vpop.f32.mrb[19].mxu0  ;;  %v2470_v25 = vpop.f32.mrb[19].mxu1  ;;  %v6975_v29 = vld [vmem:[%s9567_s1 + $0x42] ss:$8 sm:$0xf]  ;;  %7784 = vtanh.f32 %v10462_v38 }
 0x46d   : > { %v2486_v40 = vrot.slane %v2476_v20, %v9766_v35  ;;  %v2493_v10 = vrot.slane %v2477_v9, %v9766_v35  ;;  %v2500_v41 = vrot.slane %v2478_v24, %v9766_v35  ;;  %v2507_v30 = vrot.slane %v2479_v6, %v9766_v35  ;;  %v7783_v33 = vpop.eup %7782  ;;  %v6976_v37 = vld [vmem:[%s9567_s1 + $0x62] ss:$8 sm:$0xf] }
 0x46e   : > { %v6977_v5 = vld [vmem:[%s9567_s1 + $0x82] ss:$8 sm:$0xf]  ;;  %v2260_v25 = vadd.f32 1.0, %v7783_v33 }
 0x46f   : > { %v2508_v11 = vcombine.low %v2486_v40, %v2500_v41  ;;  %v2509_v42 = vcombine.high %v2486_v40, %v2500_v41  ;;  %v2510_v31 = vcombine.low %v2493_v10, %v2507_v30  ;;  %v2511_v8 = vcombine.high %v2493_v10, %v2507_v30  ;;  %v6980_v30 = vld [vmem:[%s9567_s1 + $0xe2] ss:$8 sm:$0xf] }
 0x470   : > { %7786 = vrcp.f32 %v2260_v25 }
 0x471   : > { %v2518_v20 = vrot.slane %v2508_v11, %v9766_v35  ;;  %v2525_v9 = vrot.slane %v2510_v31, %v9766_v35  ;;  %v2532_v24 = vrot.slane %v2509_v42, %v9766_v35  ;;  %v2539_v6 = vrot.slane %v2511_v8, %v9766_v35 }
 0x473   : > { %v2540_v45 = vcombine.high %v2518_v20, %v2518_v20  ;;  %v2541_v40 = vcombine.high %v2525_v9, %v2525_v9  ;;  %v2542_v41 = vcombine.high %v2532_v24, %v2532_v24  ;;  %v2543_v10 = vcombine.high %v2539_v6, %v2539_v6 }
 0x474   : > { %v10480_v51 = vadd.f32 %v6973_v14, %v2518_v20  ;;  %v10482_v58 = vadd.f32 %v6974_v13, %v2532_v24  ;;  %v10484_v46 = vadd.f32 %v6977_v5, %v2525_v9  ;;  %v10490_v42 = vadd.f32 %v6978_v52, %v2539_v6 }
 0x475   : > { %v10486_v11 = vadd.f32 %v6975_v29, %v2540_v45  ;;  %v10488_v31 = vadd.f32 %v6976_v37, %v2542_v41  ;;  %v10492_v33 = vadd.f32 %v6979_v27, %v2541_v40  ;;  %v10497_v14 = vadd.f32 %v6980_v30, %v2543_v10 }
 0x476   : > { %v6981_v8 = vmul.f32 -1.442695, %v10480_v51  ;;  %v6982_v54 = vmul.f32 -1.442695, %v10482_v58  ;;  %v6985_v29 = vmul.f32 -1.442695, %v10484_v46  ;;  %v7785_v10 = vpop.eup %7784 }
 0x477   : > { %v6983_v13 = vmul.f32 -1.442695, %v10486_v11  ;;  %v6984_v45 = vmul.f32 -1.442695, %v10488_v31  ;;  %v2616_v52 = vrot.slane %v10480_v51, 1  ;;  %v2617_v37 = vrot.slane %v10482_v58, 1 }
 0x478   : > { %7788 = vpow2.f32 %v6981_v8  ;;  %v6986_v27 = vmul.f32 -1.442695, %v10490_v42  ;;  %v6987_v5 = vmul.f32 -1.442695, %v10492_v33  ;;  %v2618_v20 = vrot.slane %v10486_v11, 1 }
 0x479   : > { %7790 = vpow2.f32 %v6982_v54  ;;  %v6988_v9 = vmul.f32 -1.442695, %v10497_v14  ;;  %v2619_v24 = vrot.slane %v10488_v31, 1  ;;  %v2620_v6 = vrot.slane %v10484_v46, 1 }
 0x47a   : > { %7792 = vpow2.f32 %v6983_v13  ;;  %v6989_v25 = vmul.f32 -1.442695, %v2616_v52  ;;  %v6990_v54 = vmul.f32 -1.442695, %v2617_v37  ;;  %v6991_v40 = vmul.f32 -1.442695, %v2618_v20  ;;  %v7787_v8 = vpop.eup %7786 }
 0x47b   : > { %7794 = vpow2.f32 %v6984_v45  ;;  %v6992_v41 = vmul.f32 -1.442695, %v2619_v24  ;;  %v6993_v30 = vmul.f32 -1.442695, %v2620_v6  ;;  %v2267_v47 = vmul.f32 %v7787_v8, %v7785_v10 }
 0x47c   : > { %7796 = vpow2.f32 %v6985_v29  ;;  %v2621_v29 = vrot.slane %v10490_v42, 1  ;;  %v2622_v20 = vrot.slane %v10492_v33, 1  ;;  %v2623_v6 = vrot.slane %v10497_v14, 1 }
 0x47d   : > { %7798 = vpow2.f32 %v6986_v27  ;;  %v2867_v8 = vpack.c.bf16 %v2267_v47, %v2267_v47  ;;  %v2711_v44 = vrot.slane %v10497_v14, 3 }
 0x47e   : > { %7800 = vpow2.f32 %v6987_v5 }
 0x47f   : > { %7802 = vpow2.f32 %v6988_v9  ;;  %2900 = vmatprep.mubr.bf16.mxu0 %v2867_v8  ;;  %2941 = vmatprep.mubr.bf16.mxu1 %v2867_v8 }
 0x480   : > { %7804 = vpow2.f32 %v6989_v25 }
 0x481   : > { %7806 = vpow2.f32 %v6990_v54 }
 0x482   : > { %v7789_v13 = vpop.eup %7788  ;;  %7808 = vpow2.f32 %v6991_v40  ;;  %v6994_v40 = vmul.f32 -1.442695, %v2621_v29 }
 0x483   : > { %v7791_v45 = vpop.eup %7790  ;;  %v2584_v38 = vadd.f32 1.0, %v7789_v13  ;;  %7810 = vpow2.f32 %v6992_v41  ;;  %v2269_v13 = vcombine.high %v2267_v47, %v2267_v47 }
 0x484   : > { %v7793_v52 = vpop.eup %7792  ;;  %v2585_v27 = vadd.f32 1.0, %v7791_v45  ;;  %7812 = vpow2.f32 %v6993_v30  ;;  %v2276_v30 = vrot.slane %v2267_v47, %v9766_v35  ;;  %v6996_v47 = vmul.f32 -1.442695, %v2623_v6 }
 0x485   : > { %v7795_v37 = vpop.eup %7794  ;;  %v2586_v5 = vadd.f32 1.0, %v7793_v52  ;;  %7814 = vrcp.f32 %v2584_v38  ;;  %v6995_v52 = vmul.f32 -1.442695, %v2622_v20 }
 0x486   : > { %v7797_v9 = vpop.eup %7796  ;;  %v2587_v24 = vadd.f32 1.0, %v7795_v37  ;;  %7816 = vrcp.f32 %v2585_v27  ;;  %v2283_v27 = vrot.slane %v2269_v13, %v9766_v35  ;;  %v2292_v29 = vrot.slane %v2276_v30, %v9766_v35  ;;  %6969 = vst.sshfl [vmem:[%s9585_s30 + $0x1] sm:$0x1 pattern:$0x73625140] %v2276_v30 }
 0x487   : > { %v7799_v25 = vpop.eup %7798  ;;  %v2588_v54 = vadd.f32 1.0, %v7797_v9  ;;  %7818 = vrcp.f32 %v2586_v5  ;;  %v2284_v5 = vcombine.high %v2276_v30, %v2276_v30 }
 0x488   : > { %v7801_v41 = vpop.eup %7800  ;;  %v2589_v10 = vadd.f32 1.0, %v7799_v25  ;;  %7820 = vrcp.f32 %v2587_v24  ;;  %v2285_v24 = vcombine.high %v2283_v27, %v2283_v27  ;;  %v2299_v25 = vrot.slane %v2283_v27, %v9766_v35  ;;  %6971 = vst.sshfl [vmem:[%s9585_s30 + $0x21] sm:$0x1 pattern:$0x73625140] %v2283_v27 }
 0x489   : > { %v7803_v38 = vpop.eup %7802  ;;  %v2590_v45 = vadd.f32 1.0, %v7801_v41  ;;  %7822 = vrcp.f32 %v2588_v54  ;;  %v2306_v13 = vrot.slane %v2284_v5, %v9766_v35  ;;  %v2314_v41 = vcombine.high %v2292_v29, %v2292_v29  ;;  %6970 = vst.sshfl [vmem:[%s9585_s30 + $0x9] sm:$0x1 pattern:$0x73625140] %v2284_v5 }
 0x48a   : > { %v7805_v37 = vpop.eup %7804  ;;  %v2591_v12 = vadd.f32 1.0, %v7803_v38  ;;  %7824 = vrcp.f32 %v2589_v10  ;;  %v2313_v8 = vrot.slane %v2285_v24, %v9766_v35  ;;  %v2315_v6 = vcombine.high %v2299_v25, %v2299_v25  ;;  %6972 = vst.sshfl [vmem:[%s9585_s30 + $0x29] sm:$0x1 pattern:$0x73625140] %v2285_v24 }
 0x48b   : > { %v7807_v9 = vpop.eup %7806  ;;  %7826 = vrcp.f32 %v2590_v45  ;;  %v2656_v54 = vadd.f32 1.0, %v7805_v37  ;;  %v2316_v27 = vcombine.high %v2306_v13, %v2306_v13  ;;  %2328 = vst [vmem:[%s9585_s30 + $0x11] sm:$0x1] %v2314_v41  ;;  %v2681_v25 = vrot.slane %v10482_v58, 2 }
 0x48c   : > { %v7809_v20 = vpop.eup %7808  ;;  %7828 = vrcp.f32 %v2591_v12  ;;  %v2657_v30 = vadd.f32 1.0, %v7807_v9  ;;  %v2317_v5 = vcombine.high %v2313_v8, %v2313_v8  ;;  %2332 = vst [vmem:[%s9585_s30 + $0x31] sm:$0x1] %v2315_v6 }
 0x48d   : > { %v7811_v10 = vpop.eup %7810  ;;  %7830 = vpow2.f32 %v6994_v40  ;;  %v2658_v45 = vadd.f32 1.0, %v7809_v20  ;;  %2329 = vst [vmem:[%s9585_s30 + $0x19] sm:$0x1] %v2316_v27  ;;  %v2682_v20 = vrot.slane %v10486_v11, 2 }
 0x48e   : > { %v7813_v38 = vpop.eup %7812  ;;  %7832 = vpow2.f32 %v6995_v52  ;;  %v2659_v37 = vadd.f32 1.0, %v7811_v10  ;;  %v2680_v52 = vrot.slane %v10480_v51, 2  ;;  %2333 = vst [vmem:[%s9585_s30 + $0x39] sm:$0x1] %v2317_v5  ;;  %v2684_v10 = vrot.slane %v10484_v46, 2 }
 0x48f   : > { %v10524_v12 = vpop.eup %7814  ;;  %7834 = vpow2.f32 %v6996_v47  ;;  %v2660_v40 = vadd.f32 1.0, %v7813_v38  ;;  %v2685_v5 = vrot.slane %v10490_v42, 2 }
 0x490   : > { %v10527_v29 = vpop.eup %7816  ;;  %7836 = vrcp.f32 %v2656_v54  ;;  %v2683_v54 = vrot.slane %v10488_v31, 2 }
 0x491   : > { %v10530_v9 = vpop.eup %7818  ;;  %7838 = vrcp.f32 %v2657_v30 }
 0x492   : > { %v10534_v24 = vpop.eup %7820  ;;  %7840 = vrcp.f32 %v2658_v45  ;;  %v2704_v45 = vrot.slane %v10480_v51, 3  ;;  %v2707_v51 = vrot.slane %v10488_v31, 3 }
 0x493   : > { %v10537_v47 = vpop.eup %7822  ;;  %7842 = vrcp.f32 %v2659_v37 }
 0x494   : > { %v10540_v13 = vpop.eup %7824  ;;  %7844 = vrcp.f32 %v2660_v40  ;;  %v2705_v40 = vrot.slane %v10482_v58, 3  ;;  %v2709_v58 = vrot.slane %v10490_v42, 3  ;;  %v7000_v31 = vmul.f32 -1.442695, %v2707_v51 }
 0x495   : > { %v10543_v41 = vpop.eup %7826  ;;  %7846 = vtanh.f32 %v2680_v52  ;;  %v2686_v52 = vrot.slane %v10492_v33, 2 }
 0x496   : > { %v10546_v30 = vpop.eup %7828  ;;  %7848 = vtanh.f32 %v2681_v25  ;;  %v2706_v25 = vrot.slane %v10486_v11, 3  ;;  %v2710_v11 = vrot.slane %v10492_v33, 3 }
 0x497   : > { %v7831_v8 = vpop.eup %7830  ;;  %7850 = vtanh.f32 %v2682_v20 }
 0x498   : > { %v7833_v6 = vpop.eup %7832  ;;  %v2661_v38 = vadd.f32 1.0, %v7831_v8  ;;  %7852 = vtanh.f32 %v2683_v54  ;;  %v2687_v54 = vrot.slane %v10497_v14, 2  ;;  %v6999_v56 = vmul.f32 -1.442695, %v2706_v25 }
 0x499   : > { %v7835_v27 = vpop.eup %7834  ;;  %v2662_v37 = vadd.f32 1.0, %v7833_v6  ;;  %7854 = vtanh.f32 %v2684_v10  ;;  %v2708_v6 = vrot.slane %v10484_v46, 3  ;;  %v6997_v10 = vmul.f32 -1.442695, %v2704_v45 }
 0x49a   : > { %v7837_v4 = vpop.eup %7836  ;;  %v2663_v21 = vadd.f32 1.0, %v7835_v27  ;;  %7856 = vrcp.f32 %v2661_v38  ;;  %v6998_v38 = vmul.f32 -1.442695, %v2705_v40  ;;  %v7004_v14 = vmul.f32 -1.442695, %v2711_v44 }
 0x49b   : > { %v7839_v20 = vpop.eup %7838  ;;  %7858 = vrcp.f32 %v2662_v37  ;;  %v2768_v46 = vmul.f32 %v7837_v4, %v10202_v59 }
 0x49c   : > { %v7841_v8 = vpop.eup %7840  ;;  %7860 = vrcp.f32 %v2663_v21  ;;  %v7001_v21 = vmul.f32 -1.442695, %v2708_v6  ;;  %v2769_v42 = vmul.f32 %v7839_v20, %v10205_v2 }
 0x49d   : > { %v7843_v18 = vpop.eup %7842  ;;  %7862 = vtanh.f32 %v2685_v5  ;;  %v7002_v5 = vmul.f32 -1.442695, %v2709_v58  ;;  %v2770_v25 = vmul.f32 %v7841_v8, %v10208_v39 }
 0x49e   : > { %v7845_v27 = vpop.eup %7844  ;;  %7864 = vtanh.f32 %v2686_v52  ;;  %v7003_v52 = vmul.f32 -1.442695, %v2710_v11  ;;  %v2771_v6 = vmul.f32 %v7843_v18, %v10210_v22 }
 0x49f   : > { %v7847_v37 = vpop.eup %7846  ;;  %7866 = vtanh.f32 %v2687_v54  ;;  %v2772_v2 = vmul.f32 %v7845_v27, %v10212_v32 }
 0x4a0   : > { %v7849_v55 = vpop.eup %7848  ;;  %7868 = vpow2.f32 %v6997_v10  ;;  %v2776_v33 = vmul.f32 %v7847_v37, %v10524_v12 }
 0x4a1   : > { %v7851_v45 = vpop.eup %7850  ;;  %7870 = vpow2.f32 %v6998_v38  ;;  %v2777_v51 = vmul.f32 %v7849_v55, %v10527_v29 }
 0x4a2   : > { %v7853_v40 = vpop.eup %7852  ;;  %7872 = vpow2.f32 %v6999_v56  ;;  %v2778_v4 = vmul.f32 %v7851_v45, %v10530_v9  ;;  %v10567_v20 = vadd.f32 %v2776_v33, %v2768_v46 }
 0x4a3   : > { %v7855_v54 = vpop.eup %7854  ;;  %7874 = vpow2.f32 %v7000_v31  ;;  %v2779_v12 = vmul.f32 %v7853_v40, %v10534_v24  ;;  %v10570_v39 = vadd.f32 %v2777_v51, %v2769_v42 }
 0x4a4   : > { %v7857_v59 = vpop.eup %7856  ;;  %7876 = vpow2.f32 %v7001_v21  ;;  %v2780_v55 = vmul.f32 %v7855_v54, %v10537_v47  ;;  %v10573_v44 = vadd.f32 %v2778_v4, %v2770_v25 }
 0x4a5   : > { %v7859_v56 = vpop.eup %7858  ;;  %7878 = vpow2.f32 %v7002_v5  ;;  %v10575_v18 = vadd.f32 %v2779_v12, %v2771_v6  ;;  %v2773_v37 = vmul.f32 %v7857_v59, %v10225_v26 }
 0x4a6   : > { %v7861_v8 = vpop.eup %7860  ;;  %7880 = vpow2.f32 %v7003_v52  ;;  %v10577_v32 = vadd.f32 %v2780_v55, %v2772_v2  ;;  %v2774_v46 = vmul.f32 %v7859_v56, %v10227_v15 }
 0x4a7   : > { %v7863_v22 = vpop.eup %7862  ;;  %7882 = vpow2.f32 %v7004_v14  ;;  %v2775_v40 = vmul.f32 %v7861_v8, %v10229_v17 }
 0x4a8   : > { %v7865_v29 = vpop.eup %7864  ;;  %7884 = vtanh.f32 %v10567_v20  ;;  %v2781_v42 = vmul.f32 %v7863_v22, %v10540_v13 }
 0x4a9   : > { %v7867_v9 = vpop.eup %7866  ;;  %7886 = vtanh.f32 %v10570_v39  ;;  %v2782_v25 = vmul.f32 %v7865_v29, %v10543_v41 }
 0x4aa   : > { %v7869_v24 = vpop.eup %7868  ;;  %7888 = vtanh.f32 %v10573_v44  ;;  %v2783_v26 = vmul.f32 %v7867_v9, %v10546_v30  ;;  %v10590_v51 = vadd.f32 %v2781_v42, %v2773_v37 }
 0x4ab   : > { %v7871_v10 = vpop.eup %7870  ;;  %v2744_v58 = vadd.f32 1.0, %v7869_v24  ;;  %7890 = vtanh.f32 %v10575_v18  ;;  %v10592_v59 = vadd.f32 %v2782_v25, %v2774_v46 }
 0x4ac   : > { %v7873_v47 = vpop.eup %7872  ;;  %v2745_v38 = vadd.f32 1.0, %v7871_v10  ;;  %7892 = vtanh.f32 %v10577_v32  ;;  %v10594_v17 = vadd.f32 %v2783_v26, %v2775_v40 }
 0x4ad   : > { %v7875_v27 = vpop.eup %7874  ;;  %v2746_v11 = vadd.f32 1.0, %v7873_v47  ;;  %7894 = vrcp.f32 %v2744_v58 }
 0x4ae   : > { %v7877_v31 = vpop.eup %7876  ;;  %v2747_v21 = vadd.f32 1.0, %v7875_v27  ;;  %7896 = vrcp.f32 %v2745_v38 }
 0x4af   : > { %v7879_v45 = vpop.eup %7878  ;;  %v2748_v5 = vadd.f32 1.0, %v7877_v31  ;;  %7898 = vrcp.f32 %v2746_v11 }
 0x4b0   : > { %v7881_v52 = vpop.eup %7880  ;;  %v2749_v33 = vadd.f32 1.0, %v7879_v45  ;;  %7900 = vrcp.f32 %v2747_v21 }
 0x4b1   : > { %v7883_v54 = vpop.eup %7882  ;;  %v2750_v14 = vadd.f32 1.0, %v7881_v52  ;;  %7902 = vrcp.f32 %v2748_v5 }
 0x4b2   : > { %v7885_v15 = vpop.eup %7884  ;;  %v2751_v6 = vadd.f32 1.0, %v7883_v54  ;;  %7904 = vrcp.f32 %v2749_v33 }
 0x4b3   : > { %v7887_v13 = vpop.eup %7886  ;;  %7906 = vrcp.f32 %v2750_v14 }
 0x4b4   : > { %v7889_v4 = vpop.eup %7888  ;;  %7908 = vrcp.f32 %v2751_v6 }
 0x4b5   : > { %v7891_v2 = vpop.eup %7890  ;;  %7910 = vtanh.f32 %v10590_v51 }
 0x4b6   : > { %v7893_v41 = vpop.eup %7892  ;;  %7912 = vtanh.f32 %v10592_v59 }
 0x4b7   : > { %v7895_v30 = vpop.eup %7894  ;;  %7914 = vtanh.f32 %v10594_v17 }
 0x4b8   : > { %v7897_v56 = vpop.eup %7896  ;;  %v2800_v12 = vmul.f32 %v7895_v30, %v7885_v15 }
 0x4b9   : > { %v7899_v8 = vpop.eup %7898  ;;  %v2801_v55 = vmul.f32 %v7897_v56, %v7887_v13 }
 0x4ba   : > { %v7901_v22 = vpop.eup %7900  ;;  %v2802_v29 = vmul.f32 %v7899_v8, %v7889_v4  ;;  %v3056_v9 = vpack.c.bf16 %v2800_v12, %v2800_v12 }
 0x4bb   : > { %v7903_v24 = vpop.eup %7902  ;;  %v2803_v10 = vmul.f32 %v7901_v22, %v7891_v2  ;;  %v2816_v58 = vcombine.low %v2800_v12, %v2801_v55  ;;  %v3057_v47 = vpack.c.bf16 %v2801_v55, %v2801_v55 }
 0x4bc   : > { %v7905_v38 = vpop.eup %7904  ;;  %v2804_v27 = vmul.f32 %v7903_v24, %v7893_v41  ;;  %v3058_v11 = vpack.c.bf16 %v2802_v29, %v2802_v29  ;;  %v3072_v5 = vunpack.c.l.b16 %v3056_v9 }
 0x4bd   : > { %v7907_v37 = vpop.eup %7906  ;;  %v2817_v31 = vcombine.low %v2802_v29, %v2803_v10  ;;  %v3059_v21 = vpack.c.bf16 %v2803_v10, %v2803_v10  ;;  %v3073_v46 = vunpack.c.l.b16 %v3057_v47  ;;  %v2826_v33 = vrot.slane %v2816_v58, %v9766_v35 }
 0x4be   : > { %v7909_v45 = vpop.eup %7908  ;;  %v3074_v42 = vunpack.c.l.b16 %v3058_v11  ;;  %v3060_v40 = vpack.c.bf16 %v2804_v27, %v2804_v27 }
 0x4bf   : > { %v7911_v52 = vpop.eup %7910  ;;  %v2833_v25 = vrot.slane %v2817_v31, %v9766_v35  ;;  %v3075_v54 = vunpack.c.l.b16 %v3059_v21  ;;  %v3080_v14 = vrot.slane %v3073_v46, 7 }
 0x4c0   : > { %v7913_v26 = vpop.eup %7912  ;;  %v2805_v15 = vmul.f32 %v7911_v52, %v7905_v38  ;;  %v3082_v6 = vrot.slane %v3074_v42, 6  ;;  %v3076_v13 = vunpack.c.l.b16 %v3060_v40 }
 0x4c1   : > { %v7915_v4 = vpop.eup %7914  ;;  %v2806_v2 = vmul.f32 %v7913_v26, %v7907_v37  ;;  %v2848_v41 = vcombine.low %v2826_v33, %v2833_v25  ;;  %v3084_v30 = vrot.slane %v3075_v54, 5  ;;  %v3081_v56 = vsel %vm1662_vm0, %v3080_v14, %v3072_v5  ;;  %v10614_v26 = vld [vmem:[#allocation9] ss:$16 sps:$4 sm:$0xff]  }
 0x4c2   : > { %v2807_v12 = vmul.f32 %v7915_v4, %v7909_v45  ;;  %v2818_v8 = vcombine.low %v2804_v27, %v2805_v15  ;;  %v3061_v55 = vpack.c.bf16 %v2805_v15, %v2805_v15  ;;  %v3083_v22 = vsel %vm1665_vm1, %v3082_v6, %v3081_v56  ;;  %v10617_v15 = vld [vmem:[#allocation9 + $0x8] ss:$16 sps:$4 sm:$0xff]   ;;  %v10620_v6 = vld [vmem:[#allocation9 + $0x24] ss:$16 sps:$4 sm:$0xff]   ;;  %v10628_v4 = vld [vmem:[#allocation9 + $0x20] ss:$16 sps:$4 sm:$0xff]  }
 0x4c3   : > { %v3062_v29 = vpack.c.bf16 %v2806_v2, %v2806_v2  ;;  %v3085_v9 = vsel %vm1668_vm2, %v3084_v30, %v3083_v22  ;;  %v3086_v24 = vrot.slane %v3076_v13, 4  ;;  %v2856_v5 = vrot.slane %v2848_v41, %v9766_v35  ;;  %v10623_v13 = vld [vmem:[#allocation9 + $0x2c] ss:$16 sps:$4 sm:$0xff]   ;;  %v10634_v41 = vld [vmem:[#allocation9 + $0x44] ss:$16 sps:$4 sm:$0xff]  }
 0x4c4   : > { %v2819_v10 = vcombine.low %v2806_v2, %v2807_v12  ;;  %v3063_v58 = vpack.c.bf16 %v2807_v12, %v2807_v12  ;;  %v3077_v47 = vunpack.c.l.b16 %v3061_v55  ;;  %v2840_v37 = vrot.slane %v2818_v8, %v9766_v35  ;;  %v10631_v2 = vld [vmem:[#allocation9 + $0x28] ss:$16 sps:$4 sm:$0xff]   ;;  %v10637_v30 = vld [vmem:[#allocation9 + $0x4c] ss:$16 sps:$4 sm:$0xff]   ;;  %v10640_v56 = vld [vmem:[#allocation9 + $0x40] ss:$16 sps:$4 sm:$0xff]  }
 0x4c5   : > { %v3078_v38 = vunpack.c.l.b16 %v3062_v29  ;;  %v3087_v11 = vsel %vm1671_vm3, %v3086_v24, %v3085_v9  ;;  %v10643_v12 = vld [vmem:[#allocation9 + $0x48] ss:$16 sps:$4 sm:$0xff]   ;;  %v10646_v8 = vld [vmem:[#allocation9 + $0x64] ss:$16 sps:$4 sm:$0xff]   ;;  %v10649_v55 = vld [vmem:[#allocation9 + $0x6c] ss:$16 sps:$4 sm:$0xff]  }
 0x4c6   : > { %v2847_v31 = vrot.slane %v2819_v10, %v9766_v35  ;;  %v3079_v21 = vunpack.c.l.b16 %v3063_v58  ;;  %v3088_v46 = vrot.slane %v3077_v47, 3  ;;  %v10652_v22 = vld [vmem:[#allocation9 + $0x60] ss:$16 sps:$4 sm:$0xff]   ;;  %v10655_v29 = vld [vmem:[#allocation9 + $0x68] ss:$16 sps:$4 sm:$0xff]  }
 0x4c7   : > { %v3090_v27 = vrot.slane %v3078_v38, 2  ;;  %v10658_v9 = vld [vmem:[#allocation9 + $0x84] ss:$16 sps:$4 sm:$0xff]   ;;  %v10661_v24 = vld [vmem:[#allocation9 + $0x8c] ss:$16 sps:$4 sm:$0xff]  }
 0x4c8   : > { %v2849_v45 = vcombine.low %v2840_v37, %v2847_v31  ;;  %v3089_v42 = vsel %vm1674_vm4, %v3088_v46, %v3087_v11  ;;  %v3092_v40 = vrot.slane %v3079_v21, 1  ;;  %v10664_v10 = vld [vmem:[#allocation9 + $0x80] ss:$16 sps:$4 sm:$0xff]   ;;  %v10667_v58 = vld [vmem:[#allocation9 + $0x88] ss:$16 sps:$4 sm:$0xff]  }
 0x4c9   : > { %v3091_v52 = vsel %vm1677_vm5, %v3090_v27, %v3089_v42  ;;  %v10670_v47 = vld [vmem:[#allocation9 + $0xa4] ss:$16 sps:$4 sm:$0xff]   ;;  %v10673_v38 = vld [vmem:[#allocation9 + $0xac] ss:$16 sps:$4 sm:$0xff]   ;;  %v10676_v11 = vld [vmem:[#allocation9 + $0xa0] ss:$16 sps:$4 sm:$0xff]  }
 0x4ca   : > { %v2863_v33 = vrot.slane %v2849_v45, %v9766_v35  ;;  %v10612_v25 = vsel %vm1680_vm6, %v3092_v40, %v3091_v52  ;;  %12772 = vst [vmem:[#allocation68_spill] sm:$0xff] %v10673_v38  ;;  %12773 = vst [vmem:[#allocation69_spill] sm:$0xff] %v10676_v11  ;;  %v10679_v37 = vld [vmem:[#allocation9 + $0xa8] ss:$16 sps:$4 sm:$0xff]   ;;  %v10682_v31 = vld [vmem:[#allocation9 + $0xc4] ss:$16 sps:$4 sm:$0xff]  }
 0x4cb   : > { %12774 = vst [vmem:[#allocation70_spill] sm:$0xff] %v10679_v37  ;;  %12775 = vst [vmem:[#allocation71_spill] sm:$0xff] %v10682_v31  ;;  %v10685_v21 = vld [vmem:[#allocation9 + $0xcc] ss:$16 sps:$4 sm:$0xff]   ;;  %v10688_v46 = vld [vmem:[#allocation9 + $0xc0] ss:$16 sps:$4 sm:$0xff]   ;;  %v3094_v52 = vpack.c.b16 %v10612_v25, %v10612_v25 }
 0x4cc   : > { %v2864_v54 = vcombine.low %v2856_v5, %v2863_v33  ;;  %12776 = vst [vmem:[#allocation72_spill] sm:$0xff] %v10685_v21  ;;  %12777 = vst [vmem:[#allocation73_spill] sm:$0xff] %v10688_v46  ;;  %v10691_v27 = vld [vmem:[#allocation9 + $0xc8] ss:$16 sps:$4 sm:$0xff]   ;;  %v10694_v45 = vld [vmem:[#allocation9 + $0xe4] ss:$16 sps:$4 sm:$0xff]  }
 0x4cd   : > { %12778 = vst [vmem:[#allocation74_spill] sm:$0xff] %v10691_v27  ;;  %12779 = vst [vmem:[#allocation75_spill] sm:$0xff] %v10694_v45  ;;  %v10697_v5 = vld [vmem:[#allocation9 + $0xec] ss:$16 sps:$4 sm:$0xff]   ;;  %v10700_v42 = vld [vmem:[#allocation9 + $0xe0] ss:$16 sps:$4 sm:$0xff]  }
 0x4ce   : > { %v2866_v14 = vpack.c.bf16 %v2864_v54, %v2864_v54  ;;  %12780 = vst [vmem:[#allocation76_spill] sm:$0xff] %v10697_v5  ;;  %12781 = vst [vmem:[#allocation23_spill] sm:$0xff] %v10700_v42  ;;  %v10703_v40 = vld [vmem:[#allocation9 + $0xe8] ss:$16 sps:$4 sm:$0xff]   ;;  %v10708_v33 = vld [vmem:[#allocation11 + $0x4] ss:$16 sps:$4 sm:$0xff]  }
 0x4cf   : > { %12782 = vst [vmem:[#allocation24_spill] sm:$0xff] %v10703_v40  ;;  %12783 = vst [vmem:[#allocation25_spill] sm:$0xff] %v10708_v33  ;;  %v10711_v54 = vld [vmem:[#allocation11 + $0xc] ss:$16 sps:$4 sm:$0xff]  }
 0x4d0   : > { %2901 = vmatmul.mubr.bf16.vlgmr.msra.gmra.mrb[20].mxu0 %v2866_v14  ;;  %2942 = vmatmul.mubr.bf16.vlgmr.msra.gmra.mrb[20].mxu1 %v2866_v14  ;;  %12784 = vst [vmem:[#allocation26_spill] sm:$0xff] %v10711_v54  ;;  %v10714_v14 = vld [vmem:[#allocation11] ss:$16 sps:$4 sm:$0xff]   ;;  %v10723_v25 = vld [vmem:[#allocation11 + $0x2c] ss:$16 sps:$4 sm:$0xff]  }
 0x4d1   : > { %3097 = vmatpush1.bf16.msra.mxu0 %v10614_v26  ;;  %3138 = vmatpush1.bf16.msra.mxu1 %v10617_v15  ;;  %12785 = vst [vmem:[#allocation27_spill] sm:$0xff] %v10714_v14  ;;  %12788 = vst [vmem:[#allocation77_spill] sm:$0xff] %v10723_v25 }
 0x4d2   : > { %3098 = vmatprep.subr.bf16.mxu0 %v10620_v6  ;;  %3139 = vmatprep.subr.bf16.mxu1 %v10623_v13 }
 0x4d3   : > { %3128 = vmatprep.mubr.bf16.mxu0 %v12646_v36  ;;  %3169 = vmatprep.mubr.bf16.mxu1 %v12646_v36 }
 0x4d5   : > { %3099 = vmatpush1.bf16.msra.mxu0 %v10628_v4  ;;  %3140 = vmatpush1.bf16.msra.mxu1 %v10631_v2 }
 0x4d6   : > { %3100 = vmatprep.subr.bf16.mxu0 %v10634_v41  ;;  %3141 = vmatprep.subr.bf16.mxu1 %v10637_v30 }
 0x4d9   : > { %3101 = vmatpush1.bf16.msra.mxu0 %v10640_v56  ;;  %3142 = vmatpush1.bf16.msra.mxu1 %v10643_v12 }
 0x4da   : > { %3102 = vmatprep.subr.bf16.mxu0 %v10646_v8  ;;  %3143 = vmatprep.subr.bf16.mxu1 %v10649_v55 }
 0x4dd   : > { %3103 = vmatpush1.bf16.msra.mxu0 %v10652_v22  ;;  %3144 = vmatpush1.bf16.msra.mxu1 %v10655_v29 }
 0x4de   : > { %3104 = vmatprep.subr.bf16.mxu0 %v10658_v9  ;;  %3145 = vmatprep.subr.bf16.mxu1 %v10661_v24 }
 0x4e1   : > { %3105 = vmatpush1.bf16.msra.mxu0 %v10664_v10  ;;  %3146 = vmatpush1.bf16.msra.mxu1 %v10667_v58 }
 0x4e2   : > { %3106 = vmatprep.subr.bf16.mxu0 %v10670_v47  ;;  %3147 = vmatprep.subr.bf16.mxu1 %v10673_v38 }
 0x4e5   : > { %3107 = vmatpush1.bf16.msra.mxu0 %v10676_v11  ;;  %3148 = vmatpush1.bf16.msra.mxu1 %v10679_v37 }
 0x4e6   : > { %3108 = vmatprep.subr.bf16.mxu0 %v10682_v31  ;;  %3149 = vmatprep.subr.bf16.mxu1 %v10685_v21 }
 0x4e9   : > { %3109 = vmatpush1.bf16.msra.mxu0 %v10688_v46  ;;  %3150 = vmatpush1.bf16.msra.mxu1 %v10691_v27 }
 0x4ea   : > { %3110 = vmatprep.subr.bf16.mxu0 %v10694_v45  ;;  %3151 = vmatprep.subr.bf16.mxu1 %v10697_v5 }
 0x4ed   : > { %3111 = vmatpush1.bf16.msra.mxu0 %v10700_v42  ;;  %3152 = vmatpush1.bf16.msra.mxu1 %v10703_v40  ;;  %v10717_v42 = vld [vmem:[#allocation11 + $0x8] ss:$16 sps:$4 sm:$0xff]   ;;  %v10720_v40 = vld [vmem:[#allocation11 + $0x24] ss:$16 sps:$4 sm:$0xff]  }
 0x4ee   : > { %3574 = vmatprep.subr.bf16.mxu0 %v10708_v33  ;;  %3615 = vmatprep.subr.bf16.mxu1 %v10711_v54  ;;  %12786 = vst [vmem:[#allocation28_spill] sm:$0xff] %v10717_v42  ;;  %12787 = vst [vmem:[#allocation29_spill] sm:$0xff] %v10720_v40  ;;  %v10726_v33 = vld [vmem:[#allocation11 + $0x20] ss:$16 sps:$4 sm:$0xff]  }
 0x4ef   : > { %12789 = vst [vmem:[#allocation78_spill] sm:$0xff] %v10726_v33 }
 0x4f0   : > { %3129 = vmatmul.mubr.bf16.vlgmr.msra.gmra.mrb[24].mxu0 %v3094_v52  ;;  %3170 = vmatmul.mubr.bf16.vlgmr.msra.gmra.mrb[24].mxu1 %v3094_v52  ;;  %v10729_v52 = vld [vmem:[#allocation11 + $0x28] ss:$16 sps:$4 sm:$0xff]  }
 0x4f1   : > { %3575 = vmatpush1.bf16.msra.mxu0 %v10714_v14  ;;  %3616 = vmatpush1.bf16.msra.mxu1 %v10717_v42  ;;  %12790 = vst [vmem:[#allocation79_spill] sm:$0xff] %v10729_v52 }
 0x4f2   : > { %3576 = vmatprep.subr.bf16.mxu0 %v10720_v40  ;;  %3617 = vmatprep.subr.bf16.mxu1 %v10723_v25  ;;  %v7018_v25 = vld [vmem:[%s9567_s1 + $0xc3] ss:$8 sm:$0xf] }
 0x4f5   : > { %3577 = vmatpush1.bf16.msra.mxu0 %v10726_v33  ;;  %3618 = vmatpush1.bf16.msra.mxu1 %v10729_v52  ;;  %v7017_v33 = vld [vmem:[%s9567_s1 + $0xa3] ss:$8 sm:$0xf] }
 0x4f6   : > { %3578 = vmatprep.subr.bf16.mxu0 %v10287_v28  ;;  %3619 = vmatprep.subr.bf16.mxu1 %v10290_v62  ;;  %v12791_v28 = vld [vmem:[#allocation30_spill] sm:$0xff]  ;;  %v12792_v62 = vld [vmem:[#allocation31_spill] sm:$0xff] }
 0x4f9   : > { %3579 = vmatpush1.bf16.msra.mxu0 %v10293_v61  ;;  %3620 = vmatpush1.bf16.msra.mxu1 %v10296_v1  ;;  %v12793_v61 = vld [vmem:[#allocation32_spill] sm:$0xff]  ;;  %v12794_v1 = vld [vmem:[#allocation33_spill] sm:$0xff] }
 0x4fa   : > { %3580 = vmatprep.subr.bf16.mxu0 %v10299_v3  ;;  %3621 = vmatprep.subr.bf16.mxu1 %v10302_v49  ;;  %v12795_v3 = vld [vmem:[#allocation34_spill] sm:$0xff]  ;;  %v12796_v49 = vld [vmem:[#allocation35_spill] sm:$0xff] }
 0x4fd   : > { %3581 = vmatpush1.bf16.msra.mxu0 %v10305_v50  ;;  %3622 = vmatpush1.bf16.msra.mxu1 %v10308_v23  ;;  %v12797_v50 = vld [vmem:[#allocation36_spill] sm:$0xff]  ;;  %v12798_v23 = vld [vmem:[#allocation37_spill] sm:$0xff] }
 0x4fe   : > { %3582 = vmatprep.subr.bf16.mxu0 %v10311_v34  ;;  %3623 = vmatprep.subr.bf16.mxu1 %v10314_v0  ;;  %v12799_v34 = vld [vmem:[#allocation38_spill] sm:$0xff]  ;;  %v12800_v0 = vld [vmem:[#allocation39_spill] sm:$0xff] }
 0x501   : > { %3583 = vmatpush1.bf16.msra.mxu0 %v10317_v16  ;;  %3624 = vmatpush1.bf16.msra.mxu1 %v10320_v7  ;;  %v12801_v16 = vld [vmem:[#allocation40_spill] sm:$0xff]  ;;  %v12802_v7 = vld [vmem:[#allocation41_spill] sm:$0xff] }
 0x502   : > { %3584 = vmatprep.subr.bf16.mxu0 %v10323_v60  ;;  %3625 = vmatprep.subr.bf16.mxu1 %v10326_v53  ;;  %v12803_v60 = vld [vmem:[#allocation42_spill] sm:$0xff]  ;;  %v12804_v53 = vld [vmem:[#allocation43_spill] sm:$0xff] }
 0x505   : > { %3585 = vmatpush1.bf16.msra.mxu0 %v10329_v57  ;;  %3626 = vmatpush1.bf16.msra.mxu1 %v10332_v48  ;;  %v12805_v57 = vld [vmem:[#allocation44_spill] sm:$0xff]  ;;  %v12806_v48 = vld [vmem:[#allocation45_spill] sm:$0xff] }
 0x506   : > { %3586 = vmatprep.subr.bf16.mxu0 %v10335_v43  ;;  %3627 = vmatprep.subr.bf16.mxu1 %v10338_v19  ;;  %v12807_v43 = vld [vmem:[#allocation46_spill] sm:$0xff]  ;;  %v12808_v19 = vld [vmem:[#allocation47_spill] sm:$0xff] }
 0x509   : > { %3587 = vmatpush1.bf16.msra.mxu0 %v10341_v63  ;;  %3628 = vmatpush1.bf16.msra.mxu1 %v12791_v28  ;;  %v12809_v63 = vld [vmem:[#allocation48_spill] sm:$0xff]  ;;  %v12810_v28 = vld [vmem:[#allocation49_spill] sm:$0xff] }
 0x50a   : > { %3588 = vmatprep.subr.bf16.mxu0 %v12792_v62  ;;  %3629 = vmatprep.subr.bf16.mxu1 %v12793_v61  ;;  %v12811_v62 = vld [vmem:[#allocation50_spill] sm:$0xff]  ;;  %v12812_v61 = vld [vmem:[#allocation51_spill] sm:$0xff] }
 0x50d   : > { %3589 = vmatpush1.bf16.msra.mxu0 %v12794_v1  ;;  %3630 = vmatpush1.bf16.msra.mxu1 %v12795_v3  ;;  %v12813_v1 = vld [vmem:[#allocation52_spill] sm:$0xff]  ;;  %v12814_v3 = vld [vmem:[#allocation53_spill] sm:$0xff] }
 0x50e   : > { %3590 = vmatprep.subr.bf16.mxu0 %v12796_v49  ;;  %3631 = vmatprep.subr.bf16.mxu1 %v12797_v50  ;;  %v12815_v49 = vld [vmem:[#allocation54_spill] sm:$0xff]  ;;  %v12816_v50 = vld [vmem:[#allocation55_spill] sm:$0xff] }
 0x511   : > { %3591 = vmatpush1.bf16.msra.mxu0 %v12798_v23  ;;  %3632 = vmatpush1.bf16.msra.mxu1 %v12799_v34  ;;  %v12817_v23 = vld [vmem:[#allocation56_spill] sm:$0xff]  ;;  %v12818_v34 = vld [vmem:[#allocation57_spill] sm:$0xff] }
 0x512   : > { %3592 = vmatprep.subr.bf16.mxu0 %v12800_v0  ;;  %3633 = vmatprep.subr.bf16.mxu1 %v12801_v16  ;;  %v12819_v0 = vld [vmem:[#allocation58_spill] sm:$0xff]  ;;  %v12820_v16 = vld [vmem:[#allocation59_spill] sm:$0xff] }
 0x515   : > { %3593 = vmatpush1.bf16.msra.mxu0 %v12802_v7  ;;  %3634 = vmatpush1.bf16.msra.mxu1 %v12803_v60  ;;  %v12821_v7 = vld [vmem:[#allocation60_spill] sm:$0xff]  ;;  %v12822_v60 = vld [vmem:[#allocation61_spill] sm:$0xff] }
 0x516   : > { %3594 = vmatprep.subr.bf16.mxu0 %v12804_v53  ;;  %3635 = vmatprep.subr.bf16.mxu1 %v12805_v57  ;;  %v12823_v53 = vld [vmem:[#allocation62_spill] sm:$0xff]  ;;  %v12824_v57 = vld [vmem:[#allocation63_spill] sm:$0xff] }
 0x519   : > { %3595 = vmatpush1.bf16.msra.mxu0 %v12806_v48  ;;  %3636 = vmatpush1.bf16.msra.mxu1 %v12807_v43  ;;  %v12825_v48 = vld [vmem:[#allocation64_spill] sm:$0xff]  ;;  %v12826_v43 = vld [vmem:[#allocation65_spill] sm:$0xff] }
 0x51a   : > { %3596 = vmatprep.subr.bf16.mxu0 %v12808_v19  ;;  %3637 = vmatprep.subr.bf16.mxu1 %v12809_v63  ;;  %v12827_v19 = vld [vmem:[#allocation66_spill] sm:$0xff]  ;;  %v10788_v63 = vld [vmem:[#allocation9 + $0x4] ss:$16 sps:$4 sm:$0xff]  }
 0x51b   : > { %12828 = vst [vmem:[#allocation30_spill] sm:$0xff] %v10788_v63 }
 0x51d   : > { %3597 = vmatpush1.bf16.msra.mxu0 %v12810_v28  ;;  %3638 = vmatpush1.bf16.msra.mxu1 %v12811_v62  ;;  %v10791_v28 = vld [vmem:[#allocation9 + $0xc] ss:$16 sps:$4 sm:$0xff]  }
 0x51e   : > { %3598 = vmatprep.subr.bf16.mxu0 %v12812_v61  ;;  %3639 = vmatprep.subr.bf16.mxu1 %v12813_v1  ;;  %12829 = vst [vmem:[#allocation31_spill] sm:$0xff] %v10791_v28  ;;  %v10795_v1 = vld [vmem:[%s9578_s10] sm:$0xff] }
 0x51f   : > { %12830 = vst [vmem:[#allocation32_spill] sm:$0xff] %v10795_v1 }
 0x521   : > { %3599 = vmatpush1.bf16.msra.mxu0 %v12814_v3  ;;  %3640 = vmatpush1.bf16.msra.mxu1 %v12815_v49 }
 0x522   : > { %3600 = vmatprep.subr.bf16.mxu0 %v12816_v50  ;;  %3641 = vmatprep.subr.bf16.mxu1 %v12817_v23  ;;  %v10799_v23 = vld [vmem:[%s9578_s10 + $0x8] sm:$0xff] }
 0x523   : > { %12831 = vst [vmem:[#allocation33_spill] sm:$0xff] %v10799_v23 }
 0x525   : > { %3601 = vmatpush1.bf16.msra.mxu0 %v12818_v34  ;;  %3642 = vmatpush1.bf16.msra.mxu1 %v12819_v0 }
 0x526   : > { %3602 = vmatprep.subr.bf16.mxu0 %v12820_v16  ;;  %3643 = vmatprep.subr.bf16.mxu1 %v12821_v7 }
 0x529   : > { %3603 = vmatpush1.bf16.msra.mxu0 %v12822_v60  ;;  %3644 = vmatpush1.bf16.msra.mxu1 %v12823_v53 }
 0x52a   : > { %3604 = vmatprep.subr.bf16.mxu0 %v12824_v57  ;;  %3645 = vmatprep.subr.bf16.mxu1 %v12825_v48  ;;  %v10803_v48 = vld [vmem:[%s9578_s10 + $0x10] sm:$0xff] }
 0x52b   : > { %12832 = vst [vmem:[#allocation34_spill] sm:$0xff] %v10803_v48 }
 0x52d   : > { %3605 = vmatpush1.bf16.msra.mxu0 %v12826_v43  ;;  %3646 = vmatpush1.bf16.msra.mxu1 %v12827_v19 }
 0x52e   : > { %3802 = vmatprep.subr.bf16.mxu0 %v10788_v63  ;;  %3843 = vmatprep.subr.bf16.mxu1 %v10791_v28  ;;  %v7016_v63 = vld [vmem:[%s9567_s1 + $0x83] ss:$8 sm:$0xf] }
 0x5a3   : > { %v2902_v62 = vpop.f32.mrb[20].mxu0  ;;  %v2943_v61 = vpop.f32.mrb[20].mxu1 }
 0x5a4   : > { %v2903_v3 = vadd.f32 %v10795_v1, %v2902_v62  ;;  %v2904_v49 = vpop.f32.mrb[21].mxu0  ;;  %v2945_v50 = vpop.f32.mrb[21].mxu1  ;;  %v2944_v43 = vadd.f32 %v10803_v48, %v2943_v61 }
 0x5a5   : > { %v2905_v34 = vadd.f32 %v10799_v23, %v2904_v49  ;;  %v2906_v0 = vpop.f32.mrb[22].mxu0  ;;  %v2947_v16 = vpop.f32.mrb[22].mxu1  ;;  %v10807_v49 = vld [vmem:[%s9578_s10 + $0x18] sm:$0xff] }
 0x5a6   : > { %v7005_v7 = vmul.f32 -1.442695, %v2903_v3  ;;  %v2907_v60 = vpop.f32.mrb[23].mxu0  ;;  %v2948_v53 = vpop.f32.mrb[23].mxu1  ;;  %12833 = vst [vmem:[#allocation35_spill] sm:$0xff] %v10807_v49  ;;  %v2946_v3 = vadd.f32 %v10807_v49, %v2945_v50 }
 0x5a7   : > { %v7006_v57 = vmul.f32 -1.442695, %v2905_v34  ;;  %v12834_v53 = vld [vmem:[#allocation67_spill] sm:$0xff] }
 0x5a8   : > { %7916 = vpow2.f32 %v7005_v7  ;;  %v7007_v0 = vmul.f32 -1.442695, %v2946_v3 }
 0x5a9   : > { %7918 = vpow2.f32 %v7006_v57 }
 0x5aa   : > { %7920 = vtanh.f32 %v2944_v43 }
 0x5b2   : > { %v7917_v19 = vpop.eup %7916 }
 0x5b3   : > { %v7919_v62 = vpop.eup %7918  ;;  %v2953_v1 = vadd.f32 1.0, %v7917_v19 }
 0x5b4   : > { %v2959_v28 = vadd.f32 1.0, %v7919_v62  ;;  %v7921_v16 = vpop.eup %7920 }
 0x5b5   : > { %7922 = vrcp.f32 %v2953_v1 }
 0x5b6   : > { %7924 = vrcp.f32 %v2959_v28 }
 0x5b7   : > { %7926 = vpow2.f32 %v7007_v0 }
 0x5bf   : > { %v7923_v34 = vpop.eup %7922 }
 0x5c0   : > { %v7925_v7 = vpop.eup %7924  ;;  %v2970_v60 = vmul.f32 %v7923_v34, %v7921_v16 }
 0x5c1   : > { %v2969_v57 = vmul.f32 %v7925_v7, %v12834_v53 }
 0x5c3   : > { %v10811_v61 = vadd.f32 %v2970_v60, %v2969_v57  ;;  %v3130_v48 = vpop.f32.mrb[24].mxu0  ;;  %v3171_v19 = vpop.f32.mrb[24].mxu1 }
 0x5c4   : > { %v3132_v43 = vpop.f32.mrb[25].mxu0  ;;  %v3173_v1 = vpop.f32.mrb[25].mxu1 }
 0x5c5   : > { %12835 = vst [vmem:[#allocation36_spill] sm:$0xff] %v10811_v61  ;;  %v3182_v28 = vcombine.low %v3130_v48, %v3132_v43  ;;  %v3183_v62 = vcombine.high %v3130_v48, %v3132_v43  ;;  %v3184_v23 = vcombine.low %v3171_v19, %v3173_v1  ;;  %v3185_v50 = vcombine.high %v3171_v19, %v3173_v1  ;;  %v3134_v3 = vpop.f32.mrb[26].mxu0  ;;  %v3175_v0 = vpop.f32.mrb[26].mxu1  ;;  %v7012_v43 = vld [vmem:[%s9567_s1 + $0x3] ss:$8 sm:$0xf] }
 0x5c6   : > { %v3135_v16 = vpop.f32.mrb[27].mxu0  ;;  %v3176_v34 = vpop.f32.mrb[27].mxu1  ;;  %v7013_v0 = vld [vmem:[%s9567_s1 + $0x23] ss:$8 sm:$0xf]  ;;  %7928 = vtanh.f32 %v10811_v61 }
 0x5c7   : > { %v3192_v7 = vrot.slane %v3182_v28, %v9766_v35  ;;  %v3199_v60 = vrot.slane %v3183_v62, %v9766_v35  ;;  %v3206_v53 = vrot.slane %v3184_v23, %v9766_v35  ;;  %v3213_v57 = vrot.slane %v3185_v50, %v9766_v35  ;;  %v7927_v48 = vpop.eup %7926  ;;  %v7014_v16 = vld [vmem:[%s9567_s1 + $0x43] ss:$8 sm:$0xf] }
 0x5c8   : > { %v7015_v34 = vld [vmem:[%s9567_s1 + $0x63] ss:$8 sm:$0xf]  ;;  %v2966_v52 = vadd.f32 1.0, %v7927_v48 }
 0x5c9   : > { %v3214_v19 = vcombine.low %v3192_v7, %v3206_v53  ;;  %v3215_v1 = vcombine.high %v3192_v7, %v3206_v53  ;;  %v3216_v3 = vcombine.low %v3199_v60, %v3213_v57  ;;  %v3217_v49 = vcombine.high %v3199_v60, %v3213_v57  ;;  %v7019_v57 = vld [vmem:[%s9567_s1 + $0xe3] ss:$8 sm:$0xf] }
 0x5ca   : > { %7930 = vrcp.f32 %v2966_v52 }
 0x5cb   : > { %v3224_v28 = vrot.slane %v3214_v19, %v9766_v35  ;;  %v3231_v62 = vrot.slane %v3216_v3, %v9766_v35  ;;  %v3238_v23 = vrot.slane %v3215_v1, %v9766_v35  ;;  %v3245_v50 = vrot.slane %v3217_v49, %v9766_v35 }
 0x5cd   : > { %v3246_v40 = vcombine.high %v3224_v28, %v3224_v28  ;;  %v3247_v7 = vcombine.high %v3231_v62, %v3231_v62  ;;  %v3248_v53 = vcombine.high %v3238_v23, %v3238_v23  ;;  %v3249_v60 = vcombine.high %v3245_v50, %v3245_v50 }
 0x5ce   : > { %v10829_v42 = vadd.f32 %v7012_v43, %v3224_v28  ;;  %v10831_v14 = vadd.f32 %v7013_v0, %v3238_v23  ;;  %v10833_v54 = vadd.f32 %v7016_v63, %v3231_v62  ;;  %v10839_v1 = vadd.f32 %v7017_v33, %v3245_v50 }
 0x5cf   : > { %v10835_v19 = vadd.f32 %v7014_v16, %v3246_v40  ;;  %v10837_v3 = vadd.f32 %v7015_v34, %v3248_v53  ;;  %v10841_v49 = vadd.f32 %v7018_v25, %v3247_v7  ;;  %v10846_v43 = vadd.f32 %v7019_v57, %v3249_v60 }
 0x5d0   : > { %v7020_v48 = vmul.f32 -1.442695, %v10829_v42  ;;  %v7021_v5 = vmul.f32 -1.442695, %v10831_v14  ;;  %v7024_v0 = vmul.f32 -1.442695, %v10833_v54  ;;  %v7929_v60 = vpop.eup %7928 }
 0x5d1   : > { %v7022_v63 = vmul.f32 -1.442695, %v10835_v19  ;;  %v7023_v40 = vmul.f32 -1.442695, %v10837_v3  ;;  %v3322_v33 = vrot.slane %v10829_v42, 1  ;;  %v3323_v16 = vrot.slane %v10831_v14, 1 }
 0x5d2   : > { %7932 = vpow2.f32 %v7020_v48  ;;  %v7025_v25 = vmul.f32 -1.442695, %v10839_v1  ;;  %v7026_v34 = vmul.f32 -1.442695, %v10841_v49  ;;  %v3324_v52 = vrot.slane %v10835_v19, 1 }
 0x5d3   : > { %7934 = vpow2.f32 %v7021_v5  ;;  %v7027_v28 = vmul.f32 -1.442695, %v10846_v43  ;;  %v3325_v62 = vrot.slane %v10837_v3, 1  ;;  %v3326_v23 = vrot.slane %v10833_v54, 1 }
 0x5d4   : > { %7936 = vpow2.f32 %v7022_v63  ;;  %v7028_v50 = vmul.f32 -1.442695, %v3322_v33  ;;  %v7029_v5 = vmul.f32 -1.442695, %v3323_v16  ;;  %v7030_v7 = vmul.f32 -1.442695, %v3324_v52  ;;  %v7931_v48 = vpop.eup %7930 }
 0x5d5   : > { %7938 = vpow2.f32 %v7023_v40  ;;  %v7031_v53 = vmul.f32 -1.442695, %v3325_v62  ;;  %v7032_v57 = vmul.f32 -1.442695, %v3326_v23  ;;  %v2973_v45 = vmul.f32 %v7931_v48, %v7929_v60 }
 0x5d6   : > { %7940 = vpow2.f32 %v7024_v0  ;;  %v3327_v0 = vrot.slane %v10839_v1, 1  ;;  %v3328_v52 = vrot.slane %v10841_v49, 1  ;;  %v3329_v23 = vrot.slane %v10846_v43, 1 }
 0x5d7   : > { %7942 = vpow2.f32 %v7025_v25  ;;  %v3573_v48 = vpack.c.bf16 %v2973_v45, %v2973_v45  ;;  %v3417_v11 = vrot.slane %v10846_v43, 3 }
 0x5d8   : > { %7944 = vpow2.f32 %v7026_v34 }
 0x5d9   : > { %7946 = vpow2.f32 %v7027_v28  ;;  %3606 = vmatprep.mubr.bf16.mxu0 %v3573_v48  ;;  %3647 = vmatprep.mubr.bf16.mxu1 %v3573_v48 }
 0x5da   : > { %7948 = vpow2.f32 %v7028_v50 }
 0x5db   : > { %7950 = vpow2.f32 %v7029_v5 }
 0x5dc   : > { %v7933_v63 = vpop.eup %7932  ;;  %7952 = vpow2.f32 %v7030_v7  ;;  %v7033_v7 = vmul.f32 -1.442695, %v3327_v0 }
 0x5dd   : > { %v7935_v40 = vpop.eup %7934  ;;  %v3290_v61 = vadd.f32 1.0, %v7933_v63  ;;  %7954 = vpow2.f32 %v7031_v53  ;;  %v2975_v63 = vcombine.high %v2973_v45, %v2973_v45 }
 0x5de   : > { %v7937_v33 = vpop.eup %7936  ;;  %v3291_v25 = vadd.f32 1.0, %v7935_v40  ;;  %7956 = vpow2.f32 %v7032_v57  ;;  %v2982_v57 = vrot.slane %v2973_v45, %v9766_v35  ;;  %v7035_v45 = vmul.f32 -1.442695, %v3329_v23 }
 0x5df   : > { %v7939_v16 = vpop.eup %7938  ;;  %v3292_v34 = vadd.f32 1.0, %v7937_v33  ;;  %7958 = vrcp.f32 %v3290_v61  ;;  %v7034_v33 = vmul.f32 -1.442695, %v3328_v52 }
 0x5e0   : > { %v7941_v28 = vpop.eup %7940  ;;  %v3293_v62 = vadd.f32 1.0, %v7939_v16  ;;  %7960 = vrcp.f32 %v3291_v25  ;;  %v2989_v25 = vrot.slane %v2975_v63, %v9766_v35  ;;  %v2998_v0 = vrot.slane %v2982_v57, %v9766_v35  ;;  %7008 = vst.sshfl [vmem:[%s9585_s30 + $0x2] sm:$0x1 pattern:$0x73625140] %v2982_v57 }
 0x5e1   : > { %v7943_v50 = vpop.eup %7942  ;;  %v3294_v5 = vadd.f32 1.0, %v7941_v28  ;;  %7962 = vrcp.f32 %v3292_v34  ;;  %v2990_v34 = vcombine.high %v2982_v57, %v2982_v57 }
 0x5e2   : > { %v7945_v53 = vpop.eup %7944  ;;  %v3295_v60 = vadd.f32 1.0, %v7943_v50  ;;  %7964 = vrcp.f32 %v3293_v62  ;;  %v2991_v62 = vcombine.high %v2989_v25, %v2989_v25  ;;  %v3005_v50 = vrot.slane %v2989_v25, %v9766_v35  ;;  %7010 = vst.sshfl [vmem:[%s9585_s30 + $0x22] sm:$0x1 pattern:$0x73625140] %v2989_v25 }
 0x5e3   : > { %v7947_v61 = vpop.eup %7946  ;;  %v3296_v40 = vadd.f32 1.0, %v7945_v53  ;;  %7966 = vrcp.f32 %v3294_v5  ;;  %v3012_v63 = vrot.slane %v2990_v34, %v9766_v35  ;;  %v3020_v53 = vcombine.high %v2998_v0, %v2998_v0  ;;  %7009 = vst.sshfl [vmem:[%s9585_s30 + $0xa] sm:$0x1 pattern:$0x73625140] %v2990_v34 }
 0x5e4   : > { %v7949_v16 = vpop.eup %7948  ;;  %v3297_v27 = vadd.f32 1.0, %v7947_v61  ;;  %7968 = vrcp.f32 %v3295_v60  ;;  %v3019_v48 = vrot.slane %v2991_v62, %v9766_v35  ;;  %v3021_v23 = vcombine.high %v3005_v50, %v3005_v50  ;;  %7011 = vst.sshfl [vmem:[%s9585_s30 + $0x2a] sm:$0x1 pattern:$0x73625140] %v2991_v62 }
 0x5e5   : > { %v7951_v28 = vpop.eup %7950  ;;  %7970 = vrcp.f32 %v3296_v40  ;;  %v3362_v5 = vadd.f32 1.0, %v7949_v16  ;;  %v3022_v25 = vcombine.high %v3012_v63, %v3012_v63  ;;  %3034 = vst [vmem:[%s9585_s30 + $0x12] sm:$0x1] %v3020_v53  ;;  %v3387_v50 = vrot.slane %v10831_v14, 2 }
 0x5e6   : > { %v7953_v52 = vpop.eup %7952  ;;  %7972 = vrcp.f32 %v3297_v27  ;;  %v3363_v57 = vadd.f32 1.0, %v7951_v28  ;;  %v3023_v34 = vcombine.high %v3019_v48, %v3019_v48  ;;  %3038 = vst [vmem:[%s9585_s30 + $0x32] sm:$0x1] %v3021_v23 }
 0x5e7   : > { %v7955_v60 = vpop.eup %7954  ;;  %7974 = vpow2.f32 %v7033_v7  ;;  %v3364_v40 = vadd.f32 1.0, %v7953_v52  ;;  %3035 = vst [vmem:[%s9585_s30 + $0x1a] sm:$0x1] %v3022_v25  ;;  %v3388_v52 = vrot.slane %v10835_v19, 2 }
 0x5e8   : > { %v7957_v61 = vpop.eup %7956  ;;  %7976 = vpow2.f32 %v7034_v33  ;;  %v3365_v16 = vadd.f32 1.0, %v7955_v60  ;;  %v3386_v33 = vrot.slane %v10829_v42, 2  ;;  %3039 = vst [vmem:[%s9585_s30 + $0x3a] sm:$0x1] %v3023_v34  ;;  %v3390_v60 = vrot.slane %v10833_v54, 2 }
 0x5e9   : > { %v10873_v27 = vpop.eup %7958  ;;  %7978 = vpow2.f32 %v7035_v45  ;;  %v3366_v7 = vadd.f32 1.0, %v7957_v61  ;;  %v3391_v34 = vrot.slane %v10839_v1, 2 }
 0x5ea   : > { %v10876_v0 = vpop.eup %7960  ;;  %7980 = vrcp.f32 %v3362_v5  ;;  %v3389_v5 = vrot.slane %v10837_v3, 2 }
 0x5eb   : > { %v10879_v28 = vpop.eup %7962  ;;  %7982 = vrcp.f32 %v3363_v57 }
 0x5ec   : > { %v10883_v62 = vpop.eup %7964  ;;  %7984 = vrcp.f32 %v3364_v40  ;;  %v3410_v40 = vrot.slane %v10829_v42, 3  ;;  %v3413_v42 = vrot.slane %v10837_v3, 3 }
 0x5ed   : > { %v10886_v45 = vpop.eup %7966  ;;  %7986 = vrcp.f32 %v3365_v16 }
 0x5ee   : > { %v10889_v63 = vpop.eup %7968  ;;  %7988 = vrcp.f32 %v3366_v7  ;;  %v3411_v7 = vrot.slane %v10831_v14, 3  ;;  %v3415_v14 = vrot.slane %v10839_v1, 3  ;;  %v7039_v3 = vmul.f32 -1.442695, %v3413_v42 }
 0x5ef   : > { %v10892_v53 = vpop.eup %7970  ;;  %7990 = vtanh.f32 %v3386_v33  ;;  %v3392_v33 = vrot.slane %v10841_v49, 2 }
 0x5f0   : > { %v10895_v57 = vpop.eup %7972  ;;  %7992 = vtanh.f32 %v3387_v50  ;;  %v3412_v50 = vrot.slane %v10835_v19, 3  ;;  %v3416_v19 = vrot.slane %v10841_v49, 3 }
 0x5f1   : > { %v7975_v48 = vpop.eup %7974  ;;  %7994 = vtanh.f32 %v3388_v52 }
 0x5f2   : > { %v7977_v23 = vpop.eup %7976  ;;  %v3367_v61 = vadd.f32 1.0, %v7975_v48  ;;  %7996 = vtanh.f32 %v3389_v5  ;;  %v3393_v5 = vrot.slane %v10846_v43, 2  ;;  %v7038_v37 = vmul.f32 -1.442695, %v3412_v50 }
 0x5f3   : > { %v7979_v25 = vpop.eup %7978  ;;  %v3368_v16 = vadd.f32 1.0, %v7977_v23  ;;  %7998 = vtanh.f32 %v3390_v60  ;;  %v3414_v23 = vrot.slane %v10833_v54, 3  ;;  %v7036_v60 = vmul.f32 -1.442695, %v3410_v40 }
 0x5f4   : > { %v7981_v46 = vpop.eup %7980  ;;  %v3369_v21 = vadd.f32 1.0, %v7979_v25  ;;  %8000 = vrcp.f32 %v3367_v61  ;;  %v7037_v61 = vmul.f32 -1.442695, %v3411_v7  ;;  %v7043_v43 = vmul.f32 -1.442695, %v3417_v11 }
 0x5f5   : > { %v7983_v52 = vpop.eup %7982  ;;  %8002 = vrcp.f32 %v3368_v16  ;;  %v3474_v54 = vmul.f32 %v7981_v46, %v10567_v20 }
 0x5f6   : > { %v7985_v48 = vpop.eup %7984  ;;  %8004 = vrcp.f32 %v3369_v21  ;;  %v7040_v21 = vmul.f32 -1.442695, %v3414_v23  ;;  %v3475_v1 = vmul.f32 %v7983_v52, %v10570_v39 }
 0x5f7   : > { %v7987_v31 = vpop.eup %7986  ;;  %8006 = vtanh.f32 %v3391_v34  ;;  %v7041_v34 = vmul.f32 -1.442695, %v3415_v14  ;;  %v3476_v50 = vmul.f32 %v7985_v48, %v10573_v44 }
 0x5f8   : > { %v7989_v25 = vpop.eup %7988  ;;  %8008 = vtanh.f32 %v3392_v33  ;;  %v7042_v33 = vmul.f32 -1.442695, %v3416_v19  ;;  %v3477_v23 = vmul.f32 %v7987_v31, %v10575_v18 }
 0x5f9   : > { %v7991_v16 = vpop.eup %7990  ;;  %8010 = vtanh.f32 %v3393_v5  ;;  %v3478_v39 = vmul.f32 %v7989_v25, %v10577_v32 }
 0x5fa   : > { %v7993_v38 = vpop.eup %7992  ;;  %8012 = vpow2.f32 %v7036_v60  ;;  %v3482_v49 = vmul.f32 %v7991_v16, %v10873_v27 }
 0x5fb   : > { %v7995_v40 = vpop.eup %7994  ;;  %8014 = vpow2.f32 %v7037_v61  ;;  %v3483_v42 = vmul.f32 %v7993_v38, %v10876_v0 }
 0x5fc   : > { %v7997_v7 = vpop.eup %7996  ;;  %8016 = vpow2.f32 %v7038_v37  ;;  %v3484_v46 = vmul.f32 %v7995_v40, %v10879_v28  ;;  %v10916_v52 = vadd.f32 %v3482_v49, %v3474_v54 }
 0x5fd   : > { %v7999_v5 = vpop.eup %7998  ;;  %8018 = vpow2.f32 %v7039_v3  ;;  %v3485_v27 = vmul.f32 %v7997_v7, %v10883_v62  ;;  %v10919_v44 = vadd.f32 %v3483_v42, %v3475_v1 }
 0x5fe   : > { %v8001_v20 = vpop.eup %8000  ;;  %8020 = vpow2.f32 %v7040_v21  ;;  %v3486_v38 = vmul.f32 %v7999_v5, %v10886_v45  ;;  %v10922_v11 = vadd.f32 %v3484_v46, %v3476_v50 }
 0x5ff   : > { %v8003_v37 = vpop.eup %8002  ;;  %8022 = vpow2.f32 %v7041_v34  ;;  %v10924_v31 = vadd.f32 %v3485_v27, %v3477_v23  ;;  %v3479_v16 = vmul.f32 %v8001_v20, %v10590_v51 }
 0x600   : > { %v8005_v48 = vpop.eup %8004  ;;  %8024 = vpow2.f32 %v7042_v33  ;;  %v10926_v32 = vadd.f32 %v3486_v38, %v3478_v39  ;;  %v3480_v54 = vmul.f32 %v8003_v37, %v10592_v59 }
 0x601   : > { %v8007_v18 = vpop.eup %8006  ;;  %8026 = vpow2.f32 %v7043_v43  ;;  %v3481_v7 = vmul.f32 %v8005_v48, %v10594_v17 }
 0x602   : > { %v8009_v0 = vpop.eup %8008  ;;  %8028 = vtanh.f32 %v10916_v52  ;;  %v3487_v1 = vmul.f32 %v8007_v18, %v10889_v63 }
 0x603   : > { %v8011_v28 = vpop.eup %8010  ;;  %8030 = vtanh.f32 %v10919_v44  ;;  %v3488_v50 = vmul.f32 %v8009_v0, %v10892_v53 }
 0x604   : > { %v8013_v62 = vpop.eup %8012  ;;  %8032 = vtanh.f32 %v10922_v11  ;;  %v3489_v51 = vmul.f32 %v8011_v28, %v10895_v57  ;;  %v10939_v42 = vadd.f32 %v3487_v1, %v3479_v16 }
 0x605   : > { %v8015_v60 = vpop.eup %8014  ;;  %v3450_v14 = vadd.f32 1.0, %v8013_v62  ;;  %8034 = vtanh.f32 %v10924_v31  ;;  %v10941_v20 = vadd.f32 %v3488_v50, %v3480_v54 }
 0x606   : > { %v8017_v45 = vpop.eup %8016  ;;  %v3451_v61 = vadd.f32 1.0, %v8015_v60  ;;  %8036 = vtanh.f32 %v10926_v32  ;;  %v10943_v17 = vadd.f32 %v3489_v51, %v3481_v7 }
 0x607   : > { %v8019_v25 = vpop.eup %8018  ;;  %v3452_v19 = vadd.f32 1.0, %v8017_v45  ;;  %8038 = vrcp.f32 %v3450_v14 }
 0x608   : > { %v8021_v3 = vpop.eup %8020  ;;  %v3453_v21 = vadd.f32 1.0, %v8019_v25  ;;  %8040 = vrcp.f32 %v3451_v61 }
 0x609   : > { %v8023_v40 = vpop.eup %8022  ;;  %v3454_v34 = vadd.f32 1.0, %v8021_v3  ;;  %8042 = vrcp.f32 %v3452_v19 }
 0x60a   : > { %v8025_v33 = vpop.eup %8024  ;;  %v3455_v49 = vadd.f32 1.0, %v8023_v40  ;;  %8044 = vrcp.f32 %v3453_v21 }
 0x60b   : > { %v8027_v5 = vpop.eup %8026  ;;  %v3456_v43 = vadd.f32 1.0, %v8025_v33  ;;  %8046 = vrcp.f32 %v3454_v34 }
 0x60c   : > { %v8029_v59 = vpop.eup %8028  ;;  %v3457_v23 = vadd.f32 1.0, %v8027_v5  ;;  %8048 = vrcp.f32 %v3455_v49 }
 0x60d   : > { %v8031_v63 = vpop.eup %8030  ;;  %8050 = vrcp.f32 %v3456_v43 }
 0x60e   : > { %v8033_v46 = vpop.eup %8032  ;;  %8052 = vrcp.f32 %v3457_v23 }
 0x60f   : > { %v8035_v39 = vpop.eup %8034  ;;  %8054 = vtanh.f32 %v10939_v42 }
 0x610   : > { %v8037_v53 = vpop.eup %8036  ;;  %8056 = vtanh.f32 %v10941_v20 }
 0x611   : > { %v8039_v57 = vpop.eup %8038  ;;  %8058 = vtanh.f32 %v10943_v17 }
 0x612   : > { %v8041_v37 = vpop.eup %8040  ;;  %v3506_v27 = vmul.f32 %v8039_v57, %v8029_v59 }
 0x613   : > { %v8043_v48 = vpop.eup %8042  ;;  %v3507_v38 = vmul.f32 %v8041_v37, %v8031_v63 }
 0x614   : > { %v8045_v18 = vpop.eup %8044  ;;  %v3508_v0 = vmul.f32 %v8043_v48, %v8033_v46  ;;  %v3762_v28 = vpack.c.bf16 %v3506_v27, %v3506_v27 }
 0x615   : > { %v8047_v62 = vpop.eup %8046  ;;  %v3509_v60 = vmul.f32 %v8045_v18, %v8035_v39  ;;  %v3522_v14 = vcombine.low %v3506_v27, %v3507_v38  ;;  %v3763_v45 = vpack.c.bf16 %v3507_v38, %v3507_v38 }
 0x616   : > { %v8049_v61 = vpop.eup %8048  ;;  %v3510_v25 = vmul.f32 %v8047_v62, %v8037_v53  ;;  %v3764_v19 = vpack.c.bf16 %v3508_v0, %v3508_v0  ;;  %v3778_v34 = vunpack.c.l.b16 %v3762_v28 }
 0x617   : > { %v8051_v16 = vpop.eup %8050  ;;  %v3523_v3 = vcombine.low %v3508_v0, %v3509_v60  ;;  %v3765_v21 = vpack.c.bf16 %v3509_v60, %v3509_v60  ;;  %v3779_v54 = vunpack.c.l.b16 %v3763_v45  ;;  %v3532_v49 = vrot.slane %v3522_v14, %v9766_v35 }
 0x618   : > { %v8053_v40 = vpop.eup %8052  ;;  %v3780_v1 = vunpack.c.l.b16 %v3764_v19  ;;  %v3766_v7 = vpack.c.bf16 %v3510_v25, %v3510_v25 }
 0x619   : > { %v8055_v33 = vpop.eup %8054  ;;  %v3539_v50 = vrot.slane %v3523_v3, %v9766_v35  ;;  %v3781_v5 = vunpack.c.l.b16 %v3765_v21  ;;  %v3786_v43 = vrot.slane %v3779_v54, 7 }
 0x61a   : > { %v8057_v51 = vpop.eup %8056  ;;  %v3511_v59 = vmul.f32 %v8055_v33, %v8049_v61  ;;  %v3788_v23 = vrot.slane %v3780_v1, 6  ;;  %v3782_v63 = vunpack.c.l.b16 %v3766_v7 }
 0x61b   : > { %v8059_v46 = vpop.eup %8058  ;;  %v3512_v39 = vmul.f32 %v8057_v51, %v8051_v16  ;;  %v3554_v53 = vcombine.low %v3532_v49, %v3539_v50  ;;  %v3790_v57 = vrot.slane %v3781_v5, 5  ;;  %v3787_v37 = vsel %vm1662_vm0, %v3786_v43, %v3778_v34  ;;  %v12854_v51 = vld [vmem:[#allocation79_spill] sm:$0xff] }
 0x61c   : > { %v3513_v27 = vmul.f32 %v8059_v46, %v8053_v40  ;;  %v3524_v48 = vcombine.low %v3510_v25, %v3511_v59  ;;  %v3767_v38 = vpack.c.bf16 %v3511_v59, %v3511_v59  ;;  %v3789_v18 = vsel %vm1665_vm1, %v3788_v23, %v3787_v37  ;;  %v11001_v59 = vld [vmem:[#allocation11 + $0x44] ss:$16 sps:$4 sm:$0xff]   ;;  %v11004_v23 = vld [vmem:[#allocation11 + $0x4c] ss:$16 sps:$4 sm:$0xff]   ;;  %v11010_v46 = vld [vmem:[#allocation11 + $0x48] ss:$16 sps:$4 sm:$0xff]  }
 0x61d   : > { %v3768_v0 = vpack.c.bf16 %v3512_v39, %v3512_v39  ;;  %v3791_v28 = vsel %vm1668_vm2, %v3790_v57, %v3789_v18  ;;  %v3792_v62 = vrot.slane %v3782_v63, 4  ;;  %v3562_v34 = vrot.slane %v3554_v53, %v9766_v35  ;;  %v11007_v63 = vld [vmem:[#allocation11 + $0x40] ss:$16 sps:$4 sm:$0xff]   ;;  %v11016_v53 = vld [vmem:[#allocation11 + $0x6c] ss:$16 sps:$4 sm:$0xff]  }
 0x61e   : > { %v3525_v60 = vcombine.low %v3512_v39, %v3513_v27  ;;  %v3769_v14 = vpack.c.bf16 %v3513_v27, %v3513_v27  ;;  %v3783_v45 = vunpack.c.l.b16 %v3767_v38  ;;  %v3546_v16 = vrot.slane %v3524_v48, %v9766_v35  ;;  %v11013_v39 = vld [vmem:[#allocation11 + $0x64] ss:$16 sps:$4 sm:$0xff]   ;;  %v11019_v57 = vld [vmem:[#allocation11 + $0x60] ss:$16 sps:$4 sm:$0xff]   ;;  %v11022_v37 = vld [vmem:[#allocation11 + $0x68] ss:$16 sps:$4 sm:$0xff]  }
 0x61f   : > { %v3784_v61 = vunpack.c.l.b16 %v3768_v0  ;;  %v3793_v19 = vsel %vm1671_vm3, %v3792_v62, %v3791_v28  ;;  %v11025_v27 = vld [vmem:[#allocation11 + $0x84] ss:$16 sps:$4 sm:$0xff]   ;;  %v11028_v48 = vld [vmem:[#allocation11 + $0x8c] ss:$16 sps:$4 sm:$0xff]   ;;  %v11031_v38 = vld [vmem:[#allocation11 + $0x80] ss:$16 sps:$4 sm:$0xff]  }
 0x620   : > { %v3553_v3 = vrot.slane %v3525_v60, %v9766_v35  ;;  %v3785_v21 = vunpack.c.l.b16 %v3769_v14  ;;  %v3794_v54 = vrot.slane %v3783_v45, 3  ;;  %v11034_v18 = vld [vmem:[#allocation11 + $0x88] ss:$16 sps:$4 sm:$0xff]   ;;  %v11037_v0 = vld [vmem:[#allocation11 + $0xa4] ss:$16 sps:$4 sm:$0xff]  }
 0x621   : > { %v3796_v25 = vrot.slane %v3784_v61, 2  ;;  %v11040_v28 = vld [vmem:[#allocation11 + $0xac] ss:$16 sps:$4 sm:$0xff]   ;;  %v11043_v62 = vld [vmem:[#allocation11 + $0xa0] ss:$16 sps:$4 sm:$0xff]  }
 0x622   : > { %v3555_v40 = vcombine.low %v3546_v16, %v3553_v3  ;;  %v3795_v1 = vsel %vm1674_vm4, %v3794_v54, %v3793_v19  ;;  %v3798_v7 = vrot.slane %v3785_v21, 1  ;;  %v11046_v60 = vld [vmem:[#allocation11 + $0xa8] ss:$16 sps:$4 sm:$0xff]   ;;  %v11049_v14 = vld [vmem:[#allocation11 + $0xc4] ss:$16 sps:$4 sm:$0xff]  }
 0x623   : > { %v3797_v33 = vsel %vm1677_vm5, %v3796_v25, %v3795_v1  ;;  %v11052_v45 = vld [vmem:[#allocation11 + $0xcc] ss:$16 sps:$4 sm:$0xff]   ;;  %v11055_v61 = vld [vmem:[#allocation11 + $0xc0] ss:$16 sps:$4 sm:$0xff]   ;;  %v11058_v19 = vld [vmem:[#allocation11 + $0xc8] ss:$16 sps:$4 sm:$0xff]  }
 0x624   : > { %v3569_v49 = vrot.slane %v3555_v40, %v9766_v35  ;;  %v3799_v50 = vsel %vm1680_vm6, %v3798_v7, %v3797_v33  ;;  %12855 = vst [vmem:[#allocation37_spill] sm:$0xff] %v11058_v19  ;;  %v11061_v16 = vld [vmem:[#allocation11 + $0xe4] ss:$16 sps:$4 sm:$0xff]   ;;  %v11064_v3 = vld [vmem:[#allocation11 + $0xec] ss:$16 sps:$4 sm:$0xff]  }
 0x625   : > { %12856 = vst [vmem:[#allocation38_spill] sm:$0xff] %v11061_v16  ;;  %12857 = vst [vmem:[#allocation39_spill] sm:$0xff] %v11064_v3  ;;  %v11067_v21 = vld [vmem:[#allocation11 + $0xe0] ss:$16 sps:$4 sm:$0xff]   ;;  %v11070_v54 = vld [vmem:[#allocation11 + $0xe8] ss:$16 sps:$4 sm:$0xff]  }
 0x626   : > { %v3570_v5 = vcombine.low %v3562_v34, %v3569_v49  ;;  %12858 = vst [vmem:[#allocation40_spill] sm:$0xff] %v11067_v21  ;;  %12859 = vst [vmem:[#allocation41_spill] sm:$0xff] %v11070_v54  ;;  %v11073_v25 = vld [vmem:[#allocation11 + $0x104] ss:$16 sps:$4 sm:$0xff]   ;;  %v11076_v40 = vld [vmem:[#allocation11 + $0x10c] ss:$16 sps:$4 sm:$0xff]  }
 0x627   : > { %12860 = vst [vmem:[#allocation42_spill] sm:$0xff] %v11073_v25  ;;  %12861 = vst [vmem:[#allocation43_spill] sm:$0xff] %v11076_v40  ;;  %v11079_v34 = vld [vmem:[#allocation11 + $0x100] ss:$16 sps:$4 sm:$0xff]   ;;  %v11082_v1 = vld [vmem:[#allocation11 + $0x108] ss:$16 sps:$4 sm:$0xff]  }
 0x628   : > { %v3572_v43 = vpack.c.bf16 %v3570_v5, %v3570_v5  ;;  %12862 = vst [vmem:[#allocation44_spill] sm:$0xff] %v11079_v34  ;;  %12863 = vst [vmem:[#allocation45_spill] sm:$0xff] %v11082_v1  ;;  %v11085_v7 = vld [vmem:[#allocation11 + $0x124] ss:$16 sps:$4 sm:$0xff]   ;;  %v11088_v33 = vld [vmem:[#allocation11 + $0x12c] ss:$16 sps:$4 sm:$0xff]  }
 0x629   : > { %12864 = vst [vmem:[#allocation46_spill] sm:$0xff] %v11085_v7  ;;  %12865 = vst [vmem:[#allocation47_spill] sm:$0xff] %v11088_v33  ;;  %v11091_v49 = vld [vmem:[#allocation11 + $0x120] ss:$16 sps:$4 sm:$0xff]   ;;  %v11097_v5 = vld [vmem:[#allocation11 + $0x144] ss:$16 sps:$4 sm:$0xff]  }
 0x62a   : > { %3607 = vmatmul.mubr.bf16.vlgmr.msra.gmra.mrb[28].mxu0 %v3572_v43  ;;  %3648 = vmatmul.mubr.bf16.vlgmr.msra.gmra.mrb[28].mxu1 %v3572_v43  ;;  %12866 = vst [vmem:[#allocation48_spill] sm:$0xff] %v11091_v49  ;;  %12868 = vst [vmem:[#allocation50_spill] sm:$0xff] %v11097_v5  ;;  %v11100_v43 = vld [vmem:[#allocation11 + $0x14c] ss:$16 sps:$4 sm:$0xff]  }
 0x62b   : > { %3803 = vmatpush1.bf16.msra.mxu0 %v10614_v26  ;;  %3844 = vmatpush1.bf16.msra.mxu1 %v10617_v15  ;;  %v12836_v26 = vld [vmem:[#allocation68_spill] sm:$0xff]  ;;  %v12837_v15 = vld [vmem:[#allocation69_spill] sm:$0xff]  ;;  %12869 = vst [vmem:[#allocation51_spill] sm:$0xff] %v11100_v43 }
 0x62c   : > { %3804 = vmatprep.subr.bf16.mxu0 %v10620_v6  ;;  %3845 = vmatprep.subr.bf16.mxu1 %v10623_v13  ;;  %v12838_v6 = vld [vmem:[#allocation70_spill] sm:$0xff]  ;;  %v12839_v13 = vld [vmem:[#allocation71_spill] sm:$0xff] }
 0x62d   : > { %3834 = vmatprep.mubr.bf16.mxu0 %v12646_v36  ;;  %3875 = vmatprep.mubr.bf16.mxu1 %v12646_v36 }
 0x62f   : > { %3805 = vmatpush1.bf16.msra.mxu0 %v10628_v4  ;;  %3846 = vmatpush1.bf16.msra.mxu1 %v10631_v2  ;;  %v12840_v4 = vld [vmem:[#allocation72_spill] sm:$0xff]  ;;  %v12841_v2 = vld [vmem:[#allocation73_spill] sm:$0xff] }
 0x630   : > { %3806 = vmatprep.subr.bf16.mxu0 %v10634_v41  ;;  %3847 = vmatprep.subr.bf16.mxu1 %v10637_v30  ;;  %v12842_v41 = vld [vmem:[#allocation74_spill] sm:$0xff]  ;;  %v12843_v30 = vld [vmem:[#allocation75_spill] sm:$0xff] }
 0x633   : > { %3807 = vmatpush1.bf16.msra.mxu0 %v10640_v56  ;;  %3848 = vmatpush1.bf16.msra.mxu1 %v10643_v12  ;;  %v12844_v56 = vld [vmem:[#allocation76_spill] sm:$0xff]  ;;  %v12845_v12 = vld [vmem:[#allocation23_spill] sm:$0xff] }
 0x634   : > { %3808 = vmatprep.subr.bf16.mxu0 %v10646_v8  ;;  %3849 = vmatprep.subr.bf16.mxu1 %v10649_v55  ;;  %v12846_v8 = vld [vmem:[#allocation24_spill] sm:$0xff]  ;;  %v3800_v55 = vpack.c.b16 %v3799_v50, %v3799_v50 }
 0x635   : > { %v11094_v50 = vld [vmem:[#allocation11 + $0x128] ss:$16 sps:$4 sm:$0xff]  }
 0x636   : > { %12867 = vst [vmem:[#allocation49_spill] sm:$0xff] %v11094_v50 }
 0x637   : > { %3809 = vmatpush1.bf16.msra.mxu0 %v10652_v22  ;;  %3850 = vmatpush1.bf16.msra.mxu1 %v10655_v29  ;;  %v12847_v22 = vld [vmem:[#allocation25_spill] sm:$0xff]  ;;  %v12848_v29 = vld [vmem:[#allocation26_spill] sm:$0xff] }
 0x638   : > { %3810 = vmatprep.subr.bf16.mxu0 %v10658_v9  ;;  %3851 = vmatprep.subr.bf16.mxu1 %v10661_v24  ;;  %v12849_v9 = vld [vmem:[#allocation27_spill] sm:$0xff]  ;;  %v12850_v24 = vld [vmem:[#allocation28_spill] sm:$0xff] }
 0x63b   : > { %3811 = vmatpush1.bf16.msra.mxu0 %v10664_v10  ;;  %3852 = vmatpush1.bf16.msra.mxu1 %v10667_v58  ;;  %v12851_v10 = vld [vmem:[#allocation29_spill] sm:$0xff] }
 0x63c   : > { %3812 = vmatprep.subr.bf16.mxu0 %v10670_v47  ;;  %3853 = vmatprep.subr.bf16.mxu1 %v12836_v26  ;;  %v12852_v58 = vld [vmem:[#allocation77_spill] sm:$0xff]  ;;  %v12853_v47 = vld [vmem:[#allocation78_spill] sm:$0xff] }
 0x63d   : > { %v11103_v26 = vld [vmem:[#allocation11 + $0x140] ss:$16 sps:$4 sm:$0xff]  }
 0x63e   : > { %12870 = vst [vmem:[#allocation52_spill] sm:$0xff] %v11103_v26 }
 0x63f   : > { %3813 = vmatpush1.bf16.msra.mxu0 %v12837_v15  ;;  %3854 = vmatpush1.bf16.msra.mxu1 %v12838_v6  ;;  %v11106_v15 = vld [vmem:[#allocation11 + $0x148] ss:$16 sps:$4 sm:$0xff]   ;;  %v11109_v6 = vld [vmem:[#allocation11 + $0x164] ss:$16 sps:$4 sm:$0xff]  }
 0x640   : > { %3814 = vmatprep.subr.bf16.mxu0 %v12839_v13  ;;  %3855 = vmatprep.subr.bf16.mxu1 %v12840_v4  ;;  %12871 = vst [vmem:[#allocation53_spill] sm:$0xff] %v11106_v15  ;;  %12872 = vst [vmem:[#allocation54_spill] sm:$0xff] %v11109_v6  ;;  %v11112_v13 = vld [vmem:[#allocation11 + $0x16c] ss:$16 sps:$4 sm:$0xff]   ;;  %v11115_v4 = vld [vmem:[#allocation11 + $0x160] ss:$16 sps:$4 sm:$0xff]  }
 0x641   : > { %12873 = vst [vmem:[#allocation55_spill] sm:$0xff] %v11112_v13  ;;  %12874 = vst [vmem:[#allocation56_spill] sm:$0xff] %v11115_v4 }
 0x643   : > { %3815 = vmatpush1.bf16.msra.mxu0 %v12841_v2  ;;  %3856 = vmatpush1.bf16.msra.mxu1 %v12842_v41  ;;  %v11118_v2 = vld [vmem:[#allocation11 + $0x168] ss:$16 sps:$4 sm:$0xff]   ;;  %v11121_v41 = vld [vmem:[#allocation11 + $0x184] ss:$16 sps:$4 sm:$0xff]  }
 0x644   : > { %3816 = vmatprep.subr.bf16.mxu0 %v12843_v30  ;;  %3857 = vmatprep.subr.bf16.mxu1 %v12844_v56  ;;  %12875 = vst [vmem:[#allocation57_spill] sm:$0xff] %v11118_v2  ;;  %12876 = vst [vmem:[#allocation58_spill] sm:$0xff] %v11121_v41  ;;  %v11124_v30 = vld [vmem:[#allocation11 + $0x18c] ss:$16 sps:$4 sm:$0xff]   ;;  %v11127_v56 = vld [vmem:[#allocation11 + $0x180] ss:$16 sps:$4 sm:$0xff]  }
 0x645   : > { %12877 = vst [vmem:[#allocation59_spill] sm:$0xff] %v11124_v30  ;;  %12878 = vst [vmem:[#allocation60_spill] sm:$0xff] %v11127_v56 }
 0x647   : > { %3817 = vmatpush1.bf16.msra.mxu0 %v12845_v12  ;;  %3858 = vmatpush1.bf16.msra.mxu1 %v12846_v8  ;;  %v11130_v12 = vld [vmem:[#allocation11 + $0x188] ss:$16 sps:$4 sm:$0xff]   ;;  %v11133_v8 = vld [vmem:[#allocation11 + $0x1a4] ss:$16 sps:$4 sm:$0xff]  }
 0x648   : > { %4280 = vmatprep.subr.bf16.mxu0 %v12847_v22  ;;  %4321 = vmatprep.subr.bf16.mxu1 %v12848_v29  ;;  %12879 = vst [vmem:[#allocation61_spill] sm:$0xff] %v11130_v12  ;;  %12880 = vst [vmem:[#allocation62_spill] sm:$0xff] %v11133_v8  ;;  %v11139_v22 = vld [vmem:[#allocation11 + $0x1a0] ss:$16 sps:$4 sm:$0xff]   ;;  %v11142_v29 = vld [vmem:[#allocation11 + $0x1a8] ss:$16 sps:$4 sm:$0xff]  }
 0x649   : > { %12882 = vst [vmem:[#allocation64_spill] sm:$0xff] %v11139_v22  ;;  %12883 = vst [vmem:[#allocation65_spill] sm:$0xff] %v11142_v29 }
 0x64a   : > { %3835 = vmatmul.mubr.bf16.vlgmr.msra.gmra.mrb[32].mxu0 %v3800_v55  ;;  %3876 = vmatmul.mubr.bf16.vlgmr.msra.gmra.mrb[32].mxu1 %v3800_v55  ;;  %v11136_v55 = vld [vmem:[#allocation11 + $0x1ac] ss:$16 sps:$4 sm:$0xff]  }
 0x64b   : > { %4281 = vmatpush1.bf16.msra.mxu0 %v12849_v9  ;;  %4322 = vmatpush1.bf16.msra.mxu1 %v12850_v24  ;;  %12881 = vst [vmem:[#allocation63_spill] sm:$0xff] %v11136_v55  ;;  %v11145_v9 = vld [vmem:[#allocation11 + $0x1c4] ss:$16 sps:$4 sm:$0xff]   ;;  %v11148_v24 = vld [vmem:[#allocation11 + $0x1cc] ss:$16 sps:$4 sm:$0xff]  }
 0x64c   : > { %4282 = vmatprep.subr.bf16.mxu0 %v12851_v10  ;;  %4323 = vmatprep.subr.bf16.mxu1 %v12852_v58  ;;  %12884 = vst [vmem:[#allocation66_spill] sm:$0xff] %v11145_v9  ;;  %12885 = vst [vmem:[#allocation67_spill] sm:$0xff] %v11148_v24  ;;  %v11151_v10 = vld [vmem:[#allocation11 + $0x1c0] ss:$16 sps:$4 sm:$0xff]   ;;  %v11154_v58 = vld [vmem:[#allocation11 + $0x1c8] ss:$16 sps:$4 sm:$0xff]  }
 0x64d   : > { %12886 = vst [vmem:[#allocation68_spill] sm:$0xff] %v11151_v10  ;;  %12887 = vst [vmem:[#allocation69_spill] sm:$0xff] %v11154_v58 }
 0x64f   : > { %4283 = vmatpush1.bf16.msra.mxu0 %v12853_v47  ;;  %4324 = vmatpush1.bf16.msra.mxu1 %v12854_v51  ;;  %v11157_v47 = vld [vmem:[#allocation11 + $0x1e4] ss:$16 sps:$4 sm:$0xff]   ;;  %v11160_v51 = vld [vmem:[#allocation11 + $0x1ec] ss:$16 sps:$4 sm:$0xff]  }
 0x650   : > { %4284 = vmatprep.subr.bf16.mxu0 %v11001_v59  ;;  %4325 = vmatprep.subr.bf16.mxu1 %v11004_v23  ;;  %12888 = vst [vmem:[#allocation70_spill] sm:$0xff] %v11157_v47  ;;  %12889 = vst [vmem:[#allocation71_spill] sm:$0xff] %v11160_v51 }
 0x653   : > { %4285 = vmatpush1.bf16.msra.mxu0 %v11007_v63  ;;  %4326 = vmatpush1.bf16.msra.mxu1 %v11010_v46 }
 0x654   : > { %4286 = vmatprep.subr.bf16.mxu0 %v11013_v39  ;;  %4327 = vmatprep.subr.bf16.mxu1 %v11016_v53 }
 0x657   : > { %4287 = vmatpush1.bf16.msra.mxu0 %v11019_v57  ;;  %4328 = vmatpush1.bf16.msra.mxu1 %v11022_v37 }
 0x658   : > { %4288 = vmatprep.subr.bf16.mxu0 %v11025_v27  ;;  %4329 = vmatprep.subr.bf16.mxu1 %v11028_v48 }
 0x65b   : > { %4289 = vmatpush1.bf16.msra.mxu0 %v11031_v38  ;;  %4330 = vmatpush1.bf16.msra.mxu1 %v11034_v18 }
 0x65c   : > { %4290 = vmatprep.subr.bf16.mxu0 %v11037_v0  ;;  %4331 = vmatprep.subr.bf16.mxu1 %v11040_v28 }
 0x65f   : > { %4291 = vmatpush1.bf16.msra.mxu0 %v11043_v62  ;;  %4332 = vmatpush1.bf16.msra.mxu1 %v11046_v60 }
 0x660   : > { %4292 = vmatprep.subr.bf16.mxu0 %v11049_v14  ;;  %4333 = vmatprep.subr.bf16.mxu1 %v11052_v45 }
 0x663   : > { %4293 = vmatpush1.bf16.msra.mxu0 %v11055_v61  ;;  %4334 = vmatpush1.bf16.msra.mxu1 %v11058_v19 }
 0x664   : > { %4294 = vmatprep.subr.bf16.mxu0 %v11061_v16  ;;  %4335 = vmatprep.subr.bf16.mxu1 %v11064_v3 }
 0x667   : > { %4295 = vmatpush1.bf16.msra.mxu0 %v11067_v21  ;;  %4336 = vmatpush1.bf16.msra.mxu1 %v11070_v54 }
 0x668   : > { %4296 = vmatprep.subr.bf16.mxu0 %v11073_v25  ;;  %4337 = vmatprep.subr.bf16.mxu1 %v11076_v40 }
 0x66b   : > { %4297 = vmatpush1.bf16.msra.mxu0 %v11079_v34  ;;  %4338 = vmatpush1.bf16.msra.mxu1 %v11082_v1 }
 0x66c   : > { %4298 = vmatprep.subr.bf16.mxu0 %v11085_v7  ;;  %4339 = vmatprep.subr.bf16.mxu1 %v11088_v33 }
 0x66f   : > { %4299 = vmatpush1.bf16.msra.mxu0 %v11091_v49  ;;  %4340 = vmatpush1.bf16.msra.mxu1 %v11094_v50 }
 0x670   : > { %4300 = vmatprep.subr.bf16.mxu0 %v11097_v5  ;;  %4341 = vmatprep.subr.bf16.mxu1 %v11100_v43  ;;  %v7056_v43 = vld [vmem:[%s9567_s1 + $0xa4] ss:$8 sm:$0xf] }
 0x671   : > { %v7057_v5 = vld [vmem:[%s9567_s1 + $0xc4] ss:$8 sm:$0xf] }
 0x673   : > { %4301 = vmatpush1.bf16.msra.mxu0 %v11103_v26  ;;  %4342 = vmatpush1.bf16.msra.mxu1 %v11106_v15 }
 0x674   : > { %4302 = vmatprep.subr.bf16.mxu0 %v11109_v6  ;;  %4343 = vmatprep.subr.bf16.mxu1 %v11112_v13 }
 0x677   : > { %4303 = vmatpush1.bf16.msra.mxu0 %v11115_v4  ;;  %4344 = vmatpush1.bf16.msra.mxu1 %v11118_v2 }
 0x678   : > { %4304 = vmatprep.subr.bf16.mxu0 %v11121_v41  ;;  %4345 = vmatprep.subr.bf16.mxu1 %v11124_v30 }
 0x67b   : > { %4305 = vmatpush1.bf16.msra.mxu0 %v11127_v56  ;;  %4346 = vmatpush1.bf16.msra.mxu1 %v11130_v12  ;;  %v12895_v56 = vld [vmem:[#allocation33_spill] sm:$0xff] }
 0x67c   : > { %4306 = vmatprep.subr.bf16.mxu0 %v11133_v8  ;;  %4347 = vmatprep.subr.bf16.mxu1 %v11136_v55  ;;  %v12894_v55 = vld [vmem:[#allocation32_spill] sm:$0xff] }
 0x67f   : > { %4307 = vmatpush1.bf16.msra.mxu0 %v11139_v22  ;;  %4348 = vmatpush1.bf16.msra.mxu1 %v11142_v29  ;;  %v12893_v29 = vld [vmem:[#allocation31_spill] sm:$0xff] }
 0x680   : > { %4308 = vmatprep.subr.bf16.mxu0 %v11145_v9  ;;  %4349 = vmatprep.subr.bf16.mxu1 %v11148_v24  ;;  %v11163_v9 = vld [vmem:[#allocation11 + $0x1e0] ss:$16 sps:$4 sm:$0xff]   ;;  %v11166_v24 = vld [vmem:[#allocation11 + $0x1e8] ss:$16 sps:$4 sm:$0xff]  }
 0x681   : > { %12890 = vst [vmem:[#allocation72_spill] sm:$0xff] %v11163_v9  ;;  %12891 = vst [vmem:[#allocation73_spill] sm:$0xff] %v11166_v24 }
 0x683   : > { %4309 = vmatpush1.bf16.msra.mxu0 %v11151_v10  ;;  %4350 = vmatpush1.bf16.msra.mxu1 %v11154_v58  ;;  %v12892_v10 = vld [vmem:[#allocation30_spill] sm:$0xff] }
 0x684   : > { %4310 = vmatprep.subr.bf16.mxu0 %v11157_v47  ;;  %4351 = vmatprep.subr.bf16.mxu1 %v11160_v51 }
 0x687   : > { %4311 = vmatpush1.bf16.msra.mxu0 %v11163_v9  ;;  %4352 = vmatpush1.bf16.msra.mxu1 %v11166_v24  ;;  %v12896_v24 = vld [vmem:[#allocation34_spill] sm:$0xff] }
 0x688   : > { %4508 = vmatprep.subr.bf16.mxu0 %v12892_v10  ;;  %4549 = vmatprep.subr.bf16.mxu1 %v12893_v29 }
 0x6fd   : > { %v3608_v58 = vpop.f32.mrb[28].mxu0  ;;  %v3649_v22 = vpop.f32.mrb[28].mxu1 }
 0x6fe   : > { %v3609_v47 = vadd.f32 %v12894_v55, %v3608_v58  ;;  %v3610_v8 = vpop.f32.mrb[29].mxu0  ;;  %v3651_v12 = vpop.f32.mrb[29].mxu1  ;;  %v3650_v10 = vadd.f32 %v12896_v24, %v3649_v22  ;;  %v12897_v55 = vld [vmem:[#allocation35_spill] sm:$0xff] }
 0x6ff   : > { %v3611_v51 = vadd.f32 %v12895_v56, %v3610_v8  ;;  %v3612_v30 = vpop.f32.mrb[30].mxu0  ;;  %v3653_v41 = vpop.f32.mrb[30].mxu1  ;;  %v3652_v58 = vadd.f32 %v12897_v55, %v3651_v12 }
 0x700   : > { %v7044_v2 = vmul.f32 -1.442695, %v3609_v47  ;;  %v3613_v9 = vpop.f32.mrb[31].mxu0  ;;  %v3654_v4 = vpop.f32.mrb[31].mxu1 }
 0x701   : > { %v7045_v13 = vmul.f32 -1.442695, %v3611_v51  ;;  %v7046_v56 = vmul.f32 -1.442695, %v3652_v58  ;;  %v12898_v9 = vld [vmem:[#allocation36_spill] sm:$0xff] }
 0x702   : > { %8060 = vpow2.f32 %v7044_v2 }
 0x703   : > { %8062 = vpow2.f32 %v7045_v13 }
 0x704   : > { %8064 = vtanh.f32 %v3650_v10 }
 0x70c   : > { %v8061_v6 = vpop.eup %8060 }
 0x70d   : > { %v8063_v29 = vpop.eup %8062  ;;  %v3659_v15 = vadd.f32 1.0, %v8061_v6 }
 0x70e   : > { %v3665_v26 = vadd.f32 1.0, %v8063_v29  ;;  %v8065_v30 = vpop.eup %8064 }
 0x70f   : > { %8066 = vrcp.f32 %v3659_v15 }
 0x710   : > { %8068 = vrcp.f32 %v3665_v26 }
 0x711   : > { %8070 = vpow2.f32 %v7046_v56 }
 0x719   : > { %v8067_v41 = vpop.eup %8066 }
 0x71a   : > { %v8069_v8 = vpop.eup %8068  ;;  %v3676_v4 = vmul.f32 %v8067_v41, %v8065_v30 }
 0x71b   : > { %v3675_v2 = vmul.f32 %v8069_v8, %v12898_v9  ;;  %v7051_v9 = vld [vmem:[%s9567_s1 + $0x4] ss:$8 sm:$0xf] }
 0x71d   : > { %v11176_v13 = vadd.f32 %v3676_v4, %v3675_v2  ;;  %v3836_v22 = vpop.f32.mrb[32].mxu0  ;;  %v3877_v24 = vpop.f32.mrb[32].mxu1 }
 0x71e   : > { %v3838_v6 = vpop.f32.mrb[33].mxu0  ;;  %v3879_v47 = vpop.f32.mrb[33].mxu1 }
 0x71f   : > { %12899 = vst [vmem:[#allocation74_spill] sm:$0xff] %v11176_v13  ;;  %v3888_v51 = vcombine.low %v3836_v22, %v3838_v6  ;;  %v3889_v15 = vcombine.high %v3836_v22, %v3838_v6  ;;  %v3890_v26 = vcombine.low %v3877_v24, %v3879_v47  ;;  %v3891_v12 = vcombine.high %v3877_v24, %v3879_v47  ;;  %v3840_v10 = vpop.f32.mrb[34].mxu0  ;;  %v3881_v29 = vpop.f32.mrb[34].mxu1  ;;  %v7052_v47 = vld [vmem:[%s9567_s1 + $0x24] ss:$8 sm:$0xf] }
 0x720   : > { %v3841_v55 = vpop.f32.mrb[35].mxu0  ;;  %v3882_v58 = vpop.f32.mrb[35].mxu1  ;;  %v7053_v10 = vld [vmem:[%s9567_s1 + $0x44] ss:$8 sm:$0xf]  ;;  %8072 = vtanh.f32 %v11176_v13 }
 0x721   : > { %v3898_v56 = vrot.slane %v3888_v51, %v9766_v35  ;;  %v3905_v30 = vrot.slane %v3889_v15, %v9766_v35  ;;  %v3912_v41 = vrot.slane %v3890_v26, %v9766_v35  ;;  %v3919_v8 = vrot.slane %v3891_v12, %v9766_v35  ;;  %v8071_v4 = vpop.eup %8070  ;;  %v7054_v29 = vld [vmem:[%s9567_s1 + $0x64] ss:$8 sm:$0xf] }
 0x722   : > { %v7055_v55 = vld [vmem:[%s9567_s1 + $0x84] ss:$8 sm:$0xf]  ;;  %v3672_v58 = vadd.f32 1.0, %v8071_v4 }
 0x723   : > { %v3920_v2 = vcombine.low %v3898_v56, %v3912_v41  ;;  %v3921_v22 = vcombine.high %v3898_v56, %v3912_v41  ;;  %v3922_v24 = vcombine.low %v3905_v30, %v3919_v8  ;;  %v3923_v6 = vcombine.high %v3905_v30, %v3919_v8  ;;  %v7058_v8 = vld [vmem:[%s9567_s1 + $0xe4] ss:$8 sm:$0xf] }
 0x724   : > { %8074 = vrcp.f32 %v3672_v58 }
 0x725   : > { %v3930_v51 = vrot.slane %v3920_v2, %v9766_v35  ;;  %v3937_v15 = vrot.slane %v3922_v24, %v9766_v35  ;;  %v3944_v26 = vrot.slane %v3921_v22, %v9766_v35  ;;  %v3951_v12 = vrot.slane %v3923_v6, %v9766_v35 }
 0x727   : > { %v3952_v50 = vcombine.high %v3930_v51, %v3930_v51  ;;  %v3953_v56 = vcombine.high %v3937_v15, %v3937_v15  ;;  %v3954_v41 = vcombine.high %v3944_v26, %v3944_v26  ;;  %v3955_v30 = vcombine.high %v3951_v12, %v3951_v12 }
 0x728   : > { %v11194_v49 = vadd.f32 %v7051_v9, %v3930_v51  ;;  %v11196_v33 = vadd.f32 %v7052_v47, %v3944_v26  ;;  %v11198_v7 = vadd.f32 %v7055_v55, %v3937_v15  ;;  %v11204_v22 = vadd.f32 %v7056_v43, %v3951_v12 }
 0x729   : > { %v11200_v2 = vadd.f32 %v7053_v10, %v3952_v50  ;;  %v11202_v24 = vadd.f32 %v7054_v29, %v3954_v41  ;;  %v11206_v4 = vadd.f32 %v7057_v5, %v3953_v56  ;;  %v11211_v9 = vadd.f32 %v7058_v8, %v3955_v30 }
 0x72a   : > { %v7059_v6 = vmul.f32 -1.442695, %v11194_v49  ;;  %v7060_v1 = vmul.f32 -1.442695, %v11196_v33  ;;  %v7063_v10 = vmul.f32 -1.442695, %v11198_v7  ;;  %v8073_v30 = vpop.eup %8072 }
 0x72b   : > { %v7061_v47 = vmul.f32 -1.442695, %v11200_v2  ;;  %v7062_v50 = vmul.f32 -1.442695, %v11202_v24  ;;  %v4028_v43 = vrot.slane %v11194_v49, 1  ;;  %v4029_v29 = vrot.slane %v11196_v33, 1 }
 0x72c   : > { %8076 = vpow2.f32 %v7059_v6  ;;  %v7064_v5 = vmul.f32 -1.442695, %v11204_v22  ;;  %v7065_v55 = vmul.f32 -1.442695, %v11206_v4  ;;  %v4030_v51 = vrot.slane %v11200_v2, 1 }
 0x72d   : > { %8078 = vpow2.f32 %v7060_v1  ;;  %v7066_v15 = vmul.f32 -1.442695, %v11211_v9  ;;  %v4031_v26 = vrot.slane %v11202_v24, 1  ;;  %v4032_v12 = vrot.slane %v11198_v7, 1 }
 0x72e   : > { %8080 = vpow2.f32 %v7061_v47  ;;  %v7067_v58 = vmul.f32 -1.442695, %v4028_v43  ;;  %v7068_v1 = vmul.f32 -1.442695, %v4029_v29  ;;  %v7069_v56 = vmul.f32 -1.442695, %v4030_v51  ;;  %v8075_v6 = vpop.eup %8074 }
 0x72f   : > { %8082 = vpow2.f32 %v7062_v50  ;;  %v7070_v41 = vmul.f32 -1.442695, %v4031_v26  ;;  %v7071_v8 = vmul.f32 -1.442695, %v4032_v12  ;;  %v3679_v34 = vmul.f32 %v8075_v6, %v8073_v30 }
 0x730   : > { %8084 = vpow2.f32 %v7063_v10  ;;  %v4033_v10 = vrot.slane %v11204_v22, 1  ;;  %v4034_v51 = vrot.slane %v11206_v4, 1  ;;  %v4035_v12 = vrot.slane %v11211_v9, 1 }
 0x731   : > { %8086 = vpow2.f32 %v7064_v5  ;;  %v4279_v6 = vpack.c.bf16 %v3679_v34, %v3679_v34  ;;  %v4123_v16 = vrot.slane %v11211_v9, 3 }
 0x732   : > { %8088 = vpow2.f32 %v7065_v55 }
 0x733   : > { %8090 = vpow2.f32 %v7066_v15  ;;  %4312 = vmatprep.mubr.bf16.mxu0 %v4279_v6  ;;  %4353 = vmatprep.mubr.bf16.mxu1 %v4279_v6 }
 0x734   : > { %8092 = vpow2.f32 %v7067_v58 }
 0x735   : > { %8094 = vpow2.f32 %v7068_v1 }
 0x736   : > { %v8077_v47 = vpop.eup %8076  ;;  %8096 = vpow2.f32 %v7069_v56  ;;  %v7072_v56 = vmul.f32 -1.442695, %v4033_v10 }
 0x737   : > { %v8079_v50 = vpop.eup %8078  ;;  %v3996_v13 = vadd.f32 1.0, %v8077_v47  ;;  %8098 = vpow2.f32 %v7070_v41  ;;  %v3681_v47 = vcombine.high %v3679_v34, %v3679_v34 }
 0x738   : > { %v8081_v43 = vpop.eup %8080  ;;  %v3997_v5 = vadd.f32 1.0, %v8079_v50  ;;  %8100 = vpow2.f32 %v7071_v8  ;;  %v3688_v8 = vrot.slane %v3679_v34, %v9766_v35  ;;  %v7074_v34 = vmul.f32 -1.442695, %v4035_v12 }
 0x739   : > { %v8083_v29 = vpop.eup %8082  ;;  %v3998_v55 = vadd.f32 1.0, %v8081_v43  ;;  %8102 = vrcp.f32 %v3996_v13  ;;  %v7073_v43 = vmul.f32 -1.442695, %v4034_v51 }
 0x73a   : > { %v8085_v15 = vpop.eup %8084  ;;  %v3999_v26 = vadd.f32 1.0, %v8083_v29  ;;  %8104 = vrcp.f32 %v3997_v5  ;;  %v3695_v5 = vrot.slane %v3681_v47, %v9766_v35  ;;  %v3704_v10 = vrot.slane %v3688_v8, %v9766_v35  ;;  %7047 = vst.sshfl [vmem:[%s9585_s30 + $0x3] sm:$0x1 pattern:$0x73625140] %v3688_v8 }
 0x73b   : > { %v8087_v58 = vpop.eup %8086  ;;  %v4000_v1 = vadd.f32 1.0, %v8085_v15  ;;  %8106 = vrcp.f32 %v3998_v55  ;;  %v3696_v55 = vcombine.high %v3688_v8, %v3688_v8 }
 0x73c   : > { %v8089_v41 = vpop.eup %8088  ;;  %v4001_v30 = vadd.f32 1.0, %v8087_v58  ;;  %8108 = vrcp.f32 %v3999_v26  ;;  %v3697_v26 = vcombine.high %v3695_v5, %v3695_v5  ;;  %v3711_v58 = vrot.slane %v3695_v5, %v9766_v35  ;;  %7049 = vst.sshfl [vmem:[%s9585_s30 + $0x23] sm:$0x1 pattern:$0x73625140] %v3695_v5 }
 0x73d   : > { %v8091_v13 = vpop.eup %8090  ;;  %v4002_v50 = vadd.f32 1.0, %v8089_v41  ;;  %8110 = vrcp.f32 %v4000_v1  ;;  %v3718_v47 = vrot.slane %v3696_v55, %v9766_v35  ;;  %v3726_v41 = vcombine.high %v3704_v10, %v3704_v10  ;;  %7048 = vst.sshfl [vmem:[%s9585_s30 + $0xb] sm:$0x1 pattern:$0x73625140] %v3696_v55 }
 0x73e   : > { %v8093_v29 = vpop.eup %8092  ;;  %v4003_v40 = vadd.f32 1.0, %v8091_v13  ;;  %8112 = vrcp.f32 %v4001_v30  ;;  %v3725_v6 = vrot.slane %v3697_v26, %v9766_v35  ;;  %v3727_v12 = vcombine.high %v3711_v58, %v3711_v58  ;;  %7050 = vst.sshfl [vmem:[%s9585_s30 + $0x2b] sm:$0x1 pattern:$0x73625140] %v3697_v26 }
 0x73f   : > { %v8095_v15 = vpop.eup %8094  ;;  %8114 = vrcp.f32 %v4002_v50  ;;  %v4068_v1 = vadd.f32 1.0, %v8093_v29  ;;  %v3728_v5 = vcombine.high %v3718_v47, %v3718_v47  ;;  %3740 = vst [vmem:[%s9585_s30 + $0x13] sm:$0x1] %v3726_v41  ;;  %v4093_v58 = vrot.slane %v11196_v33, 2 }
 0x740   : > { %v8097_v51 = vpop.eup %8096  ;;  %8116 = vrcp.f32 %v4003_v40  ;;  %v4069_v8 = vadd.f32 1.0, %v8095_v15  ;;  %v3729_v55 = vcombine.high %v3725_v6, %v3725_v6  ;;  %3744 = vst [vmem:[%s9585_s30 + $0x33] sm:$0x1] %v3727_v12 }
 0x741   : > { %v8099_v30 = vpop.eup %8098  ;;  %8118 = vpow2.f32 %v7072_v56  ;;  %v4070_v50 = vadd.f32 1.0, %v8097_v51  ;;  %3741 = vst [vmem:[%s9585_s30 + $0x1b] sm:$0x1] %v3728_v5  ;;  %v4094_v51 = vrot.slane %v11200_v2, 2 }
 0x742   : > { %v8101_v13 = vpop.eup %8100  ;;  %8120 = vpow2.f32 %v7073_v43  ;;  %v4071_v29 = vadd.f32 1.0, %v8099_v30  ;;  %v4092_v43 = vrot.slane %v11194_v49, 2  ;;  %3745 = vst [vmem:[%s9585_s30 + $0x3b] sm:$0x1] %v3729_v55  ;;  %v4096_v30 = vrot.slane %v11198_v7, 2 }
 0x743   : > { %v11238_v40 = vpop.eup %8102  ;;  %8122 = vpow2.f32 %v7074_v34  ;;  %v4072_v56 = vadd.f32 1.0, %v8101_v13  ;;  %v4097_v55 = vrot.slane %v11204_v22, 2 }
 0x744   : > { %v11241_v10 = vpop.eup %8104  ;;  %8124 = vrcp.f32 %v4068_v1  ;;  %v4095_v1 = vrot.slane %v11202_v24, 2 }
 0x745   : > { %v11244_v15 = vpop.eup %8106  ;;  %8126 = vrcp.f32 %v4069_v8 }
 0x746   : > { %v11248_v26 = vpop.eup %8108  ;;  %8128 = vrcp.f32 %v4070_v50  ;;  %v4116_v50 = vrot.slane %v11194_v49, 3  ;;  %v4119_v49 = vrot.slane %v11202_v24, 3 }
 0x747   : > { %v11251_v34 = vpop.eup %8110  ;;  %8130 = vrcp.f32 %v4071_v29 }
 0x748   : > { %v11254_v47 = vpop.eup %8112  ;;  %8132 = vrcp.f32 %v4072_v56  ;;  %v4117_v56 = vrot.slane %v11196_v33, 3  ;;  %v4121_v33 = vrot.slane %v11204_v22, 3  ;;  %v7078_v24 = vmul.f32 -1.442695, %v4119_v49 }
 0x749   : > { %v11257_v41 = vpop.eup %8114  ;;  %8134 = vtanh.f32 %v4092_v43  ;;  %v4098_v43 = vrot.slane %v11206_v4, 2 }
 0x74a   : > { %v11260_v8 = vpop.eup %8116  ;;  %8136 = vtanh.f32 %v4093_v58  ;;  %v4118_v58 = vrot.slane %v11200_v2, 3  ;;  %v4122_v2 = vrot.slane %v11206_v4, 3 }
 0x74b   : > { %v8119_v6 = vpop.eup %8118  ;;  %8138 = vtanh.f32 %v4094_v51 }
 0x74c   : > { %v8121_v12 = vpop.eup %8120  ;;  %v4073_v13 = vadd.f32 1.0, %v8119_v6  ;;  %8140 = vtanh.f32 %v4095_v1  ;;  %v4099_v1 = vrot.slane %v11211_v9, 2  ;;  %v7077_v3 = vmul.f32 -1.442695, %v4118_v58 }
 0x74d   : > { %v8123_v5 = vpop.eup %8122  ;;  %v4074_v29 = vadd.f32 1.0, %v8121_v12  ;;  %8142 = vtanh.f32 %v4096_v30  ;;  %v4120_v12 = vrot.slane %v11198_v7, 3  ;;  %v7075_v30 = vmul.f32 -1.442695, %v4116_v50 }
 0x74e   : > { %v8125_v25 = vpop.eup %8124  ;;  %v4075_v54 = vadd.f32 1.0, %v8123_v5  ;;  %8144 = vrcp.f32 %v4073_v13  ;;  %v7076_v13 = vmul.f32 -1.442695, %v4117_v56  ;;  %v7082_v9 = vmul.f32 -1.442695, %v4123_v16 }
 0x74f   : > { %v8127_v51 = vpop.eup %8126  ;;  %8146 = vrcp.f32 %v4074_v29  ;;  %v4180_v7 = vmul.f32 %v8125_v25, %v10916_v52 }
 0x750   : > { %v8129_v6 = vpop.eup %8128  ;;  %8148 = vrcp.f32 %v4075_v54  ;;  %v7079_v54 = vmul.f32 -1.442695, %v4120_v12  ;;  %v4181_v22 = vmul.f32 %v8127_v51, %v10919_v44 }
 0x751   : > { %v8131_v21 = vpop.eup %8130  ;;  %8150 = vtanh.f32 %v4097_v55  ;;  %v7080_v55 = vmul.f32 -1.442695, %v4121_v33  ;;  %v4182_v58 = vmul.f32 %v8129_v6, %v10922_v11 }
 0x752   : > { %v8133_v5 = vpop.eup %8132  ;;  %8152 = vtanh.f32 %v4098_v43  ;;  %v7081_v43 = vmul.f32 -1.442695, %v4122_v2  ;;  %v4183_v12 = vmul.f32 %v8131_v21, %v10924_v31 }
 0x753   : > { %v8135_v29 = vpop.eup %8134  ;;  %8154 = vtanh.f32 %v4099_v1  ;;  %v4184_v44 = vmul.f32 %v8133_v5, %v10926_v32 }
 0x754   : > { %v8137_v19 = vpop.eup %8136  ;;  %8156 = vpow2.f32 %v7075_v30  ;;  %v4188_v4 = vmul.f32 %v8135_v29, %v11238_v40 }
 0x755   : > { %v8139_v50 = vpop.eup %8138  ;;  %8158 = vpow2.f32 %v7076_v13  ;;  %v4189_v49 = vmul.f32 %v8137_v19, %v11241_v10 }
 0x756   : > { %v8141_v56 = vpop.eup %8140  ;;  %8160 = vpow2.f32 %v7077_v3  ;;  %v4190_v25 = vmul.f32 %v8139_v50, %v11244_v15  ;;  %v11281_v51 = vadd.f32 %v4188_v4, %v4180_v7 }
 0x757   : > { %v8143_v1 = vpop.eup %8142  ;;  %8162 = vpow2.f32 %v7078_v24  ;;  %v4191_v40 = vmul.f32 %v8141_v56, %v11248_v26  ;;  %v11284_v11 = vadd.f32 %v4189_v49, %v4181_v22 }
 0x758   : > { %v8145_v52 = vpop.eup %8144  ;;  %8164 = vpow2.f32 %v7079_v54  ;;  %v4192_v19 = vmul.f32 %v8143_v1, %v11251_v34  ;;  %v11287_v16 = vadd.f32 %v4190_v25, %v4182_v58 }
 0x759   : > { %v8147_v3 = vpop.eup %8146  ;;  %8166 = vpow2.f32 %v7080_v55  ;;  %v11289_v21 = vadd.f32 %v4191_v40, %v4183_v12  ;;  %v4185_v29 = vmul.f32 %v8145_v52, %v10939_v42 }
 0x75a   : > { %v8149_v6 = vpop.eup %8148  ;;  %8168 = vpow2.f32 %v7081_v43  ;;  %v11291_v32 = vadd.f32 %v4192_v19, %v4184_v44  ;;  %v4186_v7 = vmul.f32 %v8147_v3, %v10941_v20 }
 0x75b   : > { %v8151_v31 = vpop.eup %8150  ;;  %8170 = vpow2.f32 %v7082_v9  ;;  %v4187_v56 = vmul.f32 %v8149_v6, %v10943_v17 }
 0x75c   : > { %v8153_v10 = vpop.eup %8152  ;;  %8172 = vtanh.f32 %v11281_v51  ;;  %v4193_v22 = vmul.f32 %v8151_v31, %v11254_v47 }
 0x75d   : > { %v8155_v15 = vpop.eup %8154  ;;  %8174 = vtanh.f32 %v11284_v11  ;;  %v4194_v58 = vmul.f32 %v8153_v10, %v11257_v41 }
 0x75e   : > { %v8157_v26 = vpop.eup %8156  ;;  %8176 = vtanh.f32 %v11287_v16  ;;  %v4195_v42 = vmul.f32 %v8155_v15, %v11260_v8  ;;  %v11304_v49 = vadd.f32 %v4193_v22, %v4185_v29 }
 0x75f   : > { %v8159_v30 = vpop.eup %8158  ;;  %v4156_v33 = vadd.f32 1.0, %v8157_v26  ;;  %8178 = vtanh.f32 %v11289_v21  ;;  %v11306_v52 = vadd.f32 %v4194_v58, %v4186_v7 }
 0x760   : > { %v8161_v34 = vpop.eup %8160  ;;  %v4157_v13 = vadd.f32 1.0, %v8159_v30  ;;  %8180 = vtanh.f32 %v11291_v32  ;;  %v11308_v17 = vadd.f32 %v4195_v42, %v4187_v56 }
 0x761   : > { %v8163_v5 = vpop.eup %8162  ;;  %v4158_v2 = vadd.f32 1.0, %v8161_v34  ;;  %8182 = vrcp.f32 %v4156_v33 }
 0x762   : > { %v8165_v24 = vpop.eup %8164  ;;  %v4159_v54 = vadd.f32 1.0, %v8163_v5  ;;  %8184 = vrcp.f32 %v4157_v13 }
 0x763   : > { %v8167_v50 = vpop.eup %8166  ;;  %v4160_v55 = vadd.f32 1.0, %v8165_v24  ;;  %8186 = vrcp.f32 %v4158_v2 }
 0x764   : > { %v8169_v43 = vpop.eup %8168  ;;  %v4161_v4 = vadd.f32 1.0, %v8167_v50  ;;  %8188 = vrcp.f32 %v4159_v54 }
 0x765   : > { %v8171_v1 = vpop.eup %8170  ;;  %v4162_v9 = vadd.f32 1.0, %v8169_v43  ;;  %8190 = vrcp.f32 %v4160_v55 }
 0x766   : > { %v8173_v20 = vpop.eup %8172  ;;  %v4163_v12 = vadd.f32 1.0, %v8171_v1  ;;  %8192 = vrcp.f32 %v4161_v4 }
 0x767   : > { %v8175_v47 = vpop.eup %8174  ;;  %8194 = vrcp.f32 %v4162_v9 }
 0x768   : > { %v8177_v25 = vpop.eup %8176  ;;  %8196 = vrcp.f32 %v4163_v12 }
 0x769   : > { %v8179_v44 = vpop.eup %8178  ;;  %8198 = vtanh.f32 %v11304_v49 }
 0x76a   : > { %v8181_v41 = vpop.eup %8180  ;;  %8200 = vtanh.f32 %v11306_v52 }
 0x76b   : > { %v8183_v8 = vpop.eup %8182  ;;  %8202 = vtanh.f32 %v11308_v17 }
 0x76c   : > { %v8185_v3 = vpop.eup %8184  ;;  %v4212_v40 = vmul.f32 %v8183_v8, %v8173_v20 }
 0x76d   : > { %v8187_v6 = vpop.eup %8186  ;;  %v4213_v19 = vmul.f32 %v8185_v3, %v8175_v47 }
 0x76e   : > { %v8189_v31 = vpop.eup %8188  ;;  %v4214_v10 = vmul.f32 %v8187_v6, %v8177_v25  ;;  %v4468_v15 = vpack.c.bf16 %v4212_v40, %v4212_v40 }
 0x76f   : > { %v8191_v26 = vpop.eup %8190  ;;  %v4215_v30 = vmul.f32 %v8189_v31, %v8179_v44  ;;  %v4228_v33 = vcombine.low %v4212_v40, %v4213_v19  ;;  %v4469_v34 = vpack.c.bf16 %v4213_v19, %v4213_v19 }
 0x770   : > { %v8193_v13 = vpop.eup %8192  ;;  %v4216_v5 = vmul.f32 %v8191_v26, %v8181_v41  ;;  %v4470_v2 = vpack.c.bf16 %v4214_v10, %v4214_v10  ;;  %v4484_v55 = vunpack.c.l.b16 %v4468_v15 }
 0x771   : > { %v8195_v29 = vpop.eup %8194  ;;  %v4229_v24 = vcombine.low %v4214_v10, %v4215_v30  ;;  %v4471_v54 = vpack.c.bf16 %v4215_v30, %v4215_v30  ;;  %v4485_v7 = vunpack.c.l.b16 %v4469_v34  ;;  %v4238_v4 = vrot.slane %v4228_v33, %v9766_v35 }
 0x772   : > { %v8197_v50 = vpop.eup %8196  ;;  %v4486_v22 = vunpack.c.l.b16 %v4470_v2  ;;  %v4472_v56 = vpack.c.bf16 %v4216_v5, %v4216_v5 }
 0x773   : > { %v8199_v43 = vpop.eup %8198  ;;  %v4245_v58 = vrot.slane %v4229_v24, %v9766_v35  ;;  %v4487_v1 = vunpack.c.l.b16 %v4471_v54  ;;  %v4492_v9 = vrot.slane %v4485_v7, 7 }
 0x774   : > { %v8201_v42 = vpop.eup %8200  ;;  %v4217_v20 = vmul.f32 %v8199_v43, %v8193_v13  ;;  %v4494_v12 = vrot.slane %v4486_v22, 6  ;;  %v4488_v47 = vunpack.c.l.b16 %v4472_v56 }
 0x775   : > { %v8203_v25 = vpop.eup %8202  ;;  %v4218_v44 = vmul.f32 %v8201_v42, %v8195_v29  ;;  %v4260_v41 = vcombine.low %v4238_v4, %v4245_v58  ;;  %v4496_v8 = vrot.slane %v4487_v1, 5  ;;  %v4493_v3 = vsel %vm1662_vm0, %v4492_v9, %v4484_v55  ;;  %v11328_v42 = vld [vmem:[#allocation9] ss:$16 sps:$4 sm:$0xff]  }
 0x776   : > { %v4219_v40 = vmul.f32 %v8203_v25, %v8197_v50  ;;  %v4230_v6 = vcombine.low %v4216_v5, %v4217_v20  ;;  %v4473_v19 = vpack.c.bf16 %v4217_v20, %v4217_v20  ;;  %v4495_v31 = vsel %vm1665_vm1, %v4494_v12, %v4493_v3  ;;  %v11331_v20 = vld [vmem:[#allocation9 + $0x8] ss:$16 sps:$4 sm:$0xff]   ;;  %v11334_v12 = vld [vmem:[#allocation9 + $0x24] ss:$16 sps:$4 sm:$0xff]   ;;  %v11342_v25 = vld [vmem:[#allocation9 + $0x20] ss:$16 sps:$4 sm:$0xff]  }
 0x777   : > { %v4474_v10 = vpack.c.bf16 %v4218_v44, %v4218_v44  ;;  %v4497_v15 = vsel %vm1668_vm2, %v4496_v8, %v4495_v31  ;;  %v4498_v26 = vrot.slane %v4488_v47, 4  ;;  %v4268_v55 = vrot.slane %v4260_v41, %v9766_v35  ;;  %v11337_v47 = vld [vmem:[#allocation9 + $0x2c] ss:$16 sps:$4 sm:$0xff]   ;;  %v11348_v41 = vld [vmem:[#allocation9 + $0x44] ss:$16 sps:$4 sm:$0xff]  }
 0x778   : > { %v4231_v30 = vcombine.low %v4218_v44, %v4219_v40  ;;  %v4475_v33 = vpack.c.bf16 %v4219_v40, %v4219_v40  ;;  %v4489_v34 = vunpack.c.l.b16 %v4473_v19  ;;  %v4252_v29 = vrot.slane %v4230_v6, %v9766_v35  ;;  %v11345_v44 = vld [vmem:[#allocation9 + $0x28] ss:$16 sps:$4 sm:$0xff]   ;;  %v11351_v8 = vld [vmem:[#allocation9 + $0x4c] ss:$16 sps:$4 sm:$0xff]   ;;  %v11354_v3 = vld [vmem:[#allocation9 + $0x40] ss:$16 sps:$4 sm:$0xff]  }
 0x779   : > { %v4490_v13 = vunpack.c.l.b16 %v4474_v10  ;;  %v4499_v2 = vsel %vm1671_vm3, %v4498_v26, %v4497_v15  ;;  %v11357_v40 = vld [vmem:[#allocation9 + $0x48] ss:$16 sps:$4 sm:$0xff]   ;;  %v11360_v6 = vld [vmem:[#allocation9 + $0x64] ss:$16 sps:$4 sm:$0xff]   ;;  %v11363_v19 = vld [vmem:[#allocation9 + $0x6c] ss:$16 sps:$4 sm:$0xff]  }
 0x77a   : > { %v4259_v24 = vrot.slane %v4231_v30, %v9766_v35  ;;  %v4491_v54 = vunpack.c.l.b16 %v4475_v33  ;;  %v4500_v7 = vrot.slane %v4489_v34, 3  ;;  %v11366_v31 = vld [vmem:[#allocation9 + $0x60] ss:$16 sps:$4 sm:$0xff]   ;;  %v11369_v10 = vld [vmem:[#allocation9 + $0x68] ss:$16 sps:$4 sm:$0xff]  }
 0x77b   : > { %v4502_v5 = vrot.slane %v4490_v13, 2  ;;  %v11372_v15 = vld [vmem:[#allocation9 + $0x84] ss:$16 sps:$4 sm:$0xff]   ;;  %v11375_v26 = vld [vmem:[#allocation9 + $0x8c] ss:$16 sps:$4 sm:$0xff]  }
 0x77c   : > { %v4261_v50 = vcombine.low %v4252_v29, %v4259_v24  ;;  %v4501_v22 = vsel %vm1674_vm4, %v4500_v7, %v4499_v2  ;;  %v4504_v56 = vrot.slane %v4491_v54, 1  ;;  %v11378_v30 = vld [vmem:[#allocation9 + $0x80] ss:$16 sps:$4 sm:$0xff]   ;;  %v11381_v33 = vld [vmem:[#allocation9 + $0x88] ss:$16 sps:$4 sm:$0xff]  }
 0x77d   : > { %v4503_v43 = vsel %vm1677_vm5, %v4502_v5, %v4501_v22  ;;  %v11384_v34 = vld [vmem:[#allocation9 + $0xa4] ss:$16 sps:$4 sm:$0xff]   ;;  %v11387_v13 = vld [vmem:[#allocation9 + $0xac] ss:$16 sps:$4 sm:$0xff]   ;;  %v11390_v2 = vld [vmem:[#allocation9 + $0xa0] ss:$16 sps:$4 sm:$0xff]  }
 0x77e   : > { %v4275_v4 = vrot.slane %v4261_v50, %v9766_v35  ;;  %v11326_v58 = vsel %vm1680_vm6, %v4504_v56, %v4503_v43  ;;  %12900 = vst [vmem:[#allocation75_spill] sm:$0xff] %v11387_v13  ;;  %12901 = vst [vmem:[#allocation76_spill] sm:$0xff] %v11390_v2  ;;  %v11393_v29 = vld [vmem:[#allocation9 + $0xa8] ss:$16 sps:$4 sm:$0xff]   ;;  %v11396_v24 = vld [vmem:[#allocation9 + $0xc4] ss:$16 sps:$4 sm:$0xff]  }
 0x77f   : > { %12902 = vst [vmem:[#allocation23_spill] sm:$0xff] %v11393_v29  ;;  %12903 = vst [vmem:[#allocation24_spill] sm:$0xff] %v11396_v24  ;;  %v11399_v54 = vld [vmem:[#allocation9 + $0xcc] ss:$16 sps:$4 sm:$0xff]   ;;  %v11402_v7 = vld [vmem:[#allocation9 + $0xc0] ss:$16 sps:$4 sm:$0xff]   ;;  %v4506_v43 = vpack.c.b16 %v11326_v58, %v11326_v58 }
 0x780   : > { %v4276_v1 = vcombine.low %v4268_v55, %v4275_v4  ;;  %12904 = vst [vmem:[#allocation25_spill] sm:$0xff] %v11399_v54  ;;  %12905 = vst [vmem:[#allocation26_spill] sm:$0xff] %v11402_v7  ;;  %v11405_v5 = vld [vmem:[#allocation9 + $0xc8] ss:$16 sps:$4 sm:$0xff]   ;;  %v11408_v50 = vld [vmem:[#allocation9 + $0xe4] ss:$16 sps:$4 sm:$0xff]  }
 0x781   : > { %12906 = vst [vmem:[#allocation27_spill] sm:$0xff] %v11405_v5  ;;  %12907 = vst [vmem:[#allocation28_spill] sm:$0xff] %v11408_v50  ;;  %v11411_v55 = vld [vmem:[#allocation9 + $0xec] ss:$16 sps:$4 sm:$0xff]   ;;  %v11414_v22 = vld [vmem:[#allocation9 + $0xe0] ss:$16 sps:$4 sm:$0xff]  }
 0x782   : > { %v4278_v9 = vpack.c.bf16 %v4276_v1, %v4276_v1  ;;  %12908 = vst [vmem:[#allocation29_spill] sm:$0xff] %v11411_v55  ;;  %12909 = vst [vmem:[#allocation77_spill] sm:$0xff] %v11414_v22  ;;  %v11417_v56 = vld [vmem:[#allocation9 + $0xe8] ss:$16 sps:$4 sm:$0xff]   ;;  %v11422_v4 = vld [vmem:[#allocation11 + $0x4] ss:$16 sps:$4 sm:$0xff]  }
 0x783   : > { %12910 = vst [vmem:[#allocation78_spill] sm:$0xff] %v11417_v56  ;;  %12911 = vst [vmem:[#allocation79_spill] sm:$0xff] %v11422_v4  ;;  %v11425_v1 = vld [vmem:[#allocation11 + $0xc] ss:$16 sps:$4 sm:$0xff]  }
 0x784   : > { %4313 = vmatmul.mubr.bf16.vlgmr.msra.gmra.mrb[36].mxu0 %v4278_v9  ;;  %4354 = vmatmul.mubr.bf16.vlgmr.msra.gmra.mrb[36].mxu1 %v4278_v9  ;;  %12912 = vst [vmem:[#allocation30_spill] sm:$0xff] %v11425_v1  ;;  %v11428_v9 = vld [vmem:[#allocation11] ss:$16 sps:$4 sm:$0xff]   ;;  %v11437_v58 = vld [vmem:[#allocation11 + $0x2c] ss:$16 sps:$4 sm:$0xff]  }
 0x785   : > { %4509 = vmatpush1.bf16.msra.mxu0 %v11328_v42  ;;  %4550 = vmatpush1.bf16.msra.mxu1 %v11331_v20  ;;  %12913 = vst [vmem:[#allocation31_spill] sm:$0xff] %v11428_v9  ;;  %12916 = vst [vmem:[#allocation34_spill] sm:$0xff] %v11437_v58 }
 0x786   : > { %4510 = vmatprep.subr.bf16.mxu0 %v11334_v12  ;;  %4551 = vmatprep.subr.bf16.mxu1 %v11337_v47 }
 0x787   : > { %4540 = vmatprep.mubr.bf16.mxu0 %v12646_v36  ;;  %4581 = vmatprep.mubr.bf16.mxu1 %v12646_v36 }
 0x789   : > { %4511 = vmatpush1.bf16.msra.mxu0 %v11342_v25  ;;  %4552 = vmatpush1.bf16.msra.mxu1 %v11345_v44 }
 0x78a   : > { %4512 = vmatprep.subr.bf16.mxu0 %v11348_v41  ;;  %4553 = vmatprep.subr.bf16.mxu1 %v11351_v8 }
 0x78d   : > { %4513 = vmatpush1.bf16.msra.mxu0 %v11354_v3  ;;  %4554 = vmatpush1.bf16.msra.mxu1 %v11357_v40 }
 0x78e   : > { %4514 = vmatprep.subr.bf16.mxu0 %v11360_v6  ;;  %4555 = vmatprep.subr.bf16.mxu1 %v11363_v19 }
 0x791   : > { %4515 = vmatpush1.bf16.msra.mxu0 %v11366_v31  ;;  %4556 = vmatpush1.bf16.msra.mxu1 %v11369_v10 }
 0x792   : > { %4516 = vmatprep.subr.bf16.mxu0 %v11372_v15  ;;  %4557 = vmatprep.subr.bf16.mxu1 %v11375_v26 }
 0x795   : > { %4517 = vmatpush1.bf16.msra.mxu0 %v11378_v30  ;;  %4558 = vmatpush1.bf16.msra.mxu1 %v11381_v33 }
 0x796   : > { %4518 = vmatprep.subr.bf16.mxu0 %v11384_v34  ;;  %4559 = vmatprep.subr.bf16.mxu1 %v11387_v13 }
 0x799   : > { %4519 = vmatpush1.bf16.msra.mxu0 %v11390_v2  ;;  %4560 = vmatpush1.bf16.msra.mxu1 %v11393_v29 }
 0x79a   : > { %4520 = vmatprep.subr.bf16.mxu0 %v11396_v24  ;;  %4561 = vmatprep.subr.bf16.mxu1 %v11399_v54 }
 0x79d   : > { %4521 = vmatpush1.bf16.msra.mxu0 %v11402_v7  ;;  %4562 = vmatpush1.bf16.msra.mxu1 %v11405_v5 }
 0x79e   : > { %4522 = vmatprep.subr.bf16.mxu0 %v11408_v50  ;;  %4563 = vmatprep.subr.bf16.mxu1 %v11411_v55 }
 0x7a1   : > { %4523 = vmatpush1.bf16.msra.mxu0 %v11414_v22  ;;  %4564 = vmatpush1.bf16.msra.mxu1 %v11417_v56  ;;  %v11431_v22 = vld [vmem:[#allocation11 + $0x8] ss:$16 sps:$4 sm:$0xff]   ;;  %v11434_v56 = vld [vmem:[#allocation11 + $0x24] ss:$16 sps:$4 sm:$0xff]  }
 0x7a2   : > { %4986 = vmatprep.subr.bf16.mxu0 %v11422_v4  ;;  %5027 = vmatprep.subr.bf16.mxu1 %v11425_v1  ;;  %12914 = vst [vmem:[#allocation32_spill] sm:$0xff] %v11431_v22  ;;  %12915 = vst [vmem:[#allocation33_spill] sm:$0xff] %v11434_v56  ;;  %v11440_v4 = vld [vmem:[#allocation11 + $0x20] ss:$16 sps:$4 sm:$0xff]  }
 0x7a3   : > { %12917 = vst [vmem:[#allocation35_spill] sm:$0xff] %v11440_v4 }
 0x7a4   : > { %4541 = vmatmul.mubr.bf16.vlgmr.msra.gmra.mrb[40].mxu0 %v4506_v43  ;;  %4582 = vmatmul.mubr.bf16.vlgmr.msra.gmra.mrb[40].mxu1 %v4506_v43  ;;  %v11443_v43 = vld [vmem:[#allocation11 + $0x28] ss:$16 sps:$4 sm:$0xff]  }
 0x7a5   : > { %4987 = vmatpush1.bf16.msra.mxu0 %v11428_v9  ;;  %5028 = vmatpush1.bf16.msra.mxu1 %v11431_v22  ;;  %12918 = vst [vmem:[#allocation36_spill] sm:$0xff] %v11443_v43 }
 0x7a6   : > { %4988 = vmatprep.subr.bf16.mxu0 %v11434_v56  ;;  %5029 = vmatprep.subr.bf16.mxu1 %v11437_v58  ;;  %v7096_v58 = vld [vmem:[%s9567_s1 + $0xc5] ss:$8 sm:$0xf] }
 0x7a9   : > { %4989 = vmatpush1.bf16.msra.mxu0 %v11440_v4  ;;  %5030 = vmatpush1.bf16.msra.mxu1 %v11443_v43  ;;  %v7095_v4 = vld [vmem:[%s9567_s1 + $0xa5] ss:$8 sm:$0xf] }
 0x7aa   : > { %4990 = vmatprep.subr.bf16.mxu0 %v11001_v59  ;;  %5031 = vmatprep.subr.bf16.mxu1 %v11004_v23  ;;  %v12919_v59 = vld [vmem:[#allocation37_spill] sm:$0xff]  ;;  %v12920_v23 = vld [vmem:[#allocation38_spill] sm:$0xff] }
 0x7ad   : > { %4991 = vmatpush1.bf16.msra.mxu0 %v11007_v63  ;;  %5032 = vmatpush1.bf16.msra.mxu1 %v11010_v46  ;;  %v12921_v63 = vld [vmem:[#allocation39_spill] sm:$0xff]  ;;  %v12922_v46 = vld [vmem:[#allocation40_spill] sm:$0xff] }
 0x7ae   : > { %4992 = vmatprep.subr.bf16.mxu0 %v11013_v39  ;;  %5033 = vmatprep.subr.bf16.mxu1 %v11016_v53  ;;  %v12923_v39 = vld [vmem:[#allocation41_spill] sm:$0xff]  ;;  %v12924_v53 = vld [vmem:[#allocation42_spill] sm:$0xff] }
 0x7b1   : > { %4993 = vmatpush1.bf16.msra.mxu0 %v11019_v57  ;;  %5034 = vmatpush1.bf16.msra.mxu1 %v11022_v37  ;;  %v12925_v57 = vld [vmem:[#allocation43_spill] sm:$0xff]  ;;  %v12926_v37 = vld [vmem:[#allocation44_spill] sm:$0xff] }
 0x7b2   : > { %4994 = vmatprep.subr.bf16.mxu0 %v11025_v27  ;;  %5035 = vmatprep.subr.bf16.mxu1 %v11028_v48  ;;  %v12927_v27 = vld [vmem:[#allocation45_spill] sm:$0xff]  ;;  %v12928_v48 = vld [vmem:[#allocation46_spill] sm:$0xff] }
 0x7b5   : > { %4995 = vmatpush1.bf16.msra.mxu0 %v11031_v38  ;;  %5036 = vmatpush1.bf16.msra.mxu1 %v11034_v18  ;;  %v12929_v38 = vld [vmem:[#allocation47_spill] sm:$0xff]  ;;  %v12930_v18 = vld [vmem:[#allocation48_spill] sm:$0xff] }
 0x7b6   : > { %4996 = vmatprep.subr.bf16.mxu0 %v11037_v0  ;;  %5037 = vmatprep.subr.bf16.mxu1 %v11040_v28  ;;  %v12931_v0 = vld [vmem:[#allocation49_spill] sm:$0xff]  ;;  %v12932_v28 = vld [vmem:[#allocation50_spill] sm:$0xff] }
 0x7b9   : > { %4997 = vmatpush1.bf16.msra.mxu0 %v11043_v62  ;;  %5038 = vmatpush1.bf16.msra.mxu1 %v11046_v60  ;;  %v12933_v62 = vld [vmem:[#allocation51_spill] sm:$0xff]  ;;  %v12934_v60 = vld [vmem:[#allocation52_spill] sm:$0xff] }
 0x7ba   : > { %4998 = vmatprep.subr.bf16.mxu0 %v11049_v14  ;;  %5039 = vmatprep.subr.bf16.mxu1 %v11052_v45  ;;  %v12935_v14 = vld [vmem:[#allocation53_spill] sm:$0xff]  ;;  %v12936_v45 = vld [vmem:[#allocation54_spill] sm:$0xff] }
 0x7bd   : > { %4999 = vmatpush1.bf16.msra.mxu0 %v11055_v61  ;;  %5040 = vmatpush1.bf16.msra.mxu1 %v12919_v59  ;;  %v12937_v61 = vld [vmem:[#allocation55_spill] sm:$0xff]  ;;  %v12938_v59 = vld [vmem:[#allocation56_spill] sm:$0xff] }
 0x7be   : > { %5000 = vmatprep.subr.bf16.mxu0 %v12920_v23  ;;  %5041 = vmatprep.subr.bf16.mxu1 %v12921_v63  ;;  %v12939_v23 = vld [vmem:[#allocation57_spill] sm:$0xff]  ;;  %v12940_v63 = vld [vmem:[#allocation58_spill] sm:$0xff] }
 0x7c1   : > { %5001 = vmatpush1.bf16.msra.mxu0 %v12922_v46  ;;  %5042 = vmatpush1.bf16.msra.mxu1 %v12923_v39  ;;  %v12941_v46 = vld [vmem:[#allocation59_spill] sm:$0xff]  ;;  %v12942_v39 = vld [vmem:[#allocation60_spill] sm:$0xff] }
 0x7c2   : > { %5002 = vmatprep.subr.bf16.mxu0 %v12924_v53  ;;  %5043 = vmatprep.subr.bf16.mxu1 %v12925_v57  ;;  %v12943_v53 = vld [vmem:[#allocation61_spill] sm:$0xff]  ;;  %v12944_v57 = vld [vmem:[#allocation62_spill] sm:$0xff] }
 0x7c5   : > { %5003 = vmatpush1.bf16.msra.mxu0 %v12926_v37  ;;  %5044 = vmatpush1.bf16.msra.mxu1 %v12927_v27  ;;  %v12945_v37 = vld [vmem:[#allocation63_spill] sm:$0xff]  ;;  %v12946_v27 = vld [vmem:[#allocation64_spill] sm:$0xff] }
 0x7c6   : > { %5004 = vmatprep.subr.bf16.mxu0 %v12928_v48  ;;  %5045 = vmatprep.subr.bf16.mxu1 %v12929_v38  ;;  %v12947_v48 = vld [vmem:[#allocation65_spill] sm:$0xff]  ;;  %v12948_v38 = vld [vmem:[#allocation66_spill] sm:$0xff] }
 0x7c9   : > { %5005 = vmatpush1.bf16.msra.mxu0 %v12930_v18  ;;  %5046 = vmatpush1.bf16.msra.mxu1 %v12931_v0  ;;  %v12949_v18 = vld [vmem:[#allocation67_spill] sm:$0xff]  ;;  %v12950_v0 = vld [vmem:[#allocation68_spill] sm:$0xff] }
 0x7ca   : > { %5006 = vmatprep.subr.bf16.mxu0 %v12932_v28  ;;  %5047 = vmatprep.subr.bf16.mxu1 %v12933_v62  ;;  %v12951_v28 = vld [vmem:[#allocation69_spill] sm:$0xff]  ;;  %v12952_v62 = vld [vmem:[#allocation70_spill] sm:$0xff] }
 0x7cd   : > { %5007 = vmatpush1.bf16.msra.mxu0 %v12934_v60  ;;  %5048 = vmatpush1.bf16.msra.mxu1 %v12935_v14  ;;  %v12953_v60 = vld [vmem:[#allocation71_spill] sm:$0xff]  ;;  %v12954_v14 = vld [vmem:[#allocation72_spill] sm:$0xff] }
 0x7ce   : > { %5008 = vmatprep.subr.bf16.mxu0 %v12936_v45  ;;  %5049 = vmatprep.subr.bf16.mxu1 %v12937_v61  ;;  %v12955_v45 = vld [vmem:[#allocation73_spill] sm:$0xff] }
 0x7cf   : > { %v11502_v61 = vld [vmem:[#allocation9 + $0x4] ss:$16 sps:$4 sm:$0xff]  }
 0x7d0   : > { %12956 = vst [vmem:[#allocation37_spill] sm:$0xff] %v11502_v61 }
 0x7d1   : > { %5009 = vmatpush1.bf16.msra.mxu0 %v12938_v59  ;;  %5050 = vmatpush1.bf16.msra.mxu1 %v12939_v23  ;;  %v11505_v59 = vld [vmem:[#allocation9 + $0xc] ss:$16 sps:$4 sm:$0xff]  }
 0x7d2   : > { %5010 = vmatprep.subr.bf16.mxu0 %v12940_v63  ;;  %5051 = vmatprep.subr.bf16.mxu1 %v12941_v46  ;;  %12957 = vst [vmem:[#allocation38_spill] sm:$0xff] %v11505_v59  ;;  %v11509_v46 = vld [vmem:[%s9578_s10] sm:$0xff] }
 0x7d3   : > { %12958 = vst [vmem:[#allocation39_spill] sm:$0xff] %v11509_v46 }
 0x7d5   : > { %5011 = vmatpush1.bf16.msra.mxu0 %v12942_v39  ;;  %5052 = vmatpush1.bf16.msra.mxu1 %v12943_v53 }
 0x7d6   : > { %5012 = vmatprep.subr.bf16.mxu0 %v12944_v57  ;;  %5053 = vmatprep.subr.bf16.mxu1 %v12945_v37  ;;  %v11513_v37 = vld [vmem:[%s9578_s10 + $0x8] sm:$0xff] }
 0x7d7   : > { %12959 = vst [vmem:[#allocation40_spill] sm:$0xff] %v11513_v37 }
 0x7d9   : > { %5013 = vmatpush1.bf16.msra.mxu0 %v12946_v27  ;;  %5054 = vmatpush1.bf16.msra.mxu1 %v12947_v48 }
 0x7da   : > { %5014 = vmatprep.subr.bf16.mxu0 %v12948_v38  ;;  %5055 = vmatprep.subr.bf16.mxu1 %v12949_v18 }
 0x7dd   : > { %5015 = vmatpush1.bf16.msra.mxu0 %v12950_v0  ;;  %5056 = vmatpush1.bf16.msra.mxu1 %v12951_v28 }
 0x7de   : > { %5016 = vmatprep.subr.bf16.mxu0 %v12952_v62  ;;  %5057 = vmatprep.subr.bf16.mxu1 %v12953_v60  ;;  %v11517_v60 = vld [vmem:[%s9578_s10 + $0x10] sm:$0xff] }
 0x7df   : > { %12960 = vst [vmem:[#allocation41_spill] sm:$0xff] %v11517_v60 }
 0x7e1   : > { %5017 = vmatpush1.bf16.msra.mxu0 %v12954_v14  ;;  %5058 = vmatpush1.bf16.msra.mxu1 %v12955_v45 }
 0x7e2   : > { %5214 = vmatprep.subr.bf16.mxu0 %v11502_v61  ;;  %5255 = vmatprep.subr.bf16.mxu1 %v11505_v59  ;;  %v7094_v61 = vld [vmem:[%s9567_s1 + $0x85] ss:$8 sm:$0xf] }
 0x857   : > { %v4314_v23 = vpop.f32.mrb[36].mxu0  ;;  %v4355_v63 = vpop.f32.mrb[36].mxu1 }
 0x858   : > { %v4315_v39 = vadd.f32 %v11509_v46, %v4314_v23  ;;  %v4316_v53 = vpop.f32.mrb[37].mxu0  ;;  %v4357_v57 = vpop.f32.mrb[37].mxu1  ;;  %v4356_v14 = vadd.f32 %v11517_v60, %v4355_v63 }
 0x859   : > { %v4317_v27 = vadd.f32 %v11513_v37, %v4316_v53  ;;  %v4318_v48 = vpop.f32.mrb[38].mxu0  ;;  %v4359_v38 = vpop.f32.mrb[38].mxu1  ;;  %v11521_v53 = vld [vmem:[%s9578_s10 + $0x18] sm:$0xff] }
 0x85a   : > { %v7083_v18 = vmul.f32 -1.442695, %v4315_v39  ;;  %v4319_v0 = vpop.f32.mrb[39].mxu0  ;;  %v4360_v28 = vpop.f32.mrb[39].mxu1  ;;  %12961 = vst [vmem:[#allocation42_spill] sm:$0xff] %v11521_v53  ;;  %v4358_v39 = vadd.f32 %v11521_v53, %v4357_v57 }
 0x85b   : > { %v7084_v62 = vmul.f32 -1.442695, %v4317_v27  ;;  %v12962_v28 = vld [vmem:[#allocation74_spill] sm:$0xff] }
 0x85c   : > { %8204 = vpow2.f32 %v7083_v18  ;;  %v7085_v48 = vmul.f32 -1.442695, %v4358_v39 }
 0x85d   : > { %8206 = vpow2.f32 %v7084_v62 }
 0x85e   : > { %8208 = vtanh.f32 %v4356_v14 }
 0x866   : > { %v8205_v45 = vpop.eup %8204 }
 0x867   : > { %v8207_v23 = vpop.eup %8206  ;;  %v4365_v46 = vadd.f32 1.0, %v8205_v45 }
 0x868   : > { %v4371_v59 = vadd.f32 1.0, %v8207_v23  ;;  %v8209_v38 = vpop.eup %8208 }
 0x869   : > { %8210 = vrcp.f32 %v4365_v46 }
 0x86a   : > { %8212 = vrcp.f32 %v4371_v59 }
 0x86b   : > { %8214 = vpow2.f32 %v7085_v48 }
 0x873   : > { %v8211_v27 = vpop.eup %8210 }
 0x874   : > { %v8213_v18 = vpop.eup %8212  ;;  %v4382_v0 = vmul.f32 %v8211_v27, %v8209_v38 }
 0x875   : > { %v4381_v62 = vmul.f32 %v8213_v18, %v12962_v28 }
 0x877   : > { %v11525_v63 = vadd.f32 %v4382_v0, %v4381_v62  ;;  %v4542_v60 = vpop.f32.mrb[40].mxu0  ;;  %v4583_v45 = vpop.f32.mrb[40].mxu1 }
 0x878   : > { %v4544_v14 = vpop.f32.mrb[41].mxu0  ;;  %v4585_v46 = vpop.f32.mrb[41].mxu1 }
 0x879   : > { %12963 = vst [vmem:[#allocation43_spill] sm:$0xff] %v11525_v63  ;;  %v4594_v59 = vcombine.low %v4542_v60, %v4544_v14  ;;  %v4595_v23 = vcombine.high %v4542_v60, %v4544_v14  ;;  %v4596_v37 = vcombine.low %v4583_v45, %v4585_v46  ;;  %v4597_v57 = vcombine.high %v4583_v45, %v4585_v46  ;;  %v4546_v39 = vpop.f32.mrb[42].mxu0  ;;  %v4587_v48 = vpop.f32.mrb[42].mxu1  ;;  %v7090_v14 = vld [vmem:[%s9567_s1 + $0x5] ss:$8 sm:$0xf] }
 0x87a   : > { %v4547_v38 = vpop.f32.mrb[43].mxu0  ;;  %v4588_v27 = vpop.f32.mrb[43].mxu1  ;;  %v7091_v48 = vld [vmem:[%s9567_s1 + $0x25] ss:$8 sm:$0xf]  ;;  %8216 = vtanh.f32 %v11525_v63 }
 0x87b   : > { %v4604_v18 = vrot.slane %v4594_v59, %v9766_v35  ;;  %v4611_v0 = vrot.slane %v4595_v23, %v9766_v35  ;;  %v4618_v28 = vrot.slane %v4596_v37, %v9766_v35  ;;  %v4625_v62 = vrot.slane %v4597_v57, %v9766_v35  ;;  %v8215_v60 = vpop.eup %8214  ;;  %v7092_v38 = vld [vmem:[%s9567_s1 + $0x45] ss:$8 sm:$0xf] }
 0x87c   : > { %v7093_v27 = vld [vmem:[%s9567_s1 + $0x65] ss:$8 sm:$0xf]  ;;  %v4378_v43 = vadd.f32 1.0, %v8215_v60 }
 0x87d   : > { %v4626_v45 = vcombine.low %v4604_v18, %v4618_v28  ;;  %v4627_v46 = vcombine.high %v4604_v18, %v4618_v28  ;;  %v4628_v39 = vcombine.low %v4611_v0, %v4625_v62  ;;  %v4629_v53 = vcombine.high %v4611_v0, %v4625_v62  ;;  %v7097_v62 = vld [vmem:[%s9567_s1 + $0xe5] ss:$8 sm:$0xf] }
 0x87e   : > { %8218 = vrcp.f32 %v4378_v43 }
 0x87f   : > { %v4636_v59 = vrot.slane %v4626_v45, %v9766_v35  ;;  %v4643_v23 = vrot.slane %v4628_v39, %v9766_v35  ;;  %v4650_v37 = vrot.slane %v4627_v46, %v9766_v35  ;;  %v4657_v57 = vrot.slane %v4629_v53, %v9766_v35 }
 0x881   : > { %v4658_v56 = vcombine.high %v4636_v59, %v4636_v59  ;;  %v4659_v18 = vcombine.high %v4643_v23, %v4643_v23  ;;  %v4660_v28 = vcombine.high %v4650_v37, %v4650_v37  ;;  %v4661_v0 = vcombine.high %v4657_v57, %v4657_v57 }
 0x882   : > { %v11543_v22 = vadd.f32 %v7090_v14, %v4636_v59  ;;  %v11545_v9 = vadd.f32 %v7091_v48, %v4650_v37  ;;  %v11547_v1 = vadd.f32 %v7094_v61, %v4643_v23  ;;  %v11553_v46 = vadd.f32 %v7095_v4, %v4657_v57 }
 0x883   : > { %v11549_v45 = vadd.f32 %v7092_v38, %v4658_v56  ;;  %v11551_v39 = vadd.f32 %v7093_v27, %v4660_v28  ;;  %v11555_v53 = vadd.f32 %v7096_v58, %v4659_v18  ;;  %v11560_v14 = vadd.f32 %v7097_v62, %v4661_v0 }
 0x884   : > { %v7098_v60 = vmul.f32 -1.442695, %v11543_v22  ;;  %v7099_v55 = vmul.f32 -1.442695, %v11545_v9  ;;  %v7102_v48 = vmul.f32 -1.442695, %v11547_v1  ;;  %v8217_v0 = vpop.eup %8216 }
 0x885   : > { %v7100_v61 = vmul.f32 -1.442695, %v11549_v45  ;;  %v7101_v56 = vmul.f32 -1.442695, %v11551_v39  ;;  %v4734_v4 = vrot.slane %v11543_v22, 1  ;;  %v4735_v38 = vrot.slane %v11545_v9, 1 }
 0x886   : > { %8220 = vpow2.f32 %v7098_v60  ;;  %v7103_v58 = vmul.f32 -1.442695, %v11553_v46  ;;  %v7104_v27 = vmul.f32 -1.442695, %v11555_v53  ;;  %v4736_v43 = vrot.slane %v11549_v45, 1 }
 0x887   : > { %8222 = vpow2.f32 %v7099_v55  ;;  %v7105_v59 = vmul.f32 -1.442695, %v11560_v14  ;;  %v4737_v23 = vrot.slane %v11551_v39, 1  ;;  %v4738_v37 = vrot.slane %v11547_v1, 1 }
 0x888   : > { %8224 = vpow2.f32 %v7100_v61  ;;  %v7106_v57 = vmul.f32 -1.442695, %v4734_v4  ;;  %v7107_v55 = vmul.f32 -1.442695, %v4735_v38  ;;  %v7108_v18 = vmul.f32 -1.442695, %v4736_v43  ;;  %v8219_v60 = vpop.eup %8218 }
 0x889   : > { %8226 = vpow2.f32 %v7101_v56  ;;  %v7109_v28 = vmul.f32 -1.442695, %v4737_v23  ;;  %v7110_v62 = vmul.f32 -1.442695, %v4738_v37  ;;  %v4385_v50 = vmul.f32 %v8219_v60, %v8217_v0 }
 0x88a   : > { %8228 = vpow2.f32 %v7102_v48  ;;  %v4739_v48 = vrot.slane %v11553_v46, 1  ;;  %v4740_v43 = vrot.slane %v11555_v53, 1  ;;  %v4741_v37 = vrot.slane %v11560_v14, 1 }
 0x88b   : > { %8230 = vpow2.f32 %v7103_v58  ;;  %v4985_v60 = vpack.c.bf16 %v4385_v50, %v4385_v50  ;;  %v4829_v2 = vrot.slane %v11560_v14, 3 }
 0x88c   : > { %8232 = vpow2.f32 %v7104_v27 }
 0x88d   : > { %8234 = vpow2.f32 %v7105_v59  ;;  %5018 = vmatprep.mubr.bf16.mxu0 %v4985_v60  ;;  %5059 = vmatprep.mubr.bf16.mxu1 %v4985_v60 }
 0x88e   : > { %8236 = vpow2.f32 %v7106_v57 }
 0x88f   : > { %8238 = vpow2.f32 %v7107_v55 }
 0x890   : > { %v8221_v61 = vpop.eup %8220  ;;  %8240 = vpow2.f32 %v7108_v18  ;;  %v7111_v18 = vmul.f32 -1.442695, %v4739_v48 }
 0x891   : > { %v8223_v56 = vpop.eup %8222  ;;  %v4702_v63 = vadd.f32 1.0, %v8221_v61  ;;  %8242 = vpow2.f32 %v7109_v28  ;;  %v4387_v61 = vcombine.high %v4385_v50, %v4385_v50 }
 0x892   : > { %v8225_v4 = vpop.eup %8224  ;;  %v4703_v58 = vadd.f32 1.0, %v8223_v56  ;;  %8244 = vpow2.f32 %v7110_v62  ;;  %v4394_v62 = vrot.slane %v4385_v50, %v9766_v35  ;;  %v7113_v50 = vmul.f32 -1.442695, %v4741_v37 }
 0x893   : > { %v8227_v38 = vpop.eup %8226  ;;  %v4704_v27 = vadd.f32 1.0, %v8225_v4  ;;  %8246 = vrcp.f32 %v4702_v63  ;;  %v7112_v4 = vmul.f32 -1.442695, %v4740_v43 }
 0x894   : > { %v8229_v59 = vpop.eup %8228  ;;  %v4705_v23 = vadd.f32 1.0, %v8227_v38  ;;  %8248 = vrcp.f32 %v4703_v58  ;;  %v4401_v58 = vrot.slane %v4387_v61, %v9766_v35  ;;  %v4410_v48 = vrot.slane %v4394_v62, %v9766_v35  ;;  %7086 = vst.sshfl [vmem:[%s9585_s30 + $0x4] sm:$0x1 pattern:$0x73625140] %v4394_v62 }
 0x895   : > { %v8231_v57 = vpop.eup %8230  ;;  %v4706_v55 = vadd.f32 1.0, %v8229_v59  ;;  %8250 = vrcp.f32 %v4704_v27  ;;  %v4402_v27 = vcombine.high %v4394_v62, %v4394_v62 }
 0x896   : > { %v8233_v28 = vpop.eup %8232  ;;  %v4707_v0 = vadd.f32 1.0, %v8231_v57  ;;  %8252 = vrcp.f32 %v4705_v23  ;;  %v4403_v23 = vcombine.high %v4401_v58, %v4401_v58  ;;  %v4417_v57 = vrot.slane %v4401_v58, %v9766_v35  ;;  %7088 = vst.sshfl [vmem:[%s9585_s30 + $0x24] sm:$0x1 pattern:$0x73625140] %v4401_v58 }
 0x897   : > { %v8235_v63 = vpop.eup %8234  ;;  %v4708_v56 = vadd.f32 1.0, %v8233_v28  ;;  %8254 = vrcp.f32 %v4706_v55  ;;  %v4424_v61 = vrot.slane %v4402_v27, %v9766_v35  ;;  %v4432_v28 = vcombine.high %v4410_v48, %v4410_v48  ;;  %7087 = vst.sshfl [vmem:[%s9585_s30 + $0xc] sm:$0x1 pattern:$0x73625140] %v4402_v27 }
 0x898   : > { %v8237_v38 = vpop.eup %8236  ;;  %v4709_v5 = vadd.f32 1.0, %v8235_v63  ;;  %8256 = vrcp.f32 %v4707_v0  ;;  %v4431_v60 = vrot.slane %v4403_v23, %v9766_v35  ;;  %v4433_v37 = vcombine.high %v4417_v57, %v4417_v57  ;;  %7089 = vst.sshfl [vmem:[%s9585_s30 + $0x2c] sm:$0x1 pattern:$0x73625140] %v4403_v23 }
 0x899   : > { %v8239_v59 = vpop.eup %8238  ;;  %8258 = vrcp.f32 %v4708_v56  ;;  %v4774_v55 = vadd.f32 1.0, %v8237_v38  ;;  %v4434_v58 = vcombine.high %v4424_v61, %v4424_v61  ;;  %4446 = vst [vmem:[%s9585_s30 + $0x14] sm:$0x1] %v4432_v28  ;;  %v4799_v57 = vrot.slane %v11545_v9, 2 }
 0x89a   : > { %v8241_v43 = vpop.eup %8240  ;;  %8260 = vrcp.f32 %v4709_v5  ;;  %v4775_v62 = vadd.f32 1.0, %v8239_v59  ;;  %v4435_v27 = vcombine.high %v4431_v60, %v4431_v60  ;;  %4450 = vst [vmem:[%s9585_s30 + $0x34] sm:$0x1] %v4433_v37 }
 0x89b   : > { %v8243_v0 = vpop.eup %8242  ;;  %8262 = vpow2.f32 %v7111_v18  ;;  %v4776_v56 = vadd.f32 1.0, %v8241_v43  ;;  %4447 = vst [vmem:[%s9585_s30 + $0x1c] sm:$0x1] %v4434_v58  ;;  %v4800_v43 = vrot.slane %v11549_v45, 2 }
 0x89c   : > { %v8245_v63 = vpop.eup %8244  ;;  %8264 = vpow2.f32 %v7112_v4  ;;  %v4777_v38 = vadd.f32 1.0, %v8243_v0  ;;  %v4798_v4 = vrot.slane %v11543_v22, 2  ;;  %4451 = vst [vmem:[%s9585_s30 + $0x3c] sm:$0x1] %v4435_v27  ;;  %v4802_v0 = vrot.slane %v11547_v1, 2 }
 0x89d   : > { %v11587_v5 = vpop.eup %8246  ;;  %8266 = vpow2.f32 %v7113_v50  ;;  %v4778_v18 = vadd.f32 1.0, %v8245_v63  ;;  %v4803_v27 = vrot.slane %v11553_v46, 2 }
 0x89e   : > { %v11590_v48 = vpop.eup %8248  ;;  %8268 = vrcp.f32 %v4774_v55  ;;  %v4801_v55 = vrot.slane %v11551_v39, 2 }
 0x89f   : > { %v11593_v59 = vpop.eup %8250  ;;  %8270 = vrcp.f32 %v4775_v62 }
 0x8a0   : > { %v11597_v23 = vpop.eup %8252  ;;  %8272 = vrcp.f32 %v4776_v56  ;;  %v4822_v56 = vrot.slane %v11543_v22, 3  ;;  %v4825_v22 = vrot.slane %v11551_v39, 3 }
 0x8a1   : > { %v11600_v50 = vpop.eup %8254  ;;  %8274 = vrcp.f32 %v4777_v38 }
 0x8a2   : > { %v11603_v61 = vpop.eup %8256  ;;  %8276 = vrcp.f32 %v4778_v18  ;;  %v4823_v18 = vrot.slane %v11545_v9, 3  ;;  %v4827_v9 = vrot.slane %v11553_v46, 3  ;;  %v7117_v39 = vmul.f32 -1.442695, %v4825_v22 }
 0x8a3   : > { %v11606_v28 = vpop.eup %8258  ;;  %8278 = vtanh.f32 %v4798_v4  ;;  %v4804_v4 = vrot.slane %v11555_v53, 2 }
 0x8a4   : > { %v11609_v62 = vpop.eup %8260  ;;  %8280 = vtanh.f32 %v4799_v57  ;;  %v4824_v57 = vrot.slane %v11549_v45, 3  ;;  %v4828_v45 = vrot.slane %v11555_v53, 3 }
 0x8a5   : > { %v8263_v60 = vpop.eup %8262  ;;  %8282 = vtanh.f32 %v4800_v43 }
 0x8a6   : > { %v8265_v37 = vpop.eup %8264  ;;  %v4779_v63 = vadd.f32 1.0, %v8263_v60  ;;  %8284 = vtanh.f32 %v4801_v55  ;;  %v4805_v55 = vrot.slane %v11560_v14, 2  ;;  %v7116_v29 = vmul.f32 -1.442695, %v4824_v57 }
 0x8a7   : > { %v8267_v58 = vpop.eup %8266  ;;  %v4780_v38 = vadd.f32 1.0, %v8265_v37  ;;  %8286 = vtanh.f32 %v4802_v0  ;;  %v4826_v37 = vrot.slane %v11547_v1, 3  ;;  %v7114_v0 = vmul.f32 -1.442695, %v4822_v56 }
 0x8a8   : > { %v8269_v7 = vpop.eup %8268  ;;  %v4781_v54 = vadd.f32 1.0, %v8267_v58  ;;  %8288 = vrcp.f32 %v4779_v63  ;;  %v7115_v63 = vmul.f32 -1.442695, %v4823_v18  ;;  %v7121_v14 = vmul.f32 -1.442695, %v4829_v2 }
 0x8a9   : > { %v8271_v43 = vpop.eup %8270  ;;  %8290 = vrcp.f32 %v4780_v38  ;;  %v4886_v1 = vmul.f32 %v8269_v7, %v11281_v51 }
 0x8aa   : > { %v8273_v60 = vpop.eup %8272  ;;  %8292 = vrcp.f32 %v4781_v54  ;;  %v7118_v54 = vmul.f32 -1.442695, %v4826_v37  ;;  %v4887_v46 = vmul.f32 %v8271_v43, %v11284_v11 }
 0x8ab   : > { %v8275_v24 = vpop.eup %8274  ;;  %8294 = vtanh.f32 %v4803_v27  ;;  %v7119_v27 = vmul.f32 -1.442695, %v4827_v9  ;;  %v4888_v57 = vmul.f32 %v8273_v60, %v11287_v16 }
 0x8ac   : > { %v8277_v58 = vpop.eup %8276  ;;  %8296 = vtanh.f32 %v4804_v4  ;;  %v7120_v4 = vmul.f32 -1.442695, %v4828_v45  ;;  %v4889_v37 = vmul.f32 %v8275_v24, %v11289_v21 }
 0x8ad   : > { %v8279_v38 = vpop.eup %8278  ;;  %8298 = vtanh.f32 %v4805_v55  ;;  %v4890_v11 = vmul.f32 %v8277_v58, %v11291_v32 }
 0x8ae   : > { %v8281_v13 = vpop.eup %8280  ;;  %8300 = vpow2.f32 %v7114_v0  ;;  %v4894_v53 = vmul.f32 %v8279_v38, %v11587_v5 }
 0x8af   : > { %v8283_v56 = vpop.eup %8282  ;;  %8302 = vpow2.f32 %v7115_v63  ;;  %v4895_v22 = vmul.f32 %v8281_v13, %v11590_v48 }
 0x8b0   : > { %v8285_v18 = vpop.eup %8284  ;;  %8304 = vpow2.f32 %v7116_v29  ;;  %v4896_v7 = vmul.f32 %v8283_v56, %v11593_v59  ;;  %v11630_v43 = vadd.f32 %v4894_v53, %v4886_v1 }
 0x8b1   : > { %v8287_v55 = vpop.eup %8286  ;;  %8306 = vpow2.f32 %v7117_v39  ;;  %v4897_v5 = vmul.f32 %v8285_v18, %v11597_v23  ;;  %v11633_v16 = vadd.f32 %v4895_v22, %v4887_v46 }
 0x8b2   : > { %v8289_v51 = vpop.eup %8288  ;;  %8308 = vpow2.f32 %v7118_v54  ;;  %v4898_v13 = vmul.f32 %v8287_v55, %v11600_v50  ;;  %v11636_v2 = vadd.f32 %v4896_v7, %v4888_v57 }
 0x8b3   : > { %v8291_v29 = vpop.eup %8290  ;;  %8310 = vpow2.f32 %v7119_v27  ;;  %v11638_v24 = vadd.f32 %v4897_v5, %v4889_v37  ;;  %v4891_v38 = vmul.f32 %v8289_v51, %v11304_v49 }
 0x8b4   : > { %v8293_v60 = vpop.eup %8292  ;;  %8312 = vpow2.f32 %v7120_v4  ;;  %v11640_v32 = vadd.f32 %v4898_v13, %v4890_v11  ;;  %v4892_v1 = vmul.f32 %v8291_v29, %v11306_v52 }
 0x8b5   : > { %v8295_v21 = vpop.eup %8294  ;;  %8314 = vpow2.f32 %v7121_v14  ;;  %v4893_v18 = vmul.f32 %v8293_v60, %v11308_v17 }
 0x8b6   : > { %v8297_v48 = vpop.eup %8296  ;;  %8316 = vtanh.f32 %v11630_v43  ;;  %v4899_v46 = vmul.f32 %v8295_v21, %v11603_v61 }
 0x8b7   : > { %v8299_v59 = vpop.eup %8298  ;;  %8318 = vtanh.f32 %v11633_v16  ;;  %v4900_v57 = vmul.f32 %v8297_v48, %v11606_v28 }
 0x8b8   : > { %v8301_v23 = vpop.eup %8300  ;;  %8320 = vtanh.f32 %v11636_v2  ;;  %v4901_v49 = vmul.f32 %v8299_v59, %v11609_v62  ;;  %v11653_v22 = vadd.f32 %v4899_v46, %v4891_v38 }
 0x8b9   : > { %v8303_v0 = vpop.eup %8302  ;;  %v4862_v9 = vadd.f32 1.0, %v8301_v23  ;;  %8322 = vtanh.f32 %v11638_v24  ;;  %v11655_v51 = vadd.f32 %v4900_v57, %v4892_v1 }
 0x8ba   : > { %v8305_v50 = vpop.eup %8304  ;;  %v4863_v63 = vadd.f32 1.0, %v8303_v0  ;;  %8324 = vtanh.f32 %v11640_v32  ;;  %v11657_v17 = vadd.f32 %v4901_v49, %v4893_v18 }
 0x8bb   : > { %v8307_v58 = vpop.eup %8306  ;;  %v4864_v45 = vadd.f32 1.0, %v8305_v50  ;;  %8326 = vrcp.f32 %v4862_v9 }
 0x8bc   : > { %v8309_v39 = vpop.eup %8308  ;;  %v4865_v54 = vadd.f32 1.0, %v8307_v58  ;;  %8328 = vrcp.f32 %v4863_v63 }
 0x8bd   : > { %v8311_v56 = vpop.eup %8310  ;;  %v4866_v27 = vadd.f32 1.0, %v8309_v39  ;;  %8330 = vrcp.f32 %v4864_v45 }
 0x8be   : > { %v8313_v4 = vpop.eup %8312  ;;  %v4867_v53 = vadd.f32 1.0, %v8311_v56  ;;  %8332 = vrcp.f32 %v4865_v54 }
 0x8bf   : > { %v8315_v55 = vpop.eup %8314  ;;  %v4868_v14 = vadd.f32 1.0, %v8313_v4  ;;  %8334 = vrcp.f32 %v4866_v27 }
 0x8c0   : > { %v8317_v52 = vpop.eup %8316  ;;  %v4869_v37 = vadd.f32 1.0, %v8315_v55  ;;  %8336 = vrcp.f32 %v4867_v53 }
 0x8c1   : > { %v8319_v61 = vpop.eup %8318  ;;  %8338 = vrcp.f32 %v4868_v14 }
 0x8c2   : > { %v8321_v7 = vpop.eup %8320  ;;  %8340 = vrcp.f32 %v4869_v37 }
 0x8c3   : > { %v8323_v11 = vpop.eup %8322  ;;  %8342 = vtanh.f32 %v11653_v22 }
 0x8c4   : > { %v8325_v28 = vpop.eup %8324  ;;  %8344 = vtanh.f32 %v11655_v51 }
 0x8c5   : > { %v8327_v62 = vpop.eup %8326  ;;  %8346 = vtanh.f32 %v11657_v17 }
 0x8c6   : > { %v8329_v29 = vpop.eup %8328  ;;  %v4918_v5 = vmul.f32 %v8327_v62, %v8317_v52 }
 0x8c7   : > { %v8331_v60 = vpop.eup %8330  ;;  %v4919_v13 = vmul.f32 %v8329_v29, %v8319_v61 }
 0x8c8   : > { %v8333_v21 = vpop.eup %8332  ;;  %v4920_v48 = vmul.f32 %v8331_v60, %v8321_v7  ;;  %v5174_v59 = vpack.c.bf16 %v4918_v5, %v4918_v5 }
 0x8c9   : > { %v8335_v23 = vpop.eup %8334  ;;  %v4921_v0 = vmul.f32 %v8333_v21, %v8323_v11  ;;  %v4934_v9 = vcombine.low %v4918_v5, %v4919_v13  ;;  %v5175_v50 = vpack.c.bf16 %v4919_v13, %v4919_v13 }
 0x8ca   : > { %v8337_v63 = vpop.eup %8336  ;;  %v4922_v58 = vmul.f32 %v8335_v23, %v8325_v28  ;;  %v5176_v45 = vpack.c.bf16 %v4920_v48, %v4920_v48  ;;  %v5190_v27 = vunpack.c.l.b16 %v5174_v59 }
 0x8cb   : > { %v8339_v38 = vpop.eup %8338  ;;  %v4935_v39 = vcombine.low %v4920_v48, %v4921_v0  ;;  %v5177_v54 = vpack.c.bf16 %v4921_v0, %v4921_v0  ;;  %v5191_v1 = vunpack.c.l.b16 %v5175_v50  ;;  %v4944_v53 = vrot.slane %v4934_v9, %v9766_v35 }
 0x8cc   : > { %v8341_v56 = vpop.eup %8340  ;;  %v5192_v46 = vunpack.c.l.b16 %v5176_v45  ;;  %v5178_v18 = vpack.c.bf16 %v4922_v58, %v4922_v58 }
 0x8cd   : > { %v8343_v4 = vpop.eup %8342  ;;  %v4951_v57 = vrot.slane %v4935_v39, %v9766_v35  ;;  %v5193_v55 = vunpack.c.l.b16 %v5177_v54  ;;  %v5198_v14 = vrot.slane %v5191_v1, 7 }
 0x8ce   : > { %v8345_v49 = vpop.eup %8344  ;;  %v4923_v52 = vmul.f32 %v8343_v4, %v8337_v63  ;;  %v5200_v37 = vrot.slane %v5192_v46, 6  ;;  %v5194_v61 = vunpack.c.l.b16 %v5178_v18 }
 0x8cf   : > { %v8347_v7 = vpop.eup %8346  ;;  %v4924_v11 = vmul.f32 %v8345_v49, %v8339_v38  ;;  %v4966_v28 = vcombine.low %v4944_v53, %v4951_v57  ;;  %v5202_v62 = vrot.slane %v5193_v55, 5  ;;  %v5199_v29 = vsel %vm1662_vm0, %v5198_v14, %v5190_v27  ;;  %v12982_v49 = vld [vmem:[#allocation36_spill] sm:$0xff] }
 0x8d0   : > { %v4925_v5 = vmul.f32 %v8347_v7, %v8341_v56  ;;  %v4936_v60 = vcombine.low %v4922_v58, %v4923_v52  ;;  %v5179_v13 = vpack.c.bf16 %v4923_v52, %v4923_v52  ;;  %v5201_v21 = vsel %vm1665_vm1, %v5200_v37, %v5199_v29  ;;  %v11715_v52 = vld [vmem:[#allocation11 + $0x44] ss:$16 sps:$4 sm:$0xff]   ;;  %v11718_v37 = vld [vmem:[#allocation11 + $0x4c] ss:$16 sps:$4 sm:$0xff]   ;;  %v11724_v7 = vld [vmem:[#allocation11 + $0x48] ss:$16 sps:$4 sm:$0xff]  }
 0x8d1   : > { %v5180_v48 = vpack.c.bf16 %v4924_v11, %v4924_v11  ;;  %v5203_v59 = vsel %vm1668_vm2, %v5202_v62, %v5201_v21  ;;  %v5204_v23 = vrot.slane %v5194_v61, 4  ;;  %v4974_v27 = vrot.slane %v4966_v28, %v9766_v35  ;;  %v11721_v61 = vld [vmem:[#allocation11 + $0x40] ss:$16 sps:$4 sm:$0xff]   ;;  %v11730_v28 = vld [vmem:[#allocation11 + $0x6c] ss:$16 sps:$4 sm:$0xff]  }
 0x8d2   : > { %v4937_v0 = vcombine.low %v4924_v11, %v4925_v5  ;;  %v5181_v9 = vpack.c.bf16 %v4925_v5, %v4925_v5  ;;  %v5195_v50 = vunpack.c.l.b16 %v5179_v13  ;;  %v4958_v38 = vrot.slane %v4936_v60, %v9766_v35  ;;  %v11727_v11 = vld [vmem:[#allocation11 + $0x64] ss:$16 sps:$4 sm:$0xff]   ;;  %v11733_v62 = vld [vmem:[#allocation11 + $0x60] ss:$16 sps:$4 sm:$0xff]   ;;  %v11736_v29 = vld [vmem:[#allocation11 + $0x68] ss:$16 sps:$4 sm:$0xff]  }
 0x8d3   : > { %v5196_v63 = vunpack.c.l.b16 %v5180_v48  ;;  %v5205_v45 = vsel %vm1671_vm3, %v5204_v23, %v5203_v59  ;;  %v11739_v5 = vld [vmem:[#allocation11 + $0x84] ss:$16 sps:$4 sm:$0xff]   ;;  %v11742_v60 = vld [vmem:[#allocation11 + $0x8c] ss:$16 sps:$4 sm:$0xff]   ;;  %v11745_v13 = vld [vmem:[#allocation11 + $0x80] ss:$16 sps:$4 sm:$0xff]  }
 0x8d4   : > { %v4965_v39 = vrot.slane %v4937_v0, %v9766_v35  ;;  %v5197_v54 = vunpack.c.l.b16 %v5181_v9  ;;  %v5206_v1 = vrot.slane %v5195_v50, 3  ;;  %v11748_v21 = vld [vmem:[#allocation11 + $0x88] ss:$16 sps:$4 sm:$0xff]   ;;  %v11751_v48 = vld [vmem:[#allocation11 + $0xa4] ss:$16 sps:$4 sm:$0xff]  }
 0x8d5   : > { %v5208_v58 = vrot.slane %v5196_v63, 2  ;;  %v11754_v59 = vld [vmem:[#allocation11 + $0xac] ss:$16 sps:$4 sm:$0xff]   ;;  %v11757_v23 = vld [vmem:[#allocation11 + $0xa0] ss:$16 sps:$4 sm:$0xff]  }
 0x8d6   : > { %v4967_v56 = vcombine.low %v4958_v38, %v4965_v39  ;;  %v5207_v46 = vsel %vm1674_vm4, %v5206_v1, %v5205_v45  ;;  %v5210_v18 = vrot.slane %v5197_v54, 1  ;;  %v11760_v0 = vld [vmem:[#allocation11 + $0xa8] ss:$16 sps:$4 sm:$0xff]   ;;  %v11763_v9 = vld [vmem:[#allocation11 + $0xc4] ss:$16 sps:$4 sm:$0xff]  }
 0x8d7   : > { %v5209_v4 = vsel %vm1677_vm5, %v5208_v58, %v5207_v46  ;;  %v11766_v50 = vld [vmem:[#allocation11 + $0xcc] ss:$16 sps:$4 sm:$0xff]   ;;  %v11769_v63 = vld [vmem:[#allocation11 + $0xc0] ss:$16 sps:$4 sm:$0xff]   ;;  %v11772_v45 = vld [vmem:[#allocation11 + $0xc8] ss:$16 sps:$4 sm:$0xff]  }
 0x8d8   : > { %v4981_v53 = vrot.slane %v4967_v56, %v9766_v35  ;;  %v5211_v57 = vsel %vm1680_vm6, %v5210_v18, %v5209_v4  ;;  %12983 = vst [vmem:[#allocation44_spill] sm:$0xff] %v11772_v45  ;;  %v11775_v38 = vld [vmem:[#allocation11 + $0xe4] ss:$16 sps:$4 sm:$0xff]   ;;  %v11778_v39 = vld [vmem:[#allocation11 + $0xec] ss:$16 sps:$4 sm:$0xff]  }
 0x8d9   : > { %12984 = vst [vmem:[#allocation45_spill] sm:$0xff] %v11775_v38  ;;  %12985 = vst [vmem:[#allocation46_spill] sm:$0xff] %v11778_v39  ;;  %v11781_v54 = vld [vmem:[#allocation11 + $0xe0] ss:$16 sps:$4 sm:$0xff]   ;;  %v11784_v1 = vld [vmem:[#allocation11 + $0xe8] ss:$16 sps:$4 sm:$0xff]  }
 0x8da   : > { %v4982_v55 = vcombine.low %v4974_v27, %v4981_v53  ;;  %12986 = vst [vmem:[#allocation47_spill] sm:$0xff] %v11781_v54  ;;  %12987 = vst [vmem:[#allocation48_spill] sm:$0xff] %v11784_v1  ;;  %v11787_v58 = vld [vmem:[#allocation11 + $0x104] ss:$16 sps:$4 sm:$0xff]   ;;  %v11790_v56 = vld [vmem:[#allocation11 + $0x10c] ss:$16 sps:$4 sm:$0xff]  }
 0x8db   : > { %12988 = vst [vmem:[#allocation49_spill] sm:$0xff] %v11787_v58  ;;  %12989 = vst [vmem:[#allocation50_spill] sm:$0xff] %v11790_v56  ;;  %v11793_v27 = vld [vmem:[#allocation11 + $0x100] ss:$16 sps:$4 sm:$0xff]   ;;  %v11796_v46 = vld [vmem:[#allocation11 + $0x108] ss:$16 sps:$4 sm:$0xff]  }
 0x8dc   : > { %v4984_v14 = vpack.c.bf16 %v4982_v55, %v4982_v55  ;;  %12990 = vst [vmem:[#allocation51_spill] sm:$0xff] %v11793_v27  ;;  %12991 = vst [vmem:[#allocation52_spill] sm:$0xff] %v11796_v46  ;;  %v11799_v18 = vld [vmem:[#allocation11 + $0x124] ss:$16 sps:$4 sm:$0xff]   ;;  %v11802_v4 = vld [vmem:[#allocation11 + $0x12c] ss:$16 sps:$4 sm:$0xff]  }
 0x8dd   : > { %12992 = vst [vmem:[#allocation53_spill] sm:$0xff] %v11799_v18  ;;  %12993 = vst [vmem:[#allocation54_spill] sm:$0xff] %v11802_v4  ;;  %v11805_v53 = vld [vmem:[#allocation11 + $0x120] ss:$16 sps:$4 sm:$0xff]   ;;  %v11811_v55 = vld [vmem:[#allocation11 + $0x144] ss:$16 sps:$4 sm:$0xff]  }
 0x8de   : > { %5019 = vmatmul.mubr.bf16.vlgmr.msra.gmra.mrb[44].mxu0 %v4984_v14  ;;  %5060 = vmatmul.mubr.bf16.vlgmr.msra.gmra.mrb[44].mxu1 %v4984_v14  ;;  %12994 = vst [vmem:[#allocation55_spill] sm:$0xff] %v11805_v53  ;;  %12996 = vst [vmem:[#allocation57_spill] sm:$0xff] %v11811_v55  ;;  %v11814_v14 = vld [vmem:[#allocation11 + $0x14c] ss:$16 sps:$4 sm:$0xff]  }
 0x8df   : > { %5215 = vmatpush1.bf16.msra.mxu0 %v11328_v42  ;;  %5256 = vmatpush1.bf16.msra.mxu1 %v11331_v20  ;;  %v12964_v42 = vld [vmem:[#allocation75_spill] sm:$0xff]  ;;  %v12965_v20 = vld [vmem:[#allocation76_spill] sm:$0xff]  ;;  %12997 = vst [vmem:[#allocation58_spill] sm:$0xff] %v11814_v14 }
 0x8e0   : > { %5216 = vmatprep.subr.bf16.mxu0 %v11334_v12  ;;  %5257 = vmatprep.subr.bf16.mxu1 %v11337_v47  ;;  %v12966_v12 = vld [vmem:[#allocation23_spill] sm:$0xff]  ;;  %v12967_v47 = vld [vmem:[#allocation24_spill] sm:$0xff] }
 0x8e1   : > { %5246 = vmatprep.mubr.bf16.mxu0 %v12646_v36  ;;  %5287 = vmatprep.mubr.bf16.mxu1 %v12646_v36 }
 0x8e3   : > { %5217 = vmatpush1.bf16.msra.mxu0 %v11342_v25  ;;  %5258 = vmatpush1.bf16.msra.mxu1 %v11345_v44  ;;  %v12968_v25 = vld [vmem:[#allocation25_spill] sm:$0xff]  ;;  %v12969_v44 = vld [vmem:[#allocation26_spill] sm:$0xff] }
 0x8e4   : > { %5218 = vmatprep.subr.bf16.mxu0 %v11348_v41  ;;  %5259 = vmatprep.subr.bf16.mxu1 %v11351_v8  ;;  %v12970_v41 = vld [vmem:[#allocation27_spill] sm:$0xff]  ;;  %v12971_v8 = vld [vmem:[#allocation28_spill] sm:$0xff] }
 0x8e7   : > { %5219 = vmatpush1.bf16.msra.mxu0 %v11354_v3  ;;  %5260 = vmatpush1.bf16.msra.mxu1 %v11357_v40  ;;  %v12972_v3 = vld [vmem:[#allocation29_spill] sm:$0xff] }
 0x8e8   : > { %5220 = vmatprep.subr.bf16.mxu0 %v11360_v6  ;;  %5261 = vmatprep.subr.bf16.mxu1 %v11363_v19  ;;  %v12973_v40 = vld [vmem:[#allocation77_spill] sm:$0xff]  ;;  %v12974_v6 = vld [vmem:[#allocation78_spill] sm:$0xff]  ;;  %v5212_v19 = vpack.c.b16 %v5211_v57, %v5211_v57 }
 0x8e9   : > { %v11808_v57 = vld [vmem:[#allocation11 + $0x128] ss:$16 sps:$4 sm:$0xff]  }
 0x8ea   : > { %12995 = vst [vmem:[#allocation56_spill] sm:$0xff] %v11808_v57 }
 0x8eb   : > { %5221 = vmatpush1.bf16.msra.mxu0 %v11366_v31  ;;  %5262 = vmatpush1.bf16.msra.mxu1 %v11369_v10  ;;  %v12975_v31 = vld [vmem:[#allocation79_spill] sm:$0xff]  ;;  %v12976_v10 = vld [vmem:[#allocation30_spill] sm:$0xff] }
 0x8ec   : > { %5222 = vmatprep.subr.bf16.mxu0 %v11372_v15  ;;  %5263 = vmatprep.subr.bf16.mxu1 %v11375_v26  ;;  %v12977_v15 = vld [vmem:[#allocation31_spill] sm:$0xff]  ;;  %v12978_v26 = vld [vmem:[#allocation32_spill] sm:$0xff] }
 0x8ef   : > { %5223 = vmatpush1.bf16.msra.mxu0 %v11378_v30  ;;  %5264 = vmatpush1.bf16.msra.mxu1 %v11381_v33  ;;  %v12979_v30 = vld [vmem:[#allocation33_spill] sm:$0xff]  ;;  %v12980_v33 = vld [vmem:[#allocation34_spill] sm:$0xff] }
 0x8f0   : > { %5224 = vmatprep.subr.bf16.mxu0 %v11384_v34  ;;  %5265 = vmatprep.subr.bf16.mxu1 %v12964_v42  ;;  %v12981_v34 = vld [vmem:[#allocation35_spill] sm:$0xff] }
 0x8f1   : > { %v11817_v42 = vld [vmem:[#allocation11 + $0x140] ss:$16 sps:$4 sm:$0xff]  }
 0x8f2   : > { %12998 = vst [vmem:[#allocation59_spill] sm:$0xff] %v11817_v42 }
 0x8f3   : > { %5225 = vmatpush1.bf16.msra.mxu0 %v12965_v20  ;;  %5266 = vmatpush1.bf16.msra.mxu1 %v12966_v12  ;;  %v11820_v20 = vld [vmem:[#allocation11 + $0x148] ss:$16 sps:$4 sm:$0xff]   ;;  %v11823_v12 = vld [vmem:[#allocation11 + $0x164] ss:$16 sps:$4 sm:$0xff]  }
 0x8f4   : > { %5226 = vmatprep.subr.bf16.mxu0 %v12967_v47  ;;  %5267 = vmatprep.subr.bf16.mxu1 %v12968_v25  ;;  %12999 = vst [vmem:[#allocation60_spill] sm:$0xff] %v11820_v20  ;;  %13000 = vst [vmem:[#allocation61_spill] sm:$0xff] %v11823_v12  ;;  %v11826_v47 = vld [vmem:[#allocation11 + $0x16c] ss:$16 sps:$4 sm:$0xff]   ;;  %v11829_v25 = vld [vmem:[#allocation11 + $0x160] ss:$16 sps:$4 sm:$0xff]  }
 0x8f5   : > { %13001 = vst [vmem:[#allocation62_spill] sm:$0xff] %v11826_v47  ;;  %13002 = vst [vmem:[#allocation63_spill] sm:$0xff] %v11829_v25 }
 0x8f7   : > { %5227 = vmatpush1.bf16.msra.mxu0 %v12969_v44  ;;  %5268 = vmatpush1.bf16.msra.mxu1 %v12970_v41  ;;  %v11832_v44 = vld [vmem:[#allocation11 + $0x168] ss:$16 sps:$4 sm:$0xff]   ;;  %v11835_v41 = vld [vmem:[#allocation11 + $0x184] ss:$16 sps:$4 sm:$0xff]  }
 0x8f8   : > { %5228 = vmatprep.subr.bf16.mxu0 %v12971_v8  ;;  %5269 = vmatprep.subr.bf16.mxu1 %v12972_v3  ;;  %13003 = vst [vmem:[#allocation64_spill] sm:$0xff] %v11832_v44  ;;  %13004 = vst [vmem:[#allocation65_spill] sm:$0xff] %v11835_v41  ;;  %v11838_v8 = vld [vmem:[#allocation11 + $0x18c] ss:$16 sps:$4 sm:$0xff]   ;;  %v11841_v3 = vld [vmem:[#allocation11 + $0x180] ss:$16 sps:$4 sm:$0xff]  }
 0x8f9   : > { %13005 = vst [vmem:[#allocation66_spill] sm:$0xff] %v11838_v8  ;;  %13006 = vst [vmem:[#allocation67_spill] sm:$0xff] %v11841_v3 }
 0x8fb   : > { %5229 = vmatpush1.bf16.msra.mxu0 %v12973_v40  ;;  %5270 = vmatpush1.bf16.msra.mxu1 %v12974_v6  ;;  %v11844_v40 = vld [vmem:[#allocation11 + $0x188] ss:$16 sps:$4 sm:$0xff]   ;;  %v11847_v6 = vld [vmem:[#allocation11 + $0x1a4] ss:$16 sps:$4 sm:$0xff]  }
 0x8fc   : > { %5692 = vmatprep.subr.bf16.mxu0 %v12975_v31  ;;  %5733 = vmatprep.subr.bf16.mxu1 %v12976_v10  ;;  %13007 = vst [vmem:[#allocation68_spill] sm:$0xff] %v11844_v40  ;;  %13008 = vst [vmem:[#allocation69_spill] sm:$0xff] %v11847_v6  ;;  %v11853_v31 = vld [vmem:[#allocation11 + $0x1a0] ss:$16 sps:$4 sm:$0xff]   ;;  %v11856_v10 = vld [vmem:[#allocation11 + $0x1a8] ss:$16 sps:$4 sm:$0xff]  }
 0x8fd   : > { %13010 = vst [vmem:[#allocation71_spill] sm:$0xff] %v11853_v31  ;;  %13011 = vst [vmem:[#allocation72_spill] sm:$0xff] %v11856_v10 }
 0x8fe   : > { %5247 = vmatmul.mubr.bf16.vlgmr.msra.gmra.mrb[48].mxu0 %v5212_v19  ;;  %5288 = vmatmul.mubr.bf16.vlgmr.msra.gmra.mrb[48].mxu1 %v5212_v19  ;;  %v11850_v19 = vld [vmem:[#allocation11 + $0x1ac] ss:$16 sps:$4 sm:$0xff]  }
 0x8ff   : > { %5693 = vmatpush1.bf16.msra.mxu0 %v12977_v15  ;;  %5734 = vmatpush1.bf16.msra.mxu1 %v12978_v26  ;;  %13009 = vst [vmem:[#allocation70_spill] sm:$0xff] %v11850_v19  ;;  %v11859_v15 = vld [vmem:[#allocation11 + $0x1c4] ss:$16 sps:$4 sm:$0xff]   ;;  %v11862_v26 = vld [vmem:[#allocation11 + $0x1cc] ss:$16 sps:$4 sm:$0xff]  }
 0x900   : > { %5694 = vmatprep.subr.bf16.mxu0 %v12979_v30  ;;  %5735 = vmatprep.subr.bf16.mxu1 %v12980_v33  ;;  %13012 = vst [vmem:[#allocation73_spill] sm:$0xff] %v11859_v15  ;;  %13013 = vst [vmem:[#allocation74_spill] sm:$0xff] %v11862_v26  ;;  %v11865_v30 = vld [vmem:[#allocation11 + $0x1c0] ss:$16 sps:$4 sm:$0xff]   ;;  %v11868_v33 = vld [vmem:[#allocation11 + $0x1c8] ss:$16 sps:$4 sm:$0xff]  }
 0x901   : > { %13014 = vst [vmem:[#allocation75_spill] sm:$0xff] %v11865_v30  ;;  %13015 = vst [vmem:[#allocation76_spill] sm:$0xff] %v11868_v33 }
 0x903   : > { %5695 = vmatpush1.bf16.msra.mxu0 %v12981_v34  ;;  %5736 = vmatpush1.bf16.msra.mxu1 %v12982_v49  ;;  %v11871_v34 = vld [vmem:[#allocation11 + $0x1e4] ss:$16 sps:$4 sm:$0xff]   ;;  %v11874_v49 = vld [vmem:[#allocation11 + $0x1ec] ss:$16 sps:$4 sm:$0xff]  }
 0x904   : > { %5696 = vmatprep.subr.bf16.mxu0 %v11715_v52  ;;  %5737 = vmatprep.subr.bf16.mxu1 %v11718_v37  ;;  %13016 = vst [vmem:[#allocation23_spill] sm:$0xff] %v11871_v34  ;;  %13017 = vst [vmem:[#allocation24_spill] sm:$0xff] %v11874_v49 }
 0x907   : > { %5697 = vmatpush1.bf16.msra.mxu0 %v11721_v61  ;;  %5738 = vmatpush1.bf16.msra.mxu1 %v11724_v7 }
 0x908   : > { %5698 = vmatprep.subr.bf16.mxu0 %v11727_v11  ;;  %5739 = vmatprep.subr.bf16.mxu1 %v11730_v28 }
 0x90b   : > { %5699 = vmatpush1.bf16.msra.mxu0 %v11733_v62  ;;  %5740 = vmatpush1.bf16.msra.mxu1 %v11736_v29 }
 0x90c   : > { %5700 = vmatprep.subr.bf16.mxu0 %v11739_v5  ;;  %5741 = vmatprep.subr.bf16.mxu1 %v11742_v60 }
 0x90f   : > { %5701 = vmatpush1.bf16.msra.mxu0 %v11745_v13  ;;  %5742 = vmatpush1.bf16.msra.mxu1 %v11748_v21 }
 0x910   : > { %5702 = vmatprep.subr.bf16.mxu0 %v11751_v48  ;;  %5743 = vmatprep.subr.bf16.mxu1 %v11754_v59 }
 0x913   : > { %5703 = vmatpush1.bf16.msra.mxu0 %v11757_v23  ;;  %5744 = vmatpush1.bf16.msra.mxu1 %v11760_v0 }
 0x914   : > { %5704 = vmatprep.subr.bf16.mxu0 %v11763_v9  ;;  %5745 = vmatprep.subr.bf16.mxu1 %v11766_v50 }
 0x917   : > { %5705 = vmatpush1.bf16.msra.mxu0 %v11769_v63  ;;  %5746 = vmatpush1.bf16.msra.mxu1 %v11772_v45 }
 0x918   : > { %5706 = vmatprep.subr.bf16.mxu0 %v11775_v38  ;;  %5747 = vmatprep.subr.bf16.mxu1 %v11778_v39 }
 0x91b   : > { %5707 = vmatpush1.bf16.msra.mxu0 %v11781_v54  ;;  %5748 = vmatpush1.bf16.msra.mxu1 %v11784_v1 }
 0x91c   : > { %5708 = vmatprep.subr.bf16.mxu0 %v11787_v58  ;;  %5749 = vmatprep.subr.bf16.mxu1 %v11790_v56 }
 0x91f   : > { %5709 = vmatpush1.bf16.msra.mxu0 %v11793_v27  ;;  %5750 = vmatpush1.bf16.msra.mxu1 %v11796_v46 }
 0x920   : > { %5710 = vmatprep.subr.bf16.mxu0 %v11799_v18  ;;  %5751 = vmatprep.subr.bf16.mxu1 %v11802_v4 }
 0x923   : > { %5711 = vmatpush1.bf16.msra.mxu0 %v11805_v53  ;;  %5752 = vmatpush1.bf16.msra.mxu1 %v11808_v57 }
 0x924   : > { %5712 = vmatprep.subr.bf16.mxu0 %v11811_v55  ;;  %5753 = vmatprep.subr.bf16.mxu1 %v11814_v14  ;;  %v7134_v14 = vld [vmem:[%s9567_s1 + $0xa6] ss:$8 sm:$0xf] }
 0x925   : > { %v7135_v55 = vld [vmem:[%s9567_s1 + $0xc6] ss:$8 sm:$0xf] }
 0x927   : > { %5713 = vmatpush1.bf16.msra.mxu0 %v11817_v42  ;;  %5754 = vmatpush1.bf16.msra.mxu1 %v11820_v20 }
 0x928   : > { %5714 = vmatprep.subr.bf16.mxu0 %v11823_v12  ;;  %5755 = vmatprep.subr.bf16.mxu1 %v11826_v47 }
 0x92b   : > { %5715 = vmatpush1.bf16.msra.mxu0 %v11829_v25  ;;  %5756 = vmatpush1.bf16.msra.mxu1 %v11832_v44 }
 0x92c   : > { %5716 = vmatprep.subr.bf16.mxu0 %v11835_v41  ;;  %5757 = vmatprep.subr.bf16.mxu1 %v11838_v8 }
 0x92f   : > { %5717 = vmatpush1.bf16.msra.mxu0 %v11841_v3  ;;  %5758 = vmatpush1.bf16.msra.mxu1 %v11844_v40  ;;  %v13023_v3 = vld [vmem:[#allocation40_spill] sm:$0xff] }
 0x930   : > { %5718 = vmatprep.subr.bf16.mxu0 %v11847_v6  ;;  %5759 = vmatprep.subr.bf16.mxu1 %v11850_v19  ;;  %v13022_v19 = vld [vmem:[#allocation39_spill] sm:$0xff] }
 0x933   : > { %5719 = vmatpush1.bf16.msra.mxu0 %v11853_v31  ;;  %5760 = vmatpush1.bf16.msra.mxu1 %v11856_v10  ;;  %v13021_v10 = vld [vmem:[#allocation38_spill] sm:$0xff] }
 0x934   : > { %5720 = vmatprep.subr.bf16.mxu0 %v11859_v15  ;;  %5761 = vmatprep.subr.bf16.mxu1 %v11862_v26  ;;  %v11877_v15 = vld [vmem:[#allocation11 + $0x1e0] ss:$16 sps:$4 sm:$0xff]   ;;  %v11880_v26 = vld [vmem:[#allocation11 + $0x1e8] ss:$16 sps:$4 sm:$0xff]  }
 0x935   : > { %13018 = vst [vmem:[#allocation25_spill] sm:$0xff] %v11877_v15  ;;  %13019 = vst [vmem:[#allocation26_spill] sm:$0xff] %v11880_v26 }
 0x937   : > { %5721 = vmatpush1.bf16.msra.mxu0 %v11865_v30  ;;  %5762 = vmatpush1.bf16.msra.mxu1 %v11868_v33  ;;  %v13020_v30 = vld [vmem:[#allocation37_spill] sm:$0xff] }
 0x938   : > { %5722 = vmatprep.subr.bf16.mxu0 %v11871_v34  ;;  %5763 = vmatprep.subr.bf16.mxu1 %v11874_v49 }
 0x93b   : > { %5723 = vmatpush1.bf16.msra.mxu0 %v11877_v15  ;;  %5764 = vmatpush1.bf16.msra.mxu1 %v11880_v26  ;;  %v13024_v26 = vld [vmem:[#allocation41_spill] sm:$0xff] }
 0x93c   : > { %5920 = vmatprep.subr.bf16.mxu0 %v13020_v30  ;;  %5961 = vmatprep.subr.bf16.mxu1 %v13021_v10 }
 0x9b1   : > { %v5020_v33 = vpop.f32.mrb[44].mxu0  ;;  %v5061_v31 = vpop.f32.mrb[44].mxu1 }
 0x9b2   : > { %v5021_v34 = vadd.f32 %v13022_v19, %v5020_v33  ;;  %v5022_v6 = vpop.f32.mrb[45].mxu0  ;;  %v5063_v40 = vpop.f32.mrb[45].mxu1  ;;  %v5062_v30 = vadd.f32 %v13024_v26, %v5061_v31  ;;  %v13025_v19 = vld [vmem:[#allocation42_spill] sm:$0xff] }
 0x9b3   : > { %v5023_v49 = vadd.f32 %v13023_v3, %v5022_v6  ;;  %v5024_v8 = vpop.f32.mrb[46].mxu0  ;;  %v5065_v41 = vpop.f32.mrb[46].mxu1  ;;  %v5064_v33 = vadd.f32 %v13025_v19, %v5063_v40 }
 0x9b4   : > { %v7122_v44 = vmul.f32 -1.442695, %v5021_v34  ;;  %v5025_v15 = vpop.f32.mrb[47].mxu0  ;;  %v5066_v25 = vpop.f32.mrb[47].mxu1 }
 0x9b5   : > { %v7123_v47 = vmul.f32 -1.442695, %v5023_v49  ;;  %v7124_v3 = vmul.f32 -1.442695, %v5064_v33  ;;  %v13026_v15 = vld [vmem:[#allocation43_spill] sm:$0xff] }
 0x9b6   : > { %8348 = vpow2.f32 %v7122_v44 }
 0x9b7   : > { %8350 = vpow2.f32 %v7123_v47 }
 0x9b8   : > { %8352 = vtanh.f32 %v5062_v30 }
 0x9c0   : > { %v8349_v12 = vpop.eup %8348 }
 0x9c1   : > { %v8351_v10 = vpop.eup %8350  ;;  %v5071_v20 = vadd.f32 1.0, %v8349_v12 }
 0x9c2   : > { %v5077_v42 = vadd.f32 1.0, %v8351_v10  ;;  %v8353_v8 = vpop.eup %8352 }
 0x9c3   : > { %8354 = vrcp.f32 %v5071_v20 }
 0x9c4   : > { %8356 = vrcp.f32 %v5077_v42 }
 0x9c5   : > { %8358 = vpow2.f32 %v7124_v3 }
 0x9cd   : > { %v8355_v41 = vpop.eup %8354 }
 0x9ce   : > { %v8357_v6 = vpop.eup %8356  ;;  %v5088_v25 = vmul.f32 %v8355_v41, %v8353_v8 }
 0x9cf   : > { %v5087_v44 = vmul.f32 %v8357_v6, %v13026_v15  ;;  %v7129_v15 = vld [vmem:[%s9567_s1 + $0x6] ss:$8 sm:$0xf] }
 0x9d1   : > { %v11890_v47 = vadd.f32 %v5088_v25, %v5087_v44  ;;  %v5248_v31 = vpop.f32.mrb[48].mxu0  ;;  %v5289_v26 = vpop.f32.mrb[48].mxu1 }
 0x9d2   : > { %v5250_v12 = vpop.f32.mrb[49].mxu0  ;;  %v5291_v34 = vpop.f32.mrb[49].mxu1 }
 0x9d3   : > { %13027 = vst [vmem:[#allocation27_spill] sm:$0xff] %v11890_v47  ;;  %v5300_v49 = vcombine.low %v5248_v31, %v5250_v12  ;;  %v5301_v20 = vcombine.high %v5248_v31, %v5250_v12  ;;  %v5302_v42 = vcombine.low %v5289_v26, %v5291_v34  ;;  %v5303_v40 = vcombine.high %v5289_v26, %v5291_v34  ;;  %v5252_v30 = vpop.f32.mrb[50].mxu0  ;;  %v5293_v10 = vpop.f32.mrb[50].mxu1  ;;  %v7130_v34 = vld [vmem:[%s9567_s1 + $0x26] ss:$8 sm:$0xf] }
 0x9d4   : > { %v5253_v19 = vpop.f32.mrb[51].mxu0  ;;  %v5294_v33 = vpop.f32.mrb[51].mxu1  ;;  %v7131_v30 = vld [vmem:[%s9567_s1 + $0x46] ss:$8 sm:$0xf]  ;;  %8360 = vtanh.f32 %v11890_v47 }
 0x9d5   : > { %v5310_v3 = vrot.slane %v5300_v49, %v9766_v35  ;;  %v5317_v8 = vrot.slane %v5301_v20, %v9766_v35  ;;  %v5324_v41 = vrot.slane %v5302_v42, %v9766_v35  ;;  %v5331_v6 = vrot.slane %v5303_v40, %v9766_v35  ;;  %v8359_v25 = vpop.eup %8358  ;;  %v7132_v10 = vld [vmem:[%s9567_s1 + $0x66] ss:$8 sm:$0xf] }
 0x9d6   : > { %v7133_v19 = vld [vmem:[%s9567_s1 + $0x86] ss:$8 sm:$0xf]  ;;  %v5084_v33 = vadd.f32 1.0, %v8359_v25 }
 0x9d7   : > { %v5332_v44 = vcombine.low %v5310_v3, %v5324_v41  ;;  %v5333_v31 = vcombine.high %v5310_v3, %v5324_v41  ;;  %v5334_v26 = vcombine.low %v5317_v8, %v5331_v6  ;;  %v5335_v12 = vcombine.high %v5317_v8, %v5331_v6  ;;  %v7136_v6 = vld [vmem:[%s9567_s1 + $0xe6] ss:$8 sm:$0xf] }
 0x9d8   : > { %8362 = vrcp.f32 %v5084_v33 }
 0x9d9   : > { %v5342_v49 = vrot.slane %v5332_v44, %v9766_v35  ;;  %v5349_v20 = vrot.slane %v5334_v26, %v9766_v35  ;;  %v5356_v42 = vrot.slane %v5333_v31, %v9766_v35  ;;  %v5363_v40 = vrot.slane %v5335_v12, %v9766_v35 }
 0x9db   : > { %v5364_v57 = vcombine.high %v5342_v49, %v5342_v49  ;;  %v5365_v3 = vcombine.high %v5349_v20, %v5349_v20  ;;  %v5366_v41 = vcombine.high %v5356_v42, %v5356_v42  ;;  %v5367_v8 = vcombine.high %v5363_v40, %v5363_v40 }
 0x9dc   : > { %v11908_v53 = vadd.f32 %v7129_v15, %v5342_v49  ;;  %v11910_v4 = vadd.f32 %v7130_v34, %v5356_v42  ;;  %v11912_v18 = vadd.f32 %v7133_v19, %v5349_v20  ;;  %v11918_v31 = vadd.f32 %v7134_v14, %v5363_v40 }
 0x9dd   : > { %v11914_v44 = vadd.f32 %v7131_v30, %v5364_v57  ;;  %v11916_v26 = vadd.f32 %v7132_v10, %v5366_v41  ;;  %v11920_v25 = vadd.f32 %v7135_v55, %v5365_v3  ;;  %v11925_v15 = vadd.f32 %v7136_v6, %v5367_v8 }
 0x9de   : > { %v7137_v12 = vmul.f32 -1.442695, %v11908_v53  ;;  %v7138_v46 = vmul.f32 -1.442695, %v11910_v4  ;;  %v7141_v30 = vmul.f32 -1.442695, %v11912_v18  ;;  %v8361_v8 = vpop.eup %8360 }
 0x9df   : > { %v7139_v34 = vmul.f32 -1.442695, %v11914_v44  ;;  %v7140_v57 = vmul.f32 -1.442695, %v11916_v26  ;;  %v5440_v14 = vrot.slane %v11908_v53, 1  ;;  %v5441_v10 = vrot.slane %v11910_v4, 1 }
 0x9e0   : > { %8364 = vpow2.f32 %v7137_v12  ;;  %v7142_v55 = vmul.f32 -1.442695, %v11918_v31  ;;  %v7143_v19 = vmul.f32 -1.442695, %v11920_v25  ;;  %v5442_v49 = vrot.slane %v11914_v44, 1 }
 0x9e1   : > { %8366 = vpow2.f32 %v7138_v46  ;;  %v7144_v20 = vmul.f32 -1.442695, %v11925_v15  ;;  %v5443_v42 = vrot.slane %v11916_v26, 1  ;;  %v5444_v40 = vrot.slane %v11912_v18, 1 }
 0x9e2   : > { %8368 = vpow2.f32 %v7139_v34  ;;  %v7145_v33 = vmul.f32 -1.442695, %v5440_v14  ;;  %v7146_v46 = vmul.f32 -1.442695, %v5441_v10  ;;  %v7147_v3 = vmul.f32 -1.442695, %v5442_v49  ;;  %v8363_v12 = vpop.eup %8362 }
 0x9e3   : > { %8370 = vpow2.f32 %v7140_v57  ;;  %v7148_v41 = vmul.f32 -1.442695, %v5443_v42  ;;  %v7149_v6 = vmul.f32 -1.442695, %v5444_v40  ;;  %v5091_v27 = vmul.f32 %v8363_v12, %v8361_v8 }
 0x9e4   : > { %8372 = vpow2.f32 %v7141_v30  ;;  %v5445_v30 = vrot.slane %v11918_v31, 1  ;;  %v5446_v49 = vrot.slane %v11920_v25, 1  ;;  %v5447_v40 = vrot.slane %v11925_v15, 1 }
 0x9e5   : > { %8374 = vpow2.f32 %v7142_v55  ;;  %v5691_v12 = vpack.c.bf16 %v5091_v27, %v5091_v27  ;;  %v5535_v38 = vrot.slane %v11925_v15, 3 }
 0x9e6   : > { %8376 = vpow2.f32 %v7143_v19 }
 0x9e7   : > { %8378 = vpow2.f32 %v7144_v20  ;;  %5724 = vmatprep.mubr.bf16.mxu0 %v5691_v12  ;;  %5765 = vmatprep.mubr.bf16.mxu1 %v5691_v12 }
 0x9e8   : > { %8380 = vpow2.f32 %v7145_v33 }
 0x9e9   : > { %8382 = vpow2.f32 %v7146_v46 }
 0x9ea   : > { %v8365_v34 = vpop.eup %8364  ;;  %8384 = vpow2.f32 %v7147_v3  ;;  %v7150_v3 = vmul.f32 -1.442695, %v5445_v30 }
 0x9eb   : > { %v8367_v57 = vpop.eup %8366  ;;  %v5408_v47 = vadd.f32 1.0, %v8365_v34  ;;  %8386 = vpow2.f32 %v7148_v41  ;;  %v5093_v34 = vcombine.high %v5091_v27, %v5091_v27 }
 0x9ec   : > { %v8369_v14 = vpop.eup %8368  ;;  %v5409_v55 = vadd.f32 1.0, %v8367_v57  ;;  %8388 = vpow2.f32 %v7149_v6  ;;  %v5100_v6 = vrot.slane %v5091_v27, %v9766_v35  ;;  %v7152_v27 = vmul.f32 -1.442695, %v5447_v40 }
 0x9ed   : > { %v8371_v10 = vpop.eup %8370  ;;  %v5410_v19 = vadd.f32 1.0, %v8369_v14  ;;  %8390 = vrcp.f32 %v5408_v47  ;;  %v7151_v14 = vmul.f32 -1.442695, %v5446_v49 }
 0x9ee   : > { %v8373_v20 = vpop.eup %8372  ;;  %v5411_v42 = vadd.f32 1.0, %v8371_v10  ;;  %8392 = vrcp.f32 %v5409_v55  ;;  %v5107_v55 = vrot.slane %v5093_v34, %v9766_v35  ;;  %v5116_v30 = vrot.slane %v5100_v6, %v9766_v35  ;;  %7125 = vst.sshfl [vmem:[%s9585_s30 + $0x5] sm:$0x1 pattern:$0x73625140] %v5100_v6 }
 0x9ef   : > { %v8375_v33 = vpop.eup %8374  ;;  %v5412_v46 = vadd.f32 1.0, %v8373_v20  ;;  %8394 = vrcp.f32 %v5410_v19  ;;  %v5108_v19 = vcombine.high %v5100_v6, %v5100_v6 }
 0x9f0   : > { %v8377_v41 = vpop.eup %8376  ;;  %v5413_v8 = vadd.f32 1.0, %v8375_v33  ;;  %8396 = vrcp.f32 %v5411_v42  ;;  %v5109_v42 = vcombine.high %v5107_v55, %v5107_v55  ;;  %v5123_v33 = vrot.slane %v5107_v55, %v9766_v35  ;;  %7127 = vst.sshfl [vmem:[%s9585_s30 + $0x25] sm:$0x1 pattern:$0x73625140] %v5107_v55 }
 0x9f1   : > { %v8379_v47 = vpop.eup %8378  ;;  %v5414_v57 = vadd.f32 1.0, %v8377_v41  ;;  %8398 = vrcp.f32 %v5412_v46  ;;  %v5130_v34 = vrot.slane %v5108_v19, %v9766_v35  ;;  %v5138_v41 = vcombine.high %v5116_v30, %v5116_v30  ;;  %7126 = vst.sshfl [vmem:[%s9585_s30 + $0xd] sm:$0x1 pattern:$0x73625140] %v5108_v19 }
 0x9f2   : > { %v8381_v10 = vpop.eup %8380  ;;  %v5415_v56 = vadd.f32 1.0, %v8379_v47  ;;  %8400 = vrcp.f32 %v5413_v8  ;;  %v5137_v12 = vrot.slane %v5109_v42, %v9766_v35  ;;  %v5139_v40 = vcombine.high %v5123_v33, %v5123_v33  ;;  %7128 = vst.sshfl [vmem:[%s9585_s30 + $0x2d] sm:$0x1 pattern:$0x73625140] %v5109_v42 }
 0x9f3   : > { %v8383_v20 = vpop.eup %8382  ;;  %8402 = vrcp.f32 %v5414_v57  ;;  %v5480_v46 = vadd.f32 1.0, %v8381_v10  ;;  %v5140_v55 = vcombine.high %v5130_v34, %v5130_v34  ;;  %5152 = vst [vmem:[%s9585_s30 + $0x15] sm:$0x1] %v5138_v41  ;;  %v5505_v33 = vrot.slane %v11910_v4, 2 }
 0x9f4   : > { %v8385_v49 = vpop.eup %8384  ;;  %8404 = vrcp.f32 %v5415_v56  ;;  %v5481_v6 = vadd.f32 1.0, %v8383_v20  ;;  %v5141_v19 = vcombine.high %v5137_v12, %v5137_v12  ;;  %5156 = vst [vmem:[%s9585_s30 + $0x35] sm:$0x1] %v5139_v40 }
 0x9f5   : > { %v8387_v8 = vpop.eup %8386  ;;  %8406 = vpow2.f32 %v7150_v3  ;;  %v5482_v57 = vadd.f32 1.0, %v8385_v49  ;;  %5153 = vst [vmem:[%s9585_s30 + $0x1d] sm:$0x1] %v5140_v55  ;;  %v5506_v49 = vrot.slane %v11914_v44, 2 }
 0x9f6   : > { %v8389_v47 = vpop.eup %8388  ;;  %8408 = vpow2.f32 %v7151_v14  ;;  %v5483_v10 = vadd.f32 1.0, %v8387_v8  ;;  %v5504_v14 = vrot.slane %v11908_v53, 2  ;;  %5157 = vst [vmem:[%s9585_s30 + $0x3d] sm:$0x1] %v5141_v19  ;;  %v5508_v8 = vrot.slane %v11912_v18, 2 }
 0x9f7   : > { %v11952_v56 = vpop.eup %8390  ;;  %8410 = vpow2.f32 %v7152_v27  ;;  %v5484_v3 = vadd.f32 1.0, %v8389_v47  ;;  %v5509_v19 = vrot.slane %v11918_v31, 2 }
 0x9f8   : > { %v11955_v30 = vpop.eup %8392  ;;  %8412 = vrcp.f32 %v5480_v46  ;;  %v5507_v46 = vrot.slane %v11916_v26, 2 }
 0x9f9   : > { %v11958_v20 = vpop.eup %8394  ;;  %8414 = vrcp.f32 %v5481_v6 }
 0x9fa   : > { %v11962_v42 = vpop.eup %8396  ;;  %8416 = vrcp.f32 %v5482_v57  ;;  %v5528_v57 = vrot.slane %v11908_v53, 3  ;;  %v5531_v53 = vrot.slane %v11916_v26, 3 }
 0x9fb   : > { %v11965_v27 = vpop.eup %8398  ;;  %8418 = vrcp.f32 %v5483_v10 }
 0x9fc   : > { %v11968_v34 = vpop.eup %8400  ;;  %8420 = vrcp.f32 %v5484_v3  ;;  %v5529_v3 = vrot.slane %v11910_v4, 3  ;;  %v5533_v4 = vrot.slane %v11918_v31, 3  ;;  %v7156_v26 = vmul.f32 -1.442695, %v5531_v53 }
 0x9fd   : > { %v11971_v41 = vpop.eup %8402  ;;  %8422 = vtanh.f32 %v5504_v14  ;;  %v5510_v14 = vrot.slane %v11920_v25, 2 }
 0x9fe   : > { %v11974_v6 = vpop.eup %8404  ;;  %8424 = vtanh.f32 %v5505_v33  ;;  %v5530_v33 = vrot.slane %v11914_v44, 3  ;;  %v5534_v44 = vrot.slane %v11920_v25, 3 }
 0x9ff   : > { %v8407_v12 = vpop.eup %8406  ;;  %8426 = vtanh.f32 %v5506_v49 }
 0xa00   : > { %v8409_v40 = vpop.eup %8408  ;;  %v5485_v47 = vadd.f32 1.0, %v8407_v12  ;;  %8428 = vtanh.f32 %v5507_v46  ;;  %v5511_v46 = vrot.slane %v11925_v15, 2  ;;  %v7155_v39 = vmul.f32 -1.442695, %v5530_v33 }
 0xa01   : > { %v8411_v55 = vpop.eup %8410  ;;  %v5486_v10 = vadd.f32 1.0, %v8409_v40  ;;  %8430 = vtanh.f32 %v5508_v8  ;;  %v5532_v40 = vrot.slane %v11912_v18, 3  ;;  %v7153_v8 = vmul.f32 -1.442695, %v5528_v57 }
 0xa02   : > { %v8413_v58 = vpop.eup %8412  ;;  %v5487_v1 = vadd.f32 1.0, %v8411_v55  ;;  %8432 = vrcp.f32 %v5485_v47  ;;  %v7154_v47 = vmul.f32 -1.442695, %v5529_v3  ;;  %v7160_v15 = vmul.f32 -1.442695, %v5535_v38 }
 0xa03   : > { %v8415_v49 = vpop.eup %8414  ;;  %8434 = vrcp.f32 %v5486_v10  ;;  %v5592_v18 = vmul.f32 %v8413_v58, %v11630_v43 }
 0xa04   : > { %v8417_v12 = vpop.eup %8416  ;;  %8436 = vrcp.f32 %v5487_v1  ;;  %v7157_v1 = vmul.f32 -1.442695, %v5532_v40  ;;  %v5593_v31 = vmul.f32 %v8415_v49, %v11633_v16 }
 0xa05   : > { %v8419_v54 = vpop.eup %8418  ;;  %8438 = vtanh.f32 %v5509_v19  ;;  %v7158_v19 = vmul.f32 -1.442695, %v5533_v4  ;;  %v5594_v33 = vmul.f32 %v8417_v12, %v11636_v2 }
 0xa06   : > { %v8421_v55 = vpop.eup %8420  ;;  %8440 = vtanh.f32 %v5510_v14  ;;  %v7159_v14 = vmul.f32 -1.442695, %v5534_v44  ;;  %v5595_v40 = vmul.f32 %v8419_v54, %v11638_v24 }
 0xa07   : > { %v8423_v10 = vpop.eup %8422  ;;  %8442 = vtanh.f32 %v5511_v46  ;;  %v5596_v16 = vmul.f32 %v8421_v55, %v11640_v32 }
 0xa08   : > { %v8425_v45 = vpop.eup %8424  ;;  %8444 = vpow2.f32 %v7153_v8  ;;  %v5600_v25 = vmul.f32 %v8423_v10, %v11952_v56 }
 0xa09   : > { %v8427_v57 = vpop.eup %8426  ;;  %8446 = vpow2.f32 %v7154_v47  ;;  %v5601_v53 = vmul.f32 %v8425_v45, %v11955_v30 }
 0xa0a   : > { %v8429_v3 = vpop.eup %8428  ;;  %8448 = vpow2.f32 %v7155_v39  ;;  %v5602_v58 = vmul.f32 %v8427_v57, %v11958_v20  ;;  %v11995_v49 = vadd.f32 %v5600_v25, %v5592_v18 }
 0xa0b   : > { %v8431_v46 = vpop.eup %8430  ;;  %8450 = vpow2.f32 %v7156_v26  ;;  %v5603_v56 = vmul.f32 %v8429_v3, %v11962_v42  ;;  %v11998_v2 = vadd.f32 %v5601_v53, %v5593_v31 }
 0xa0c   : > { %v8433_v43 = vpop.eup %8432  ;;  %8452 = vpow2.f32 %v7157_v1  ;;  %v5604_v45 = vmul.f32 %v8431_v46, %v11965_v27  ;;  %v12001_v38 = vadd.f32 %v5602_v58, %v5594_v33 }
 0xa0d   : > { %v8435_v39 = vpop.eup %8434  ;;  %8454 = vpow2.f32 %v7158_v19  ;;  %v12003_v54 = vadd.f32 %v5603_v56, %v5595_v40  ;;  %v5597_v10 = vmul.f32 %v8433_v43, %v11653_v22 }
 0xa0e   : > { %v8437_v12 = vpop.eup %8436  ;;  %8456 = vpow2.f32 %v7159_v14  ;;  %v12005_v32 = vadd.f32 %v5604_v45, %v5596_v16  ;;  %v5598_v18 = vmul.f32 %v8435_v39, %v11655_v51 }
 0xa0f   : > { %v8439_v24 = vpop.eup %8438  ;;  %8458 = vpow2.f32 %v7160_v15  ;;  %v5599_v3 = vmul.f32 %v8437_v12, %v11657_v17 }
 0xa10   : > { %v8441_v30 = vpop.eup %8440  ;;  %8460 = vtanh.f32 %v11995_v49  ;;  %v5605_v31 = vmul.f32 %v8439_v24, %v11968_v34 }
 0xa11   : > { %v8443_v20 = vpop.eup %8442  ;;  %8462 = vtanh.f32 %v11998_v2  ;;  %v5606_v33 = vmul.f32 %v8441_v30, %v11971_v41 }
 0xa12   : > { %v8445_v42 = vpop.eup %8444  ;;  %8464 = vtanh.f32 %v12001_v38  ;;  %v5607_v22 = vmul.f32 %v8443_v20, %v11974_v6  ;;  %v12018_v53 = vadd.f32 %v5605_v31, %v5597_v10 }
 0xa13   : > { %v8447_v8 = vpop.eup %8446  ;;  %v5568_v4 = vadd.f32 1.0, %v8445_v42  ;;  %8466 = vtanh.f32 %v12003_v54  ;;  %v12020_v43 = vadd.f32 %v5606_v33, %v5598_v18 }
 0xa14   : > { %v8449_v27 = vpop.eup %8448  ;;  %v5569_v47 = vadd.f32 1.0, %v8447_v8  ;;  %8468 = vtanh.f32 %v12005_v32  ;;  %v12022_v17 = vadd.f32 %v5607_v22, %v5599_v3 }
 0xa15   : > { %v8451_v55 = vpop.eup %8450  ;;  %v5570_v44 = vadd.f32 1.0, %v8449_v27  ;;  %8470 = vrcp.f32 %v5568_v4 }
 0xa16   : > { %v8453_v26 = vpop.eup %8452  ;;  %v5571_v1 = vadd.f32 1.0, %v8451_v55  ;;  %8472 = vrcp.f32 %v5569_v47 }
 0xa17   : > { %v8455_v57 = vpop.eup %8454  ;;  %v5572_v19 = vadd.f32 1.0, %v8453_v26  ;;  %8474 = vrcp.f32 %v5570_v44 }
 0xa18   : > { %v8457_v14 = vpop.eup %8456  ;;  %v5573_v25 = vadd.f32 1.0, %v8455_v57  ;;  %8476 = vrcp.f32 %v5571_v1 }
 0xa19   : > { %v8459_v46 = vpop.eup %8458  ;;  %v5574_v15 = vadd.f32 1.0, %v8457_v14  ;;  %8478 = vrcp.f32 %v5572_v19 }
 0xa1a   : > { %v8461_v51 = vpop.eup %8460  ;;  %v5575_v40 = vadd.f32 1.0, %v8459_v46  ;;  %8480 = vrcp.f32 %v5573_v25 }
 0xa1b   : > { %v8463_v34 = vpop.eup %8462  ;;  %8482 = vrcp.f32 %v5574_v15 }
 0xa1c   : > { %v8465_v58 = vpop.eup %8464  ;;  %8484 = vrcp.f32 %v5575_v40 }
 0xa1d   : > { %v8467_v16 = vpop.eup %8466  ;;  %8486 = vtanh.f32 %v12018_v53 }
 0xa1e   : > { %v8469_v41 = vpop.eup %8468  ;;  %8488 = vtanh.f32 %v12020_v43 }
 0xa1f   : > { %v8471_v6 = vpop.eup %8470  ;;  %8490 = vtanh.f32 %v12022_v17 }
 0xa20   : > { %v8473_v39 = vpop.eup %8472  ;;  %v5624_v56 = vmul.f32 %v8471_v6, %v8461_v51 }
 0xa21   : > { %v8475_v12 = vpop.eup %8474  ;;  %v5625_v45 = vmul.f32 %v8473_v39, %v8463_v34 }
 0xa22   : > { %v8477_v24 = vpop.eup %8476  ;;  %v5626_v30 = vmul.f32 %v8475_v12, %v8465_v58  ;;  %v5880_v20 = vpack.c.bf16 %v5624_v56, %v5624_v56 }
 0xa23   : > { %v8479_v42 = vpop.eup %8478  ;;  %v5627_v8 = vmul.f32 %v8477_v24, %v8467_v16  ;;  %v5640_v4 = vcombine.low %v5624_v56, %v5625_v45  ;;  %v5881_v27 = vpack.c.bf16 %v5625_v45, %v5625_v45 }
 0xa24   : > { %v8481_v47 = vpop.eup %8480  ;;  %v5628_v55 = vmul.f32 %v8479_v42, %v8469_v41  ;;  %v5882_v44 = vpack.c.bf16 %v5626_v30, %v5626_v30  ;;  %v5896_v19 = vunpack.c.l.b16 %v5880_v20 }
 0xa25   : > { %v8483_v10 = vpop.eup %8482  ;;  %v5641_v26 = vcombine.low %v5626_v30, %v5627_v8  ;;  %v5883_v1 = vpack.c.bf16 %v5627_v8, %v5627_v8  ;;  %v5897_v18 = vunpack.c.l.b16 %v5881_v27  ;;  %v5650_v25 = vrot.slane %v5640_v4, %v9766_v35 }
 0xa26   : > { %v8485_v57 = vpop.eup %8484  ;;  %v5898_v31 = vunpack.c.l.b16 %v5882_v44  ;;  %v5884_v3 = vpack.c.bf16 %v5628_v55, %v5628_v55 }
 0xa27   : > { %v8487_v14 = vpop.eup %8486  ;;  %v5657_v33 = vrot.slane %v5641_v26, %v9766_v35  ;;  %v5899_v46 = vunpack.c.l.b16 %v5883_v1  ;;  %v5904_v15 = vrot.slane %v5897_v18, 7 }
 0xa28   : > { %v8489_v22 = vpop.eup %8488  ;;  %v5629_v51 = vmul.f32 %v8487_v14, %v8481_v47  ;;  %v5906_v40 = vrot.slane %v5898_v31, 6  ;;  %v5900_v34 = vunpack.c.l.b16 %v5884_v3 }
 0xa29   : > { %v8491_v58 = vpop.eup %8490  ;;  %v5630_v16 = vmul.f32 %v8489_v22, %v8483_v10  ;;  %v5672_v41 = vcombine.low %v5650_v25, %v5657_v33  ;;  %v5908_v6 = vrot.slane %v5899_v46, 5  ;;  %v5905_v39 = vsel %vm1662_vm0, %v5904_v15, %v5896_v19  ;;  %v8948_v22 = vld [vmem:[#allocation9] ss:$16 sps:$4 sm:$0xff]  }
 0xa2a   : > { %v5631_v56 = vmul.f32 %v8491_v58, %v8485_v57  ;;  %v5642_v12 = vcombine.low %v5628_v55, %v5629_v51  ;;  %v5885_v45 = vpack.c.bf16 %v5629_v51, %v5629_v51  ;;  %v5907_v24 = vsel %vm1665_vm1, %v5906_v40, %v5905_v39  ;;  %v8949_v51 = vld [vmem:[#allocation9 + $0x8] ss:$16 sps:$4 sm:$0xff]   ;;  %v8950_v40 = vld [vmem:[#allocation9 + $0x24] ss:$16 sps:$4 sm:$0xff]   ;;  %v8952_v58 = vld [vmem:[#allocation9 + $0x20] ss:$16 sps:$4 sm:$0xff]  }
 0xa2b   : > { %v5886_v30 = vpack.c.bf16 %v5630_v16, %v5630_v16  ;;  %v5909_v20 = vsel %vm1668_vm2, %v5908_v6, %v5907_v24  ;;  %v5910_v42 = vrot.slane %v5900_v34, 4  ;;  %v5680_v19 = vrot.slane %v5672_v41, %v9766_v35  ;;  %v8951_v34 = vld [vmem:[#allocation9 + $0x2c] ss:$16 sps:$4 sm:$0xff]   ;;  %v8954_v41 = vld [vmem:[#allocation9 + $0x44] ss:$16 sps:$4 sm:$0xff]  }
 0xa2c   : > { %v5643_v8 = vcombine.low %v5630_v16, %v5631_v56  ;;  %v5887_v4 = vpack.c.bf16 %v5631_v56, %v5631_v56  ;;  %v5901_v27 = vunpack.c.l.b16 %v5885_v45  ;;  %v5664_v10 = vrot.slane %v5642_v12, %v9766_v35  ;;  %v8953_v16 = vld [vmem:[#allocation9 + $0x28] ss:$16 sps:$4 sm:$0xff]   ;;  %v8955_v6 = vld [vmem:[#allocation9 + $0x4c] ss:$16 sps:$4 sm:$0xff]   ;;  %v8956_v39 = vld [vmem:[#allocation9 + $0x40] ss:$16 sps:$4 sm:$0xff]  }
 0xa2d   : > { %v5902_v47 = vunpack.c.l.b16 %v5886_v30  ;;  %v5911_v44 = vsel %vm1671_vm3, %v5910_v42, %v5909_v20  ;;  %v8957_v56 = vld [vmem:[#allocation9 + $0x48] ss:$16 sps:$4 sm:$0xff]   ;;  %v8958_v12 = vld [vmem:[#allocation9 + $0x64] ss:$16 sps:$4 sm:$0xff]   ;;  %v8959_v45 = vld [vmem:[#allocation9 + $0x6c] ss:$16 sps:$4 sm:$0xff]  }
 0xa2e   : > { %v5671_v26 = vrot.slane %v5643_v8, %v9766_v35  ;;  %v5903_v1 = vunpack.c.l.b16 %v5887_v4  ;;  %v5912_v18 = vrot.slane %v5901_v27, 3  ;;  %v8960_v24 = vld [vmem:[#allocation9 + $0x60] ss:$16 sps:$4 sm:$0xff]   ;;  %v8961_v30 = vld [vmem:[#allocation9 + $0x68] ss:$16 sps:$4 sm:$0xff]  }
 0xa2f   : > { %v5914_v55 = vrot.slane %v5902_v47, 2  ;;  %v8963_v20 = vld [vmem:[#allocation9 + $0x8c] ss:$16 sps:$4 sm:$0xff]   ;;  %v8964_v42 = vld [vmem:[#allocation9 + $0x80] ss:$16 sps:$4 sm:$0xff]  }
 0xa30   : > { %v5673_v57 = vcombine.low %v5664_v10, %v5671_v26  ;;  %v5913_v31 = vsel %vm1674_vm4, %v5912_v18, %v5911_v44  ;;  %v5916_v3 = vrot.slane %v5903_v1, 1  ;;  %v8965_v8 = vld [vmem:[#allocation9 + $0x88] ss:$16 sps:$4 sm:$0xff]   ;;  %v8966_v4 = vld [vmem:[#allocation9 + $0xa4] ss:$16 sps:$4 sm:$0xff]  }
 0xa31   : > { %v5915_v14 = vsel %vm1677_vm5, %v5914_v55, %v5913_v31  ;;  %v8967_v27 = vld [vmem:[#allocation9 + $0xac] ss:$16 sps:$4 sm:$0xff]   ;;  %v8968_v47 = vld [vmem:[#allocation9 + $0xa0] ss:$16 sps:$4 sm:$0xff]   ;;  %v8969_v44 = vld [vmem:[#allocation9 + $0xa8] ss:$16 sps:$4 sm:$0xff]  }
 0xa32   : > { %v5687_v25 = vrot.slane %v5673_v57, %v9766_v35  ;;  %v12040_v33 = vsel %vm1680_vm6, %v5916_v3, %v5915_v14  ;;  %v8970_v10 = vld [vmem:[#allocation9 + $0xc4] ss:$16 sps:$4 sm:$0xff]   ;;  %v8971_v26 = vld [vmem:[#allocation9 + $0xcc] ss:$16 sps:$4 sm:$0xff]   ;;  %v8972_v1 = vld [vmem:[#allocation9 + $0xc0] ss:$16 sps:$4 sm:$0xff]  }
 0xa33   : > { %v8973_v18 = vld [vmem:[#allocation9 + $0xc8] ss:$16 sps:$4 sm:$0xff]   ;;  %v8974_v55 = vld [vmem:[#allocation9 + $0xe4] ss:$16 sps:$4 sm:$0xff]   ;;  %v8975_v57 = vld [vmem:[#allocation9 + $0xec] ss:$16 sps:$4 sm:$0xff]   ;;  %v5918_v3 = vpack.c.b16 %v12040_v33, %v12040_v33 }
 0xa34   : > { %v5688_v46 = vcombine.low %v5680_v19, %v5687_v25  ;;  %v8976_v19 = vld [vmem:[#allocation9 + $0xe0] ss:$16 sps:$4 sm:$0xff]   ;;  %v8977_v31 = vld [vmem:[#allocation9 + $0xe8] ss:$16 sps:$4 sm:$0xff]   ;;  %v8978_v14 = vld [vmem:[#allocation11 + $0x4] ss:$16 sps:$4 sm:$0xff]  }
 0xa35   : > { %v8979_v25 = vld [vmem:[#allocation11 + $0xc] ss:$16 sps:$4 sm:$0xff]   ;;  %v13047_v33 = vld [vmem:[#allocation63_spill] sm:$0xff] }
 0xa36   : > { %v5690_v15 = vpack.c.bf16 %v5688_v46, %v5688_v46  ;;  %v8980_v46 = vld [vmem:[#allocation11] ss:$16 sps:$4 sm:$0xff]  }
 0xa38   : > { %5725 = vmatmul.mubr.bf16.vlgmr.msra.gmra.mrb[52].mxu0 %v5690_v15  ;;  %5766 = vmatmul.mubr.bf16.vlgmr.msra.gmra.mrb[52].mxu1 %v5690_v15  ;;  %v8981_v15 = vld [vmem:[#allocation11 + $0x8] ss:$16 sps:$4 sm:$0xff]  }
 0xa39   : > { %5921 = vmatpush1.bf16.msra.mxu0 %v8948_v22  ;;  %5962 = vmatpush1.bf16.msra.mxu1 %v8949_v51  ;;  %v8982_v22 = vld [vmem:[#allocation11 + $0x24] ss:$16 sps:$4 sm:$0xff]   ;;  %v8983_v51 = vld [vmem:[#allocation11 + $0x2c] ss:$16 sps:$4 sm:$0xff]  }
 0xa3a   : > { %5922 = vmatprep.subr.bf16.mxu0 %v8950_v40  ;;  %5963 = vmatprep.subr.bf16.mxu1 %v8951_v34  ;;  %v8984_v40 = vld [vmem:[#allocation11 + $0x20] ss:$16 sps:$4 sm:$0xff]   ;;  %v8985_v34 = vld [vmem:[#allocation11 + $0x28] ss:$16 sps:$4 sm:$0xff]  }
 0xa3b   : > { %5952 = vmatprep.mubr.bf16.mxu0 %v12646_v36  ;;  %5993 = vmatprep.mubr.bf16.mxu1 %v12646_v36  ;;  %v8962_v36 = vld [vmem:[#allocation9 + $0x84] ss:$16 sps:$4 sm:$0xff]  }
 0xa3d   : > { %5923 = vmatpush1.bf16.msra.mxu0 %v8952_v58  ;;  %5964 = vmatpush1.bf16.msra.mxu1 %v8953_v16  ;;  %v13048_v58 = vld [vmem:[#allocation64_spill] sm:$0xff]  ;;  %v13049_v16 = vld [vmem:[#allocation65_spill] sm:$0xff] }
 0xa3e   : > { %5924 = vmatprep.subr.bf16.mxu0 %v8954_v41  ;;  %5965 = vmatprep.subr.bf16.mxu1 %v8955_v6  ;;  %v13050_v41 = vld [vmem:[#allocation66_spill] sm:$0xff]  ;;  %v13051_v6 = vld [vmem:[#allocation67_spill] sm:$0xff] }
 0xa41   : > { %5925 = vmatpush1.bf16.msra.mxu0 %v8956_v39  ;;  %5966 = vmatpush1.bf16.msra.mxu1 %v8957_v56  ;;  %v13052_v39 = vld [vmem:[#allocation68_spill] sm:$0xff]  ;;  %v13053_v56 = vld [vmem:[#allocation69_spill] sm:$0xff] }
 0xa42   : > { %5926 = vmatprep.subr.bf16.mxu0 %v8958_v12  ;;  %5967 = vmatprep.subr.bf16.mxu1 %v8959_v45  ;;  %v13054_v12 = vld [vmem:[#allocation70_spill] sm:$0xff]  ;;  %v13055_v45 = vld [vmem:[#allocation71_spill] sm:$0xff] }
 0xa45   : > { %5927 = vmatpush1.bf16.msra.mxu0 %v8960_v24  ;;  %5968 = vmatpush1.bf16.msra.mxu1 %v8961_v30  ;;  %v13056_v24 = vld [vmem:[#allocation72_spill] sm:$0xff]  ;;  %v13057_v30 = vld [vmem:[#allocation73_spill] sm:$0xff] }
 0xa46   : > { %5928 = vmatprep.subr.bf16.mxu0 %v8962_v36  ;;  %5969 = vmatprep.subr.bf16.mxu1 %v8963_v20  ;;  %v13058_v36 = vld [vmem:[#allocation74_spill] sm:$0xff]  ;;  %v13059_v20 = vld [vmem:[#allocation75_spill] sm:$0xff] }
 0xa49   : > { %5929 = vmatpush1.bf16.msra.mxu0 %v8964_v42  ;;  %5970 = vmatpush1.bf16.msra.mxu1 %v8965_v8  ;;  %v13060_v42 = vld [vmem:[#allocation76_spill] sm:$0xff]  ;;  %v13061_v8 = vld [vmem:[#allocation23_spill] sm:$0xff] }
 0xa4a   : > { %5930 = vmatprep.subr.bf16.mxu0 %v8966_v4  ;;  %5971 = vmatprep.subr.bf16.mxu1 %v8967_v27  ;;  %v13062_v4 = vld [vmem:[#allocation24_spill] sm:$0xff]  ;;  %v13063_v27 = vld [vmem:[#allocation25_spill] sm:$0xff] }
 0xa4d   : > { %5931 = vmatpush1.bf16.msra.mxu0 %v8968_v47  ;;  %5972 = vmatpush1.bf16.msra.mxu1 %v8969_v44  ;;  %v13064_v47 = vld [vmem:[#allocation26_spill] sm:$0xff] }
 0xa4e   : > { %5932 = vmatprep.subr.bf16.mxu0 %v8970_v10  ;;  %5973 = vmatprep.subr.bf16.mxu1 %v8971_v26  ;;  %v12103_v26 = vld [vmem:[%s9578_s10] sm:$0xff] }
 0xa51   : > { %5933 = vmatpush1.bf16.msra.mxu0 %v8972_v1  ;;  %5974 = vmatpush1.bf16.msra.mxu1 %v8973_v18 }
 0xa52   : > { %5934 = vmatprep.subr.bf16.mxu0 %v8974_v55  ;;  %5975 = vmatprep.subr.bf16.mxu1 %v8975_v57  ;;  %v12107_v57 = vld [vmem:[%s9578_s10 + $0x8] sm:$0xff] }
 0xa55   : > { %5935 = vmatpush1.bf16.msra.mxu0 %v8976_v19  ;;  %5976 = vmatpush1.bf16.msra.mxu1 %v8977_v31 }
 0xa56   : > { %6398 = vmatprep.subr.bf16.mxu0 %v8978_v14  ;;  %6439 = vmatprep.subr.bf16.mxu1 %v8979_v25 }
 0xa58   : > { %5953 = vmatmul.mubr.bf16.vlgmr.msra.gmra.mrb[56].mxu0 %v5918_v3  ;;  %5994 = vmatmul.mubr.bf16.vlgmr.msra.gmra.mrb[56].mxu1 %v5918_v3 }
 0xa59   : > { %6399 = vmatpush1.bf16.msra.mxu0 %v8980_v46  ;;  %6440 = vmatpush1.bf16.msra.mxu1 %v8981_v15 }
 0xa5a   : > { %6400 = vmatprep.subr.bf16.mxu0 %v8982_v22  ;;  %6441 = vmatprep.subr.bf16.mxu1 %v8983_v51  ;;  %v12111_v22 = vld [vmem:[%s9578_s10 + $0x10] sm:$0xff] }
 0xa5d   : > { %6401 = vmatpush1.bf16.msra.mxu0 %v8984_v40  ;;  %6442 = vmatpush1.bf16.msra.mxu1 %v8985_v34 }
 0xa5e   : > { %6402 = vmatprep.subr.bf16.mxu0 %v11715_v52  ;;  %6443 = vmatprep.subr.bf16.mxu1 %v11718_v37  ;;  %v13028_v52 = vld [vmem:[#allocation44_spill] sm:$0xff]  ;;  %v13029_v37 = vld [vmem:[#allocation45_spill] sm:$0xff] }
 0xa61   : > { %6403 = vmatpush1.bf16.msra.mxu0 %v11721_v61  ;;  %6444 = vmatpush1.bf16.msra.mxu1 %v11724_v7  ;;  %v13030_v61 = vld [vmem:[#allocation46_spill] sm:$0xff]  ;;  %v13031_v7 = vld [vmem:[#allocation47_spill] sm:$0xff] }
 0xa62   : > { %6404 = vmatprep.subr.bf16.mxu0 %v11727_v11  ;;  %6445 = vmatprep.subr.bf16.mxu1 %v11730_v28  ;;  %v13032_v11 = vld [vmem:[#allocation48_spill] sm:$0xff]  ;;  %v13033_v28 = vld [vmem:[#allocation49_spill] sm:$0xff] }
 0xa65   : > { %6405 = vmatpush1.bf16.msra.mxu0 %v11733_v62  ;;  %6446 = vmatpush1.bf16.msra.mxu1 %v11736_v29  ;;  %v13034_v62 = vld [vmem:[#allocation50_spill] sm:$0xff]  ;;  %v13035_v29 = vld [vmem:[#allocation51_spill] sm:$0xff] }
 0xa66   : > { %6406 = vmatprep.subr.bf16.mxu0 %v11739_v5  ;;  %6447 = vmatprep.subr.bf16.mxu1 %v11742_v60  ;;  %v13036_v5 = vld [vmem:[#allocation52_spill] sm:$0xff]  ;;  %v13037_v60 = vld [vmem:[#allocation53_spill] sm:$0xff] }
 0xa69   : > { %6407 = vmatpush1.bf16.msra.mxu0 %v11745_v13  ;;  %6448 = vmatpush1.bf16.msra.mxu1 %v11748_v21  ;;  %v13038_v13 = vld [vmem:[#allocation54_spill] sm:$0xff]  ;;  %v13039_v21 = vld [vmem:[#allocation55_spill] sm:$0xff] }
 0xa6a   : > { %6408 = vmatprep.subr.bf16.mxu0 %v11751_v48  ;;  %6449 = vmatprep.subr.bf16.mxu1 %v11754_v59  ;;  %v13040_v48 = vld [vmem:[#allocation56_spill] sm:$0xff]  ;;  %v13041_v59 = vld [vmem:[#allocation57_spill] sm:$0xff] }
 0xa6d   : > { %6409 = vmatpush1.bf16.msra.mxu0 %v11757_v23  ;;  %6450 = vmatpush1.bf16.msra.mxu1 %v11760_v0  ;;  %v13042_v23 = vld [vmem:[#allocation58_spill] sm:$0xff]  ;;  %v13043_v0 = vld [vmem:[#allocation59_spill] sm:$0xff] }
 0xa6e   : > { %6410 = vmatprep.subr.bf16.mxu0 %v11763_v9  ;;  %6451 = vmatprep.subr.bf16.mxu1 %v11766_v50  ;;  %v13044_v9 = vld [vmem:[#allocation60_spill] sm:$0xff]  ;;  %v13045_v50 = vld [vmem:[#allocation61_spill] sm:$0xff] }
 0xa71   : > { %6411 = vmatpush1.bf16.msra.mxu0 %v11769_v63  ;;  %6452 = vmatpush1.bf16.msra.mxu1 %v13028_v52  ;;  %v13046_v63 = vld [vmem:[#allocation62_spill] sm:$0xff] }
 0xa72   : > { %6412 = vmatprep.subr.bf16.mxu0 %v13029_v37  ;;  %6453 = vmatprep.subr.bf16.mxu1 %v13030_v61  ;;  %v12115_v61 = vld [vmem:[%s9578_s10 + $0x18] sm:$0xff] }
 0xa75   : > { %6413 = vmatpush1.bf16.msra.mxu0 %v13031_v7  ;;  %6454 = vmatpush1.bf16.msra.mxu1 %v13032_v11 }
 0xa76   : > { %6414 = vmatprep.subr.bf16.mxu0 %v13033_v28  ;;  %6455 = vmatprep.subr.bf16.mxu1 %v13034_v62 }
 0xa79   : > { %6415 = vmatpush1.bf16.msra.mxu0 %v13035_v29  ;;  %6456 = vmatpush1.bf16.msra.mxu1 %v13036_v5 }
 0xa7a   : > { %6416 = vmatprep.subr.bf16.mxu0 %v13037_v60  ;;  %6457 = vmatprep.subr.bf16.mxu1 %v13038_v13  ;;  %v13065_v60 = vld [vmem:[#allocation27_spill] sm:$0xff] }
 0xa7d   : > { %6417 = vmatpush1.bf16.msra.mxu0 %v13039_v21  ;;  %6458 = vmatpush1.bf16.msra.mxu1 %v13040_v48 }
 0xa7e   : > { %6418 = vmatprep.subr.bf16.mxu0 %v13041_v59  ;;  %6459 = vmatprep.subr.bf16.mxu1 %v13042_v23 }
 0xa81   : > { %6419 = vmatpush1.bf16.msra.mxu0 %v13043_v0  ;;  %6460 = vmatpush1.bf16.msra.mxu1 %v13044_v9 }
 0xa82   : > { %6420 = vmatprep.subr.bf16.mxu0 %v13045_v50  ;;  %6461 = vmatprep.subr.bf16.mxu1 %v13046_v63 }
 0xa85   : > { %6421 = vmatpush1.bf16.msra.mxu0 %v13047_v33  ;;  %6462 = vmatpush1.bf16.msra.mxu1 %v13048_v58 }
 0xa86   : > { %6422 = vmatprep.subr.bf16.mxu0 %v13049_v16  ;;  %6463 = vmatprep.subr.bf16.mxu1 %v13050_v41 }
 0xa89   : > { %6423 = vmatpush1.bf16.msra.mxu0 %v13051_v6  ;;  %6464 = vmatpush1.bf16.msra.mxu1 %v13052_v39 }
 0xa8a   : > { %6424 = vmatprep.subr.bf16.mxu0 %v13053_v56  ;;  %6465 = vmatprep.subr.bf16.mxu1 %v13054_v12 }
 0xa8d   : > { %6425 = vmatpush1.bf16.msra.mxu0 %v13055_v45  ;;  %6466 = vmatpush1.bf16.msra.mxu1 %v13056_v24 }
 0xa8e   : > { %6426 = vmatprep.subr.bf16.mxu0 %v13057_v30  ;;  %6467 = vmatprep.subr.bf16.mxu1 %v13058_v36  ;;  %v7168_v30 = vld [vmem:[%s9567_s1 + $0x7] ss:$8 sm:$0xf] }
 0xa91   : > { %6427 = vmatpush1.bf16.msra.mxu0 %v13059_v20  ;;  %6468 = vmatpush1.bf16.msra.mxu1 %v13060_v42 }
 0xa92   : > { %6428 = vmatprep.subr.bf16.mxu0 %v13061_v8  ;;  %6469 = vmatprep.subr.bf16.mxu1 %v13062_v4  ;;  %v7169_v4 = vld [vmem:[%s9567_s1 + $0x27] ss:$8 sm:$0xf] }
 0xa95   : > { %6429 = vmatpush1.bf16.msra.mxu0 %v13063_v27  ;;  %6470 = vmatpush1.bf16.msra.mxu1 %v13064_v47  ;;  %v7170_v27 = vld [vmem:[%s9567_s1 + $0x47] ss:$8 sm:$0xf] }
 0xa96   : > { %v7171_v47 = vld [vmem:[%s9567_s1 + $0x67] ss:$8 sm:$0xf] }
 0xb0b   : > { %v5726_v44 = vpop.f32.mrb[52].mxu0  ;;  %v5767_v10 = vpop.f32.mrb[52].mxu1 }
 0xb0c   : > { %v5727_v1 = vadd.f32 %v12103_v26, %v5726_v44  ;;  %v5728_v18 = vpop.f32.mrb[53].mxu0  ;;  %v5769_v55 = vpop.f32.mrb[53].mxu1  ;;  %v5768_v51 = vadd.f32 %v12111_v22, %v5767_v10  ;;  %v7172_v44 = vld [vmem:[%s9567_s1 + $0x87] ss:$8 sm:$0xf] }
 0xb0d   : > { %v5729_v19 = vadd.f32 %v12107_v57, %v5728_v18  ;;  %v5730_v31 = vpop.f32.mrb[54].mxu0  ;;  %v5771_v3 = vpop.f32.mrb[54].mxu1  ;;  %v5770_v7 = vadd.f32 %v12115_v61, %v5769_v55 }
 0xb0e   : > { %v7161_v14 = vmul.f32 -1.442695, %v5727_v1  ;;  %v5731_v25 = vpop.f32.mrb[55].mxu0  ;;  %v5772_v46 = vpop.f32.mrb[55].mxu1 }
 0xb0f   : > { %v7162_v15 = vmul.f32 -1.442695, %v5729_v19  ;;  %v7163_v11 = vmul.f32 -1.442695, %v5770_v7 }
 0xb10   : > { %8492 = vpow2.f32 %v7161_v14  ;;  %v7173_v31 = vld [vmem:[%s9567_s1 + $0xa7] ss:$8 sm:$0xf] }
 0xb11   : > { %8494 = vpow2.f32 %v7162_v15  ;;  %v7174_v3 = vld [vmem:[%s9567_s1 + $0xc7] ss:$8 sm:$0xf] }
 0xb12   : > { %8496 = vtanh.f32 %v5768_v51  ;;  %v7175_v51 = vld [vmem:[%s9567_s1 + $0xe7] ss:$8 sm:$0xf]  ;;  %s9112_s1 = scalar_lea.vmem %s9111_s26, 2048 }
 0xb13   : > { %p9114_p6 = scmp.lt.s32.totalorder %s9112_s1, %s9106_s7 }
 0xb15   : > { %p9115_p11 = por %p9114_p6, %p9113_p13 }
 0xb17   : > { %p9116_p5 = pnand %p9115_p11, %p9109_p7 }
 0xb1a   : > { %v8493_v40 = vpop.eup %8492 }
 0xb1b   : > { %v8495_v34 = vpop.eup %8494  ;;  %v5777_v52 = vadd.f32 1.0, %v8493_v40 }
 0xb1c   : > { %v5783_v37 = vadd.f32 1.0, %v8495_v34  ;;  %v8497_v28 = vpop.eup %8496 }
 0xb1d   : > { %8498 = vrcp.f32 %v5777_v52 }
 0xb1e   : > { %8500 = vrcp.f32 %v5783_v37 }
 0xb1f   : > { %8502 = vpow2.f32 %v7163_v11 }
 0xb27   : > { %v8499_v62 = vpop.eup %8498 }
 0xb28   : > { %v8501_v29 = vpop.eup %8500  ;;  %v5794_v5 = vmul.f32 %v8499_v62, %v8497_v28 }
 0xb29   : > { %v5793_v13 = vmul.f32 %v8501_v29, %v13065_v60  ;;  %v8503_v24 = vpop.eup %8502 }
 0xb2a   : > { %v5790_v19 = vadd.f32 1.0, %v8503_v24 }
 0xb2b   : > { %v12119_v21 = vadd.f32 %v5794_v5, %v5793_v13  ;;  %v5954_v48 = vpop.f32.mrb[56].mxu0  ;;  %v5995_v59 = vpop.f32.mrb[56].mxu1 }
 0xb2c   : > { %v5956_v23 = vpop.f32.mrb[57].mxu0  ;;  %v5997_v0 = vpop.f32.mrb[57].mxu1 }
 0xb2d   : > { %v6006_v9 = vcombine.low %v5954_v48, %v5956_v23  ;;  %v6007_v50 = vcombine.high %v5954_v48, %v5956_v23  ;;  %v6008_v63 = vcombine.low %v5995_v59, %v5997_v0  ;;  %v6009_v33 = vcombine.high %v5995_v59, %v5997_v0  ;;  %v5958_v58 = vpop.f32.mrb[58].mxu0  ;;  %v5999_v16 = vpop.f32.mrb[58].mxu1 }
 0xb2e   : > { %v5959_v41 = vpop.f32.mrb[59].mxu0  ;;  %v6000_v6 = vpop.f32.mrb[59].mxu1  ;;  %8504 = vtanh.f32 %v12119_v21 }
 0xb2f   : > { %v6016_v39 = vrot.slane %v6006_v9, %v9766_v35  ;;  %v6023_v56 = vrot.slane %v6007_v50, %v9766_v35  ;;  %v6030_v12 = vrot.slane %v6008_v63, %v9766_v35  ;;  %v6037_v45 = vrot.slane %v6009_v33, %v9766_v35 }
 0xb30   : > { %8506 = vrcp.f32 %v5790_v19 }
 0xb31   : > { %v6038_v36 = vcombine.low %v6016_v39, %v6030_v12  ;;  %v6039_v20 = vcombine.high %v6016_v39, %v6030_v12  ;;  %v6040_v42 = vcombine.low %v6023_v56, %v6037_v45  ;;  %v6041_v8 = vcombine.high %v6023_v56, %v6037_v45 }
 0xb33   : > { %v6048_v10 = vrot.slane %v6038_v36, %v9766_v35  ;;  %v6055_v1 = vrot.slane %v6040_v42, %v9766_v35  ;;  %v6062_v18 = vrot.slane %v6039_v20, %v9766_v35  ;;  %v6069_v55 = vrot.slane %v6041_v8, %v9766_v35 }
 0xb35   : > { %v6070_v14 = vcombine.high %v6048_v10, %v6048_v10  ;;  %v6071_v25 = vcombine.high %v6055_v1, %v6055_v1  ;;  %v6072_v46 = vcombine.high %v6062_v18, %v6062_v18  ;;  %v6073_v15 = vcombine.high %v6069_v55, %v6069_v55 }
 0xb36   : > { %v12137_v40 = vadd.f32 %v7168_v30, %v6048_v10  ;;  %v12139_v34 = vadd.f32 %v7169_v4, %v6062_v18  ;;  %v12141_v52 = vadd.f32 %v7172_v44, %v6055_v1  ;;  %v12147_v11 = vadd.f32 %v7173_v31, %v6069_v55 }
 0xb37   : > { %v12143_v37 = vadd.f32 %v7170_v27, %v6070_v14  ;;  %v12145_v7 = vadd.f32 %v7171_v47, %v6072_v46  ;;  %v12149_v28 = vadd.f32 %v7174_v3, %v6071_v25  ;;  %v12154_v5 = vadd.f32 %v7175_v51, %v6073_v15 }
 0xb38   : > { %v7176_v62 = vmul.f32 -1.442695, %v12137_v40  ;;  %v7177_v29 = vmul.f32 -1.442695, %v12139_v34  ;;  %v7180_v48 = vmul.f32 -1.442695, %v12141_v52  ;;  %v8505_v56 = vpop.eup %8504 }
 0xb39   : > { %v7178_v60 = vmul.f32 -1.442695, %v12143_v37  ;;  %v7179_v13 = vmul.f32 -1.442695, %v12145_v7  ;;  %v6146_v59 = vrot.slane %v12137_v40, 1  ;;  %v6147_v0 = vrot.slane %v12139_v34, 1 }
 0xb3a   : > { %8508 = vpow2.f32 %v7176_v62  ;;  %v7181_v23 = vmul.f32 -1.442695, %v12147_v11  ;;  %v7182_v9 = vmul.f32 -1.442695, %v12149_v28  ;;  %v6148_v50 = vrot.slane %v12143_v37, 1  ;;  %v8507_v45 = vpop.eup %8506 }
 0xb3b   : > { %8510 = vpow2.f32 %v7177_v29  ;;  %v7183_v63 = vmul.f32 -1.442695, %v12154_v5  ;;  %v6149_v33 = vrot.slane %v12145_v7, 1  ;;  %v6150_v58 = vrot.slane %v12141_v52, 1 }
 0xb3c   : > { %8512 = vpow2.f32 %v7178_v60  ;;  %v7184_v16 = vmul.f32 -1.442695, %v6146_v59  ;;  %v7185_v41 = vmul.f32 -1.442695, %v6147_v0  ;;  %v7186_v6 = vmul.f32 -1.442695, %v6148_v50 }
 0xb3d   : > { %8514 = vpow2.f32 %v7179_v13  ;;  %v7187_v39 = vmul.f32 -1.442695, %v6149_v33  ;;  %v7188_v12 = vmul.f32 -1.442695, %v6150_v58  ;;  %v6151_v20 = vrot.slane %v12147_v11, 1 }
 0xb3e   : > { %8516 = vpow2.f32 %v7180_v48  ;;  %v5797_v42 = vmul.f32 %v8507_v45, %v8505_v56  ;;  %v6152_v44 = vrot.slane %v12149_v28, 1  ;;  %v6153_v18 = vrot.slane %v12154_v5, 1 }
 0xb3f   : > { %8518 = vpow2.f32 %v7181_v23  ;;  %v7189_v31 = vmul.f32 -1.442695, %v6151_v20 }
 0xb40   : > { %8520 = vpow2.f32 %v7182_v9  ;;  %v5799_v3 = vcombine.high %v5797_v42, %v5797_v42  ;;  %v5806_v46 = vrot.slane %v5797_v42, %v9766_v35  ;;  %v6397_v15 = vpack.c.bf16 %v5797_v42, %v5797_v42 }
 0xb41   : > { %8522 = vpow2.f32 %v7183_v63  ;;  %v7190_v29 = vmul.f32 -1.442695, %v6152_v44  ;;  %v7191_v9 = vmul.f32 -1.442695, %v6153_v18  ;;  %v6212_v18 = vrot.slane %v12143_v37, 2 }
 0xb42   : > { %8524 = vpow2.f32 %v7184_v16  ;;  %v5813_v60 = vrot.slane %v5799_v3, %v9766_v35  ;;  %v5814_v59 = vcombine.high %v5806_v46, %v5806_v46  ;;  %v5822_v23 = vrot.slane %v5806_v46, %v9766_v35  ;;  %7164 = vst.sshfl [vmem:[%s9585_s30 + $0x6] sm:$0x1 pattern:$0x73625140] %v5806_v46  ;;  %6430 = vmatprep.mubr.bf16.mxu0 %v6397_v15 }
 0xb43   : > { %8526 = vpow2.f32 %v7185_v41  ;;  %6471 = vmatprep.mubr.bf16.mxu1 %v6397_v15  ;;  %v6214_v3 = vrot.slane %v12141_v52, 2 }
 0xb44   : > { %v8509_v24 = vpop.eup %8508  ;;  %8528 = vpow2.f32 %v7186_v6  ;;  %v5815_v50 = vcombine.high %v5813_v60, %v5813_v60  ;;  %v5829_v63 = vrot.slane %v5813_v60, %v9766_v35  ;;  %7166 = vst.sshfl [vmem:[%s9585_s30 + $0x26] sm:$0x1 pattern:$0x73625140] %v5813_v60  ;;  %v5836_v16 = vrot.slane %v5814_v59, %v9766_v35 }
 0xb45   : > { %v8511_v30 = vpop.eup %8510  ;;  %v6114_v36 = vadd.f32 1.0, %v8509_v24  ;;  %8530 = vpow2.f32 %v7187_v39  ;;  %v5844_v41 = vcombine.high %v5822_v23, %v5822_v23  ;;  %7165 = vst.sshfl [vmem:[%s9585_s30 + $0xe] sm:$0x1 pattern:$0x73625140] %v5814_v59  ;;  %v6215_v60 = vrot.slane %v12147_v11, 2 }
 0xb46   : > { %v8513_v8 = vpop.eup %8512  ;;  %v6115_v4 = vadd.f32 1.0, %v8511_v30  ;;  %8532 = vpow2.f32 %v7188_v12  ;;  %v5843_v56 = vrot.slane %v5815_v50, %v9766_v35  ;;  %v5845_v12 = vcombine.high %v5829_v63, %v5829_v63  ;;  %7167 = vst.sshfl [vmem:[%s9585_s30 + $0x2e] sm:$0x1 pattern:$0x73625140] %v5815_v50 }
 0xb47   : > { %v8515_v27 = vpop.eup %8514  ;;  %v6116_v47 = vadd.f32 1.0, %v8513_v8  ;;  %8534 = vrcp.f32 %v6114_v36  ;;  %v5846_v30 = vcombine.high %v5836_v16, %v5836_v16  ;;  %5858 = vst [vmem:[%s9585_s30 + $0x16] sm:$0x1] %v5844_v41  ;;  %v6216_v23 = vrot.slane %v12149_v28, 2 }
 0xb48   : > { %v8517_v10 = vpop.eup %8516  ;;  %v6117_v1 = vadd.f32 1.0, %v8515_v27  ;;  %8536 = vrcp.f32 %v6115_v4  ;;  %v5847_v42 = vcombine.high %v5843_v56, %v5843_v56  ;;  %5862 = vst [vmem:[%s9585_s30 + $0x36] sm:$0x1] %v5845_v12  ;;  %v6217_v50 = vrot.slane %v12154_v5, 2 }
 0xb49   : > { %v8519_v55 = vpop.eup %8518  ;;  %v6118_v19 = vadd.f32 1.0, %v8517_v10  ;;  %8538 = vrcp.f32 %v6116_v47  ;;  %5859 = vst [vmem:[%s9585_s30 + $0x1e] sm:$0x1] %v5846_v30  ;;  %v6210_v47 = vrot.slane %v12137_v40, 2  ;;  %v6211_v10 = vrot.slane %v12139_v34, 2 }
 0xb4a   : > { %v8521_v14 = vpop.eup %8520  ;;  %v6119_v25 = vadd.f32 1.0, %v8519_v55  ;;  %8540 = vrcp.f32 %v6117_v1  ;;  %5863 = vst [vmem:[%s9585_s30 + $0x3e] sm:$0x1] %v5847_v42 }
 0xb4b   : > { %v8523_v51 = vpop.eup %8522  ;;  %v6120_v62 = vadd.f32 1.0, %v8521_v14  ;;  %8542 = vrcp.f32 %v6118_v19  ;;  %v6213_v19 = vrot.slane %v12145_v7, 2 }
 0xb4c   : > { %v8525_v13 = vpop.eup %8524  ;;  %v6121_v48 = vadd.f32 1.0, %v8523_v51  ;;  %8544 = vrcp.f32 %v6119_v25  ;;  %v6234_v51 = vrot.slane %v12137_v40, 3  ;;  %v6237_v40 = vrot.slane %v12145_v7, 3 }
 0xb4d   : > { %v8527_v0 = vpop.eup %8526  ;;  %8546 = vrcp.f32 %v6120_v62  ;;  %v6186_v58 = vadd.f32 1.0, %v8525_v13  ;;  %v6235_v13 = vrot.slane %v12139_v34, 3  ;;  %v6239_v34 = vrot.slane %v12147_v11, 3 }
 0xb4e   : > { %v8529_v33 = vpop.eup %8528  ;;  %8548 = vrcp.f32 %v6121_v48  ;;  %v6187_v39 = vadd.f32 1.0, %v8527_v0  ;;  %v6236_v0 = vrot.slane %v12143_v37, 3  ;;  %v6240_v37 = vrot.slane %v12149_v28, 3 }
 0xb4f   : > { %v8531_v6 = vpop.eup %8530  ;;  %8550 = vpow2.f32 %v7189_v31  ;;  %v6188_v24 = vadd.f32 1.0, %v8529_v33  ;;  %v6238_v33 = vrot.slane %v12141_v52, 3  ;;  %v7193_v41 = vmul.f32 -1.442695, %v6235_v13 }
 0xb50   : > { %v8533_v45 = vpop.eup %8532  ;;  %8552 = vpow2.f32 %v7190_v29  ;;  %v6189_v20 = vadd.f32 1.0, %v8531_v6  ;;  %v6241_v7 = vrot.slane %v12154_v5, 3  ;;  %v7197_v28 = vmul.f32 -1.442695, %v6239_v34 }
 0xb51   : > { %v12181_v36 = vpop.eup %8534  ;;  %8554 = vpow2.f32 %v7191_v9  ;;  %v6190_v4 = vadd.f32 1.0, %v8533_v45  ;;  %v7195_v45 = vmul.f32 -1.442695, %v6237_v40  ;;  %v7196_v30 = vmul.f32 -1.442695, %v6238_v33 }
 0xb52   : > { %v12184_v8 = vpop.eup %8536  ;;  %8556 = vrcp.f32 %v6186_v58  ;;  %v7192_v58 = vmul.f32 -1.442695, %v6234_v51  ;;  %v7198_v5 = vmul.f32 -1.442695, %v6240_v37 }
 0xb53   : > { %v12187_v27 = vpop.eup %8538  ;;  %8558 = vrcp.f32 %v6187_v39  ;;  %v7194_v39 = vmul.f32 -1.442695, %v6236_v0 }
 0xb54   : > { %v12191_v44 = vpop.eup %8540  ;;  %8560 = vrcp.f32 %v6188_v24 }
 0xb55   : > { %v12194_v1 = vpop.eup %8542  ;;  %8562 = vrcp.f32 %v6189_v20 }
 0xb56   : > { %v12197_v55 = vpop.eup %8544  ;;  %8564 = vrcp.f32 %v6190_v4 }
 0xb57   : > { %v12200_v31 = vpop.eup %8546  ;;  %8566 = vtanh.f32 %v6210_v47 }
 0xb58   : > { %v12203_v14 = vpop.eup %8548  ;;  %8568 = vtanh.f32 %v6211_v10 }
 0xb59   : > { %v8551_v25 = vpop.eup %8550  ;;  %8570 = vtanh.f32 %v6212_v18 }
 0xb5a   : > { %v8553_v46 = vpop.eup %8552  ;;  %v6191_v15 = vadd.f32 1.0, %v8551_v25  ;;  %8572 = vtanh.f32 %v6213_v19  ;;  %v7199_v19 = vmul.f32 -1.442695, %v6241_v7 }
 0xb5b   : > { %v8555_v62 = vpop.eup %8554  ;;  %v6192_v29 = vadd.f32 1.0, %v8553_v46  ;;  %8574 = vtanh.f32 %v6214_v3 }
 0xb5c   : > { %v8557_v48 = vpop.eup %8556  ;;  %v6193_v59 = vadd.f32 1.0, %v8555_v62  ;;  %8576 = vrcp.f32 %v6191_v15 }
 0xb5d   : > { %v8559_v9 = vpop.eup %8558  ;;  %8578 = vrcp.f32 %v6192_v29  ;;  %v6298_v56 = vmul.f32 %v8557_v48, %v11995_v49 }
 0xb5e   : > { %v8561_v63 = vpop.eup %8560  ;;  %8580 = vrcp.f32 %v6193_v59  ;;  %v6299_v52 = vmul.f32 %v8559_v9, %v11998_v2 }
 0xb5f   : > { %v8563_v16 = vpop.eup %8562  ;;  %8582 = vtanh.f32 %v6215_v60  ;;  %v6300_v20 = vmul.f32 %v8561_v63, %v12001_v38 }
 0xb60   : > { %v8565_v6 = vpop.eup %8564  ;;  %8584 = vtanh.f32 %v6216_v23  ;;  %v6301_v49 = vmul.f32 %v8563_v16, %v12003_v54 }
 0xb61   : > { %v8567_v12 = vpop.eup %8566  ;;  %8586 = vtanh.f32 %v6217_v50  ;;  %v6302_v25 = vmul.f32 %v8565_v6, %v12005_v32 }
 0xb62   : > { %v8569_v24 = vpop.eup %8568  ;;  %8588 = vpow2.f32 %v7192_v58  ;;  %v6306_v11 = vmul.f32 %v8567_v12, %v12181_v36 }
 0xb63   : > { %v8571_v42 = vpop.eup %8570  ;;  %8590 = vpow2.f32 %v7193_v41  ;;  %v6307_v4 = vmul.f32 %v8569_v24, %v12184_v8 }
 0xb64   : > { %v8573_v47 = vpop.eup %8572  ;;  %8592 = vpow2.f32 %v7194_v39  ;;  %v6308_v10 = vmul.f32 %v8571_v42, %v12187_v27  ;;  %v6314_v2 = vadd.f32 %v6306_v11, %v6298_v56 }
 0xb65   : > { %v8575_v18 = vpop.eup %8574  ;;  %8594 = vpow2.f32 %v7195_v45  ;;  %v6309_v36 = vmul.f32 %v8573_v47, %v12191_v44  ;;  %v6315_v3 = vadd.f32 %v6307_v4, %v6299_v52 }
 0xb66   : > { %v8577_v38 = vpop.eup %8576  ;;  %8596 = vpow2.f32 %v7196_v30  ;;  %v6316_v46 = vadd.f32 %v6308_v10, %v6300_v20  ;;  %v6310_v62 = vmul.f32 %v8575_v18, %v12194_v1 }
 0xb67   : > { %v8579_v8 = vpop.eup %8578  ;;  %8598 = vpow2.f32 %v7197_v28  ;;  %v6579_v54 = vcombine.low %v6314_v2, %v6315_v3  ;;  %v6317_v15 = vadd.f32 %v6309_v36, %v6301_v49  ;;  %v6303_v27 = vmul.f32 %v8577_v38, %v12018_v53 }
 0xb68   : > { %v8581_v51 = vpop.eup %8580  ;;  %8600 = vpow2.f32 %v7198_v5  ;;  %v6304_v44 = vmul.f32 %v8579_v8, %v12020_v43  ;;  %v6318_v32 = vadd.f32 %v6310_v62, %v6302_v25 }
 0xb69   : > { %v8583_v29 = vpop.eup %8582  ;;  %8602 = vpow2.f32 %v7199_v19  ;;  %v6580_v60 = vcombine.low %v6316_v46, %v6317_v15  ;;  %v6305_v59 = vmul.f32 %v8581_v51, %v12022_v17  ;;  %v6589_v9 = vrot.slane %v6579_v54, %v9766_v35 }
 0xb6a   : > { %v8585_v13 = vpop.eup %8584  ;;  %v6311_v48 = vmul.f32 %v8583_v29, %v12197_v55  ;;  %8604 = vtanh.f32 %v6314_v2 }
 0xb6b   : > { %v8587_v23 = vpop.eup %8586  ;;  %v6312_v0 = vmul.f32 %v8585_v13, %v12200_v31  ;;  %8606 = vtanh.f32 %v6315_v3  ;;  %v6596_v53 = vrot.slane %v6580_v60, %v9766_v35 }
 0xb6c   : > { %v8589_v1 = vpop.eup %8588  ;;  %v6313_v50 = vmul.f32 %v8587_v23, %v12203_v14  ;;  %v6319_v43 = vadd.f32 %v6311_v48, %v6303_v27  ;;  %8608 = vtanh.f32 %v6316_v46 }
 0xb6d   : > { %v8591_v40 = vpop.eup %8590  ;;  %v6274_v63 = vadd.f32 1.0, %v8589_v1  ;;  %v6320_v55 = vadd.f32 %v6312_v0, %v6304_v44  ;;  %8610 = vtanh.f32 %v6317_v15  ;;  %v6611_v33 = vcombine.low %v6589_v9, %v6596_v53 }
 0xb6e   : > { %v8593_v17 = vpop.eup %8592  ;;  %v6275_v58 = vadd.f32 1.0, %v8591_v40  ;;  %v6581_v16 = vcombine.low %v6318_v32, %v6319_v43  ;;  %v6321_v34 = vadd.f32 %v6313_v50, %v6305_v59  ;;  %8612 = vtanh.f32 %v6318_v32 }
 0xb6f   : > { %v8595_v31 = vpop.eup %8594  ;;  %v6276_v41 = vadd.f32 1.0, %v8593_v17  ;;  %8614 = vrcp.f32 %v6274_v63  ;;  %v6619_v28 = vrot.slane %v6611_v33, %v9766_v35 }
 0xb70   : > { %v8597_v6 = vpop.eup %8596  ;;  %v6277_v37 = vadd.f32 1.0, %v8595_v31  ;;  %8616 = vrcp.f32 %v6275_v58  ;;  %v6582_v39 = vcombine.low %v6320_v55, %v6321_v34  ;;  %v6603_v45 = vrot.slane %v6581_v16, %v9766_v35 }
 0xb71   : > { %v8599_v14 = vpop.eup %8598  ;;  %v6278_v56 = vadd.f32 1.0, %v8597_v6  ;;  %8618 = vrcp.f32 %v6276_v41 }
 0xb72   : > { %v8601_v12 = vpop.eup %8600  ;;  %v6279_v7 = vadd.f32 1.0, %v8599_v14  ;;  %8620 = vrcp.f32 %v6277_v37  ;;  %v6610_v52 = vrot.slane %v6582_v39, %v9766_v35 }
 0xb73   : > { %v8603_v24 = vpop.eup %8602  ;;  %v6280_v30 = vadd.f32 1.0, %v8601_v12  ;;  %8622 = vrcp.f32 %v6278_v56 }
 0xb74   : > { %v8605_v11 = vpop.eup %8604  ;;  %v6281_v20 = vadd.f32 1.0, %v8603_v24  ;;  %8624 = vrcp.f32 %v6279_v7  ;;  %v6612_v42 = vcombine.low %v6603_v45, %v6610_v52 }
 0xb75   : > { %v8607_v4 = vpop.eup %8606  ;;  %8626 = vrcp.f32 %v6280_v30 }
 0xb76   : > { %v8609_v49 = vpop.eup %8608  ;;  %8628 = vrcp.f32 %v6281_v20  ;;  %v6626_v47 = vrot.slane %v6612_v42, %v9766_v35 }
 0xb77   : > { %v8611_v5 = vpop.eup %8610  ;;  %8630 = vtanh.f32 %v6319_v43 }
 0xb78   : > { %v8613_v10 = vpop.eup %8612  ;;  %8632 = vtanh.f32 %v6320_v55  ;;  %v6627_v2 = vcombine.low %v6619_v28, %v6626_v47 }
 0xb79   : > { %v8615_v18 = vpop.eup %8614  ;;  %8634 = vtanh.f32 %v6321_v34 }
 0xb7a   : > { %v8617_v19 = vpop.eup %8616  ;;  %v6330_v36 = vmul.f32 %v8615_v18, %v8605_v11  ;;  %6629 = vst [vmem:[#allocation3] sm:$0xff] %v6627_v2 }
 0xb7b   : > { %v8619_v3 = vpop.eup %8618  ;;  %v6331_v38 = vmul.f32 %v8617_v19, %v8607_v4 }
 0xb7c   : > { %v8621_v25 = vpop.eup %8620  ;;  %v6332_v46 = vmul.f32 %v8619_v3, %v8609_v49 }
 0xb7d   : > { %v8623_v8 = vpop.eup %8622  ;;  %v6333_v54 = vmul.f32 %v8621_v25, %v8611_v5  ;;  %v6346_v15 = vcombine.low %v6330_v36, %v6331_v38 }
 0xb7e   : > { %v8625_v51 = vpop.eup %8624  ;;  %v6334_v44 = vmul.f32 %v8623_v8, %v8613_v10 }
 0xb7f   : > { %v8627_v27 = vpop.eup %8626  ;;  %v6347_v62 = vcombine.low %v6332_v46, %v6333_v54  ;;  %v6356_v13 = vrot.slane %v6346_v15, %v9766_v35 }
 0xb80   : > { %v8629_v29 = vpop.eup %8628 }
 0xb81   : > { %v8631_v60 = vpop.eup %8630  ;;  %v6363_v48 = vrot.slane %v6347_v62, %v9766_v35 }
 0xb82   : > { %v8633_v32 = vpop.eup %8632  ;;  %v6335_v59 = vmul.f32 %v8631_v60, %v8625_v51 }
 0xb83   : > { %v8635_v23 = vpop.eup %8634  ;;  %v6336_v0 = vmul.f32 %v8633_v32, %v8627_v27  ;;  %v6378_v9 = vcombine.low %v6356_v13, %v6363_v48 }
 0xb84   : > { %v6337_v53 = vmul.f32 %v8635_v23, %v8629_v29  ;;  %v6348_v1 = vcombine.low %v6334_v44, %v6335_v59 }
 0xb85   : > { %v6386_v55 = vrot.slane %v6378_v9, %v9766_v35 }
 0xb86   : > { %v6349_v50 = vcombine.low %v6336_v0, %v6337_v53  ;;  %v6370_v43 = vrot.slane %v6348_v1, %v9766_v35 }
 0xb88   : > { %v6377_v40 = vrot.slane %v6349_v50, %v9766_v35 }
 0xb8a   : > { %v6379_v63 = vcombine.low %v6370_v43, %v6377_v40 }
 0xb8c   : > { %v6393_v33 = vrot.slane %v6379_v63, %v9766_v35 }
 0xb8e   : > { %v6394_v17 = vcombine.low %v6386_v55, %v6393_v33 }
 0xb90   : > { %v6396_v58 = vpack.c.bf16 %v6394_v17, %v6394_v17  ;;  %6570 = vst [vmem:[#allocation2] sm:$0xff] %v6394_v17 }
 0xb92   : > { %6431 = vmatmul.mubr.bf16.vlgmr.msra.gmra.mrb[60].mxu0 %v6396_v58  ;;  %6472 = vmatmul.mubr.bf16.vlgmr.msra.gmra.mrb[60].mxu1 %v6396_v58 }
 0xc65   : > { %v6432_v16 = vpop.f32.mrb[60].mxu0  ;;  %v6473_v34 = vpop.f32.mrb[60].mxu1 }
 0xc66   : > { %v6433_v31 = vadd.f32 %v12103_v26, %v6432_v16  ;;  %v6434_v41 = vpop.f32.mrb[61].mxu0  ;;  %v6475_v6 = vpop.f32.mrb[61].mxu1  ;;  %v6474_v30 = vadd.f32 %v12111_v22, %v6473_v34 }
 0xc67   : > { %v6435_v37 = vadd.f32 %v12107_v57, %v6434_v41  ;;  %v6436_v39 = vpop.f32.mrb[62].mxu0  ;;  %v6477_v14 = vpop.f32.mrb[62].mxu1  ;;  %v6476_v52 = vadd.f32 %v12115_v61, %v6475_v6 }
 0xc68   : > { %v7200_v56 = vmul.f32 -1.442695, %v6433_v31  ;;  %v6437_v12 = vpop.f32.mrb[63].mxu0  ;;  %v6478_v7 = vpop.f32.mrb[63].mxu1 }
 0xc69   : > { %v7201_v45 = vmul.f32 -1.442695, %v6435_v37  ;;  %v7202_v24 = vmul.f32 -1.442695, %v6476_v52 }
 0xc6a   : > { %8636 = vpow2.f32 %v7200_v56 }
 0xc6b   : > { %8638 = vpow2.f32 %v7201_v45 }
 0xc6c   : > { %8640 = vpow2.f32 %v7202_v24 }
 0xc6d   : > { %8642 = vtanh.f32 %v6474_v30 }
 0xc74   : > { %v8637_v11 = vpop.eup %8636 }
 0xc75   : > { %v8639_v20 = vpop.eup %8638  ;;  %v6483_v26 = vadd.f32 1.0, %v8637_v11 }
 0xc76   : > { %v6489_v42 = vadd.f32 1.0, %v8639_v20  ;;  %v8641_v57 = vpop.eup %8640 }
 0xc77   : > { %8644 = vrcp.f32 %v6483_v26  ;;  %v8643_v28 = vpop.eup %8642  ;;  %v6496_v5 = vadd.f32 1.0, %v8641_v57 }
 0xc78   : > { %8646 = vrcp.f32 %v6489_v42 }
 0xc79   : > { %8648 = vrcp.f32 %v6496_v5 }
 0xc81   : > { %v8645_v4 = vpop.eup %8644 }
 0xc82   : > { %v8647_v49 = vpop.eup %8646  ;;  %v6500_v47 = vmul.f32 %v8645_v4, %v8643_v28 }
 0xc83   : > { %v6499_v61 = vmul.f32 %v8647_v49, %v12119_v21  ;;  %v8649_v10 = vpop.eup %8648 }
 0xc85   : > { %v6501_v22 = vadd.f32 %v6500_v47, %v6499_v61 }
 0xc87   : > { %8650 = vtanh.f32 %v6501_v22  ;;  %6631 = vst [vmem:[#allocation5] sm:$0xff] %v6501_v22 }
 0xc91   : > { %v8651_v2 = vpop.eup %8650 }
 0xc92   : > { %v6503_v18 = vmul.f32 %v8651_v2, %v8649_v10 }
 0xc94   : > { %v6505_v19 = vcombine.high %v6503_v18, %v6503_v18  ;;  %v6512_v36 = vrot.slane %v6503_v18, %v9766_v35  ;;  %6630 = vst [vmem:[#allocation4] sm:$0xff] %v6503_v18 }
 0xc96   : > { %v6519_v21 = vrot.slane %v6505_v19, %v9766_v35  ;;  %v6520_v3 = vcombine.high %v6512_v36, %v6512_v36  ;;  %v6528_v38 = vrot.slane %v6512_v36, %v9766_v35  ;;  %7203 = vst.sshfl [vmem:[%s9585_s30 + $0x7] sm:$0x1 pattern:$0x73625140] %v6512_v36 }
 0xc98   : > { %v6521_v25 = vcombine.high %v6519_v21, %v6519_v21  ;;  %v6535_v46 = vrot.slane %v6519_v21, %v9766_v35  ;;  %v6542_v8 = vrot.slane %v6520_v3, %v9766_v35  ;;  %v6550_v54 = vcombine.high %v6528_v38, %v6528_v38  ;;  %7204 = vst.sshfl [vmem:[%s9585_s30 + $0xf] sm:$0x1 pattern:$0x73625140] %v6520_v3 }
 0xc99   : > { %7205 = vst.sshfl [vmem:[%s9585_s30 + $0x27] sm:$0x1 pattern:$0x73625140] %v6519_v21 }
 0xc9a   : > { %v6549_v15 = vrot.slane %v6521_v25, %v9766_v35  ;;  %v6551_v51 = vcombine.high %v6535_v46, %v6535_v46  ;;  %v6552_v27 = vcombine.high %v6542_v8, %v6542_v8  ;;  %6564 = vst [vmem:[%s9585_s30 + $0x17] sm:$0x1] %v6550_v54  ;;  %7206 = vst.sshfl [vmem:[%s9585_s30 + $0x2f] sm:$0x1 pattern:$0x73625140] %v6521_v25 }
 0xc9c   : > { %v6553_v62 = vcombine.high %v6549_v15, %v6549_v15  ;;  %6565 = vst [vmem:[%s9585_s30 + $0x1f] sm:$0x1] %v6552_v27  ;;  %6568 = vst [vmem:[%s9585_s30 + $0x37] sm:$0x1] %v6551_v51 }
 0xc9e   : > { %6569 = vst [vmem:[%s9585_s30 + $0x3f] sm:$0x1] %v6553_v62 }
 0xc9f   : > { %9119 = shalt.err (!%p9116_p5)
}
 0xca0   : > { %s9120_s0 = scalar_lea.hbm %s12268_s13, 1024  ;;  %s9124_s10 = scalar_lea.hbm %s13066_s27, 4096 }
 0xca1   : > { %p9121_p9 = scmp.ne.s32.totalorder %s12268_s13, %s9120_s0  ;;  %p9125_p8 = scmp.lt.u32.totalorder %s12268_s13, %s13066_s27 }
 0xca2   : > { %p9126_p2 = scmp.lt.u32.totalorder %s9124_s10, %s9120_s0  ;;  %p9128_p10 = scmp.lt.u32.totalorder %s9120_s0, %s12268_s13 }
 0xca3   : > { %p9122_p0 = pnand %p9121_p9, %p13067_p12 }
 0xca4   : > { %p9127_p4 = por %p9126_p2, %p9125_p8 }
 0xca5   : > { %p9123_p3 = pneg %p9122_p0 }
 0xca6   : > { %p9129_p1 = por %p9128_p10, %p9127_p4 }
 0xca8   : > { %p9130_p7 = pnand %p9129_p1, %p9123_p3 }
 0xcaa   : > { %9133 = shalt.err (!%p9130_p7)
}
 0xcab   : > { %s9251_s28 = smov 128   ;;  %s9252_s8 = smov 256  }
 0xcac   : > { %s9253_s21 = smov 8  }
 0xcad   : > { %7228 = dma.vmem_to_hbm [thread:$0]  (%p13067_p12), %s12263_s18, 1024, %s12268_s13, %s6633_s6, %s9251_s28, %s9252_s8, %s9253_s21  }
 0xcae PF: > { %s13068_s22 = sld [smem:[#allocation19_spill]]  ;;  %s13069_s15 = sld [smem:[#allocation21_spill]] }
 0xcaf   : > { %p7253_p13 = scmp.ge.s32.totalorder %s9236_s25, 2 }
 0xcb4   : > { %s6663_s7 = sand.u32 1, %s13068_s22   ;;  %p13070_p6 = scmp.ne.s32.totalorder %s13069_s15, 0 }
 0xcb5   : > { %s6664_s2 = scalar_lea.sflag [#allocation8], %s6663_s7 }
 0xcb6   : > { %p7245_p11 = pnand %p7253_p13, %p13070_p6 }
 0xcb8   : > { %9191 = dma.done.wait (!%p7245_p11), %s6664_s2, 1024  }
 0xcb9   : > { %9193 = vsyncadd (!%p7245_p11), %s6664_s2, 4294966272  ;;  %s24_s25 = sadd.s32 1, %s9236_s25   ;;  %s13071_s21 = sld [smem:[#allocation20_spill]] }
 0xcba   : > { %p21_p5 = scmp.ge.s32.totalorder %s24_s25, 6   ;;  %s13072_s23 = sld [smem:[#allocation22_spill]] }
 0xcbb   : > { %s13073_s15 = smov %s9200_s16  ;;  %s13074_s16 = smov %s9204_s17 }
 0xcbc   : > { %s13075_s17 = smov %s9512_s11  ;;  %s13076_s18 = smov %s9212_s19 }
 0xcbd   : > { %s13077_s19 = smov %s9216_s20  ;;  %s13078_s20 = smov %s9517_s12 }
 0xcbe   : > { %s13079_s22 = smov %s9232_s24  ;;  %s13080_s24 = smov %s13086_s4 }
 0xcbf   :  { %23 = sbr.rel (!%p21_p5) target bundleno = 17 (0x11), region = 169 }
 0xcc6   :  { %6669 = vsyncpa [#allocation7], 1 }
 0xcc7   :  { %6671 = vsyncpa [#allocation7 + $0x1], 1 }
 0xcc8   :  { %6672 = vsyncpa [#allocation10], 1 }
 0xcc9   :  { %6673 = vsyncpa [#allocation13], 1 }
 0xcca   :  { %6675 = vsyncpa [#allocation13 + $0x1], 1 }
 0xccb   :  { %6676 = vsyncpa [#allocation8], 1 }
 0xccc   :  { %6678 = vsyncpa [#allocation8 + $0x1], 1 }

</bundles_post_ra>
